<compile_context>
chip_gen: v7x
topology: tpu7x:2x2x1
jax: 0.10.0
libtpu: 0.0.40
codegen_flags: <defaults>
</compile_context>

<pallas_src>
import functools
import math

import jax
import jax.numpy as jnp
from jax.experimental import pallas as pl
from jax.experimental.pallas import tpu as pltpu


def _round_up(x, m):
    return ((x + m - 1) // m) * m


# --------------------------------------------------------------------------------------
# Elementwise helpers (f32 on VPU/EUP inside GEMM epilogues)
# --------------------------------------------------------------------------------------
def _erf_f32(x):
    # Abramowitz & Stegun 7.1.26 polynomial (|err| < 1.5e-7): uses only exp + basic
    # arithmetic so it lowers cleanly in Mosaic; matches exact-erf GELU to f32 precision.
    p = 0.3275911
    a1, a2, a3, a4, a5 = 0.254829592, -0.284496736, 1.421413741, -1.453152027, 1.061405429
    sgn = jnp.where(x >= 0.0, 1.0, -1.0)
    ax = jnp.abs(x)
    t = 1.0 / (1.0 + p * ax)
    poly = ((((a5 * t + a4) * t + a3) * t + a2) * t + a1) * t
    return sgn * (1.0 - poly * jnp.exp(-ax * ax))


def _gelu_exact(x):
    return 0.5 * x * (1.0 + _erf_f32(x * 0.7071067811865475))


# --------------------------------------------------------------------------------------
# Fused GEMM kernel:  out = [res +] act((LN(x) @ w) * scale + bias) [/ skip_lam]
# --------------------------------------------------------------------------------------
def _make_gemm_kernel(has_ln, act, has_residual, inv_skip, eps=1e-5):
    def kernel(*refs):
        i = 0
        x = refs[i][...].astype(jnp.float32); i += 1
        if has_ln:
            g = refs[i][...]; i += 1
            b_ln = refs[i][...]; i += 1
            mu = jnp.mean(x, axis=-1, keepdims=True)
            var = jnp.mean(jnp.square(x - mu), axis=-1, keepdims=True)
            x = (x - mu) * jax.lax.rsqrt(var + eps) * g + b_ln
        w = refs[i][...]; i += 1
        s = refs[i][...]; i += 1
        b = refs[i][...]; i += 1
        # bf16 MXU inputs, f32 accumulation; all elementwise math stays f32.
        y = jnp.dot(x.astype(jnp.bfloat16), w, preferred_element_type=jnp.float32)
        y = y * s + b
        if act == "relu":
            y = jnp.maximum(y, 0.0)
        elif act == "gelu":
            y = _gelu_exact(y)
        if has_residual:
            r = refs[i][...]; i += 1
            y = r + y * inv_skip
        refs[i][...] = y
    return kernel


def pallas_gemm(x, w, *, scale=None, bias=None, ln=None, act="none",
                residual=None, skip_lam=None, tm=256, tn_max=512):
    """x:[M,K] f32, w:[K,N] -> [M,N] f32, with optional fused LN prologue / epilogues."""
    x = x.astype(jnp.float32)
    M, K = x.shape
    N = w.shape[1]
    if scale is None:
        scale = jnp.ones((N,), jnp.float32)
    if bias is None:
        bias = jnp.zeros((N,), jnp.float32)

    tm = min(tm, _round_up(M, 8))          # multiple of 8 (sublane), big MXU-friendly rows
    tn = N if N <= tn_max else (tn_max // 128) * 128   # full N or a multiple of 128
    grid = (pl.cdiv(M, tm), pl.cdiv(N, tn))

    inputs = [x]
    in_specs = [pl.BlockSpec((tm, K), lambda i, j: (i, 0))]
    if ln is not None:
        g, b_ln = ln
        inputs += [g.reshape(1, K).astype(jnp.float32), b_ln.reshape(1, K).astype(jnp.float32)]
        in_specs += [pl.BlockSpec((1, K), lambda i, j: (0, 0)),
                     pl.BlockSpec((1, K), lambda i, j: (0, 0))]
    inputs += [w.astype(jnp.bfloat16),
               scale.reshape(1, N).astype(jnp.float32),
               bias.reshape(1, N).astype(jnp.float32)]
    in_specs += [pl.BlockSpec((K, tn), lambda i, j: (0, j)),
                 pl.BlockSpec((1, tn), lambda i, j: (0, j)),
                 pl.BlockSpec((1, tn), lambda i, j: (0, j))]
    inv_skip = 1.0
    if residual is not None:
        inv_skip = 1.0 / float(skip_lam if skip_lam is not None else 1.0)
        inputs.append(residual.astype(jnp.float32))
        in_specs.append(pl.BlockSpec((tm, tn), lambda i, j: (i, j)))

    kernel = _make_gemm_kernel(ln is not None, act, residual is not None, inv_skip)
    # TODO(synk): add K-tiling with a VMEM accumulator + pl.when init/finalize (and an
    # explicit vmem_limit_bytes for v7x's 64 MiB VMEM) once K*N weight blocks outgrow VMEM;
    # unnecessary at LV-ViT-small scales where the full (K, tn) weight block fits easily.
    return pl.pallas_call(
        kernel,
        out_shape=jax.ShapeDtypeStruct((M, N), jnp.float32),
        grid=grid,
        in_specs=in_specs,
        out_specs=pl.BlockSpec((tm, tn), lambda i, j: (i, j)),
        compiler_params=pltpu.CompilerParams(
            dimension_semantics=("parallel", "parallel")),
    )(*inputs)


# --------------------------------------------------------------------------------------
# Standalone LayerNorm (only used where the full normalized tensor is actually consumed)
# --------------------------------------------------------------------------------------
def _layernorm_kernel(x_ref, g_ref, b_ref, o_ref, *, eps):
    x = x_ref[...]
    mu = jnp.mean(x, axis=-1, keepdims=True)
    var = jnp.mean(jnp.square(x - mu), axis=-1, keepdims=True)
    y = (x - mu) * jax.lax.rsqrt(var + eps)
    o_ref[...] = y * g_ref[...] + b_ref[...]


def pallas_layernorm(x2d, gamma, beta, eps=1e-5, tm=256):
    x2d = x2d.astype(jnp.float32)
    M, D = x2d.shape
    tm = min(tm, _round_up(M, 8))
    return pl.pallas_call(
        functools.partial(_layernorm_kernel, eps=eps),
        out_shape=jax.ShapeDtypeStruct((M, D), jnp.float32),
        grid=(pl.cdiv(M, tm),),
        in_specs=[pl.BlockSpec((tm, D), lambda i: (i, 0)),
                  pl.BlockSpec((1, D), lambda i: (0, 0)),
                  pl.BlockSpec((1, D), lambda i: (0, 0))],
        out_specs=pl.BlockSpec((tm, D), lambda i: (i, 0)),
        compiler_params=pltpu.CompilerParams(dimension_semantics=("parallel",)),
    )(x2d, gamma.reshape(1, D).astype(jnp.float32), beta.reshape(1, D).astype(jnp.float32))


# --------------------------------------------------------------------------------------
# Attention: several heads per grid step, softmax stats in f32, no attention-map output
# --------------------------------------------------------------------------------------
def _attention_kernel(q_ref, k_ref, v_ref, o_ref, *, scale):
    q = q_ref[...]
    k = k_ref[...]
    v = v_ref[...]
    s = jnp.einsum("hqd,hkd->hqk", q, k, preferred_element_type=jnp.float32) * scale
    s = s - jnp.max(s, axis=-1, keepdims=True)
    e = jnp.exp(s)
    l = jnp.sum(e, axis=-1, keepdims=True)
    p = e * pl.reciprocal(l, approx=True)          # EUP reciprocal instead of VPU divide
    o_ref[...] = jnp.einsum("hqk,hkd->hqd", p.astype(jnp.bfloat16), v,
                            preferred_element_type=jnp.float32)


def pallas_attention(q, k, v, scale, hc_max=8):
    """q,k,v: [B*H, N, Dh] -> out [B*H, N, Dh] (float32). Attention matrix is NOT emitted."""
    BH, N, Dh = q.shape
    # heads per grid step: amortize per-step overhead while keeping scores in VMEM budget
    budget = max(1, (2 << 20) // max(1, N * N * 4))
    hc = max(1, min(BH, hc_max, budget))
    return pl.pallas_call(
        functools.partial(_attention_kernel, scale=scale),
        out_shape=jax.ShapeDtypeStruct((BH, N, Dh), jnp.float32),
        grid=(pl.cdiv(BH, hc),),
        in_specs=[pl.BlockSpec((hc, N, Dh), lambda i: (i, 0, 0))] * 3,
        out_specs=pl.BlockSpec((hc, N, Dh), lambda i: (i, 0, 0)),
        compiler_params=pltpu.CompilerParams(dimension_semantics=("parallel",)),
    )(q.astype(jnp.bfloat16), k.astype(jnp.bfloat16), v.astype(jnp.bfloat16))


# --------------------------------------------------------------------------------------
# Conv (im2col + fused Pallas GEMM), patch embedding, transformer modules
# --------------------------------------------------------------------------------------
def conv2d_pallas(x_nchw, w_oihw, stride, padding, scale=None, shift=None, act="none"):
    B, C, H, W = x_nchw.shape
    Cout, Cin, kh, kw = w_oihw.shape
    # feature dim is channel-major: idx = c*(kh*kw) + i*kw + j (matches torch
    # weight.reshape(Cout, Cin*kh*kw))
    patches = jax.lax.conv_general_dilated_patches(
        x_nchw, (kh, kw), (stride, stride),
        padding=[(padding, padding), (padding, padding)],
        dimension_numbers=("NCHW", "OIHW", "NCHW"))
    _, F, Ho, Wo = patches.shape
    cols = patches.reshape(B, F, Ho * Wo).transpose(0, 2, 1).reshape(B * Ho * Wo, F)
    w2d = w_oihw.reshape(Cout, F).T
    y = pallas_gemm(cols, w2d, scale=scale, bias=shift, act=act)
    return y.reshape(B, Ho, Wo, Cout).transpose(0, 3, 1, 2)  # back to NCHW


def patch_embed_forward(x_nchw, p, patch_size):
    """MultiResoPatchEmbed4_2: conv7x7/s2 -> BN -> ReLU -> 2x(conv3x3 -> BN -> ReLU) -> proj."""
    eps = 1e-5

    def bn_fold(bn):
        s = bn["w"] / jnp.sqrt(bn["var"] + eps)
        t = bn["b"] - bn["mean"] * s
        return s, t

    s1, t1 = bn_fold(p["bn1"])
    x = conv2d_pallas(x_nchw, p["conv1_w"], stride=2, padding=3, scale=s1, shift=t1, act="relu")
    s2, t2 = bn_fold(p["bn2"])
    x = conv2d_pallas(x, p["conv2_w"], stride=1, padding=1, scale=s2, shift=t2, act="relu")
    s3, t3 = bn_fold(p["bn3"])
    x = conv2d_pallas(x, p["conv3_w"], stride=1, padding=1, scale=s3, shift=t3, act="relu")
    ps2 = patch_size // 2
    x = conv2d_pallas(x, p["proj_w"], stride=ps2, padding=0, scale=None, shift=p["proj_b"])
    return x  # [B, embed_dim, H/patch, W/patch]


def block_forward(x, p, num_heads, head_dim, skip_lam):
    # TODO(synk): DropPath / Dropout are identity at rate 0 (eval mode) and omitted.
    B, N, D = x.shape
    x2d = x.reshape(B * N, D)
    scale = head_dim ** -0.5
    # LN1 fused as row-wise prologue of the qkv GEMM (qkv_bias=False)
    qkv = pallas_gemm(x2d, p["qkv_w"], ln=(p["ln1_w"], p["ln1_b"]))
    qkv = qkv.reshape(B, N, 3, num_heads, head_dim)
    q = qkv[:, :, 0].transpose(0, 2, 1, 3).reshape(B * num_heads, N, head_dim)
    k = qkv[:, :, 1].transpose(0, 2, 1, 3).reshape(B * num_heads, N, head_dim)
    v = qkv[:, :, 2].transpose(0, 2, 1, 3).reshape(B * num_heads, N, head_dim)
    attn_out = pallas_attention(q, k, v, scale)
    attn_out = attn_out.reshape(B, num_heads, N, head_dim).transpose(0, 2, 1, 3)
    attn_out = attn_out.reshape(B * N, num_heads * head_dim)
    # proj GEMM with fused residual:  x = x + proj(attn_out) / skip_lam
    x2d = pallas_gemm(attn_out, p["proj_w"], bias=p["proj_b"],
                      residual=x2d, skip_lam=skip_lam)
    # LN2 fused into fc1 + fused exact GELU; fc2 with fused residual
    h = pallas_gemm(x2d, p["mlp"]["fc1_w"], bias=p["mlp"]["fc1_b"],
                    ln=(p["ln2_w"], p["ln2_b"]), act="gelu")
    x2d = pallas_gemm(h, p["mlp"]["fc2_w"], bias=p["mlp"]["fc2_b"],
                      residual=x2d, skip_lam=skip_lam)
    return x2d.reshape(B, N, D)


def tokens_from_map(x_nchw):
    B, C, H, W = x_nchw.shape
    return x_nchw.reshape(B, C, H * W).transpose(0, 2, 1)  # == flatten(2).transpose(1,2)


def nearest_resize_nchw(x, out_h, out_w):
    B, C, H, W = x.shape
    ridx = (jnp.arange(out_h) * H) // out_h  # torch 'nearest': floor(dst * in/out)
    cidx = (jnp.arange(out_w) * W) // out_w
    return x[:, :, ridx][:, :, :, cidx]


# --------------------------------------------------------------------------------------
# CF_LV_ViT forward (eval path)
# --------------------------------------------------------------------------------------
def cf_lv_vit_forward(params, xx, cfg):
    results = []
    D = cfg["embed_dim"]
    H, hd, skip_lam = cfg["num_heads"], cfg["head_dim"], cfg["skip_lam"]
    ncls = cfg["num_classes"]

    # ----- stage 1: coarse image -----
    x_map = patch_embed_forward(xx[0], params["patch_embed"], cfg["patch_size"])
    x = tokens_from_map(x_map)
    B = x.shape[0]
    cls = jnp.broadcast_to(params["cls_token"], (B, 1, D))
    x = jnp.concatenate([cls, x], axis=1)
    x = x + params["pos_embed"][0]
    # TODO(synk): the global_attention EMA only feeds the informative_selection /
    # early-exit branches (disabled in this eval forward), so per-block [B,H,N,N]
    # attention maps are intentionally not materialized.
    for bp in params["blocks"]:
        x = block_forward(x, bp, H, hd, skip_lam)
    BN = x.shape[0] * x.shape[1]
    x = pallas_layernorm(x.reshape(BN, D), params["norm_w"], params["norm_b"]).reshape(x.shape)
    first_stage_output = x
    x_cls = pallas_gemm(x[:, 0], params["head_w"], bias=params["head_b"])[:, :ncls]
    results.append(x_cls)

    # ----- stage 2: fine image -----
    x_map = patch_embed_forward(xx[1], params["patch_embed"], cfg["patch_size"])
    x = tokens_from_map(x_map)
    x = jnp.concatenate([jnp.broadcast_to(params["cls_token"], (B, 1, D)), x], axis=1)

    feat = first_stage_output[:, 1:, :]                       # [B, N1, D]
    Bf, N1, C = feat.shape
    # reuse_block = LN -> Mlp(fc1, GELU, fc2): LN + GELU fused into the fc1 GEMM
    f2 = pallas_gemm(feat.reshape(Bf * N1, C), params["reuse_mlp"]["fc1_w"],
                     bias=params["reuse_mlp"]["fc1_b"],
                     ln=(params["reuse_ln_w"], params["reuse_ln_b"]), act="gelu")
    f2 = pallas_gemm(f2, params["reuse_mlp"]["fc2_w"], bias=params["reuse_mlp"]["fc2_b"])
    f2 = f2.reshape(Bf, N1, C)
    hw = int(math.isqrt(N1))
    fmap = f2.transpose(0, 2, 1).reshape(Bf, C, hw, hw)       # [B, C, sqrt(N1), sqrt(N1)]
    fmap = nearest_resize_nchw(fmap, cfg["patch_h"], cfg["patch_w"])
    feature_temp = fmap.reshape(Bf, C, cfg["patch_h"] * cfg["patch_w"]).transpose(0, 2, 1)
    feature_temp = jnp.concatenate([jnp.zeros((Bf, 1, C), jnp.float32), feature_temp], axis=1)

    x = x + feature_temp
    x = x + params["pos_embed"][1]
    # TODO(synk): informative_selection branch (argsort-based token gather) not implemented;
    # the module defaults to informative_selection=False so forward() never takes it.
    for bp in params["blocks"]:
        x = block_forward(x, bp, H, hd, skip_lam)
    # Stage-2 final norm is only consumed through the cls token, so fuse it as the LN
    # prologue of the classifier-head GEMM (saves a full-tensor LayerNorm pass).
    x_cls = pallas_gemm(x[:, 0], params["head_w"], bias=params["head_b"],
                        ln=(params["norm_w"], params["norm_b"]))[:, :ncls]
    results.append(x_cls)
    return results


# --------------------------------------------------------------------------------------
# Deterministic synthetic parameter init (shapes follow CF_LV_ViT.__init__)
# --------------------------------------------------------------------------------------
def init_params(key, cfg):
    D = cfg["embed_dim"]
    H, hd = cfg["num_heads"], cfg["head_dim"]
    hidden = int(cfg["mlp_ratio"] * D)
    mid = 64  # PatchEmbed4_2 intermediate conv channels
    ks = iter(jax.random.split(key, 64))

    def tn(k, shape):  # ~trunc_normal(std=0.02), deterministic
        return 0.02 * jax.random.normal(k, shape, jnp.float32)

    def bn_params(c):
        return dict(w=jnp.ones((c,), jnp.float32), b=jnp.zeros((c,), jnp.float32),
                    mean=jnp.zeros((c,), jnp.float32), var=jnp.ones((c,), jnp.float32))

    ps2 = cfg["patch_size"] // 2
    patch_embed = dict(
        conv1_w=tn(next(ks), (mid, cfg["in_chans"], 7, 7)), bn1=bn_params(mid),
        conv2_w=tn(next(ks), (mid, mid, 3, 3)), bn2=bn_params(mid),
        conv3_w=tn(next(ks), (mid, mid, 3, 3)), bn3=bn_params(mid),
        proj_w=tn(next(ks), (D, mid, ps2, ps2)), proj_b=jnp.zeros((D,), jnp.float32),
    )
    blocks = []
    for _ in range(cfg["depth"]):
        blocks.append(dict(
            ln1_w=jnp.ones((D,), jnp.float32), ln1_b=jnp.zeros((D,), jnp.float32),
            qkv_w=tn(next(ks), (D, 3 * H * hd)),            # stored [in, out]
            proj_w=tn(next(ks), (H * hd, D)), proj_b=jnp.zeros((D,), jnp.float32),
            ln2_w=jnp.ones((D,), jnp.float32), ln2_b=jnp.zeros((D,), jnp.float32),
            mlp=dict(fc1_w=tn(next(ks), (D, hidden)), fc1_b=jnp.zeros((hidden,), jnp.float32),
                     fc2_w=tn(next(ks), (hidden, D)), fc2_b=jnp.zeros((D,), jnp.float32)),
        ))
    num_patches_list = [(s // cfg["patch_size"]) ** 2 for s in cfg["img_size_list"]]
    # classifier head padded with zero columns to a lane-dense multiple of 128 (inert)
    ncls = cfg["num_classes"]
    ncls_pad = _round_up(max(ncls, 128), 128)
    head_w = jnp.pad(tn(next(ks), (D, ncls)), ((0, 0), (0, ncls_pad - ncls)))
    head_b = jnp.zeros((ncls_pad,), jnp.float32)
    return dict(
        patch_embed=patch_embed,
        cls_token=tn(next(ks), (1, 1, D)),
        pos_embed=[tn(next(ks), (1, n + 1, D)) for n in num_patches_list],
        blocks=blocks,
        norm_w=jnp.ones((D,), jnp.float32), norm_b=jnp.zeros((D,), jnp.float32),
        head_w=head_w, head_b=head_b,
        reuse_ln_w=jnp.ones((D,), jnp.float32), reuse_ln_b=jnp.zeros((D,), jnp.float32),
        reuse_mlp=dict(fc1_w=tn(next(ks), (D, hidden)), fc1_b=jnp.zeros((hidden,), jnp.float32),
                       fc2_w=tn(next(ks), (hidden, D)), fc2_b=jnp.zeros((D,), jnp.float32)),
    )


if __name__ == "__main__":
    # Small config consistent with the module (coarse/fine dual-resolution input).
    # embed_dim=128 keeps the token feature dim lane-dense (multiple of 128) while small.
    cfg = dict(
        img_size_list=[8, 16], patch_size=4, in_chans=3, num_classes=10,
        embed_dim=128, depth=2, num_heads=4, mlp_ratio=2.0, skip_lam=1.0,
        # beta_2 / target_index only matter for the disabled informative_selection path.
        beta_2=0.99, target_index=[3, 4, 5, 6, 7, 8, 9, 10, 11, 12, 13, 14, 15],
    )
    cfg["head_dim"] = cfg["embed_dim"] // cfg["num_heads"]
    cfg["patch_h"] = cfg["img_size_list"][1] // cfg["patch_size"]
    cfg["patch_w"] = cfg["img_size_list"][1] // cfg["patch_size"]

    key = jax.random.PRNGKey(0)
    kp, k0, k1 = jax.random.split(key, 3)
    params = init_params(kp, cfg)

    # TODO(synk): mix_token CutMix path uses host-side numpy RNG and only runs in training;
    # this script reproduces the eval forward (mix_token disabled).
    x_coarse = jax.random.normal(k0, (2, 3, 8, 8), jnp.float32)     # xx[0], NCHW
    x_fine = jax.random.normal(k1, (2, 3, 16, 16), jnp.float32)     # xx[1], NCHW

    fwd = jax.jit(lambda p, xc, xf: cf_lv_vit_forward(p, (xc, xf), cfg))
    results = fwd(params, x_coarse, x_fine)
    results = jax.block_until_ready(results)
    assert results[0].shape == (2, cfg["num_classes"])
    assert results[1].shape == (2, cfg["num_classes"])
    assert all(bool(jnp.all(jnp.isfinite(r))) for r in results)
    print("KERNEL_OK")
</pallas_src>

<mosaic_0001>
module attributes {stable_mosaic.version = 11 : i64} {
  func.func @kernel(%arg0: i32, %arg1: i32, %arg2: memref<32x147xf32, #tpu.memory_space<vmem>>, %arg3: memref<147x64xbf16, #tpu.memory_space<vmem>>, %arg4: memref<1x64xf32, #tpu.memory_space<vmem>>, %arg5: memref<1x64xf32, #tpu.memory_space<vmem>>, %arg6: memref<32x64xf32, #tpu.memory_space<vmem>>) attributes {dimension_semantics = [#tpu.dimension_semantics<parallel>, #tpu.dimension_semantics<parallel>], iteration_bounds = array<i64: 1, 1>, scalar_prefetch = 0 : i64, scratch_operands = 0 : i64, tpu.core_type = #tpu.core_type<tc>, window_params = [{transform_indices = @transform_0, window_bounds = array<i64: 32, 147>}, {transform_indices = @transform_1, window_bounds = array<i64: 147, 64>}, {transform_indices = @transform_2, window_bounds = array<i64: 1, 64>}, {transform_indices = @transform_3, window_bounds = array<i64: 1, 64>}, {transform_indices = @transform_4, window_bounds = array<i64: 32, 64>}]} {
    %c0 = arith.constant 0 : index
    %c0_0 = arith.constant 0 : index
    %0 = vector.load %arg2[%c0, %c0_0] : memref<32x147xf32, #tpu.memory_space<vmem>>, vector<32x147xf32>
    %c0_1 = arith.constant 0 : index
    %c0_2 = arith.constant 0 : index
    %1 = vector.load %arg3[%c0_1, %c0_2] : memref<147x64xbf16, #tpu.memory_space<vmem>>, vector<147x64xbf16>
    %c0_3 = arith.constant 0 : index
    %c0_4 = arith.constant 0 : index
    %2 = vector.load %arg4[%c0_3, %c0_4] : memref<1x64xf32, #tpu.memory_space<vmem>>, vector<1x64xf32>
    %c0_5 = arith.constant 0 : index
    %c0_6 = arith.constant 0 : index
    %3 = vector.load %arg5[%c0_5, %c0_6] : memref<1x64xf32, #tpu.memory_space<vmem>>, vector<1x64xf32>
    %4 = arith.truncf %0 : vector<32x147xf32> to vector<32x147xbf16>
    %cst = arith.constant dense<0.000000e+00> : vector<32x64xf32>
    %5 = tpu.matmul %4, %1, %cst {dimension_numbers = #tpu.dot_dimension_numbers<[1], [0], [0], [1], [0, 0, 1, 1], [], []>} : vector<32x147xbf16>, vector<147x64xbf16>, vector<32x64xf32> -> vector<32x64xf32>
    %6 = vector.broadcast %2 : vector<1x64xf32> to vector<32x64xf32>
    %7 = arith.mulf %5, %6 : vector<32x64xf32>
    %8 = vector.broadcast %3 : vector<1x64xf32> to vector<32x64xf32>
    %9 = arith.addf %7, %8 : vector<32x64xf32>
    %cst_7 = arith.constant 0.000000e+00 : f32
    %10 = vector.broadcast %cst_7 : f32 to vector<32x64xf32>
    %11 = arith.maximumf %9, %10 : vector<32x64xf32>
    %c0_8 = arith.constant 0 : index
    %c0_9 = arith.constant 0 : index
    %12 = vector.load %arg6[%c0_8, %c0_9] : memref<32x64xf32, #tpu.memory_space<vmem>>, vector<32x64xf32>
    tpu.vector_store %arg6[%c0_8, %c0_9], %11 {strides = array<i32>} : memref<32x64xf32, #tpu.memory_space<vmem>>, vector<32x64xf32>,
    return
  }
  func.func @transform_0(%arg0: i32, %arg1: i32) -> (i32, i32) {
    %c0_i32 = arith.constant 0 : i32
    %c0_i32_0 = arith.constant 0 : i32
    return %arg0, %c0_i32 : i32, i32
  }
  func.func @transform_1(%arg0: i32, %arg1: i32) -> (i32, i32) {
    %c0_i32 = arith.constant 0 : i32
    %c0_i32_0 = arith.constant 0 : i32
    return %c0_i32, %arg1 : i32, i32
  }
  func.func @transform_2(%arg0: i32, %arg1: i32) -> (i32, i32) {
    %c0_i32 = arith.constant 0 : i32
    %c0_i32_0 = arith.constant 0 : i32
    return %c0_i32, %arg1 : i32, i32
  }
  func.func @transform_3(%arg0: i32, %arg1: i32) -> (i32, i32) {
    %c0_i32 = arith.constant 0 : i32
    %c0_i32_0 = arith.constant 0 : i32
    return %c0_i32, %arg1 : i32, i32
  }
  func.func @transform_4(%arg0: i32, %arg1: i32) -> (i32, i32) {
    %c0_i32 = arith.constant 0 : i32
    return %arg0, %arg1 : i32, i32
  }
}

module attributes {stable_mosaic.version = 11 : i64} {
  func.func @kernel(%arg0: i32, %arg1: i32, %arg2: memref<32x576xf32, #tpu.memory_space<vmem>>, %arg3: memref<576x64xbf16, #tpu.memory_space<vmem>>, %arg4: memref<1x64xf32, #tpu.memory_space<vmem>>, %arg5: memref<1x64xf32, #tpu.memory_space<vmem>>, %arg6: memref<32x64xf32, #tpu.memory_space<vmem>>) attributes {dimension_semantics = [#tpu.dimension_semantics<parallel>, #tpu.dimension_semantics<parallel>], iteration_bounds = array<i64: 1, 1>, scalar_prefetch = 0 : i64, scratch_operands = 0 : i64, tpu.core_type = #tpu.core_type<tc>, window_params = [{transform_indices = @transform_0, window_bounds = array<i64: 32, 576>}, {transform_indices = @transform_1, window_bounds = array<i64: 576, 64>}, {transform_indices = @transform_2, window_bounds = array<i64: 1, 64>}, {transform_indices = @transform_3, window_bounds = array<i64: 1, 64>}, {transform_indices = @transform_4, window_bounds = array<i64: 32, 64>}]} {
    %c0 = arith.constant 0 : index
    %c0_0 = arith.constant 0 : index
    %0 = vector.load %arg2[%c0, %c0_0] : memref<32x576xf32, #tpu.memory_space<vmem>>, vector<32x576xf32>
    %c0_1 = arith.constant 0 : index
    %c0_2 = arith.constant 0 : index
    %1 = vector.load %arg3[%c0_1, %c0_2] : memref<576x64xbf16, #tpu.memory_space<vmem>>, vector<576x64xbf16>
    %c0_3 = arith.constant 0 : index
    %c0_4 = arith.constant 0 : index
    %2 = vector.load %arg4[%c0_3, %c0_4] : memref<1x64xf32, #tpu.memory_space<vmem>>, vector<1x64xf32>
    %c0_5 = arith.constant 0 : index
    %c0_6 = arith.constant 0 : index
    %3 = vector.load %arg5[%c0_5, %c0_6] : memref<1x64xf32, #tpu.memory_space<vmem>>, vector<1x64xf32>
    %4 = arith.truncf %0 : vector<32x576xf32> to vector<32x576xbf16>
    %cst = arith.constant dense<0.000000e+00> : vector<32x64xf32>
    %5 = tpu.matmul %4, %1, %cst {dimension_numbers = #tpu.dot_dimension_numbers<[1], [0], [0], [1], [0, 0, 1, 1], [], []>} : vector<32x576xbf16>, vector<576x64xbf16>, vector<32x64xf32> -> vector<32x64xf32>
    %6 = vector.broadcast %2 : vector<1x64xf32> to vector<32x64xf32>
    %7 = arith.mulf %5, %6 : vector<32x64xf32>
    %8 = vector.broadcast %3 : vector<1x64xf32> to vector<32x64xf32>
    %9 = arith.addf %7, %8 : vector<32x64xf32>
    %cst_7 = arith.constant 0.000000e+00 : f32
    %10 = vector.broadcast %cst_7 : f32 to vector<32x64xf32>
    %11 = arith.maximumf %9, %10 : vector<32x64xf32>
    %c0_8 = arith.constant 0 : index
    %c0_9 = arith.constant 0 : index
    %12 = vector.load %arg6[%c0_8, %c0_9] : memref<32x64xf32, #tpu.memory_space<vmem>>, vector<32x64xf32>
    tpu.vector_store %arg6[%c0_8, %c0_9], %11 {strides = array<i32>} : memref<32x64xf32, #tpu.memory_space<vmem>>, vector<32x64xf32>,
    return
  }
  func.func @transform_0(%arg0: i32, %arg1: i32) -> (i32, i32) {
    %c0_i32 = arith.constant 0 : i32
    %c0_i32_0 = arith.constant 0 : i32
    return %arg0, %c0_i32 : i32, i32
  }
  func.func @transform_1(%arg0: i32, %arg1: i32) -> (i32, i32) {
    %c0_i32 = arith.constant 0 : i32
    %c0_i32_0 = arith.constant 0 : i32
    return %c0_i32, %arg1 : i32, i32
  }
  func.func @transform_2(%arg0: i32, %arg1: i32) -> (i32, i32) {
    %c0_i32 = arith.constant 0 : i32
    %c0_i32_0 = arith.constant 0 : i32
    return %c0_i32, %arg1 : i32, i32
  }
  func.func @transform_3(%arg0: i32, %arg1: i32) -> (i32, i32) {
    %c0_i32 = arith.constant 0 : i32
    %c0_i32_0 = arith.constant 0 : i32
    return %c0_i32, %arg1 : i32, i32
  }
  func.func @transform_4(%arg0: i32, %arg1: i32) -> (i32, i32) {
    %c0_i32 = arith.constant 0 : i32
    return %arg0, %arg1 : i32, i32
  }
}

module attributes {stable_mosaic.version = 11 : i64} {
  func.func @kernel(%arg0: i32, %arg1: i32, %arg2: memref<8x256xf32, #tpu.memory_space<vmem>>, %arg3: memref<256x128xbf16, #tpu.memory_space<vmem>>, %arg4: memref<1x128xf32, #tpu.memory_space<vmem>>, %arg5: memref<1x128xf32, #tpu.memory_space<vmem>>, %arg6: memref<8x128xf32, #tpu.memory_space<vmem>>) attributes {dimension_semantics = [#tpu.dimension_semantics<parallel>, #tpu.dimension_semantics<parallel>], iteration_bounds = array<i64: 1, 1>, scalar_prefetch = 0 : i64, scratch_operands = 0 : i64, tpu.core_type = #tpu.core_type<tc>, window_params = [{transform_indices = @transform_0, window_bounds = array<i64: 8, 256>}, {transform_indices = @transform_1, window_bounds = array<i64: 256, 128>}, {transform_indices = @transform_2, window_bounds = array<i64: 1, 128>}, {transform_indices = @transform_3, window_bounds = array<i64: 1, 128>}, {transform_indices = @transform_4, window_bounds = array<i64: 8, 128>}]} {
    %c0 = arith.constant 0 : index
    %c0_0 = arith.constant 0 : index
    %0 = vector.load %arg2[%c0, %c0_0] : memref<8x256xf32, #tpu.memory_space<vmem>>, vector<8x256xf32>
    %c0_1 = arith.constant 0 : index
    %c0_2 = arith.constant 0 : index
    %1 = vector.load %arg3[%c0_1, %c0_2] : memref<256x128xbf16, #tpu.memory_space<vmem>>, vector<256x128xbf16>
    %c0_3 = arith.constant 0 : index
    %c0_4 = arith.constant 0 : index
    %2 = vector.load %arg4[%c0_3, %c0_4] : memref<1x128xf32, #tpu.memory_space<vmem>>, vector<1x128xf32>
    %c0_5 = arith.constant 0 : index
    %c0_6 = arith.constant 0 : index
    %3 = vector.load %arg5[%c0_5, %c0_6] : memref<1x128xf32, #tpu.memory_space<vmem>>, vector<1x128xf32>
    %4 = arith.truncf %0 : vector<8x256xf32> to vector<8x256xbf16>
    %cst = arith.constant dense<0.000000e+00> : vector<8x128xf32>
    %5 = tpu.matmul %4, %1, %cst {dimension_numbers = #tpu.dot_dimension_numbers<[1], [0], [0], [1], [0, 0, 1, 1], [], []>} : vector<8x256xbf16>, vector<256x128xbf16>, vector<8x128xf32> -> vector<8x128xf32>
    %6 = vector.broadcast %2 : vector<1x128xf32> to vector<8x128xf32>
    %7 = arith.mulf %5, %6 : vector<8x128xf32>
    %8 = vector.broadcast %3 : vector<1x128xf32> to vector<8x128xf32>
    %9 = arith.addf %7, %8 : vector<8x128xf32>
    %c0_7 = arith.constant 0 : index
    %c0_8 = arith.constant 0 : index
    %10 = vector.load %arg6[%c0_7, %c0_8] : memref<8x128xf32, #tpu.memory_space<vmem>>, vector<8x128xf32>
    tpu.vector_store %arg6[%c0_7, %c0_8], %9 {strides = array<i32>} : memref<8x128xf32, #tpu.memory_space<vmem>>, vector<8x128xf32>,
    return
  }
  func.func @transform_0(%arg0: i32, %arg1: i32) -> (i32, i32) {
    %c0_i32 = arith.constant 0 : i32
    %c0_i32_0 = arith.constant 0 : i32
    return %arg0, %c0_i32 : i32, i32
  }
  func.func @transform_1(%arg0: i32, %arg1: i32) -> (i32, i32) {
    %c0_i32 = arith.constant 0 : i32
    %c0_i32_0 = arith.constant 0 : i32
    return %c0_i32, %arg1 : i32, i32
  }
  func.func @transform_2(%arg0: i32, %arg1: i32) -> (i32, i32) {
    %c0_i32 = arith.constant 0 : i32
    %c0_i32_0 = arith.constant 0 : i32
    return %c0_i32, %arg1 : i32, i32
  }
  func.func @transform_3(%arg0: i32, %arg1: i32) -> (i32, i32) {
    %c0_i32 = arith.constant 0 : i32
    %c0_i32_0 = arith.constant 0 : i32
    return %c0_i32, %arg1 : i32, i32
  }
  func.func @transform_4(%arg0: i32, %arg1: i32) -> (i32, i32) {
    %c0_i32 = arith.constant 0 : i32
    return %arg0, %arg1 : i32, i32
  }
}

module attributes {stable_mosaic.version = 11 : i64} {
  func.func @_attention_kernel(%arg0: i32, %arg1: memref<8x5x32xbf16, #tpu.memory_space<vmem>>, %arg2: memref<8x5x32xbf16, #tpu.memory_space<vmem>>, %arg3: memref<8x5x32xbf16, #tpu.memory_space<vmem>>, %arg4: memref<8x5x32xf32, #tpu.memory_space<vmem>>) attributes {dimension_semantics = [#tpu.dimension_semantics<parallel>], iteration_bounds = array<i64: 1>, scalar_prefetch = 0 : i64, scratch_operands = 0 : i64, tpu.core_type = #tpu.core_type<tc>, window_params = [{transform_indices = @transform_0, window_bounds = array<i64: 8, 5, 32>}, {transform_indices = @transform_1, window_bounds = array<i64: 8, 5, 32>}, {transform_indices = @transform_2, window_bounds = array<i64: 8, 5, 32>}, {transform_indices = @transform_3, window_bounds = array<i64: 8, 5, 32>}]} {
    %c0 = arith.constant 0 : index
    %c0_0 = arith.constant 0 : index
    %c0_1 = arith.constant 0 : index
    %0 = vector.load %arg1[%c0, %c0_0, %c0_1] : memref<8x5x32xbf16, #tpu.memory_space<vmem>>, vector<8x5x32xbf16>
    %c0_2 = arith.constant 0 : index
    %c0_3 = arith.constant 0 : index
    %c0_4 = arith.constant 0 : index
    %1 = vector.load %arg2[%c0_2, %c0_3, %c0_4] : memref<8x5x32xbf16, #tpu.memory_space<vmem>>, vector<8x5x32xbf16>
    %c0_5 = arith.constant 0 : index
    %c0_6 = arith.constant 0 : index
    %c0_7 = arith.constant 0 : index
    %2 = vector.load %arg3[%c0_5, %c0_6, %c0_7] : memref<8x5x32xbf16, #tpu.memory_space<vmem>>, vector<8x5x32xbf16>
    "tpu.trace_start"() <{level = 10 : i32, message = "hqd,hkd->hqk"}> : () -> ()
    %cst = arith.constant dense<0.000000e+00> : vector<8x5x5xf32>
    %3 = tpu.matmul %0, %1, %cst {dimension_numbers = #tpu.dot_dimension_numbers<[2], [2], [1], [1], [0, 0, 0, 1, 1, 1], [0], [0]>} : vector<8x5x32xbf16>, vector<8x5x32xbf16>, vector<8x5x5xf32> -> vector<8x5x5xf32>
    "tpu.trace_stop"() : () -> ()
    %cst_8 = arith.constant 0.176776692 : f32
    %4 = vector.broadcast %cst_8 : f32 to vector<8x5x5xf32>
    %5 = arith.mulf %3, %4 : vector<8x5x5xf32>
    %cst_9 = arith.constant dense<0xFF800000> : vector<8x5xf32>
    %6 = vector.multi_reduction <maximumf>, %5, %cst_9 [2] : vector<8x5x5xf32> to vector<8x5xf32>
    %7 = vector.shape_cast %6 : vector<8x5xf32> to vector<8x5x1xf32>
    %8 = vector.broadcast %7 : vector<8x5x1xf32> to vector<8x5x5xf32>
    %9 = arith.subf %5, %8 : vector<8x5x5xf32>
    %10 = math.exp %9 : vector<8x5x5xf32>
    %cst_10 = arith.constant dense<0.000000e+00> : vector<8x5xf32>
    %11 = vector.multi_reduction <add>, %10, %cst_10 [2] : vector<8x5x5xf32> to vector<8x5xf32>
    %12 = vector.shape_cast %11 : vector<8x5xf32> to vector<8x5x1xf32>
    %13 = tpu.reciprocal %12 {approx = true} : vector<8x5x1xf32> -> vector<8x5x1xf32>
    %14 = vector.broadcast %13 : vector<8x5x1xf32> to vector<8x5x5xf32>
    %15 = arith.mulf %10, %14 : vector<8x5x5xf32>
    %16 = arith.truncf %15 : vector<8x5x5xf32> to vector<8x5x5xbf16>
    "tpu.trace_start"() <{level = 10 : i32, message = "hqk,hkd->hqd"}> : () -> ()
    %cst_11 = arith.constant dense<0.000000e+00> : vector<8x5x32xf32>
    %17 = tpu.matmul %16, %2, %cst_11 {dimension_numbers = #tpu.dot_dimension_numbers<[2], [1], [1], [2], [0, 0, 0, 1, 1, 2], [0], [0]>} : vector<8x5x5xbf16>, vector<8x5x32xbf16>, vector<8x5x32xf32> -> vector<8x5x32xf32>
    "tpu.trace_stop"() : () -> ()
    %c0_12 = arith.constant 0 : index
    %c0_13 = arith.constant 0 : index
    %c0_14 = arith.constant 0 : index
    %18 = vector.load %arg4[%c0_12, %c0_13, %c0_14] : memref<8x5x32xf32, #tpu.memory_space<vmem>>, vector<8x5x32xf32>
    tpu.vector_store %arg4[%c0_12, %c0_13, %c0_14], %17 {strides = array<i32>} : memref<8x5x32xf32, #tpu.memory_space<vmem>>, vector<8x5x32xf32>,
    return
  }
  func.func @transform_0(%arg0: i32) -> (i32, i32, i32) {
    %c0_i32 = arith.constant 0 : i32
    %c0_i32_0 = arith.constant 0 : i32
    %c0_i32_1 = arith.constant 0 : i32
    return %arg0, %c0_i32, %c0_i32_0 : i32, i32, i32
  }
  func.func @transform_1(%arg0: i32) -> (i32, i32, i32) {
    %c0_i32 = arith.constant 0 : i32
    %c0_i32_0 = arith.constant 0 : i32
    %c0_i32_1 = arith.constant 0 : i32
    return %arg0, %c0_i32, %c0_i32_0 : i32, i32, i32
  }
  func.func @transform_2(%arg0: i32) -> (i32, i32, i32) {
    %c0_i32 = arith.constant 0 : i32
    %c0_i32_0 = arith.constant 0 : i32
    %c0_i32_1 = arith.constant 0 : i32
    return %arg0, %c0_i32, %c0_i32_0 : i32, i32, i32
  }
  func.func @transform_3(%arg0: i32) -> (i32, i32, i32) {
    %c0_i32 = arith.constant 0 : i32
    %c0_i32_0 = arith.constant 0 : i32
    %c0_i32_1 = arith.constant 0 : i32
    return %arg0, %c0_i32, %c0_i32_0 : i32, i32, i32
  }
}

module attributes {stable_mosaic.version = 11 : i64} {
  func.func @kernel(%arg0: i32, %arg1: i32, %arg2: memref<16x128xf32, #tpu.memory_space<vmem>>, %arg3: memref<1x128xf32, #tpu.memory_space<vmem>>, %arg4: memref<1x128xf32, #tpu.memory_space<vmem>>, %arg5: memref<128x384xbf16, #tpu.memory_space<vmem>>, %arg6: memref<1x384xf32, #tpu.memory_space<vmem>>, %arg7: memref<1x384xf32, #tpu.memory_space<vmem>>, %arg8: memref<16x384xf32, #tpu.memory_space<vmem>>) attributes {dimension_semantics = [#tpu.dimension_semantics<parallel>, #tpu.dimension_semantics<parallel>], iteration_bounds = array<i64: 1, 1>, scalar_prefetch = 0 : i64, scratch_operands = 0 : i64, tpu.core_type = #tpu.core_type<tc>, window_params = [{transform_indices = @transform_0, window_bounds = array<i64: 16, 128>}, {pipeline_mode = #tpu.pipeline_mode<synchronous>, transform_indices = @transform_1, window_bounds = array<i64: 1, 128>}, {pipeline_mode = #tpu.pipeline_mode<synchronous>, transform_indices = @transform_2, window_bounds = array<i64: 1, 128>}, {transform_indices = @transform_3, window_bounds = array<i64: 128, 384>}, {transform_indices = @transform_4, window_bounds = array<i64: 1, 384>}, {transform_indices = @transform_5, window_bounds = array<i64: 1, 384>}, {transform_indices = @transform_6, window_bounds = array<i64: 16, 384>}]} {
    %c0 = arith.constant 0 : index
    %c0_0 = arith.constant 0 : index
    %0 = vector.load %arg2[%c0, %c0_0] : memref<16x128xf32, #tpu.memory_space<vmem>>, vector<16x128xf32>
    %c0_1 = arith.constant 0 : index
    %c0_2 = arith.constant 0 : index
    %1 = vector.load %arg3[%c0_1, %c0_2] : memref<1x128xf32, #tpu.memory_space<vmem>>, vector<1x128xf32>
    %c0_3 = arith.constant 0 : index
    %c0_4 = arith.constant 0 : index
    %2 = vector.load %arg4[%c0_3, %c0_4] : memref<1x128xf32, #tpu.memory_space<vmem>>, vector<1x128xf32>
    %cst = arith.constant dense<0.000000e+00> : vector<16xf32>
    %3 = vector.multi_reduction <add>, %0, %cst [1] : vector<16x128xf32> to vector<16xf32>
    %4 = vector.shape_cast %3 : vector<16xf32> to vector<16x1xf32>
    %cst_5 = arith.constant 1.280000e+02 : f32
    %5 = vector.broadcast %cst_5 : f32 to vector<16x1xf32>
    %6 = arith.divf %4, %5 : vector<16x1xf32>
    %7 = vector.broadcast %6 : vector<16x1xf32> to vector<16x128xf32>
    %8 = arith.subf %0, %7 : vector<16x128xf32>
    %9 = arith.mulf %8, %8 : vector<16x128xf32>
    %cst_6 = arith.constant dense<0.000000e+00> : vector<16xf32>
    %10 = vector.multi_reduction <add>, %9, %cst_6 [1] : vector<16x128xf32> to vector<16xf32>
    %11 = vector.shape_cast %10 : vector<16xf32> to vector<16x1xf32>
    %cst_7 = arith.constant 1.280000e+02 : f32
    %12 = vector.broadcast %cst_7 : f32 to vector<16x1xf32>
    %13 = arith.divf %11, %12 : vector<16x1xf32>
    %14 = vector.broadcast %6 : vector<16x1xf32> to vector<16x128xf32>
    %15 = arith.subf %0, %14 : vector<16x128xf32>
    %cst_8 = arith.constant 9.99999974E-6 : f32
    %16 = vector.broadcast %cst_8 : f32 to vector<16x1xf32>
    %17 = arith.addf %13, %16 : vector<16x1xf32>
    %18 = math.rsqrt %17 : vector<16x1xf32>
    %19 = vector.broadcast %18 : vector<16x1xf32> to vector<16x128xf32>
    %20 = arith.mulf %15, %19 : vector<16x128xf32>
    %21 = vector.broadcast %1 : vector<1x128xf32> to vector<16x128xf32>
    %22 = arith.mulf %20, %21 : vector<16x128xf32>
    %23 = vector.broadcast %2 : vector<1x128xf32> to vector<16x128xf32>
    %24 = arith.addf %22, %23 : vector<16x128xf32>
    %c0_9 = arith.constant 0 : index
    %c0_10 = arith.constant 0 : index
    %25 = vector.load %arg5[%c0_9, %c0_10] : memref<128x384xbf16, #tpu.memory_space<vmem>>, vector<128x384xbf16>
    %c0_11 = arith.constant 0 : index
    %c0_12 = arith.constant 0 : index
    %26 = vector.load %arg6[%c0_11, %c0_12] : memref<1x384xf32, #tpu.memory_space<vmem>>, vector<1x384xf32>
    %c0_13 = arith.constant 0 : index
    %c0_14 = arith.constant 0 : index
    %27 = vector.load %arg7[%c0_13, %c0_14] : memref<1x384xf32, #tpu.memory_space<vmem>>, vector<1x384xf32>
    %28 = arith.truncf %24 : vector<16x128xf32> to vector<16x128xbf16>
    %cst_15 = arith.constant dense<0.000000e+00> : vector<16x384xf32>
    %29 = tpu.matmul %28, %25, %cst_15 {dimension_numbers = #tpu.dot_dimension_numbers<[1], [0], [0], [1], [0, 0, 1, 1], [], []>} : vector<16x128xbf16>, vector<128x384xbf16>, vector<16x384xf32> -> vector<16x384xf32>
    %30 = vector.broadcast %26 : vector<1x384xf32> to vector<16x384xf32>
    %31 = arith.mulf %29, %30 : vector<16x384xf32>
    %32 = vector.broadcast %27 : vector<1x384xf32> to vector<16x384xf32>
    %33 = arith.addf %31, %32 : vector<16x384xf32>
    %c0_16 = arith.constant 0 : index
    %c0_17 = arith.constant 0 : index
    %34 = vector.load %arg8[%c0_16, %c0_17] : memref<16x384xf32, #tpu.memory_space<vmem>>, vector<16x384xf32>
    tpu.vector_store %arg8[%c0_16, %c0_17], %33 {strides = array<i32>} : memref<16x384xf32, #tpu.memory_space<vmem>>, vector<16x384xf32>,
    return
  }
  func.func @transform_0(%arg0: i32, %arg1: i32) -> (i32, i32) {
    %c0_i32 = arith.constant 0 : i32
    %c0_i32_0 = arith.constant 0 : i32
    return %arg0, %c0_i32 : i32, i32
  }
  func.func @transform_1(%arg0: i32, %arg1: i32) -> (i32, i32) {
    %c0_i32 = arith.constant 0 : i32
    %c0_i32_0 = arith.constant 0 : i32
    %c0_i32_1 = arith.constant 0 : i32
    return %c0_i32, %c0_i32_0 : i32, i32
  }
  func.func @transform_2(%arg0: i32, %arg1: i32) -> (i32, i32) {
    %c0_i32 = arith.constant 0 : i32
    %c0_i32_0 = arith.constant 0 : i32
    %c0_i32_1 = arith.constant 0 : i32
    return %c0_i32, %c0_i32_0 : i32, i32
  }
  func.func @transform_3(%arg0: i32, %arg1: i32) -> (i32, i32) {
    %c0_i32 = arith.constant 0 : i32
    %c0_i32_0 = arith.constant 0 : i32
    return %c0_i32, %arg1 : i32, i32
  }
  func.func @transform_4(%arg0: i32, %arg1: i32) -> (i32, i32) {
    %c0_i32 = arith.constant 0 : i32
    %c0_i32_0 = arith.constant 0 : i32
    return %c0_i32, %arg1 : i32, i32
  }
  func.func @transform_5(%arg0: i32, %arg1: i32) -> (i32, i32) {
    %c0_i32 = arith.constant 0 : i32
    %c0_i32_0 = arith.constant 0 : i32
    return %c0_i32, %arg1 : i32, i32
  }
  func.func @transform_6(%arg0: i32, %arg1: i32) -> (i32, i32) {
    %c0_i32 = arith.constant 0 : i32
    return %arg0, %arg1 : i32, i32
  }
}

module attributes {stable_mosaic.version = 11 : i64} {
  func.func @kernel(%arg0: i32, %arg1: i32, %arg2: memref<16x128xf32, #tpu.memory_space<vmem>>, %arg3: memref<128x128xbf16, #tpu.memory_space<vmem>>, %arg4: memref<1x128xf32, #tpu.memory_space<vmem>>, %arg5: memref<1x128xf32, #tpu.memory_space<vmem>>, %arg6: memref<16x128xf32, #tpu.memory_space<vmem>>, %arg7: memref<16x128xf32, #tpu.memory_space<vmem>>) attributes {dimension_semantics = [#tpu.dimension_semantics<parallel>, #tpu.dimension_semantics<parallel>], iteration_bounds = array<i64: 1, 1>, scalar_prefetch = 0 : i64, scratch_operands = 0 : i64, tpu.core_type = #tpu.core_type<tc>, window_params = [{transform_indices = @transform_0, window_bounds = array<i64: 16, 128>}, {transform_indices = @transform_1, window_bounds = array<i64: 128, 128>}, {transform_indices = @transform_2, window_bounds = array<i64: 1, 128>}, {transform_indices = @transform_3, window_bounds = array<i64: 1, 128>}, {transform_indices = @transform_4, window_bounds = array<i64: 16, 128>}, {transform_indices = @transform_5, window_bounds = array<i64: 16, 128>}]} {
    %c0 = arith.constant 0 : index
    %c0_0 = arith.constant 0 : index
    %0 = vector.load %arg2[%c0, %c0_0] : memref<16x128xf32, #tpu.memory_space<vmem>>, vector<16x128xf32>
    %c0_1 = arith.constant 0 : index
    %c0_2 = arith.constant 0 : index
    %1 = vector.load %arg3[%c0_1, %c0_2] : memref<128x128xbf16, #tpu.memory_space<vmem>>, vector<128x128xbf16>
    %c0_3 = arith.constant 0 : index
    %c0_4 = arith.constant 0 : index
    %2 = vector.load %arg4[%c0_3, %c0_4] : memref<1x128xf32, #tpu.memory_space<vmem>>, vector<1x128xf32>
    %c0_5 = arith.constant 0 : index
    %c0_6 = arith.constant 0 : index
    %3 = vector.load %arg5[%c0_5, %c0_6] : memref<1x128xf32, #tpu.memory_space<vmem>>, vector<1x128xf32>
    %4 = arith.truncf %0 : vector<16x128xf32> to vector<16x128xbf16>
    %cst = arith.constant dense<0.000000e+00> : vector<16x128xf32>
    %5 = tpu.matmul %4, %1, %cst {dimension_numbers = #tpu.dot_dimension_numbers<[1], [0], [0], [1], [0, 0, 1, 1], [], []>} : vector<16x128xbf16>, vector<128x128xbf16>, vector<16x128xf32> -> vector<16x128xf32>
    %6 = vector.broadcast %2 : vector<1x128xf32> to vector<16x128xf32>
    %7 = arith.mulf %5, %6 : vector<16x128xf32>
    %8 = vector.broadcast %3 : vector<1x128xf32> to vector<16x128xf32>
    %9 = arith.addf %7, %8 : vector<16x128xf32>
    %c0_7 = arith.constant 0 : index
    %c0_8 = arith.constant 0 : index
    %10 = vector.load %arg6[%c0_7, %c0_8] : memref<16x128xf32, #tpu.memory_space<vmem>>, vector<16x128xf32>
    %cst_9 = arith.constant 1.000000e+00 : f32
    %11 = vector.broadcast %cst_9 : f32 to vector<16x128xf32>
    %12 = arith.mulf %9, %11 : vector<16x128xf32>
    %13 = arith.addf %10, %12 : vector<16x128xf32>
    %c0_10 = arith.constant 0 : index
    %c0_11 = arith.constant 0 : index
    %14 = vector.load %arg7[%c0_10, %c0_11] : memref<16x128xf32, #tpu.memory_space<vmem>>, vector<16x128xf32>
    tpu.vector_store %arg7[%c0_10, %c0_11], %13 {strides = array<i32>} : memref<16x128xf32, #tpu.memory_space<vmem>>, vector<16x128xf32>,
    return
  }
  func.func @transform_0(%arg0: i32, %arg1: i32) -> (i32, i32) {
    %c0_i32 = arith.constant 0 : i32
    %c0_i32_0 = arith.constant 0 : i32
    return %arg0, %c0_i32 : i32, i32
  }
  func.func @transform_1(%arg0: i32, %arg1: i32) -> (i32, i32) {
    %c0_i32 = arith.constant 0 : i32
    %c0_i32_0 = arith.constant 0 : i32
    return %c0_i32, %arg1 : i32, i32
  }
  func.func @transform_2(%arg0: i32, %arg1: i32) -> (i32, i32) {
    %c0_i32 = arith.constant 0 : i32
    %c0_i32_0 = arith.constant 0 : i32
    return %c0_i32, %arg1 : i32, i32
  }
  func.func @transform_3(%arg0: i32, %arg1: i32) -> (i32, i32) {
    %c0_i32 = arith.constant 0 : i32
    %c0_i32_0 = arith.constant 0 : i32
    return %c0_i32, %arg1 : i32, i32
  }
  func.func @transform_4(%arg0: i32, %arg1: i32) -> (i32, i32) {
    %c0_i32 = arith.constant 0 : i32
    return %arg0, %arg1 : i32, i32
  }
  func.func @transform_5(%arg0: i32, %arg1: i32) -> (i32, i32) {
    %c0_i32 = arith.constant 0 : i32
    return %arg0, %arg1 : i32, i32
  }
}

module attributes {stable_mosaic.version = 11 : i64} {
  func.func @kernel(%arg0: i32, %arg1: i32, %arg2: memref<16x128xf32, #tpu.memory_space<vmem>>, %arg3: memref<1x128xf32, #tpu.memory_space<vmem>>, %arg4: memref<1x128xf32, #tpu.memory_space<vmem>>, %arg5: memref<128x256xbf16, #tpu.memory_space<vmem>>, %arg6: memref<1x256xf32, #tpu.memory_space<vmem>>, %arg7: memref<1x256xf32, #tpu.memory_space<vmem>>, %arg8: memref<16x256xf32, #tpu.memory_space<vmem>>) attributes {dimension_semantics = [#tpu.dimension_semantics<parallel>, #tpu.dimension_semantics<parallel>], iteration_bounds = array<i64: 1, 1>, scalar_prefetch = 0 : i64, scratch_operands = 0 : i64, tpu.core_type = #tpu.core_type<tc>, window_params = [{transform_indices = @transform_0, window_bounds = array<i64: 16, 128>}, {pipeline_mode = #tpu.pipeline_mode<synchronous>, transform_indices = @transform_1, window_bounds = array<i64: 1, 128>}, {pipeline_mode = #tpu.pipeline_mode<synchronous>, transform_indices = @transform_2, window_bounds = array<i64: 1, 128>}, {transform_indices = @transform_3, window_bounds = array<i64: 128, 256>}, {transform_indices = @transform_4, window_bounds = array<i64: 1, 256>}, {transform_indices = @transform_5, window_bounds = array<i64: 1, 256>}, {transform_indices = @transform_6, window_bounds = array<i64: 16, 256>}]} {
    %c0 = arith.constant 0 : index
    %c0_0 = arith.constant 0 : index
    %0 = vector.load %arg2[%c0, %c0_0] : memref<16x128xf32, #tpu.memory_space<vmem>>, vector<16x128xf32>
    %c0_1 = arith.constant 0 : index
    %c0_2 = arith.constant 0 : index
    %1 = vector.load %arg3[%c0_1, %c0_2] : memref<1x128xf32, #tpu.memory_space<vmem>>, vector<1x128xf32>
    %c0_3 = arith.constant 0 : index
    %c0_4 = arith.constant 0 : index
    %2 = vector.load %arg4[%c0_3, %c0_4] : memref<1x128xf32, #tpu.memory_space<vmem>>, vector<1x128xf32>
    %cst = arith.constant dense<0.000000e+00> : vector<16xf32>
    %3 = vector.multi_reduction <add>, %0, %cst [1] : vector<16x128xf32> to vector<16xf32>
    %4 = vector.shape_cast %3 : vector<16xf32> to vector<16x1xf32>
    %cst_5 = arith.constant 1.280000e+02 : f32
    %5 = vector.broadcast %cst_5 : f32 to vector<16x1xf32>
    %6 = arith.divf %4, %5 : vector<16x1xf32>
    %7 = vector.broadcast %6 : vector<16x1xf32> to vector<16x128xf32>
    %8 = arith.subf %0, %7 : vector<16x128xf32>
    %9 = arith.mulf %8, %8 : vector<16x128xf32>
    %cst_6 = arith.constant dense<0.000000e+00> : vector<16xf32>
    %10 = vector.multi_reduction <add>, %9, %cst_6 [1] : vector<16x128xf32> to vector<16xf32>
    %11 = vector.shape_cast %10 : vector<16xf32> to vector<16x1xf32>
    %cst_7 = arith.constant 1.280000e+02 : f32
    %12 = vector.broadcast %cst_7 : f32 to vector<16x1xf32>
    %13 = arith.divf %11, %12 : vector<16x1xf32>
    %14 = vector.broadcast %6 : vector<16x1xf32> to vector<16x128xf32>
    %15 = arith.subf %0, %14 : vector<16x128xf32>
    %cst_8 = arith.constant 9.99999974E-6 : f32
    %16 = vector.broadcast %cst_8 : f32 to vector<16x1xf32>
    %17 = arith.addf %13, %16 : vector<16x1xf32>
    %18 = math.rsqrt %17 : vector<16x1xf32>
    %19 = vector.broadcast %18 : vector<16x1xf32> to vector<16x128xf32>
    %20 = arith.mulf %15, %19 : vector<16x128xf32>
    %21 = vector.broadcast %1 : vector<1x128xf32> to vector<16x128xf32>
    %22 = arith.mulf %20, %21 : vector<16x128xf32>
    %23 = vector.broadcast %2 : vector<1x128xf32> to vector<16x128xf32>
    %24 = arith.addf %22, %23 : vector<16x128xf32>
    %c0_9 = arith.constant 0 : index
    %c0_10 = arith.constant 0 : index
    %25 = vector.load %arg5[%c0_9, %c0_10] : memref<128x256xbf16, #tpu.memory_space<vmem>>, vector<128x256xbf16>
    %c0_11 = arith.constant 0 : index
    %c0_12 = arith.constant 0 : index
    %26 = vector.load %arg6[%c0_11, %c0_12] : memref<1x256xf32, #tpu.memory_space<vmem>>, vector<1x256xf32>
    %c0_13 = arith.constant 0 : index
    %c0_14 = arith.constant 0 : index
    %27 = vector.load %arg7[%c0_13, %c0_14] : memref<1x256xf32, #tpu.memory_space<vmem>>, vector<1x256xf32>
    %28 = arith.truncf %24 : vector<16x128xf32> to vector<16x128xbf16>
    %cst_15 = arith.constant dense<0.000000e+00> : vector<16x256xf32>
    %29 = tpu.matmul %28, %25, %cst_15 {dimension_numbers = #tpu.dot_dimension_numbers<[1], [0], [0], [1], [0, 0, 1, 1], [], []>} : vector<16x128xbf16>, vector<128x256xbf16>, vector<16x256xf32> -> vector<16x256xf32>
    %30 = vector.broadcast %26 : vector<1x256xf32> to vector<16x256xf32>
    %31 = arith.mulf %29, %30 : vector<16x256xf32>
    %32 = vector.broadcast %27 : vector<1x256xf32> to vector<16x256xf32>
    %33 = arith.addf %31, %32 : vector<16x256xf32>
    %cst_16 = arith.constant 5.000000e-01 : f32
    %34 = vector.broadcast %cst_16 : f32 to vector<16x256xf32>
    %35 = arith.mulf %34, %33 : vector<16x256xf32>
    %cst_17 = arith.constant 0.707106769 : f32
    %36 = vector.broadcast %cst_17 : f32 to vector<16x256xf32>
    %37 = arith.mulf %33, %36 : vector<16x256xf32>
    %cst_18 = arith.constant 0.000000e+00 : f32
    %38 = vector.broadcast %cst_18 : f32 to vector<16x256xf32>
    %39 = arith.cmpf oge, %37, %38 : vector<16x256xf32>
    %cst_19 = arith.constant 1.000000e+00 : f32
    %cst_20 = arith.constant -1.000000e+00 : f32
    %40 = vector.broadcast %cst_19 : f32 to vector<16x256xf32>
    %41 = vector.broadcast %cst_20 : f32 to vector<16x256xf32>
    %42 = arith.select %39, %40, %41 : vector<16x256xi1>, vector<16x256xf32>
    %43 = math.absf %37 : vector<16x256xf32>
    %cst_21 = arith.constant 0.327591091 : f32
    %44 = vector.broadcast %cst_21 : f32 to vector<16x256xf32>
    %45 = arith.mulf %44, %43 : vector<16x256xf32>
    %cst_22 = arith.constant 1.000000e+00 : f32
    %46 = vector.broadcast %cst_22 : f32 to vector<16x256xf32>
    %47 = arith.addf %46, %45 : vector<16x256xf32>
    %cst_23 = arith.constant 1.000000e+00 : f32
    %48 = vector.broadcast %cst_23 : f32 to vector<16x256xf32>
    %49 = arith.divf %48, %47 : vector<16x256xf32>
    %cst_24 = arith.constant 1.06140542 : f32
    %50 = vector.broadcast %cst_24 : f32 to vector<16x256xf32>
    %51 = arith.mulf %50, %49 : vector<16x256xf32>
    %cst_25 = arith.constant -1.45315206 : f32
    %52 = vector.broadcast %cst_25 : f32 to vector<16x256xf32>
    %53 = arith.addf %51, %52 : vector<16x256xf32>
    %54 = arith.mulf %53, %49 : vector<16x256xf32>
    %cst_26 = arith.constant 1.42141378 : f32
    %55 = vector.broadcast %cst_26 : f32 to vector<16x256xf32>
    %56 = arith.addf %54, %55 : vector<16x256xf32>
    %57 = arith.mulf %56, %49 : vector<16x256xf32>
    %cst_27 = arith.constant -0.284496725 : f32
    %58 = vector.broadcast %cst_27 : f32 to vector<16x256xf32>
    %59 = arith.addf %57, %58 : vector<16x256xf32>
    %60 = arith.mulf %59, %49 : vector<16x256xf32>
    %cst_28 = arith.constant 0.254829586 : f32
    %61 = vector.broadcast %cst_28 : f32 to vector<16x256xf32>
    %62 = arith.addf %60, %61 : vector<16x256xf32>
    %63 = arith.mulf %62, %49 : vector<16x256xf32>
    %cst_29 = arith.constant 0.000000e+00 : f32
    %64 = vector.broadcast %cst_29 : f32 to vector<16x256xf32>
    %65 = arith.subf %64, %43 : vector<16x256xf32>
    %66 = arith.mulf %65, %43 : vector<16x256xf32>
    %67 = math.exp %66 : vector<16x256xf32>
    %68 = arith.mulf %63, %67 : vector<16x256xf32>
    %cst_30 = arith.constant 1.000000e+00 : f32
    %69 = vector.broadcast %cst_30 : f32 to vector<16x256xf32>
    %70 = arith.subf %69, %68 : vector<16x256xf32>
    %71 = arith.mulf %42, %70 : vector<16x256xf32>
    %cst_31 = arith.constant 1.000000e+00 : f32
    %72 = vector.broadcast %cst_31 : f32 to vector<16x256xf32>
    %73 = arith.addf %72, %71 : vector<16x256xf32>
    %74 = arith.mulf %35, %73 : vector<16x256xf32>
    %c0_32 = arith.constant 0 : index
    %c0_33 = arith.constant 0 : index
    %75 = vector.load %arg8[%c0_32, %c0_33] : memref<16x256xf32, #tpu.memory_space<vmem>>, vector<16x256xf32>
    tpu.vector_store %arg8[%c0_32, %c0_33], %74 {strides = array<i32>} : memref<16x256xf32, #tpu.memory_space<vmem>>, vector<16x256xf32>,
    return
  }
  func.func @transform_0(%arg0: i32, %arg1: i32) -> (i32, i32) {
    %c0_i32 = arith.constant 0 : i32
    %c0_i32_0 = arith.constant 0 : i32
    return %arg0, %c0_i32 : i32, i32
  }
  func.func @transform_1(%arg0: i32, %arg1: i32) -> (i32, i32) {
    %c0_i32 = arith.constant 0 : i32
    %c0_i32_0 = arith.constant 0 : i32
    %c0_i32_1 = arith.constant 0 : i32
    return %c0_i32, %c0_i32_0 : i32, i32
  }
  func.func @transform_2(%arg0: i32, %arg1: i32) -> (i32, i32) {
    %c0_i32 = arith.constant 0 : i32
    %c0_i32_0 = arith.constant 0 : i32
    %c0_i32_1 = arith.constant 0 : i32
    return %c0_i32, %c0_i32_0 : i32, i32
  }
  func.func @transform_3(%arg0: i32, %arg1: i32) -> (i32, i32) {
    %c0_i32 = arith.constant 0 : i32
    %c0_i32_0 = arith.constant 0 : i32
    return %c0_i32, %arg1 : i32, i32
  }
  func.func @transform_4(%arg0: i32, %arg1: i32) -> (i32, i32) {
    %c0_i32 = arith.constant 0 : i32
    %c0_i32_0 = arith.constant 0 : i32
    return %c0_i32, %arg1 : i32, i32
  }
  func.func @transform_5(%arg0: i32, %arg1: i32) -> (i32, i32) {
    %c0_i32 = arith.constant 0 : i32
    %c0_i32_0 = arith.constant 0 : i32
    return %c0_i32, %arg1 : i32, i32
  }
  func.func @transform_6(%arg0: i32, %arg1: i32) -> (i32, i32) {
    %c0_i32 = arith.constant 0 : i32
    return %arg0, %arg1 : i32, i32
  }
}

module attributes {stable_mosaic.version = 11 : i64} {
  func.func @_layernorm_kernel(%arg0: i32, %arg1: memref<16x128xf32, #tpu.memory_space<vmem>>, %arg2: memref<1x128xf32, #tpu.memory_space<vmem>>, %arg3: memref<1x128xf32, #tpu.memory_space<vmem>>, %arg4: memref<16x128xf32, #tpu.memory_space<vmem>>) attributes {dimension_semantics = [#tpu.dimension_semantics<parallel>], iteration_bounds = array<i64: 1>, scalar_prefetch = 0 : i64, scratch_operands = 0 : i64, tpu.core_type = #tpu.core_type<tc>, window_params = [{transform_indices = @transform_0, window_bounds = array<i64: 16, 128>}, {pipeline_mode = #tpu.pipeline_mode<synchronous>, transform_indices = @transform_1, window_bounds = array<i64: 1, 128>}, {pipeline_mode = #tpu.pipeline_mode<synchronous>, transform_indices = @transform_2, window_bounds = array<i64: 1, 128>}, {transform_indices = @transform_3, window_bounds = array<i64: 16, 128>}]} {
    %c0 = arith.constant 0 : index
    %c0_0 = arith.constant 0 : index
    %0 = vector.load %arg1[%c0, %c0_0] : memref<16x128xf32, #tpu.memory_space<vmem>>, vector<16x128xf32>
    %cst = arith.constant dense<0.000000e+00> : vector<16xf32>
    %1 = vector.multi_reduction <add>, %0, %cst [1] : vector<16x128xf32> to vector<16xf32>
    %2 = vector.shape_cast %1 : vector<16xf32> to vector<16x1xf32>
    %cst_1 = arith.constant 1.280000e+02 : f32
    %3 = vector.broadcast %cst_1 : f32 to vector<16x1xf32>
    %4 = arith.divf %2, %3 : vector<16x1xf32>
    %5 = vector.broadcast %4 : vector<16x1xf32> to vector<16x128xf32>
    %6 = arith.subf %0, %5 : vector<16x128xf32>
    %7 = arith.mulf %6, %6 : vector<16x128xf32>
    %cst_2 = arith.constant dense<0.000000e+00> : vector<16xf32>
    %8 = vector.multi_reduction <add>, %7, %cst_2 [1] : vector<16x128xf32> to vector<16xf32>
    %9 = vector.shape_cast %8 : vector<16xf32> to vector<16x1xf32>
    %cst_3 = arith.constant 1.280000e+02 : f32
    %10 = vector.broadcast %cst_3 : f32 to vector<16x1xf32>
    %11 = arith.divf %9, %10 : vector<16x1xf32>
    %12 = vector.broadcast %4 : vector<16x1xf32> to vector<16x128xf32>
    %13 = arith.subf %0, %12 : vector<16x128xf32>
    %cst_4 = arith.constant 9.99999974E-6 : f32
    %14 = vector.broadcast %cst_4 : f32 to vector<16x1xf32>
    %15 = arith.addf %11, %14 : vector<16x1xf32>
    %16 = math.rsqrt %15 : vector<16x1xf32>
    %17 = vector.broadcast %16 : vector<16x1xf32> to vector<16x128xf32>
    %18 = arith.mulf %13, %17 : vector<16x128xf32>
    %c0_5 = arith.constant 0 : index
    %c0_6 = arith.constant 0 : index
    %19 = vector.load %arg2[%c0_5, %c0_6] : memref<1x128xf32, #tpu.memory_space<vmem>>, vector<1x128xf32>
    %20 = vector.broadcast %19 : vector<1x128xf32> to vector<16x128xf32>
    %21 = arith.mulf %18, %20 : vector<16x128xf32>
    %c0_7 = arith.constant 0 : index
    %c0_8 = arith.constant 0 : index
    %22 = vector.load %arg3[%c0_7, %c0_8] : memref<1x128xf32, #tpu.memory_space<vmem>>, vector<1x128xf32>
    %23 = vector.broadcast %22 : vector<1x128xf32> to vector<16x128xf32>
    %24 = arith.addf %21, %23 : vector<16x128xf32>
    %c0_9 = arith.constant 0 : index
    %c0_10 = arith.constant 0 : index
    %25 = vector.load %arg4[%c0_9, %c0_10] : memref<16x128xf32, #tpu.memory_space<vmem>>, vector<16x128xf32>
    tpu.vector_store %arg4[%c0_9, %c0_10], %24 {strides = array<i32>} : memref<16x128xf32, #tpu.memory_space<vmem>>, vector<16x128xf32>,
    return
  }
  func.func @transform_0(%arg0: i32) -> (i32, i32) {
    %c0_i32 = arith.constant 0 : i32
    %c0_i32_0 = arith.constant 0 : i32
    return %arg0, %c0_i32 : i32, i32
  }
  func.func @transform_1(%arg0: i32) -> (i32, i32) {
    %c0_i32 = arith.constant 0 : i32
    %c0_i32_0 = arith.constant 0 : i32
    %c0_i32_1 = arith.constant 0 : i32
    return %c0_i32, %c0_i32_0 : i32, i32
  }
  func.func @transform_2(%arg0: i32) -> (i32, i32) {
    %c0_i32 = arith.constant 0 : i32
    %c0_i32_0 = arith.constant 0 : i32
    %c0_i32_1 = arith.constant 0 : i32
    return %c0_i32, %c0_i32_0 : i32, i32
  }
  func.func @transform_3(%arg0: i32) -> (i32, i32) {
    %c0_i32 = arith.constant 0 : i32
    %c0_i32_0 = arith.constant 0 : i32
    return %arg0, %c0_i32 : i32, i32
  }
}

module attributes {stable_mosaic.version = 11 : i64} {
  func.func @kernel(%arg0: i32, %arg1: i32, %arg2: memref<16x256xf32, #tpu.memory_space<vmem>>, %arg3: memref<256x128xbf16, #tpu.memory_space<vmem>>, %arg4: memref<1x128xf32, #tpu.memory_space<vmem>>, %arg5: memref<1x128xf32, #tpu.memory_space<vmem>>, %arg6: memref<16x128xf32, #tpu.memory_space<vmem>>, %arg7: memref<16x128xf32, #tpu.memory_space<vmem>>) attributes {dimension_semantics = [#tpu.dimension_semantics<parallel>, #tpu.dimension_semantics<parallel>], iteration_bounds = array<i64: 1, 1>, scalar_prefetch = 0 : i64, scratch_operands = 0 : i64, tpu.core_type = #tpu.core_type<tc>, window_params = [{transform_indices = @transform_0, window_bounds = array<i64: 16, 256>}, {transform_indices = @transform_1, window_bounds = array<i64: 256, 128>}, {transform_indices = @transform_2, window_bounds = array<i64: 1, 128>}, {transform_indices = @transform_3, window_bounds = array<i64: 1, 128>}, {transform_indices = @transform_4, window_bounds = array<i64: 16, 128>}, {transform_indices = @transform_5, window_bounds = array<i64: 16, 128>}]} {
    %c0 = arith.constant 0 : index
    %c0_0 = arith.constant 0 : index
    %0 = vector.load %arg2[%c0, %c0_0] : memref<16x256xf32, #tpu.memory_space<vmem>>, vector<16x256xf32>
    %c0_1 = arith.constant 0 : index
    %c0_2 = arith.constant 0 : index
    %1 = vector.load %arg3[%c0_1, %c0_2] : memref<256x128xbf16, #tpu.memory_space<vmem>>, vector<256x128xbf16>
    %c0_3 = arith.constant 0 : index
    %c0_4 = arith.constant 0 : index
    %2 = vector.load %arg4[%c0_3, %c0_4] : memref<1x128xf32, #tpu.memory_space<vmem>>, vector<1x128xf32>
    %c0_5 = arith.constant 0 : index
    %c0_6 = arith.constant 0 : index
    %3 = vector.load %arg5[%c0_5, %c0_6] : memref<1x128xf32, #tpu.memory_space<vmem>>, vector<1x128xf32>
    %4 = arith.truncf %0 : vector<16x256xf32> to vector<16x256xbf16>
    %cst = arith.constant dense<0.000000e+00> : vector<16x128xf32>
    %5 = tpu.matmul %4, %1, %cst {dimension_numbers = #tpu.dot_dimension_numbers<[1], [0], [0], [1], [0, 0, 1, 1], [], []>} : vector<16x256xbf16>, vector<256x128xbf16>, vector<16x128xf32> -> vector<16x128xf32>
    %6 = vector.broadcast %2 : vector<1x128xf32> to vector<16x128xf32>
    %7 = arith.mulf %5, %6 : vector<16x128xf32>
    %8 = vector.broadcast %3 : vector<1x128xf32> to vector<16x128xf32>
    %9 = arith.addf %7, %8 : vector<16x128xf32>
    %c0_7 = arith.constant 0 : index
    %c0_8 = arith.constant 0 : index
    %10 = vector.load %arg6[%c0_7, %c0_8] : memref<16x128xf32, #tpu.memory_space<vmem>>, vector<16x128xf32>
    %cst_9 = arith.constant 1.000000e+00 : f32
    %11 = vector.broadcast %cst_9 : f32 to vector<16x128xf32>
    %12 = arith.mulf %9, %11 : vector<16x128xf32>
    %13 = arith.addf %10, %12 : vector<16x128xf32>
    %c0_10 = arith.constant 0 : index
    %c0_11 = arith.constant 0 : index
    %14 = vector.load %arg7[%c0_10, %c0_11] : memref<16x128xf32, #tpu.memory_space<vmem>>, vector<16x128xf32>
    tpu.vector_store %arg7[%c0_10, %c0_11], %13 {strides = array<i32>} : memref<16x128xf32, #tpu.memory_space<vmem>>, vector<16x128xf32>,
    return
  }
  func.func @transform_0(%arg0: i32, %arg1: i32) -> (i32, i32) {
    %c0_i32 = arith.constant 0 : i32
    %c0_i32_0 = arith.constant 0 : i32
    return %arg0, %c0_i32 : i32, i32
  }
  func.func @transform_1(%arg0: i32, %arg1: i32) -> (i32, i32) {
    %c0_i32 = arith.constant 0 : i32
    %c0_i32_0 = arith.constant 0 : i32
    return %c0_i32, %arg1 : i32, i32
  }
  func.func @transform_2(%arg0: i32, %arg1: i32) -> (i32, i32) {
    %c0_i32 = arith.constant 0 : i32
    %c0_i32_0 = arith.constant 0 : i32
    return %c0_i32, %arg1 : i32, i32
  }
  func.func @transform_3(%arg0: i32, %arg1: i32) -> (i32, i32) {
    %c0_i32 = arith.constant 0 : i32
    %c0_i32_0 = arith.constant 0 : i32
    return %c0_i32, %arg1 : i32, i32
  }
  func.func @transform_4(%arg0: i32, %arg1: i32) -> (i32, i32) {
    %c0_i32 = arith.constant 0 : i32
    return %arg0, %arg1 : i32, i32
  }
  func.func @transform_5(%arg0: i32, %arg1: i32) -> (i32, i32) {
    %c0_i32 = arith.constant 0 : i32
    return %arg0, %arg1 : i32, i32
  }
}

module attributes {stable_mosaic.version = 11 : i64} {
  func.func @kernel(%arg0: i32, %arg1: i32, %arg2: memref<8x128xf32, #tpu.memory_space<vmem>>, %arg3: memref<1x128xf32, #tpu.memory_space<vmem>>, %arg4: memref<1x128xf32, #tpu.memory_space<vmem>>, %arg5: memref<128x256xbf16, #tpu.memory_space<vmem>>, %arg6: memref<1x256xf32, #tpu.memory_space<vmem>>, %arg7: memref<1x256xf32, #tpu.memory_space<vmem>>, %arg8: memref<8x256xf32, #tpu.memory_space<vmem>>) attributes {dimension_semantics = [#tpu.dimension_semantics<parallel>, #tpu.dimension_semantics<parallel>], iteration_bounds = array<i64: 1, 1>, scalar_prefetch = 0 : i64, scratch_operands = 0 : i64, tpu.core_type = #tpu.core_type<tc>, window_params = [{transform_indices = @transform_0, window_bounds = array<i64: 8, 128>}, {pipeline_mode = #tpu.pipeline_mode<synchronous>, transform_indices = @transform_1, window_bounds = array<i64: 1, 128>}, {pipeline_mode = #tpu.pipeline_mode<synchronous>, transform_indices = @transform_2, window_bounds = array<i64: 1, 128>}, {transform_indices = @transform_3, window_bounds = array<i64: 128, 256>}, {transform_indices = @transform_4, window_bounds = array<i64: 1, 256>}, {transform_indices = @transform_5, window_bounds = array<i64: 1, 256>}, {transform_indices = @transform_6, window_bounds = array<i64: 8, 256>}]} {
    %c0 = arith.constant 0 : index
    %c0_0 = arith.constant 0 : index
    %0 = vector.load %arg2[%c0, %c0_0] : memref<8x128xf32, #tpu.memory_space<vmem>>, vector<8x128xf32>
    %c0_1 = arith.constant 0 : index
    %c0_2 = arith.constant 0 : index
    %1 = vector.load %arg3[%c0_1, %c0_2] : memref<1x128xf32, #tpu.memory_space<vmem>>, vector<1x128xf32>
    %c0_3 = arith.constant 0 : index
    %c0_4 = arith.constant 0 : index
    %2 = vector.load %arg4[%c0_3, %c0_4] : memref<1x128xf32, #tpu.memory_space<vmem>>, vector<1x128xf32>
    %cst = arith.constant dense<0.000000e+00> : vector<8xf32>
    %3 = vector.multi_reduction <add>, %0, %cst [1] : vector<8x128xf32> to vector<8xf32>
    %4 = vector.shape_cast %3 : vector<8xf32> to vector<8x1xf32>
    %cst_5 = arith.constant 1.280000e+02 : f32
    %5 = vector.broadcast %cst_5 : f32 to vector<8x1xf32>
    %6 = arith.divf %4, %5 : vector<8x1xf32>
    %7 = vector.broadcast %6 : vector<8x1xf32> to vector<8x128xf32>
    %8 = arith.subf %0, %7 : vector<8x128xf32>
    %9 = arith.mulf %8, %8 : vector<8x128xf32>
    %cst_6 = arith.constant dense<0.000000e+00> : vector<8xf32>
    %10 = vector.multi_reduction <add>, %9, %cst_6 [1] : vector<8x128xf32> to vector<8xf32>
    %11 = vector.shape_cast %10 : vector<8xf32> to vector<8x1xf32>
    %cst_7 = arith.constant 1.280000e+02 : f32
    %12 = vector.broadcast %cst_7 : f32 to vector<8x1xf32>
    %13 = arith.divf %11, %12 : vector<8x1xf32>
    %14 = vector.broadcast %6 : vector<8x1xf32> to vector<8x128xf32>
    %15 = arith.subf %0, %14 : vector<8x128xf32>
    %cst_8 = arith.constant 9.99999974E-6 : f32
    %16 = vector.broadcast %cst_8 : f32 to vector<8x1xf32>
    %17 = arith.addf %13, %16 : vector<8x1xf32>
    %18 = math.rsqrt %17 : vector<8x1xf32>
    %19 = vector.broadcast %18 : vector<8x1xf32> to vector<8x128xf32>
    %20 = arith.mulf %15, %19 : vector<8x128xf32>
    %21 = vector.broadcast %1 : vector<1x128xf32> to vector<8x128xf32>
    %22 = arith.mulf %20, %21 : vector<8x128xf32>
    %23 = vector.broadcast %2 : vector<1x128xf32> to vector<8x128xf32>
    %24 = arith.addf %22, %23 : vector<8x128xf32>
    %c0_9 = arith.constant 0 : index
    %c0_10 = arith.constant 0 : index
    %25 = vector.load %arg5[%c0_9, %c0_10] : memref<128x256xbf16, #tpu.memory_space<vmem>>, vector<128x256xbf16>
    %c0_11 = arith.constant 0 : index
    %c0_12 = arith.constant 0 : index
    %26 = vector.load %arg6[%c0_11, %c0_12] : memref<1x256xf32, #tpu.memory_space<vmem>>, vector<1x256xf32>
    %c0_13 = arith.constant 0 : index
    %c0_14 = arith.constant 0 : index
    %27 = vector.load %arg7[%c0_13, %c0_14] : memref<1x256xf32, #tpu.memory_space<vmem>>, vector<1x256xf32>
    %28 = arith.truncf %24 : vector<8x128xf32> to vector<8x128xbf16>
    %cst_15 = arith.constant dense<0.000000e+00> : vector<8x256xf32>
    %29 = tpu.matmul %28, %25, %cst_15 {dimension_numbers = #tpu.dot_dimension_numbers<[1], [0], [0], [1], [0, 0, 1, 1], [], []>} : vector<8x128xbf16>, vector<128x256xbf16>, vector<8x256xf32> -> vector<8x256xf32>
    %30 = vector.broadcast %26 : vector<1x256xf32> to vector<8x256xf32>
    %31 = arith.mulf %29, %30 : vector<8x256xf32>
    %32 = vector.broadcast %27 : vector<1x256xf32> to vector<8x256xf32>
    %33 = arith.addf %31, %32 : vector<8x256xf32>
    %cst_16 = arith.constant 5.000000e-01 : f32
    %34 = vector.broadcast %cst_16 : f32 to vector<8x256xf32>
    %35 = arith.mulf %34, %33 : vector<8x256xf32>
    %cst_17 = arith.constant 0.707106769 : f32
    %36 = vector.broadcast %cst_17 : f32 to vector<8x256xf32>
    %37 = arith.mulf %33, %36 : vector<8x256xf32>
    %cst_18 = arith.constant 0.000000e+00 : f32
    %38 = vector.broadcast %cst_18 : f32 to vector<8x256xf32>
    %39 = arith.cmpf oge, %37, %38 : vector<8x256xf32>
    %cst_19 = arith.constant 1.000000e+00 : f32
    %cst_20 = arith.constant -1.000000e+00 : f32
    %40 = vector.broadcast %cst_19 : f32 to vector<8x256xf32>
    %41 = vector.broadcast %cst_20 : f32 to vector<8x256xf32>
    %42 = arith.select %39, %40, %41 : vector<8x256xi1>, vector<8x256xf32>
    %43 = math.absf %37 : vector<8x256xf32>
    %cst_21 = arith.constant 0.327591091 : f32
    %44 = vector.broadcast %cst_21 : f32 to vector<8x256xf32>
    %45 = arith.mulf %44, %43 : vector<8x256xf32>
    %cst_22 = arith.constant 1.000000e+00 : f32
    %46 = vector.broadcast %cst_22 : f32 to vector<8x256xf32>
    %47 = arith.addf %46, %45 : vector<8x256xf32>
    %cst_23 = arith.constant 1.000000e+00 : f32
    %48 = vector.broadcast %cst_23 : f32 to vector<8x256xf32>
    %49 = arith.divf %48, %47 : vector<8x256xf32>
    %cst_24 = arith.constant 1.06140542 : f32
    %50 = vector.broadcast %cst_24 : f32 to vector<8x256xf32>
    %51 = arith.mulf %50, %49 : vector<8x256xf32>
    %cst_25 = arith.constant -1.45315206 : f32
    %52 = vector.broadcast %cst_25 : f32 to vector<8x256xf32>
    %53 = arith.addf %51, %52 : vector<8x256xf32>
    %54 = arith.mulf %53, %49 : vector<8x256xf32>
    %cst_26 = arith.constant 1.42141378 : f32
    %55 = vector.broadcast %cst_26 : f32 to vector<8x256xf32>
    %56 = arith.addf %54, %55 : vector<8x256xf32>
    %57 = arith.mulf %56, %49 : vector<8x256xf32>
    %cst_27 = arith.constant -0.284496725 : f32
    %58 = vector.broadcast %cst_27 : f32 to vector<8x256xf32>
    %59 = arith.addf %57, %58 : vector<8x256xf32>
    %60 = arith.mulf %59, %49 : vector<8x256xf32>
    %cst_28 = arith.constant 0.254829586 : f32
    %61 = vector.broadcast %cst_28 : f32 to vector<8x256xf32>
    %62 = arith.addf %60, %61 : vector<8x256xf32>
    %63 = arith.mulf %62, %49 : vector<8x256xf32>
    %cst_29 = arith.constant 0.000000e+00 : f32
    %64 = vector.broadcast %cst_29 : f32 to vector<8x256xf32>
    %65 = arith.subf %64, %43 : vector<8x256xf32>
    %66 = arith.mulf %65, %43 : vector<8x256xf32>
    %67 = math.exp %66 : vector<8x256xf32>
    %68 = arith.mulf %63, %67 : vector<8x256xf32>
    %cst_30 = arith.constant 1.000000e+00 : f32
    %69 = vector.broadcast %cst_30 : f32 to vector<8x256xf32>
    %70 = arith.subf %69, %68 : vector<8x256xf32>
    %71 = arith.mulf %42, %70 : vector<8x256xf32>
    %cst_31 = arith.constant 1.000000e+00 : f32
    %72 = vector.broadcast %cst_31 : f32 to vector<8x256xf32>
    %73 = arith.addf %72, %71 : vector<8x256xf32>
    %74 = arith.mulf %35, %73 : vector<8x256xf32>
    %c0_32 = arith.constant 0 : index
    %c0_33 = arith.constant 0 : index
    %75 = vector.load %arg8[%c0_32, %c0_33] : memref<8x256xf32, #tpu.memory_space<vmem>>, vector<8x256xf32>
    tpu.vector_store %arg8[%c0_32, %c0_33], %74 {strides = array<i32>} : memref<8x256xf32, #tpu.memory_space<vmem>>, vector<8x256xf32>,
    return
  }
  func.func @transform_0(%arg0: i32, %arg1: i32) -> (i32, i32) {
    %c0_i32 = arith.constant 0 : i32
    %c0_i32_0 = arith.constant 0 : i32
    return %arg0, %c0_i32 : i32, i32
  }
  func.func @transform_1(%arg0: i32, %arg1: i32) -> (i32, i32) {
    %c0_i32 = arith.constant 0 : i32
    %c0_i32_0 = arith.constant 0 : i32
    %c0_i32_1 = arith.constant 0 : i32
    return %c0_i32, %c0_i32_0 : i32, i32
  }
  func.func @transform_2(%arg0: i32, %arg1: i32) -> (i32, i32) {
    %c0_i32 = arith.constant 0 : i32
    %c0_i32_0 = arith.constant 0 : i32
    %c0_i32_1 = arith.constant 0 : i32
    return %c0_i32, %c0_i32_0 : i32, i32
  }
  func.func @transform_3(%arg0: i32, %arg1: i32) -> (i32, i32) {
    %c0_i32 = arith.constant 0 : i32
    %c0_i32_0 = arith.constant 0 : i32
    return %c0_i32, %arg1 : i32, i32
  }
  func.func @transform_4(%arg0: i32, %arg1: i32) -> (i32, i32) {
    %c0_i32 = arith.constant 0 : i32
    %c0_i32_0 = arith.constant 0 : i32
    return %c0_i32, %arg1 : i32, i32
  }
  func.func @transform_5(%arg0: i32, %arg1: i32) -> (i32, i32) {
    %c0_i32 = arith.constant 0 : i32
    %c0_i32_0 = arith.constant 0 : i32
    return %c0_i32, %arg1 : i32, i32
  }
  func.func @transform_6(%arg0: i32, %arg1: i32) -> (i32, i32) {
    %c0_i32 = arith.constant 0 : i32
    return %arg0, %arg1 : i32, i32
  }
}

module attributes {stable_mosaic.version = 11 : i64} {
  func.func @kernel(%arg0: i32, %arg1: i32, %arg2: memref<128x147xf32, #tpu.memory_space<vmem>>, %arg3: memref<147x64xbf16, #tpu.memory_space<vmem>>, %arg4: memref<1x64xf32, #tpu.memory_space<vmem>>, %arg5: memref<1x64xf32, #tpu.memory_space<vmem>>, %arg6: memref<128x64xf32, #tpu.memory_space<vmem>>) attributes {dimension_semantics = [#tpu.dimension_semantics<parallel>, #tpu.dimension_semantics<parallel>], iteration_bounds = array<i64: 1, 1>, scalar_prefetch = 0 : i64, scratch_operands = 0 : i64, tpu.core_type = #tpu.core_type<tc>, window_params = [{transform_indices = @transform_0, window_bounds = array<i64: 128, 147>}, {transform_indices = @transform_1, window_bounds = array<i64: 147, 64>}, {transform_indices = @transform_2, window_bounds = array<i64: 1, 64>}, {transform_indices = @transform_3, window_bounds = array<i64: 1, 64>}, {transform_indices = @transform_4, window_bounds = array<i64: 128, 64>}]} {
    %c0 = arith.constant 0 : index
    %c0_0 = arith.constant 0 : index
    %0 = vector.load %arg2[%c0, %c0_0] : memref<128x147xf32, #tpu.memory_space<vmem>>, vector<128x147xf32>
    %c0_1 = arith.constant 0 : index
    %c0_2 = arith.constant 0 : index
    %1 = vector.load %arg3[%c0_1, %c0_2] : memref<147x64xbf16, #tpu.memory_space<vmem>>, vector<147x64xbf16>
    %c0_3 = arith.constant 0 : index
    %c0_4 = arith.constant 0 : index
    %2 = vector.load %arg4[%c0_3, %c0_4] : memref<1x64xf32, #tpu.memory_space<vmem>>, vector<1x64xf32>
    %c0_5 = arith.constant 0 : index
    %c0_6 = arith.constant 0 : index
    %3 = vector.load %arg5[%c0_5, %c0_6] : memref<1x64xf32, #tpu.memory_space<vmem>>, vector<1x64xf32>
    %4 = arith.truncf %0 : vector<128x147xf32> to vector<128x147xbf16>
    %cst = arith.constant dense<0.000000e+00> : vector<128x64xf32>
    %5 = tpu.matmul %4, %1, %cst {dimension_numbers = #tpu.dot_dimension_numbers<[1], [0], [0], [1], [0, 0, 1, 1], [], []>} : vector<128x147xbf16>, vector<147x64xbf16>, vector<128x64xf32> -> vector<128x64xf32>
    %6 = vector.broadcast %2 : vector<1x64xf32> to vector<128x64xf32>
    %7 = arith.mulf %5, %6 : vector<128x64xf32>
    %8 = vector.broadcast %3 : vector<1x64xf32> to vector<128x64xf32>
    %9 = arith.addf %7, %8 : vector<128x64xf32>
    %cst_7 = arith.constant 0.000000e+00 : f32
    %10 = vector.broadcast %cst_7 : f32 to vector<128x64xf32>
    %11 = arith.maximumf %9, %10 : vector<128x64xf32>
    %c0_8 = arith.constant 0 : index
    %c0_9 = arith.constant 0 : index
    %12 = vector.load %arg6[%c0_8, %c0_9] : memref<128x64xf32, #tpu.memory_space<vmem>>, vector<128x64xf32>
    tpu.vector_store %arg6[%c0_8, %c0_9], %11 {strides = array<i32>} : memref<128x64xf32, #tpu.memory_space<vmem>>, vector<128x64xf32>,
    return
  }
  func.func @transform_0(%arg0: i32, %arg1: i32) -> (i32, i32) {
    %c0_i32 = arith.constant 0 : i32
    %c0_i32_0 = arith.constant 0 : i32
    return %arg0, %c0_i32 : i32, i32
  }
  func.func @transform_1(%arg0: i32, %arg1: i32) -> (i32, i32) {
    %c0_i32 = arith.constant 0 : i32
    %c0_i32_0 = arith.constant 0 : i32
    return %c0_i32, %arg1 : i32, i32
  }
  func.func @transform_2(%arg0: i32, %arg1: i32) -> (i32, i32) {
    %c0_i32 = arith.constant 0 : i32
    %c0_i32_0 = arith.constant 0 : i32
    return %c0_i32, %arg1 : i32, i32
  }
  func.func @transform_3(%arg0: i32, %arg1: i32) -> (i32, i32) {
    %c0_i32 = arith.constant 0 : i32
    %c0_i32_0 = arith.constant 0 : i32
    return %c0_i32, %arg1 : i32, i32
  }
  func.func @transform_4(%arg0: i32, %arg1: i32) -> (i32, i32) {
    %c0_i32 = arith.constant 0 : i32
    return %arg0, %arg1 : i32, i32
  }
}

module attributes {stable_mosaic.version = 11 : i64} {
  func.func @kernel(%arg0: i32, %arg1: i32, %arg2: memref<128x576xf32, #tpu.memory_space<vmem>>, %arg3: memref<576x64xbf16, #tpu.memory_space<vmem>>, %arg4: memref<1x64xf32, #tpu.memory_space<vmem>>, %arg5: memref<1x64xf32, #tpu.memory_space<vmem>>, %arg6: memref<128x64xf32, #tpu.memory_space<vmem>>) attributes {dimension_semantics = [#tpu.dimension_semantics<parallel>, #tpu.dimension_semantics<parallel>], iteration_bounds = array<i64: 1, 1>, scalar_prefetch = 0 : i64, scratch_operands = 0 : i64, tpu.core_type = #tpu.core_type<tc>, window_params = [{transform_indices = @transform_0, window_bounds = array<i64: 128, 576>}, {transform_indices = @transform_1, window_bounds = array<i64: 576, 64>}, {transform_indices = @transform_2, window_bounds = array<i64: 1, 64>}, {transform_indices = @transform_3, window_bounds = array<i64: 1, 64>}, {transform_indices = @transform_4, window_bounds = array<i64: 128, 64>}]} {
    %c0 = arith.constant 0 : index
    %c0_0 = arith.constant 0 : index
    %0 = vector.load %arg2[%c0, %c0_0] : memref<128x576xf32, #tpu.memory_space<vmem>>, vector<128x576xf32>
    %c0_1 = arith.constant 0 : index
    %c0_2 = arith.constant 0 : index
    %1 = vector.load %arg3[%c0_1, %c0_2] : memref<576x64xbf16, #tpu.memory_space<vmem>>, vector<576x64xbf16>
    %c0_3 = arith.constant 0 : index
    %c0_4 = arith.constant 0 : index
    %2 = vector.load %arg4[%c0_3, %c0_4] : memref<1x64xf32, #tpu.memory_space<vmem>>, vector<1x64xf32>
    %c0_5 = arith.constant 0 : index
    %c0_6 = arith.constant 0 : index
    %3 = vector.load %arg5[%c0_5, %c0_6] : memref<1x64xf32, #tpu.memory_space<vmem>>, vector<1x64xf32>
    %4 = arith.truncf %0 : vector<128x576xf32> to vector<128x576xbf16>
    %cst = arith.constant dense<0.000000e+00> : vector<128x64xf32>
    %5 = tpu.matmul %4, %1, %cst {dimension_numbers = #tpu.dot_dimension_numbers<[1], [0], [0], [1], [0, 0, 1, 1], [], []>} : vector<128x576xbf16>, vector<576x64xbf16>, vector<128x64xf32> -> vector<128x64xf32>
    %6 = vector.broadcast %2 : vector<1x64xf32> to vector<128x64xf32>
    %7 = arith.mulf %5, %6 : vector<128x64xf32>
    %8 = vector.broadcast %3 : vector<1x64xf32> to vector<128x64xf32>
    %9 = arith.addf %7, %8 : vector<128x64xf32>
    %cst_7 = arith.constant 0.000000e+00 : f32
    %10 = vector.broadcast %cst_7 : f32 to vector<128x64xf32>
    %11 = arith.maximumf %9, %10 : vector<128x64xf32>
    %c0_8 = arith.constant 0 : index
    %c0_9 = arith.constant 0 : index
    %12 = vector.load %arg6[%c0_8, %c0_9] : memref<128x64xf32, #tpu.memory_space<vmem>>, vector<128x64xf32>
    tpu.vector_store %arg6[%c0_8, %c0_9], %11 {strides = array<i32>} : memref<128x64xf32, #tpu.memory_space<vmem>>, vector<128x64xf32>,
    return
  }
  func.func @transform_0(%arg0: i32, %arg1: i32) -> (i32, i32) {
    %c0_i32 = arith.constant 0 : i32
    %c0_i32_0 = arith.constant 0 : i32
    return %arg0, %c0_i32 : i32, i32
  }
  func.func @transform_1(%arg0: i32, %arg1: i32) -> (i32, i32) {
    %c0_i32 = arith.constant 0 : i32
    %c0_i32_0 = arith.constant 0 : i32
    return %c0_i32, %arg1 : i32, i32
  }
  func.func @transform_2(%arg0: i32, %arg1: i32) -> (i32, i32) {
    %c0_i32 = arith.constant 0 : i32
    %c0_i32_0 = arith.constant 0 : i32
    return %c0_i32, %arg1 : i32, i32
  }
  func.func @transform_3(%arg0: i32, %arg1: i32) -> (i32, i32) {
    %c0_i32 = arith.constant 0 : i32
    %c0_i32_0 = arith.constant 0 : i32
    return %c0_i32, %arg1 : i32, i32
  }
  func.func @transform_4(%arg0: i32, %arg1: i32) -> (i32, i32) {
    %c0_i32 = arith.constant 0 : i32
    return %arg0, %arg1 : i32, i32
  }
}

module attributes {stable_mosaic.version = 11 : i64} {
  func.func @kernel(%arg0: i32, %arg1: i32, %arg2: memref<32x256xf32, #tpu.memory_space<vmem>>, %arg3: memref<256x128xbf16, #tpu.memory_space<vmem>>, %arg4: memref<1x128xf32, #tpu.memory_space<vmem>>, %arg5: memref<1x128xf32, #tpu.memory_space<vmem>>, %arg6: memref<32x128xf32, #tpu.memory_space<vmem>>) attributes {dimension_semantics = [#tpu.dimension_semantics<parallel>, #tpu.dimension_semantics<parallel>], iteration_bounds = array<i64: 1, 1>, scalar_prefetch = 0 : i64, scratch_operands = 0 : i64, tpu.core_type = #tpu.core_type<tc>, window_params = [{transform_indices = @transform_0, window_bounds = array<i64: 32, 256>}, {transform_indices = @transform_1, window_bounds = array<i64: 256, 128>}, {transform_indices = @transform_2, window_bounds = array<i64: 1, 128>}, {transform_indices = @transform_3, window_bounds = array<i64: 1, 128>}, {transform_indices = @transform_4, window_bounds = array<i64: 32, 128>}]} {
    %c0 = arith.constant 0 : index
    %c0_0 = arith.constant 0 : index
    %0 = vector.load %arg2[%c0, %c0_0] : memref<32x256xf32, #tpu.memory_space<vmem>>, vector<32x256xf32>
    %c0_1 = arith.constant 0 : index
    %c0_2 = arith.constant 0 : index
    %1 = vector.load %arg3[%c0_1, %c0_2] : memref<256x128xbf16, #tpu.memory_space<vmem>>, vector<256x128xbf16>
    %c0_3 = arith.constant 0 : index
    %c0_4 = arith.constant 0 : index
    %2 = vector.load %arg4[%c0_3, %c0_4] : memref<1x128xf32, #tpu.memory_space<vmem>>, vector<1x128xf32>
    %c0_5 = arith.constant 0 : index
    %c0_6 = arith.constant 0 : index
    %3 = vector.load %arg5[%c0_5, %c0_6] : memref<1x128xf32, #tpu.memory_space<vmem>>, vector<1x128xf32>
    %4 = arith.truncf %0 : vector<32x256xf32> to vector<32x256xbf16>
    %cst = arith.constant dense<0.000000e+00> : vector<32x128xf32>
    %5 = tpu.matmul %4, %1, %cst {dimension_numbers = #tpu.dot_dimension_numbers<[1], [0], [0], [1], [0, 0, 1, 1], [], []>} : vector<32x256xbf16>, vector<256x128xbf16>, vector<32x128xf32> -> vector<32x128xf32>
    %6 = vector.broadcast %2 : vector<1x128xf32> to vector<32x128xf32>
    %7 = arith.mulf %5, %6 : vector<32x128xf32>
    %8 = vector.broadcast %3 : vector<1x128xf32> to vector<32x128xf32>
    %9 = arith.addf %7, %8 : vector<32x128xf32>
    %c0_7 = arith.constant 0 : index
    %c0_8 = arith.constant 0 : index
    %10 = vector.load %arg6[%c0_7, %c0_8] : memref<32x128xf32, #tpu.memory_space<vmem>>, vector<32x128xf32>
    tpu.vector_store %arg6[%c0_7, %c0_8], %9 {strides = array<i32>} : memref<32x128xf32, #tpu.memory_space<vmem>>, vector<32x128xf32>,
    return
  }
  func.func @transform_0(%arg0: i32, %arg1: i32) -> (i32, i32) {
    %c0_i32 = arith.constant 0 : i32
    %c0_i32_0 = arith.constant 0 : i32
    return %arg0, %c0_i32 : i32, i32
  }
  func.func @transform_1(%arg0: i32, %arg1: i32) -> (i32, i32) {
    %c0_i32 = arith.constant 0 : i32
    %c0_i32_0 = arith.constant 0 : i32
    return %c0_i32, %arg1 : i32, i32
  }
  func.func @transform_2(%arg0: i32, %arg1: i32) -> (i32, i32) {
    %c0_i32 = arith.constant 0 : i32
    %c0_i32_0 = arith.constant 0 : i32
    return %c0_i32, %arg1 : i32, i32
  }
  func.func @transform_3(%arg0: i32, %arg1: i32) -> (i32, i32) {
    %c0_i32 = arith.constant 0 : i32
    %c0_i32_0 = arith.constant 0 : i32
    return %c0_i32, %arg1 : i32, i32
  }
  func.func @transform_4(%arg0: i32, %arg1: i32) -> (i32, i32) {
    %c0_i32 = arith.constant 0 : i32
    return %arg0, %arg1 : i32, i32
  }
}

module attributes {stable_mosaic.version = 11 : i64} {
  func.func @kernel(%arg0: i32, %arg1: i32, %arg2: memref<40x128xf32, #tpu.memory_space<vmem>>, %arg3: memref<1x128xf32, #tpu.memory_space<vmem>>, %arg4: memref<1x128xf32, #tpu.memory_space<vmem>>, %arg5: memref<128x384xbf16, #tpu.memory_space<vmem>>, %arg6: memref<1x384xf32, #tpu.memory_space<vmem>>, %arg7: memref<1x384xf32, #tpu.memory_space<vmem>>, %arg8: memref<40x384xf32, #tpu.memory_space<vmem>>) attributes {dimension_semantics = [#tpu.dimension_semantics<parallel>, #tpu.dimension_semantics<parallel>], iteration_bounds = array<i64: 1, 1>, scalar_prefetch = 0 : i64, scratch_operands = 0 : i64, tpu.core_type = #tpu.core_type<tc>, window_params = [{transform_indices = @transform_0, window_bounds = array<i64: 40, 128>}, {pipeline_mode = #tpu.pipeline_mode<synchronous>, transform_indices = @transform_1, window_bounds = array<i64: 1, 128>}, {pipeline_mode = #tpu.pipeline_mode<synchronous>, transform_indices = @transform_2, window_bounds = array<i64: 1, 128>}, {transform_indices = @transform_3, window_bounds = array<i64: 128, 384>}, {transform_indices = @transform_4, window_bounds = array<i64: 1, 384>}, {transform_indices = @transform_5, window_bounds = array<i64: 1, 384>}, {transform_indices = @transform_6, window_bounds = array<i64: 40, 384>}]} {
    %c0 = arith.constant 0 : index
    %c0_0 = arith.constant 0 : index
    %0 = vector.load %arg2[%c0, %c0_0] : memref<40x128xf32, #tpu.memory_space<vmem>>, vector<40x128xf32>
    %c0_1 = arith.constant 0 : index
    %c0_2 = arith.constant 0 : index
    %1 = vector.load %arg3[%c0_1, %c0_2] : memref<1x128xf32, #tpu.memory_space<vmem>>, vector<1x128xf32>
    %c0_3 = arith.constant 0 : index
    %c0_4 = arith.constant 0 : index
    %2 = vector.load %arg4[%c0_3, %c0_4] : memref<1x128xf32, #tpu.memory_space<vmem>>, vector<1x128xf32>
    %cst = arith.constant dense<0.000000e+00> : vector<40xf32>
    %3 = vector.multi_reduction <add>, %0, %cst [1] : vector<40x128xf32> to vector<40xf32>
    %4 = vector.shape_cast %3 : vector<40xf32> to vector<40x1xf32>
    %cst_5 = arith.constant 1.280000e+02 : f32
    %5 = vector.broadcast %cst_5 : f32 to vector<40x1xf32>
    %6 = arith.divf %4, %5 : vector<40x1xf32>
    %7 = vector.broadcast %6 : vector<40x1xf32> to vector<40x128xf32>
    %8 = arith.subf %0, %7 : vector<40x128xf32>
    %9 = arith.mulf %8, %8 : vector<40x128xf32>
    %cst_6 = arith.constant dense<0.000000e+00> : vector<40xf32>
    %10 = vector.multi_reduction <add>, %9, %cst_6 [1] : vector<40x128xf32> to vector<40xf32>
    %11 = vector.shape_cast %10 : vector<40xf32> to vector<40x1xf32>
    %cst_7 = arith.constant 1.280000e+02 : f32
    %12 = vector.broadcast %cst_7 : f32 to vector<40x1xf32>
    %13 = arith.divf %11, %12 : vector<40x1xf32>
    %14 = vector.broadcast %6 : vector<40x1xf32> to vector<40x128xf32>
    %15 = arith.subf %0, %14 : vector<40x128xf32>
    %cst_8 = arith.constant 9.99999974E-6 : f32
    %16 = vector.broadcast %cst_8 : f32 to vector<40x1xf32>
    %17 = arith.addf %13, %16 : vector<40x1xf32>
    %18 = math.rsqrt %17 : vector<40x1xf32>
    %19 = vector.broadcast %18 : vector<40x1xf32> to vector<40x128xf32>
    %20 = arith.mulf %15, %19 : vector<40x128xf32>
    %21 = vector.broadcast %1 : vector<1x128xf32> to vector<40x128xf32>
    %22 = arith.mulf %20, %21 : vector<40x128xf32>
    %23 = vector.broadcast %2 : vector<1x128xf32> to vector<40x128xf32>
    %24 = arith.addf %22, %23 : vector<40x128xf32>
    %c0_9 = arith.constant 0 : index
    %c0_10 = arith.constant 0 : index
    %25 = vector.load %arg5[%c0_9, %c0_10] : memref<128x384xbf16, #tpu.memory_space<vmem>>, vector<128x384xbf16>
    %c0_11 = arith.constant 0 : index
    %c0_12 = arith.constant 0 : index
    %26 = vector.load %arg6[%c0_11, %c0_12] : memref<1x384xf32, #tpu.memory_space<vmem>>, vector<1x384xf32>
    %c0_13 = arith.constant 0 : index
    %c0_14 = arith.constant 0 : index
    %27 = vector.load %arg7[%c0_13, %c0_14] : memref<1x384xf32, #tpu.memory_space<vmem>>, vector<1x384xf32>
    %28 = arith.truncf %24 : vector<40x128xf32> to vector<40x128xbf16>
    %cst_15 = arith.constant dense<0.000000e+00> : vector<40x384xf32>
    %29 = tpu.matmul %28, %25, %cst_15 {dimension_numbers = #tpu.dot_dimension_numbers<[1], [0], [0], [1], [0, 0, 1, 1], [], []>} : vector<40x128xbf16>, vector<128x384xbf16>, vector<40x384xf32> -> vector<40x384xf32>
    %30 = vector.broadcast %26 : vector<1x384xf32> to vector<40x384xf32>
    %31 = arith.mulf %29, %30 : vector<40x384xf32>
    %32 = vector.broadcast %27 : vector<1x384xf32> to vector<40x384xf32>
    %33 = arith.addf %31, %32 : vector<40x384xf32>
    %c0_16 = arith.constant 0 : index
    %c0_17 = arith.constant 0 : index
    %34 = vector.load %arg8[%c0_16, %c0_17] : memref<40x384xf32, #tpu.memory_space<vmem>>, vector<40x384xf32>
    tpu.vector_store %arg8[%c0_16, %c0_17], %33 {strides = array<i32>} : memref<40x384xf32, #tpu.memory_space<vmem>>, vector<40x384xf32>,
    return
  }
  func.func @transform_0(%arg0: i32, %arg1: i32) -> (i32, i32) {
    %c0_i32 = arith.constant 0 : i32
    %c0_i32_0 = arith.constant 0 : i32
    return %arg0, %c0_i32 : i32, i32
  }
  func.func @transform_1(%arg0: i32, %arg1: i32) -> (i32, i32) {
    %c0_i32 = arith.constant 0 : i32
    %c0_i32_0 = arith.constant 0 : i32
    %c0_i32_1 = arith.constant 0 : i32
    return %c0_i32, %c0_i32_0 : i32, i32
  }
  func.func @transform_2(%arg0: i32, %arg1: i32) -> (i32, i32) {
    %c0_i32 = arith.constant 0 : i32
    %c0_i32_0 = arith.constant 0 : i32
    %c0_i32_1 = arith.constant 0 : i32
    return %c0_i32, %c0_i32_0 : i32, i32
  }
  func.func @transform_3(%arg0: i32, %arg1: i32) -> (i32, i32) {
    %c0_i32 = arith.constant 0 : i32
    %c0_i32_0 = arith.constant 0 : i32
    return %c0_i32, %arg1 : i32, i32
  }
  func.func @transform_4(%arg0: i32, %arg1: i32) -> (i32, i32) {
    %c0_i32 = arith.constant 0 : i32
    %c0_i32_0 = arith.constant 0 : i32
    return %c0_i32, %arg1 : i32, i32
  }
  func.func @transform_5(%arg0: i32, %arg1: i32) -> (i32, i32) {
    %c0_i32 = arith.constant 0 : i32
    %c0_i32_0 = arith.constant 0 : i32
    return %c0_i32, %arg1 : i32, i32
  }
  func.func @transform_6(%arg0: i32, %arg1: i32) -> (i32, i32) {
    %c0_i32 = arith.constant 0 : i32
    return %arg0, %arg1 : i32, i32
  }
}

module attributes {stable_mosaic.version = 11 : i64} {
  func.func @_attention_kernel(%arg0: i32, %arg1: memref<8x17x32xbf16, #tpu.memory_space<vmem>>, %arg2: memref<8x17x32xbf16, #tpu.memory_space<vmem>>, %arg3: memref<8x17x32xbf16, #tpu.memory_space<vmem>>, %arg4: memref<8x17x32xf32, #tpu.memory_space<vmem>>) attributes {dimension_semantics = [#tpu.dimension_semantics<parallel>], iteration_bounds = array<i64: 1>, scalar_prefetch = 0 : i64, scratch_operands = 0 : i64, tpu.core_type = #tpu.core_type<tc>, window_params = [{transform_indices = @transform_0, window_bounds = array<i64: 8, 17, 32>}, {transform_indices = @transform_1, window_bounds = array<i64: 8, 17, 32>}, {transform_indices = @transform_2, window_bounds = array<i64: 8, 17, 32>}, {transform_indices = @transform_3, window_bounds = array<i64: 8, 17, 32>}]} {
    %c0 = arith.constant 0 : index
    %c0_0 = arith.constant 0 : index
    %c0_1 = arith.constant 0 : index
    %0 = vector.load %arg1[%c0, %c0_0, %c0_1] : memref<8x17x32xbf16, #tpu.memory_space<vmem>>, vector<8x17x32xbf16>
    %c0_2 = arith.constant 0 : index
    %c0_3 = arith.constant 0 : index
    %c0_4 = arith.constant 0 : index
    %1 = vector.load %arg2[%c0_2, %c0_3, %c0_4] : memref<8x17x32xbf16, #tpu.memory_space<vmem>>, vector<8x17x32xbf16>
    %c0_5 = arith.constant 0 : index
    %c0_6 = arith.constant 0 : index
    %c0_7 = arith.constant 0 : index
    %2 = vector.load %arg3[%c0_5, %c0_6, %c0_7] : memref<8x17x32xbf16, #tpu.memory_space<vmem>>, vector<8x17x32xbf16>
    "tpu.trace_start"() <{level = 10 : i32, message = "hqd,hkd->hqk"}> : () -> ()
    %cst = arith.constant dense<0.000000e+00> : vector<8x17x17xf32>
    %3 = tpu.matmul %0, %1, %cst {dimension_numbers = #tpu.dot_dimension_numbers<[2], [2], [1], [1], [0, 0, 0, 1, 1, 1], [0], [0]>} : vector<8x17x32xbf16>, vector<8x17x32xbf16>, vector<8x17x17xf32> -> vector<8x17x17xf32>
    "tpu.trace_stop"() : () -> ()
    %cst_8 = arith.constant 0.176776692 : f32
    %4 = vector.broadcast %cst_8 : f32 to vector<8x17x17xf32>
    %5 = arith.mulf %3, %4 : vector<8x17x17xf32>
    %cst_9 = arith.constant dense<0xFF800000> : vector<8x17xf32>
    %6 = vector.multi_reduction <maximumf>, %5, %cst_9 [2] : vector<8x17x17xf32> to vector<8x17xf32>
    %7 = vector.shape_cast %6 : vector<8x17xf32> to vector<8x17x1xf32>
    %8 = vector.broadcast %7 : vector<8x17x1xf32> to vector<8x17x17xf32>
    %9 = arith.subf %5, %8 : vector<8x17x17xf32>
    %10 = math.exp %9 : vector<8x17x17xf32>
    %cst_10 = arith.constant dense<0.000000e+00> : vector<8x17xf32>
    %11 = vector.multi_reduction <add>, %10, %cst_10 [2] : vector<8x17x17xf32> to vector<8x17xf32>
    %12 = vector.shape_cast %11 : vector<8x17xf32> to vector<8x17x1xf32>
    %13 = tpu.reciprocal %12 {approx = true} : vector<8x17x1xf32> -> vector<8x17x1xf32>
    %14 = vector.broadcast %13 : vector<8x17x1xf32> to vector<8x17x17xf32>
    %15 = arith.mulf %10, %14 : vector<8x17x17xf32>
    %16 = arith.truncf %15 : vector<8x17x17xf32> to vector<8x17x17xbf16>
    "tpu.trace_start"() <{level = 10 : i32, message = "hqk,hkd->hqd"}> : () -> ()
    %cst_11 = arith.constant dense<0.000000e+00> : vector<8x17x32xf32>
    %17 = tpu.matmul %16, %2, %cst_11 {dimension_numbers = #tpu.dot_dimension_numbers<[2], [1], [1], [2], [0, 0, 0, 1, 1, 2], [0], [0]>} : vector<8x17x17xbf16>, vector<8x17x32xbf16>, vector<8x17x32xf32> -> vector<8x17x32xf32>
    "tpu.trace_stop"() : () -> ()
    %c0_12 = arith.constant 0 : index
    %c0_13 = arith.constant 0 : index
    %c0_14 = arith.constant 0 : index
    %18 = vector.load %arg4[%c0_12, %c0_13, %c0_14] : memref<8x17x32xf32, #tpu.memory_space<vmem>>, vector<8x17x32xf32>
    tpu.vector_store %arg4[%c0_12, %c0_13, %c0_14], %17 {strides = array<i32>} : memref<8x17x32xf32, #tpu.memory_space<vmem>>, vector<8x17x32xf32>,
    return
  }
  func.func @transform_0(%arg0: i32) -> (i32, i32, i32) {
    %c0_i32 = arith.constant 0 : i32
    %c0_i32_0 = arith.constant 0 : i32
    %c0_i32_1 = arith.constant 0 : i32
    return %arg0, %c0_i32, %c0_i32_0 : i32, i32, i32
  }
  func.func @transform_1(%arg0: i32) -> (i32, i32, i32) {
    %c0_i32 = arith.constant 0 : i32
    %c0_i32_0 = arith.constant 0 : i32
    %c0_i32_1 = arith.constant 0 : i32
    return %arg0, %c0_i32, %c0_i32_0 : i32, i32, i32
  }
  func.func @transform_2(%arg0: i32) -> (i32, i32, i32) {
    %c0_i32 = arith.constant 0 : i32
    %c0_i32_0 = arith.constant 0 : i32
    %c0_i32_1 = arith.constant 0 : i32
    return %arg0, %c0_i32, %c0_i32_0 : i32, i32, i32
  }
  func.func @transform_3(%arg0: i32) -> (i32, i32, i32) {
    %c0_i32 = arith.constant 0 : i32
    %c0_i32_0 = arith.constant 0 : i32
    %c0_i32_1 = arith.constant 0 : i32
    return %arg0, %c0_i32, %c0_i32_0 : i32, i32, i32
  }
}

module attributes {stable_mosaic.version = 11 : i64} {
  func.func @kernel(%arg0: i32, %arg1: i32, %arg2: memref<40x128xf32, #tpu.memory_space<vmem>>, %arg3: memref<128x128xbf16, #tpu.memory_space<vmem>>, %arg4: memref<1x128xf32, #tpu.memory_space<vmem>>, %arg5: memref<1x128xf32, #tpu.memory_space<vmem>>, %arg6: memref<40x128xf32, #tpu.memory_space<vmem>>, %arg7: memref<40x128xf32, #tpu.memory_space<vmem>>) attributes {dimension_semantics = [#tpu.dimension_semantics<parallel>, #tpu.dimension_semantics<parallel>], iteration_bounds = array<i64: 1, 1>, scalar_prefetch = 0 : i64, scratch_operands = 0 : i64, tpu.core_type = #tpu.core_type<tc>, window_params = [{transform_indices = @transform_0, window_bounds = array<i64: 40, 128>}, {transform_indices = @transform_1, window_bounds = array<i64: 128, 128>}, {transform_indices = @transform_2, window_bounds = array<i64: 1, 128>}, {transform_indices = @transform_3, window_bounds = array<i64: 1, 128>}, {transform_indices = @transform_4, window_bounds = array<i64: 40, 128>}, {transform_indices = @transform_5, window_bounds = array<i64: 40, 128>}]} {
    %c0 = arith.constant 0 : index
    %c0_0 = arith.constant 0 : index
    %0 = vector.load %arg2[%c0, %c0_0] : memref<40x128xf32, #tpu.memory_space<vmem>>, vector<40x128xf32>
    %c0_1 = arith.constant 0 : index
    %c0_2 = arith.constant 0 : index
    %1 = vector.load %arg3[%c0_1, %c0_2] : memref<128x128xbf16, #tpu.memory_space<vmem>>, vector<128x128xbf16>
    %c0_3 = arith.constant 0 : index
    %c0_4 = arith.constant 0 : index
    %2 = vector.load %arg4[%c0_3, %c0_4] : memref<1x128xf32, #tpu.memory_space<vmem>>, vector<1x128xf32>
    %c0_5 = arith.constant 0 : index
    %c0_6 = arith.constant 0 : index
    %3 = vector.load %arg5[%c0_5, %c0_6] : memref<1x128xf32, #tpu.memory_space<vmem>>, vector<1x128xf32>
    %4 = arith.truncf %0 : vector<40x128xf32> to vector<40x128xbf16>
    %cst = arith.constant dense<0.000000e+00> : vector<40x128xf32>
    %5 = tpu.matmul %4, %1, %cst {dimension_numbers = #tpu.dot_dimension_numbers<[1], [0], [0], [1], [0, 0, 1, 1], [], []>} : vector<40x128xbf16>, vector<128x128xbf16>, vector<40x128xf32> -> vector<40x128xf32>
    %6 = vector.broadcast %2 : vector<1x128xf32> to vector<40x128xf32>
    %7 = arith.mulf %5, %6 : vector<40x128xf32>
    %8 = vector.broadcast %3 : vector<1x128xf32> to vector<40x128xf32>
    %9 = arith.addf %7, %8 : vector<40x128xf32>
    %c0_7 = arith.constant 0 : index
    %c0_8 = arith.constant 0 : index
    %10 = vector.load %arg6[%c0_7, %c0_8] : memref<40x128xf32, #tpu.memory_space<vmem>>, vector<40x128xf32>
    %cst_9 = arith.constant 1.000000e+00 : f32
    %11 = vector.broadcast %cst_9 : f32 to vector<40x128xf32>
    %12 = arith.mulf %9, %11 : vector<40x128xf32>
    %13 = arith.addf %10, %12 : vector<40x128xf32>
    %c0_10 = arith.constant 0 : index
    %c0_11 = arith.constant 0 : index
    %14 = vector.load %arg7[%c0_10, %c0_11] : memref<40x128xf32, #tpu.memory_space<vmem>>, vector<40x128xf32>
    tpu.vector_store %arg7[%c0_10, %c0_11], %13 {strides = array<i32>} : memref<40x128xf32, #tpu.memory_space<vmem>>, vector<40x128xf32>,
    return
  }
  func.func @transform_0(%arg0: i32, %arg1: i32) -> (i32, i32) {
    %c0_i32 = arith.constant 0 : i32
    %c0_i32_0 = arith.constant 0 : i32
    return %arg0, %c0_i32 : i32, i32
  }
  func.func @transform_1(%arg0: i32, %arg1: i32) -> (i32, i32) {
    %c0_i32 = arith.constant 0 : i32
    %c0_i32_0 = arith.constant 0 : i32
    return %c0_i32, %arg1 : i32, i32
  }
  func.func @transform_2(%arg0: i32, %arg1: i32) -> (i32, i32) {
    %c0_i32 = arith.constant 0 : i32
    %c0_i32_0 = arith.constant 0 : i32
    return %c0_i32, %arg1 : i32, i32
  }
  func.func @transform_3(%arg0: i32, %arg1: i32) -> (i32, i32) {
    %c0_i32 = arith.constant 0 : i32
    %c0_i32_0 = arith.constant 0 : i32
    return %c0_i32, %arg1 : i32, i32
  }
  func.func @transform_4(%arg0: i32, %arg1: i32) -> (i32, i32) {
    %c0_i32 = arith.constant 0 : i32
    return %arg0, %arg1 : i32, i32
  }
  func.func @transform_5(%arg0: i32, %arg1: i32) -> (i32, i32) {
    %c0_i32 = arith.constant 0 : i32
    return %arg0, %arg1 : i32, i32
  }
}

module attributes {stable_mosaic.version = 11 : i64} {
  func.func @kernel(%arg0: i32, %arg1: i32, %arg2: memref<40x128xf32, #tpu.memory_space<vmem>>, %arg3: memref<1x128xf32, #tpu.memory_space<vmem>>, %arg4: memref<1x128xf32, #tpu.memory_space<vmem>>, %arg5: memref<128x256xbf16, #tpu.memory_space<vmem>>, %arg6: memref<1x256xf32, #tpu.memory_space<vmem>>, %arg7: memref<1x256xf32, #tpu.memory_space<vmem>>, %arg8: memref<40x256xf32, #tpu.memory_space<vmem>>) attributes {dimension_semantics = [#tpu.dimension_semantics<parallel>, #tpu.dimension_semantics<parallel>], iteration_bounds = array<i64: 1, 1>, scalar_prefetch = 0 : i64, scratch_operands = 0 : i64, tpu.core_type = #tpu.core_type<tc>, window_params = [{transform_indices = @transform_0, window_bounds = array<i64: 40, 128>}, {pipeline_mode = #tpu.pipeline_mode<synchronous>, transform_indices = @transform_1, window_bounds = array<i64: 1, 128>}, {pipeline_mode = #tpu.pipeline_mode<synchronous>, transform_indices = @transform_2, window_bounds = array<i64: 1, 128>}, {transform_indices = @transform_3, window_bounds = array<i64: 128, 256>}, {transform_indices = @transform_4, window_bounds = array<i64: 1, 256>}, {transform_indices = @transform_5, window_bounds = array<i64: 1, 256>}, {transform_indices = @transform_6, window_bounds = array<i64: 40, 256>}]} {
    %c0 = arith.constant 0 : index
    %c0_0 = arith.constant 0 : index
    %0 = vector.load %arg2[%c0, %c0_0] : memref<40x128xf32, #tpu.memory_space<vmem>>, vector<40x128xf32>
    %c0_1 = arith.constant 0 : index
    %c0_2 = arith.constant 0 : index
    %1 = vector.load %arg3[%c0_1, %c0_2] : memref<1x128xf32, #tpu.memory_space<vmem>>, vector<1x128xf32>
    %c0_3 = arith.constant 0 : index
    %c0_4 = arith.constant 0 : index
    %2 = vector.load %arg4[%c0_3, %c0_4] : memref<1x128xf32, #tpu.memory_space<vmem>>, vector<1x128xf32>
    %cst = arith.constant dense<0.000000e+00> : vector<40xf32>
    %3 = vector.multi_reduction <add>, %0, %cst [1] : vector<40x128xf32> to vector<40xf32>
    %4 = vector.shape_cast %3 : vector<40xf32> to vector<40x1xf32>
    %cst_5 = arith.constant 1.280000e+02 : f32
    %5 = vector.broadcast %cst_5 : f32 to vector<40x1xf32>
    %6 = arith.divf %4, %5 : vector<40x1xf32>
    %7 = vector.broadcast %6 : vector<40x1xf32> to vector<40x128xf32>
    %8 = arith.subf %0, %7 : vector<40x128xf32>
    %9 = arith.mulf %8, %8 : vector<40x128xf32>
    %cst_6 = arith.constant dense<0.000000e+00> : vector<40xf32>
    %10 = vector.multi_reduction <add>, %9, %cst_6 [1] : vector<40x128xf32> to vector<40xf32>
    %11 = vector.shape_cast %10 : vector<40xf32> to vector<40x1xf32>
    %cst_7 = arith.constant 1.280000e+02 : f32
    %12 = vector.broadcast %cst_7 : f32 to vector<40x1xf32>
    %13 = arith.divf %11, %12 : vector<40x1xf32>
    %14 = vector.broadcast %6 : vector<40x1xf32> to vector<40x128xf32>
    %15 = arith.subf %0, %14 : vector<40x128xf32>
    %cst_8 = arith.constant 9.99999974E-6 : f32
    %16 = vector.broadcast %cst_8 : f32 to vector<40x1xf32>
    %17 = arith.addf %13, %16 : vector<40x1xf32>
    %18 = math.rsqrt %17 : vector<40x1xf32>
    %19 = vector.broadcast %18 : vector<40x1xf32> to vector<40x128xf32>
    %20 = arith.mulf %15, %19 : vector<40x128xf32>
    %21 = vector.broadcast %1 : vector<1x128xf32> to vector<40x128xf32>
    %22 = arith.mulf %20, %21 : vector<40x128xf32>
    %23 = vector.broadcast %2 : vector<1x128xf32> to vector<40x128xf32>
    %24 = arith.addf %22, %23 : vector<40x128xf32>
    %c0_9 = arith.constant 0 : index
    %c0_10 = arith.constant 0 : index
    %25 = vector.load %arg5[%c0_9, %c0_10] : memref<128x256xbf16, #tpu.memory_space<vmem>>, vector<128x256xbf16>
    %c0_11 = arith.constant 0 : index
    %c0_12 = arith.constant 0 : index
    %26 = vector.load %arg6[%c0_11, %c0_12] : memref<1x256xf32, #tpu.memory_space<vmem>>, vector<1x256xf32>
    %c0_13 = arith.constant 0 : index
    %c0_14 = arith.constant 0 : index
    %27 = vector.load %arg7[%c0_13, %c0_14] : memref<1x256xf32, #tpu.memory_space<vmem>>, vector<1x256xf32>
    %28 = arith.truncf %24 : vector<40x128xf32> to vector<40x128xbf16>
    %cst_15 = arith.constant dense<0.000000e+00> : vector<40x256xf32>
    %29 = tpu.matmul %28, %25, %cst_15 {dimension_numbers = #tpu.dot_dimension_numbers<[1], [0], [0], [1], [0, 0, 1, 1], [], []>} : vector<40x128xbf16>, vector<128x256xbf16>, vector<40x256xf32> -> vector<40x256xf32>
    %30 = vector.broadcast %26 : vector<1x256xf32> to vector<40x256xf32>
    %31 = arith.mulf %29, %30 : vector<40x256xf32>
    %32 = vector.broadcast %27 : vector<1x256xf32> to vector<40x256xf32>
    %33 = arith.addf %31, %32 : vector<40x256xf32>
    %cst_16 = arith.constant 5.000000e-01 : f32
    %34 = vector.broadcast %cst_16 : f32 to vector<40x256xf32>
    %35 = arith.mulf %34, %33 : vector<40x256xf32>
    %cst_17 = arith.constant 0.707106769 : f32
    %36 = vector.broadcast %cst_17 : f32 to vector<40x256xf32>
    %37 = arith.mulf %33, %36 : vector<40x256xf32>
    %cst_18 = arith.constant 0.000000e+00 : f32
    %38 = vector.broadcast %cst_18 : f32 to vector<40x256xf32>
    %39 = arith.cmpf oge, %37, %38 : vector<40x256xf32>
    %cst_19 = arith.constant 1.000000e+00 : f32
    %cst_20 = arith.constant -1.000000e+00 : f32
    %40 = vector.broadcast %cst_19 : f32 to vector<40x256xf32>
    %41 = vector.broadcast %cst_20 : f32 to vector<40x256xf32>
    %42 = arith.select %39, %40, %41 : vector<40x256xi1>, vector<40x256xf32>
    %43 = math.absf %37 : vector<40x256xf32>
    %cst_21 = arith.constant 0.327591091 : f32
    %44 = vector.broadcast %cst_21 : f32 to vector<40x256xf32>
    %45 = arith.mulf %44, %43 : vector<40x256xf32>
    %cst_22 = arith.constant 1.000000e+00 : f32
    %46 = vector.broadcast %cst_22 : f32 to vector<40x256xf32>
    %47 = arith.addf %46, %45 : vector<40x256xf32>
    %cst_23 = arith.constant 1.000000e+00 : f32
    %48 = vector.broadcast %cst_23 : f32 to vector<40x256xf32>
    %49 = arith.divf %48, %47 : vector<40x256xf32>
    %cst_24 = arith.constant 1.06140542 : f32
    %50 = vector.broadcast %cst_24 : f32 to vector<40x256xf32>
    %51 = arith.mulf %50, %49 : vector<40x256xf32>
    %cst_25 = arith.constant -1.45315206 : f32
    %52 = vector.broadcast %cst_25 : f32 to vector<40x256xf32>
    %53 = arith.addf %51, %52 : vector<40x256xf32>
    %54 = arith.mulf %53, %49 : vector<40x256xf32>
    %cst_26 = arith.constant 1.42141378 : f32
    %55 = vector.broadcast %cst_26 : f32 to vector<40x256xf32>
    %56 = arith.addf %54, %55 : vector<40x256xf32>
    %57 = arith.mulf %56, %49 : vector<40x256xf32>
    %cst_27 = arith.constant -0.284496725 : f32
    %58 = vector.broadcast %cst_27 : f32 to vector<40x256xf32>
    %59 = arith.addf %57, %58 : vector<40x256xf32>
    %60 = arith.mulf %59, %49 : vector<40x256xf32>
    %cst_28 = arith.constant 0.254829586 : f32
    %61 = vector.broadcast %cst_28 : f32 to vector<40x256xf32>
    %62 = arith.addf %60, %61 : vector<40x256xf32>
    %63 = arith.mulf %62, %49 : vector<40x256xf32>
    %cst_29 = arith.constant 0.000000e+00 : f32
    %64 = vector.broadcast %cst_29 : f32 to vector<40x256xf32>
    %65 = arith.subf %64, %43 : vector<40x256xf32>
    %66 = arith.mulf %65, %43 : vector<40x256xf32>
    %67 = math.exp %66 : vector<40x256xf32>
    %68 = arith.mulf %63, %67 : vector<40x256xf32>
    %cst_30 = arith.constant 1.000000e+00 : f32
    %69 = vector.broadcast %cst_30 : f32 to vector<40x256xf32>
    %70 = arith.subf %69, %68 : vector<40x256xf32>
    %71 = arith.mulf %42, %70 : vector<40x256xf32>
    %cst_31 = arith.constant 1.000000e+00 : f32
    %72 = vector.broadcast %cst_31 : f32 to vector<40x256xf32>
    %73 = arith.addf %72, %71 : vector<40x256xf32>
    %74 = arith.mulf %35, %73 : vector<40x256xf32>
    %c0_32 = arith.constant 0 : index
    %c0_33 = arith.constant 0 : index
    %75 = vector.load %arg8[%c0_32, %c0_33] : memref<40x256xf32, #tpu.memory_space<vmem>>, vector<40x256xf32>
    tpu.vector_store %arg8[%c0_32, %c0_33], %74 {strides = array<i32>} : memref<40x256xf32, #tpu.memory_space<vmem>>, vector<40x256xf32>,
    return
  }
  func.func @transform_0(%arg0: i32, %arg1: i32) -> (i32, i32) {
    %c0_i32 = arith.constant 0 : i32
    %c0_i32_0 = arith.constant 0 : i32
    return %arg0, %c0_i32 : i32, i32
  }
  func.func @transform_1(%arg0: i32, %arg1: i32) -> (i32, i32) {
    %c0_i32 = arith.constant 0 : i32
    %c0_i32_0 = arith.constant 0 : i32
    %c0_i32_1 = arith.constant 0 : i32
    return %c0_i32, %c0_i32_0 : i32, i32
  }
  func.func @transform_2(%arg0: i32, %arg1: i32) -> (i32, i32) {
    %c0_i32 = arith.constant 0 : i32
    %c0_i32_0 = arith.constant 0 : i32
    %c0_i32_1 = arith.constant 0 : i32
    return %c0_i32, %c0_i32_0 : i32, i32
  }
  func.func @transform_3(%arg0: i32, %arg1: i32) -> (i32, i32) {
    %c0_i32 = arith.constant 0 : i32
    %c0_i32_0 = arith.constant 0 : i32
    return %c0_i32, %arg1 : i32, i32
  }
  func.func @transform_4(%arg0: i32, %arg1: i32) -> (i32, i32) {
    %c0_i32 = arith.constant 0 : i32
    %c0_i32_0 = arith.constant 0 : i32
    return %c0_i32, %arg1 : i32, i32
  }
  func.func @transform_5(%arg0: i32, %arg1: i32) -> (i32, i32) {
    %c0_i32 = arith.constant 0 : i32
    %c0_i32_0 = arith.constant 0 : i32
    return %c0_i32, %arg1 : i32, i32
  }
  func.func @transform_6(%arg0: i32, %arg1: i32) -> (i32, i32) {
    %c0_i32 = arith.constant 0 : i32
    return %arg0, %arg1 : i32, i32
  }
}

module attributes {stable_mosaic.version = 11 : i64} {
  func.func @kernel(%arg0: i32, %arg1: i32, %arg2: memref<8x128xf32, #tpu.memory_space<vmem>>, %arg3: memref<1x128xf32, #tpu.memory_space<vmem>>, %arg4: memref<1x128xf32, #tpu.memory_space<vmem>>, %arg5: memref<128x128xbf16, #tpu.memory_space<vmem>>, %arg6: memref<1x128xf32, #tpu.memory_space<vmem>>, %arg7: memref<1x128xf32, #tpu.memory_space<vmem>>, %arg8: memref<8x128xf32, #tpu.memory_space<vmem>>) attributes {dimension_semantics = [#tpu.dimension_semantics<parallel>, #tpu.dimension_semantics<parallel>], iteration_bounds = array<i64: 1, 1>, scalar_prefetch = 0 : i64, scratch_operands = 0 : i64, tpu.core_type = #tpu.core_type<tc>, window_params = [{transform_indices = @transform_0, window_bounds = array<i64: 8, 128>}, {pipeline_mode = #tpu.pipeline_mode<synchronous>, transform_indices = @transform_1, window_bounds = array<i64: 1, 128>}, {pipeline_mode = #tpu.pipeline_mode<synchronous>, transform_indices = @transform_2, window_bounds = array<i64: 1, 128>}, {transform_indices = @transform_3, window_bounds = array<i64: 128, 128>}, {transform_indices = @transform_4, window_bounds = array<i64: 1, 128>}, {transform_indices = @transform_5, window_bounds = array<i64: 1, 128>}, {transform_indices = @transform_6, window_bounds = array<i64: 8, 128>}]} {
    %c0 = arith.constant 0 : index
    %c0_0 = arith.constant 0 : index
    %0 = vector.load %arg2[%c0, %c0_0] : memref<8x128xf32, #tpu.memory_space<vmem>>, vector<8x128xf32>
    %c0_1 = arith.constant 0 : index
    %c0_2 = arith.constant 0 : index
    %1 = vector.load %arg3[%c0_1, %c0_2] : memref<1x128xf32, #tpu.memory_space<vmem>>, vector<1x128xf32>
    %c0_3 = arith.constant 0 : index
    %c0_4 = arith.constant 0 : index
    %2 = vector.load %arg4[%c0_3, %c0_4] : memref<1x128xf32, #tpu.memory_space<vmem>>, vector<1x128xf32>
    %cst = arith.constant dense<0.000000e+00> : vector<8xf32>
    %3 = vector.multi_reduction <add>, %0, %cst [1] : vector<8x128xf32> to vector<8xf32>
    %4 = vector.shape_cast %3 : vector<8xf32> to vector<8x1xf32>
    %cst_5 = arith.constant 1.280000e+02 : f32
    %5 = vector.broadcast %cst_5 : f32 to vector<8x1xf32>
    %6 = arith.divf %4, %5 : vector<8x1xf32>
    %7 = vector.broadcast %6 : vector<8x1xf32> to vector<8x128xf32>
    %8 = arith.subf %0, %7 : vector<8x128xf32>
    %9 = arith.mulf %8, %8 : vector<8x128xf32>
    %cst_6 = arith.constant dense<0.000000e+00> : vector<8xf32>
    %10 = vector.multi_reduction <add>, %9, %cst_6 [1] : vector<8x128xf32> to vector<8xf32>
    %11 = vector.shape_cast %10 : vector<8xf32> to vector<8x1xf32>
    %cst_7 = arith.constant 1.280000e+02 : f32
    %12 = vector.broadcast %cst_7 : f32 to vector<8x1xf32>
    %13 = arith.divf %11, %12 : vector<8x1xf32>
    %14 = vector.broadcast %6 : vector<8x1xf32> to vector<8x128xf32>
    %15 = arith.subf %0, %14 : vector<8x128xf32>
    %cst_8 = arith.constant 9.99999974E-6 : f32
    %16 = vector.broadcast %cst_8 : f32 to vector<8x1xf32>
    %17 = arith.addf %13, %16 : vector<8x1xf32>
    %18 = math.rsqrt %17 : vector<8x1xf32>
    %19 = vector.broadcast %18 : vector<8x1xf32> to vector<8x128xf32>
    %20 = arith.mulf %15, %19 : vector<8x128xf32>
    %21 = vector.broadcast %1 : vector<1x128xf32> to vector<8x128xf32>
    %22 = arith.mulf %20, %21 : vector<8x128xf32>
    %23 = vector.broadcast %2 : vector<1x128xf32> to vector<8x128xf32>
    %24 = arith.addf %22, %23 : vector<8x128xf32>
    %c0_9 = arith.constant 0 : index
    %c0_10 = arith.constant 0 : index
    %25 = vector.load %arg5[%c0_9, %c0_10] : memref<128x128xbf16, #tpu.memory_space<vmem>>, vector<128x128xbf16>
    %c0_11 = arith.constant 0 : index
    %c0_12 = arith.constant 0 : index
    %26 = vector.load %arg6[%c0_11, %c0_12] : memref<1x128xf32, #tpu.memory_space<vmem>>, vector<1x128xf32>
    %c0_13 = arith.constant 0 : index
    %c0_14 = arith.constant 0 : index
    %27 = vector.load %arg7[%c0_13, %c0_14] : memref<1x128xf32, #tpu.memory_space<vmem>>, vector<1x128xf32>
    %28 = arith.truncf %24 : vector<8x128xf32> to vector<8x128xbf16>
    %cst_15 = arith.constant dense<0.000000e+00> : vector<8x128xf32>
    %29 = tpu.matmul %28, %25, %cst_15 {dimension_numbers = #tpu.dot_dimension_numbers<[1], [0], [0], [1], [0, 0, 1, 1], [], []>} : vector<8x128xbf16>, vector<128x128xbf16>, vector<8x128xf32> -> vector<8x128xf32>
    %30 = vector.broadcast %26 : vector<1x128xf32> to vector<8x128xf32>
    %31 = arith.mulf %29, %30 : vector<8x128xf32>
    %32 = vector.broadcast %27 : vector<1x128xf32> to vector<8x128xf32>
    %33 = arith.addf %31, %32 : vector<8x128xf32>
    %c0_16 = arith.constant 0 : index
    %c0_17 = arith.constant 0 : index
    %34 = vector.load %arg8[%c0_16, %c0_17] : memref<8x128xf32, #tpu.memory_space<vmem>>, vector<8x128xf32>
    tpu.vector_store %arg8[%c0_16, %c0_17], %33 {strides = array<i32>} : memref<8x128xf32, #tpu.memory_space<vmem>>, vector<8x128xf32>,
    return
  }
  func.func @transform_0(%arg0: i32, %arg1: i32) -> (i32, i32) {
    %c0_i32 = arith.constant 0 : i32
    %c0_i32_0 = arith.constant 0 : i32
    return %arg0, %c0_i32 : i32, i32
  }
  func.func @transform_1(%arg0: i32, %arg1: i32) -> (i32, i32) {
    %c0_i32 = arith.constant 0 : i32
    %c0_i32_0 = arith.constant 0 : i32
    %c0_i32_1 = arith.constant 0 : i32
    return %c0_i32, %c0_i32_0 : i32, i32
  }
  func.func @transform_2(%arg0: i32, %arg1: i32) -> (i32, i32) {
    %c0_i32 = arith.constant 0 : i32
    %c0_i32_0 = arith.constant 0 : i32
    %c0_i32_1 = arith.constant 0 : i32
    return %c0_i32, %c0_i32_0 : i32, i32
  }
  func.func @transform_3(%arg0: i32, %arg1: i32) -> (i32, i32) {
    %c0_i32 = arith.constant 0 : i32
    %c0_i32_0 = arith.constant 0 : i32
    return %c0_i32, %arg1 : i32, i32
  }
  func.func @transform_4(%arg0: i32, %arg1: i32) -> (i32, i32) {
    %c0_i32 = arith.constant 0 : i32
    %c0_i32_0 = arith.constant 0 : i32
    return %c0_i32, %arg1 : i32, i32
  }
  func.func @transform_5(%arg0: i32, %arg1: i32) -> (i32, i32) {
    %c0_i32 = arith.constant 0 : i32
    %c0_i32_0 = arith.constant 0 : i32
    return %c0_i32, %arg1 : i32, i32
  }
  func.func @transform_6(%arg0: i32, %arg1: i32) -> (i32, i32) {
    %c0_i32 = arith.constant 0 : i32
    return %arg0, %arg1 : i32, i32
  }
}

module attributes {stable_mosaic.version = 11 : i64} {
  func.func @kernel(%arg0: i32, %arg1: i32, %arg2: memref<40x256xf32, #tpu.memory_space<vmem>>, %arg3: memref<256x128xbf16, #tpu.memory_space<vmem>>, %arg4: memref<1x128xf32, #tpu.memory_space<vmem>>, %arg5: memref<1x128xf32, #tpu.memory_space<vmem>>, %arg6: memref<40x128xf32, #tpu.memory_space<vmem>>, %arg7: memref<40x128xf32, #tpu.memory_space<vmem>>) attributes {dimension_semantics = [#tpu.dimension_semantics<parallel>, #tpu.dimension_semantics<parallel>], iteration_bounds = array<i64: 1, 1>, scalar_prefetch = 0 : i64, scratch_operands = 0 : i64, tpu.core_type = #tpu.core_type<tc>, window_params = [{transform_indices = @transform_0, window_bounds = array<i64: 40, 256>}, {transform_indices = @transform_1, window_bounds = array<i64: 256, 128>}, {transform_indices = @transform_2, window_bounds = array<i64: 1, 128>}, {transform_indices = @transform_3, window_bounds = array<i64: 1, 128>}, {transform_indices = @transform_4, window_bounds = array<i64: 40, 128>}, {transform_indices = @transform_5, window_bounds = array<i64: 40, 128>}]} {
    %c0 = arith.constant 0 : index
    %c0_0 = arith.constant 0 : index
    %0 = vector.load %arg2[%c0, %c0_0] : memref<40x256xf32, #tpu.memory_space<vmem>>, vector<40x256xf32>
    %c0_1 = arith.constant 0 : index
    %c0_2 = arith.constant 0 : index
    %1 = vector.load %arg3[%c0_1, %c0_2] : memref<256x128xbf16, #tpu.memory_space<vmem>>, vector<256x128xbf16>
    %c0_3 = arith.constant 0 : index
    %c0_4 = arith.constant 0 : index
    %2 = vector.load %arg4[%c0_3, %c0_4] : memref<1x128xf32, #tpu.memory_space<vmem>>, vector<1x128xf32>
    %c0_5 = arith.constant 0 : index
    %c0_6 = arith.constant 0 : index
    %3 = vector.load %arg5[%c0_5, %c0_6] : memref<1x128xf32, #tpu.memory_space<vmem>>, vector<1x128xf32>
    %4 = arith.truncf %0 : vector<40x256xf32> to vector<40x256xbf16>
    %cst = arith.constant dense<0.000000e+00> : vector<40x128xf32>
    %5 = tpu.matmul %4, %1, %cst {dimension_numbers = #tpu.dot_dimension_numbers<[1], [0], [0], [1], [0, 0, 1, 1], [], []>} : vector<40x256xbf16>, vector<256x128xbf16>, vector<40x128xf32> -> vector<40x128xf32>
    %6 = vector.broadcast %2 : vector<1x128xf32> to vector<40x128xf32>
    %7 = arith.mulf %5, %6 : vector<40x128xf32>
    %8 = vector.broadcast %3 : vector<1x128xf32> to vector<40x128xf32>
    %9 = arith.addf %7, %8 : vector<40x128xf32>
    %c0_7 = arith.constant 0 : index
    %c0_8 = arith.constant 0 : index
    %10 = vector.load %arg6[%c0_7, %c0_8] : memref<40x128xf32, #tpu.memory_space<vmem>>, vector<40x128xf32>
    %cst_9 = arith.constant 1.000000e+00 : f32
    %11 = vector.broadcast %cst_9 : f32 to vector<40x128xf32>
    %12 = arith.mulf %9, %11 : vector<40x128xf32>
    %13 = arith.addf %10, %12 : vector<40x128xf32>
    %c0_10 = arith.constant 0 : index
    %c0_11 = arith.constant 0 : index
    %14 = vector.load %arg7[%c0_10, %c0_11] : memref<40x128xf32, #tpu.memory_space<vmem>>, vector<40x128xf32>
    tpu.vector_store %arg7[%c0_10, %c0_11], %13 {strides = array<i32>} : memref<40x128xf32, #tpu.memory_space<vmem>>, vector<40x128xf32>,
    return
  }
  func.func @transform_0(%arg0: i32, %arg1: i32) -> (i32, i32) {
    %c0_i32 = arith.constant 0 : i32
    %c0_i32_0 = arith.constant 0 : i32
    return %arg0, %c0_i32 : i32, i32
  }
  func.func @transform_1(%arg0: i32, %arg1: i32) -> (i32, i32) {
    %c0_i32 = arith.constant 0 : i32
    %c0_i32_0 = arith.constant 0 : i32
    return %c0_i32, %arg1 : i32, i32
  }
  func.func @transform_2(%arg0: i32, %arg1: i32) -> (i32, i32) {
    %c0_i32 = arith.constant 0 : i32
    %c0_i32_0 = arith.constant 0 : i32
    return %c0_i32, %arg1 : i32, i32
  }
  func.func @transform_3(%arg0: i32, %arg1: i32) -> (i32, i32) {
    %c0_i32 = arith.constant 0 : i32
    %c0_i32_0 = arith.constant 0 : i32
    return %c0_i32, %arg1 : i32, i32
  }
  func.func @transform_4(%arg0: i32, %arg1: i32) -> (i32, i32) {
    %c0_i32 = arith.constant 0 : i32
    return %arg0, %arg1 : i32, i32
  }
  func.func @transform_5(%arg0: i32, %arg1: i32) -> (i32, i32) {
    %c0_i32 = arith.constant 0 : i32
    return %arg0, %arg1 : i32, i32
  }
}

module attributes {stable_mosaic.version = 11 : i64} {
  func.func @kernel(%arg0: i32, %arg1: i32, %arg2: memref<8x128xf32, #tpu.memory_space<vmem>>, %arg3: memref<128x128xbf16, #tpu.memory_space<vmem>>, %arg4: memref<1x128xf32, #tpu.memory_space<vmem>>, %arg5: memref<1x128xf32, #tpu.memory_space<vmem>>, %arg6: memref<8x128xf32, #tpu.memory_space<vmem>>) attributes {dimension_semantics = [#tpu.dimension_semantics<parallel>, #tpu.dimension_semantics<parallel>], iteration_bounds = array<i64: 1, 1>, scalar_prefetch = 0 : i64, scratch_operands = 0 : i64, tpu.core_type = #tpu.core_type<tc>, window_params = [{transform_indices = @transform_0, window_bounds = array<i64: 8, 128>}, {transform_indices = @transform_1, window_bounds = array<i64: 128, 128>}, {transform_indices = @transform_2, window_bounds = array<i64: 1, 128>}, {transform_indices = @transform_3, window_bounds = array<i64: 1, 128>}, {transform_indices = @transform_4, window_bounds = array<i64: 8, 128>}]} {
    %c0 = arith.constant 0 : index
    %c0_0 = arith.constant 0 : index
    %0 = vector.load %arg2[%c0, %c0_0] : memref<8x128xf32, #tpu.memory_space<vmem>>, vector<8x128xf32>
    %c0_1 = arith.constant 0 : index
    %c0_2 = arith.constant 0 : index
    %1 = vector.load %arg3[%c0_1, %c0_2] : memref<128x128xbf16, #tpu.memory_space<vmem>>, vector<128x128xbf16>
    %c0_3 = arith.constant 0 : index
    %c0_4 = arith.constant 0 : index
    %2 = vector.load %arg4[%c0_3, %c0_4] : memref<1x128xf32, #tpu.memory_space<vmem>>, vector<1x128xf32>
    %c0_5 = arith.constant 0 : index
    %c0_6 = arith.constant 0 : index
    %3 = vector.load %arg5[%c0_5, %c0_6] : memref<1x128xf32, #tpu.memory_space<vmem>>, vector<1x128xf32>
    %4 = arith.truncf %0 : vector<8x128xf32> to vector<8x128xbf16>
    %cst = arith.constant dense<0.000000e+00> : vector<8x128xf32>
    %5 = tpu.matmul %4, %1, %cst {dimension_numbers = #tpu.dot_dimension_numbers<[1], [0], [0], [1], [0, 0, 1, 1], [], []>} : vector<8x128xbf16>, vector<128x128xbf16>, vector<8x128xf32> -> vector<8x128xf32>
    %6 = vector.broadcast %2 : vector<1x128xf32> to vector<8x128xf32>
    %7 = arith.mulf %5, %6 : vector<8x128xf32>
    %8 = vector.broadcast %3 : vector<1x128xf32> to vector<8x128xf32>
    %9 = arith.addf %7, %8 : vector<8x128xf32>
    %c0_7 = arith.constant 0 : index
    %c0_8 = arith.constant 0 : index
    %10 = vector.load %arg6[%c0_7, %c0_8] : memref<8x128xf32, #tpu.memory_space<vmem>>, vector<8x128xf32>
    tpu.vector_store %arg6[%c0_7, %c0_8], %9 {strides = array<i32>} : memref<8x128xf32, #tpu.memory_space<vmem>>, vector<8x128xf32>,
    return
  }
  func.func @transform_0(%arg0: i32, %arg1: i32) -> (i32, i32) {
    %c0_i32 = arith.constant 0 : i32
    %c0_i32_0 = arith.constant 0 : i32
    return %arg0, %c0_i32 : i32, i32
  }
  func.func @transform_1(%arg0: i32, %arg1: i32) -> (i32, i32) {
    %c0_i32 = arith.constant 0 : i32
    %c0_i32_0 = arith.constant 0 : i32
    return %c0_i32, %arg1 : i32, i32
  }
  func.func @transform_2(%arg0: i32, %arg1: i32) -> (i32, i32) {
    %c0_i32 = arith.constant 0 : i32
    %c0_i32_0 = arith.constant 0 : i32
    return %c0_i32, %arg1 : i32, i32
  }
  func.func @transform_3(%arg0: i32, %arg1: i32) -> (i32, i32) {
    %c0_i32 = arith.constant 0 : i32
    %c0_i32_0 = arith.constant 0 : i32
    return %c0_i32, %arg1 : i32, i32
  }
  func.func @transform_4(%arg0: i32, %arg1: i32) -> (i32, i32) {
    %c0_i32 = arith.constant 0 : i32
    return %arg0, %arg1 : i32, i32
  }
}

</mosaic_0001>

<bundles_post_ra>
// kernel: _lambda_.33
= control target key start
LH: loop header
LB: loop body
LE: loop exit
PB: predicated region body
PF: predicated region fallthrough
CT: control target
= control target key end

     0   :  { %v250_v0 = vmov 0   ;;  %vm108_vm0 = vcmask 154624   ;;  %vm115_vm1 = vcmask 1040384   ;;  %vm116_vm2 = vcmask 1041408   ;;  %s369_s1 = inlined_call_operand.vmem [shape: bf16[147,64], index: 1, kind: input, shape index: {}]   ;;  %s370_s0 = inlined_call_operand.vmem [shape: f32[32,147], index: 0, kind: input, shape index: {}]   ;;  %s371_s2 = inlined_call_operand.vmem [shape: f32[1,64], index: 2, kind: input, shape index: {}]   ;;  %s372_s3 = inlined_call_operand.vmem [shape: f32[1,64], index: 3, kind: input, shape index: {}]   ;;  %s373_s4 = inlined_call_operand.vmem [shape: f32[32,64], index: 4, kind: output, shape index: {}]  }
   0x1   :  { %122 = vmatprep.subr.bf16.mxu0 %v250_v0  ;;  %218 = vmatprep.subr.bf16.mxu1 %v250_v0  ;;  %v240_v1 = vld [vmem:[%s369_s1] sm:$0xff]   ;;  %v241_v2 = vld [vmem:[%s369_s1 + $0x8] sm:$0xff]   ;;  %v242_v3 = vld [vmem:[%s369_s1 + $0x10] sm:$0xff]   ;;  %v251_v15 = vmov 65535   ;;  %vm195_vm3 = vcmask 523264  }
   0x2   :  { %123 = vmatpush1.bf16.msra.mxu0 %v240_v1  ;;  %228 = vmatpush1.bf16.msra.mxu1 %v240_v1  ;;  %v243_v4 = vld [vmem:[%s369_s1 + $0x18] sm:$0xff]   ;;  %v19_v5 = vld [vmem:[%s370_s0 + $0x8] sm:$0xff]  ;;  %v244_v11 = vld [vmem:[%s369_s1 + $0x20] sm:$0xff]   ;;  %v117_v16 = vsel %vm115_vm1, 4294967295, %v251_v15 }
   0x3   :  { %124 = vmatprep.subr.bf16.mxu0 %v250_v0  ;;  %219 = vmatprep.subr.bf16.mxu1 %v250_v0  ;;  %v21_v6 = vld [vmem:[%s370_s0 + $0x18] sm:$0xff]  ;;  %v23_v7 = vld [vmem:[%s370_s0 + $0x28] sm:$0xff]  ;;  %v246_v13 = vld [vmem:[%s369_s1 + $0x30] sm:$0xff]   ;;  %v118_v19 = vsel %vm116_vm2, %v117_v16, 0 }
   0x4   :  { %v25_v8 = vld [vmem:[%s370_s0 + $0x38] sm:$0xff]  ;;  %v48_v9 = vpack.c.bf16 %v21_v6, %v19_v5  ;;  %v245_v12 = vld [vmem:[%s369_s1 + $0x28] sm:$0xff]   ;;  %v248_v17 = vld [vmem:[%s369_s1 + $0x40] sm:$0xff]  }
   0x5   :  { %v50_v10 = vpack.c.bf16 %v25_v8, %v23_v7  ;;  %v247_v14 = vld [vmem:[%s369_s1 + $0x38] sm:$0xff]   ;;  %v249_v18 = vld [vmem:[%s369_s1 + $0x48] ss:$0 sps:$4 sm:$0x33]   ;;  %v18_v20 = vld [vmem:[%s370_s0] sm:$0xff] }
   0x6   :  { %125 = vmatpush1.bf16.msra.mxu0 %v241_v2  ;;  %229 = vmatpush1.bf16.msra.mxu1 %v241_v2  ;;  %v120_v21 = vand.u32 %v249_v18, %v118_v19  ;;  %v20_v22 = vld [vmem:[%s370_s0 + $0x10] sm:$0xff]  ;;  %v22_v23 = vld [vmem:[%s370_s0 + $0x20] sm:$0xff] }
   0x7   :  { %126 = vmatprep.subr.bf16.mxu0 %v250_v0  ;;  %220 = vmatprep.subr.bf16.mxu1 %v250_v0  ;;  %v24_v24 = vld [vmem:[%s370_s0 + $0x30] sm:$0xff]  ;;  %v47_v25 = vpack.c.bf16 %v20_v22, %v18_v20  ;;  %v216_v27 = vld [vmem:[%s371_s2] ss:$0 sm:$0xff] }
   0x8   :  { %214 = vmatprep.mubr.msk.bf16.mxu0 %vm108_vm0, %v48_v9  ;;  %215 = vmatprep.mubr.msk.bf16.mxu1 %vm108_vm0, %v50_v10  ;;  %v49_v26 = vpack.c.bf16 %v24_v24, %v22_v23  ;;  %v217_v28 = vld [vmem:[%s372_s3] ss:$0 sm:$0xff] }
   0xa   :  { %127 = vmatpush1.bf16.msra.mxu0 %v242_v3  ;;  %230 = vmatpush1.bf16.msra.mxu1 %v242_v3 }
   0xb   :  { %128 = vmatprep.subr.bf16.mxu0 %v250_v0  ;;  %221 = vmatprep.subr.bf16.mxu1 %v250_v0 }
   0xe   :  { %129 = vmatpush1.bf16.msra.mxu0 %v243_v4  ;;  %231 = vmatpush1.bf16.msra.mxu1 %v243_v4 }
   0xf   :  { %130 = vmatprep.subr.bf16.mxu0 %v250_v0  ;;  %222 = vmatprep.subr.bf16.mxu1 %v250_v0 }
  0x12   :  { %131 = vmatpush1.bf16.msra.mxu0 %v244_v11  ;;  %232 = vmatpush1.bf16.msra.mxu1 %v244_v11 }
  0x13   :  { %132 = vmatprep.subr.bf16.mxu0 %v250_v0  ;;  %223 = vmatprep.subr.bf16.mxu1 %v250_v0 }
  0x16   :  { %133 = vmatpush1.bf16.msra.mxu0 %v245_v12  ;;  %233 = vmatpush1.bf16.msra.mxu1 %v245_v12 }
  0x17   :  { %134 = vmatprep.subr.bf16.mxu0 %v250_v0  ;;  %224 = vmatprep.subr.bf16.mxu1 %v250_v0 }
  0x1a   :  { %135 = vmatpush1.bf16.msra.mxu0 %v246_v13  ;;  %234 = vmatpush1.bf16.msra.mxu1 %v246_v13 }
  0x1b   :  { %136 = vmatprep.subr.bf16.mxu0 %v250_v0  ;;  %225 = vmatprep.subr.bf16.mxu1 %v250_v0 }
  0x1e   :  { %137 = vmatpush1.bf16.msra.mxu0 %v247_v14  ;;  %235 = vmatpush1.bf16.msra.mxu1 %v247_v14 }
  0x1f   :  { %138 = vmatprep.subr.bf16.mxu0 %v250_v0  ;;  %226 = vmatprep.subr.bf16.mxu1 %v250_v0 }
  0x22   :  { %139 = vmatpush1.bf16.msra.mxu0 %v248_v17  ;;  %236 = vmatpush1.bf16.msra.mxu1 %v248_v17 }
  0x23   :  { %140 = vmatprep.subr.bf16.mxu0 %v250_v0  ;;  %227 = vmatprep.subr.bf16.mxu1 %v250_v0 }
  0x26   :  { %141 = vmatpush1.bf16.msra.mxu0 %v120_v21  ;;  %237 = vmatpush1.bf16.msra.mxu1 %v120_v21 }
  0x29   :  { %155 = vmatmul.mubr.bf16.vlgmr.msra.gmra.mrb[0].mxu0 %v47_v25  ;;  %163 = vmatmul.mubr.bf16.vlgmr.msra.gmra.mrb[0].mxu1 %v49_v26 }
  0xfc   :  { %v156_v29 = vpop.f32.mrb[0].mxu0  ;;  %v164_v30 = vpop.f32.mrb[0].mxu1 }
  0xfd   :  { %v177_v31 = vmul.f32 %v216_v27, %v156_v29  ;;  %v179_v32 = vmul.f32 %v216_v27, %v164_v30  ;;  %v158_v33 = vpop.f32.mrb[1].mxu0  ;;  %v166_v34 = vpop.f32.mrb[1].mxu1 }
  0xfe   :  { %v159_v35 = vpop.f32.mrb[2].mxu0  ;;  %v167_v36 = vpop.f32.mrb[2].mxu1 }
  0xff   :  { %v187_v37 = vadd.f32 %v217_v28, %v177_v31  ;;  %v189_v38 = vadd.f32 %v217_v28, %v179_v32  ;;  %v178_v39 = vmul.f32 %v216_v27, %v159_v35  ;;  %v180_v40 = vmul.f32 %v216_v27, %v167_v36  ;;  %v161_v41 = vpop.f32.mrb[3].mxu0  ;;  %v169_v42 = vpop.f32.mrb[3].mxu1 }
 0x101   :  { %v191_v43 = vmax.f32 %v187_v37, 0.0  ;;  %v193_v44 = vmax.f32 %v189_v38, 0.0  ;;  %v188_v45 = vadd.f32 %v217_v28, %v178_v39  ;;  %v190_v46 = vadd.f32 %v217_v28, %v180_v40 }
 0x103   :  { %196 = vst.msk [vmem:[%s373_s4] sm:$0xff] %vm195_vm3, %v191_v43  ;;  %198 = vst.msk [vmem:[%s373_s4 + $0x10] sm:$0xff] %vm195_vm3, %v193_v44  ;;  %v192_v47 = vmax.f32 %v188_v45, 0.0  ;;  %v194_v48 = vmax.f32 %v190_v46, 0.0 }
 0x105   :  { %197 = vst.msk [vmem:[%s373_s4 + $0x8] sm:$0xff] %vm195_vm3, %v192_v47  ;;  %199 = vst.msk [vmem:[%s373_s4 + $0x18] sm:$0xff] %vm195_vm3, %v194_v48 }

// kernel: _lambda_.34
= control target key start
LH: loop header
LB: loop body
LE: loop exit
PB: predicated region body
PF: predicated region fallthrough
CT: control target
= control target key end

     0   :  { %vm338_vm0 = vcmask 523264   ;;  %s891_s1 = inlined_call_operand.vmem [shape: bf16[576,64], index: 1, kind: input, shape index: {}]   ;;  %s892_s0 = inlined_call_operand.vmem [shape: f32[32,576], index: 0, kind: input, shape index: {}]   ;;  %s893_s2 = inlined_call_operand.vmem [shape: f32[1,64], index: 2, kind: input, shape index: {}]   ;;  %s894_s3 = inlined_call_operand.vmem [shape: f32[1,64], index: 3, kind: input, shape index: {}]   ;;  %s895_s4 = inlined_call_operand.vmem [shape: f32[32,64], index: 4, kind: output, shape index: {}]  }
   0x1   :  { %v638_v0 = vld [vmem:[%s891_s1 + $0x40] sm:$0xff]   ;;  %v642_v4 = vld [vmem:[%s891_s1 + $0x48] sm:$0xff]   ;;  %v646_v8 = vld [vmem:[%s891_s1 + $0x50] sm:$0xff]  }
   0x2   :  { %v639_v1 = vld [vmem:[%s891_s1 + $0xc0] sm:$0xff]   ;;  %564 = vmatprep.subr.bf16.mxu0 %v638_v0  ;;  %v643_v5 = vld [vmem:[%s891_s1 + $0xc8] sm:$0xff]   ;;  %v647_v9 = vld [vmem:[%s891_s1 + $0xd0] sm:$0xff]  }
   0x3   :  { %v640_v2 = vld [vmem:[%s891_s1] sm:$0xff]   ;;  %592 = vmatprep.subr.bf16.mxu1 %v639_v1  ;;  %v644_v6 = vld [vmem:[%s891_s1 + $0x8] sm:$0xff]   ;;  %v648_v10 = vld [vmem:[%s891_s1 + $0x10] sm:$0xff]  }
   0x4   :  { %v641_v3 = vld [vmem:[%s891_s1 + $0x80] sm:$0xff]   ;;  %565 = vmatpush3.bf16.msra.mxu0 %v640_v2  ;;  %v645_v7 = vld [vmem:[%s891_s1 + $0x88] sm:$0xff]   ;;  %v649_v11 = vld [vmem:[%s891_s1 + $0x90] sm:$0xff]  }
   0x5   :  { %593 = vmatpush3.bf16.msra.mxu1 %v641_v3  ;;  %566 = vmatprep.subr.bf16.mxu0 %v642_v4  ;;  %v650_v12 = vld [vmem:[%s891_s1 + $0x58] sm:$0xff]   ;;  %v654_v16 = vld [vmem:[%s891_s1 + $0x60] sm:$0xff]   ;;  %v658_v20 = vld [vmem:[%s891_s1 + $0x68] sm:$0xff]  }
   0x6   :  { %594 = vmatprep.subr.bf16.mxu1 %v643_v5  ;;  %v651_v13 = vld [vmem:[%s891_s1 + $0xd8] sm:$0xff]   ;;  %v655_v17 = vld [vmem:[%s891_s1 + $0xe0] sm:$0xff]   ;;  %v659_v21 = vld [vmem:[%s891_s1 + $0xe8] sm:$0xff]  }
   0x7   :  { %v652_v14 = vld [vmem:[%s891_s1 + $0x18] sm:$0xff]   ;;  %v656_v18 = vld [vmem:[%s891_s1 + $0x20] sm:$0xff]   ;;  %v660_v22 = vld [vmem:[%s891_s1 + $0x28] sm:$0xff]  }
   0x8   :  { %567 = vmatpush3.bf16.msra.mxu0 %v644_v6  ;;  %v653_v15 = vld [vmem:[%s891_s1 + $0x98] sm:$0xff]   ;;  %v657_v19 = vld [vmem:[%s891_s1 + $0xa0] sm:$0xff]   ;;  %v661_v23 = vld [vmem:[%s891_s1 + $0xa8] sm:$0xff]  }
   0x9   :  { %595 = vmatpush3.bf16.msra.mxu1 %v645_v7  ;;  %568 = vmatprep.subr.bf16.mxu0 %v646_v8  ;;  %v662_v24 = vld [vmem:[%s891_s1 + $0x70] sm:$0xff]   ;;  %v666_v28 = vld [vmem:[%s891_s1 + $0x78] sm:$0xff]   ;;  %v19_v32 = vld [vmem:[%s892_s0 + $0x8] sm:$0xff] }
   0xa   :  { %596 = vmatprep.subr.bf16.mxu1 %v647_v9  ;;  %v663_v25 = vld [vmem:[%s891_s1 + $0xf0] sm:$0xff]   ;;  %v667_v29 = vld [vmem:[%s891_s1 + $0xf8] sm:$0xff]   ;;  %v26_v36 = vld [vmem:[%s892_s0 + $0x40] sm:$0xff] }
   0xb   :  { %v664_v26 = vld [vmem:[%s891_s1 + $0x30] sm:$0xff]   ;;  %v668_v30 = vld [vmem:[%s891_s1 + $0x38] sm:$0xff]   ;;  %v18_v37 = vld [vmem:[%s892_s0] sm:$0xff] }
   0xc   :  { %569 = vmatpush3.bf16.msra.mxu0 %v648_v10  ;;  %v665_v27 = vld [vmem:[%s891_s1 + $0xb0] sm:$0xff]   ;;  %v669_v31 = vld [vmem:[%s891_s1 + $0xb8] sm:$0xff]   ;;  %v23_v38 = vld [vmem:[%s892_s0 + $0x28] sm:$0xff] }
   0xd   :  { %597 = vmatpush3.bf16.msra.mxu1 %v649_v11  ;;  %570 = vmatprep.subr.bf16.mxu0 %v650_v12  ;;  %v24_v33 = vld [vmem:[%s892_s0 + $0x30] sm:$0xff]  ;;  %v21_v34 = vld [vmem:[%s892_s0 + $0x18] sm:$0xff]  ;;  %v112_v40 = vpack.c.bf16 %v23_v38, %v18_v37  ;;  %v670_v44 = vld [vmem:[%s891_s1 + $0x100] sm:$0xff]  }
   0xe   :  { %598 = vmatprep.subr.bf16.mxu1 %v651_v13  ;;  %v113_v35 = vpack.c.bf16 %v24_v33, %v19_v32  ;;  %v115_v39 = vpack.c.bf16 %v26_v36, %v21_v34  ;;  %v20_v41 = vld [vmem:[%s892_s0 + $0x10] sm:$0xff]  ;;  %v25_v42 = vld [vmem:[%s892_s0 + $0x38] sm:$0xff]  ;;  %v671_v45 = vld [vmem:[%s891_s1 + $0x108] sm:$0xff]  }
   0xf   :  { %v114_v43 = vpack.c.bf16 %v25_v42, %v20_v41  ;;  %v29_v46 = vld [vmem:[%s892_s0 + $0x58] sm:$0xff]  ;;  %v34_v47 = vld [vmem:[%s892_s0 + $0x80] sm:$0xff]  ;;  %v31_v48 = vld [vmem:[%s892_s0 + $0x68] sm:$0xff] }
  0x10   :  { %571 = vmatpush3.bf16.msra.mxu0 %v652_v14  ;;  %377 = vmatprep.mubr.bf16.mxu0 %v113_v35  ;;  %v36_v49 = vld [vmem:[%s892_s0 + $0x90] sm:$0xff]  ;;  %v118_v50 = vpack.c.bf16 %v34_v47, %v29_v46  ;;  %v33_v53 = vld [vmem:[%s892_s0 + $0x78] sm:$0xff]  ;;  %v30_v54 = vld [vmem:[%s892_s0 + $0x60] sm:$0xff] }
  0x11   :  { %599 = vmatpush3.bf16.msra.mxu1 %v653_v15  ;;  %572 = vmatprep.subr.bf16.mxu0 %v654_v16  ;;  %v120_v51 = vpack.c.bf16 %v36_v49, %v31_v48  ;;  %v28_v52 = vld [vmem:[%s892_s0 + $0x50] sm:$0xff]  ;;  %v35_v55 = vld [vmem:[%s892_s0 + $0x88] sm:$0xff]  ;;  %v22_v59 = vld [vmem:[%s892_s0 + $0x20] sm:$0xff] }
  0x12   :  { %600 = vmatprep.subr.bf16.mxu1 %v655_v17  ;;  %426 = vmatprep.mubr.bf16.mxu1 %v115_v39  ;;  %v117_v56 = vpack.c.bf16 %v33_v53, %v28_v52  ;;  %v672_v57 = vld [vmem:[%s891_s1 + $0x110] sm:$0xff]   ;;  %v119_v58 = vpack.c.bf16 %v35_v55, %v30_v54  ;;  %v27_v60 = vld [vmem:[%s892_s0 + $0x48] sm:$0xff]  ;;  %v673_v62 = vld [vmem:[%s891_s1 + $0x118] sm:$0xff]  }
  0x13   :  { %v116_v61 = vpack.c.bf16 %v27_v60, %v22_v59  ;;  %v32_v63 = vld [vmem:[%s892_s0 + $0x70] sm:$0xff]  ;;  %v37_v0 = vld [vmem:[%s892_s0 + $0x98] sm:$0xff]  ;;  %v563_v34 = vld [vmem:[%s894_s3] ss:$0 sm:$0xff] }
  0x14   :  { %573 = vmatpush3.bf16.msra.mxu0 %v656_v18  ;;  %v121_v1 = vpack.c.bf16 %v37_v0, %v32_v63 }
  0x15   :  { %601 = vmatpush3.bf16.msra.mxu1 %v657_v19  ;;  %574 = vmatprep.subr.bf16.mxu0 %v658_v20 }
  0x16   :  { %602 = vmatprep.subr.bf16.mxu1 %v659_v21 }
  0x18   :  { %575 = vmatpush3.bf16.msra.mxu0 %v660_v22 }
  0x19   :  { %603 = vmatpush3.bf16.msra.mxu1 %v661_v23  ;;  %576 = vmatprep.subr.bf16.mxu0 %v662_v24 }
  0x1a   :  { %604 = vmatprep.subr.bf16.mxu1 %v663_v25 }
  0x1c   :  { %577 = vmatpush3.bf16.msra.mxu0 %v664_v26 }
  0x1d   :  { %605 = vmatpush3.bf16.msra.mxu1 %v665_v27  ;;  %578 = vmatprep.subr.bf16.mxu0 %v666_v28 }
  0x1e   :  { %606 = vmatprep.subr.bf16.mxu1 %v667_v29 }
  0x20   :  { %579 = vmatpush3.bf16.msra.mxu0 %v668_v30  ;;  %v562_v30 = vld [vmem:[%s893_s2] ss:$0 sm:$0xff] }
  0x21   :  { %607 = vmatpush3.bf16.msra.mxu1 %v669_v31  ;;  %626 = vmatprep.subr.bf16.mxu0 %v670_v44 }
  0x23   :  { %378 = vmatmul.mubr.bf16.vlgmr.msra.gmra.mrb[0].mxu0 %v112_v40 }
  0x24   :  { %427 = vmatmul.mubr.bf16.vlgmr.msra.gmra.mrb[0].mxu1 %v114_v43  ;;  %627 = vmatpush3.bf16.msra.mxu0 %v670_v44 }
  0x25   :  { %628 = vmatprep.subr.bf16.mxu0 %v671_v45  ;;  %385 = vmatprep.mubr.bf16.mxu0 %v118_v50 }
  0x26   :  { %434 = vmatprep.mubr.bf16.mxu1 %v120_v51 }
  0x28   :  { %629 = vmatpush3.bf16.msra.mxu0 %v671_v45 }
  0x29   :  { %630 = vmatprep.subr.bf16.mxu0 %v672_v57 }
  0x2b   :  { %386 = vmatmul.mubr.bf16.gmra.mrb[4].mxu0 %v117_v56 }
  0x2c   :  { %435 = vmatmul.mubr.bf16.gmra.mrb[4].mxu1 %v119_v58  ;;  %634 = vmatprep.mubr.msk.bf16.mxu0 %vm338_vm0, %v116_v61 }
  0x2d   :  { %631 = vmatpush3.bf16.msra.mxu0 %v672_v57 }
  0x2e   :  { %632 = vmatprep.subr.bf16.mxu0 %v673_v62 }
  0x31   :  { %633 = vmatpush3.bf16.msra.mxu0 %v673_v62 }
  0x34   :  { %635 = vmatmul.mubr.msk.bf16.vlgmr.msra.gmra.mrb[8].mxu0 %vm338_vm0, %v121_v1 }
  0xf6   :  { %v580_v2 = vpop.f32.mrb[0].mxu0 }
  0xf7   :  { %v608_v3 = vpop.f32.mrb[0].mxu1  ;;  %v581_v4 = vpop.f32.mrb[1].mxu0 }
  0xf8   :  { %v582_v5 = vadd.f32 %v581_v4, %v580_v2  ;;  %v609_v6 = vpop.f32.mrb[1].mxu1  ;;  %v583_v7 = vpop.f32.mrb[2].mxu0 }
  0xf9   :  { %v610_v8 = vadd.f32 %v609_v6, %v608_v3  ;;  %v611_v9 = vpop.f32.mrb[2].mxu1  ;;  %v584_v10 = vpop.f32.mrb[3].mxu0 }
  0xfa   :  { %v585_v11 = vadd.f32 %v584_v10, %v583_v7  ;;  %v612_v12 = vpop.f32.mrb[3].mxu1 }
  0xfb   :  { %v613_v13 = vadd.f32 %v612_v12, %v611_v9  ;;  %v429_v14 = vadd.f32 %v610_v8, %v582_v5 }
  0xfd   :  { %v432_v15 = vadd.f32 %v613_v13, %v585_v11 }
  0xfe   :  { %v586_v16 = vpop.f32.mrb[4].mxu0 }
  0xff   :  { %v614_v17 = vpop.f32.mrb[4].mxu1  ;;  %v587_v18 = vpop.f32.mrb[5].mxu0 }
 0x100   :  { %v588_v19 = vadd.f32 %v587_v18, %v586_v16  ;;  %v615_v20 = vpop.f32.mrb[5].mxu1  ;;  %v589_v21 = vpop.f32.mrb[6].mxu0 }
 0x101   :  { %v616_v22 = vadd.f32 %v615_v20, %v614_v17  ;;  %v617_v23 = vpop.f32.mrb[6].mxu1  ;;  %v590_v24 = vpop.f32.mrb[7].mxu0 }
 0x102   :  { %v591_v25 = vadd.f32 %v590_v24, %v589_v21  ;;  %v618_v26 = vpop.f32.mrb[7].mxu1 }
 0x103   :  { %v619_v27 = vadd.f32 %v618_v26, %v617_v23  ;;  %v437_v28 = vadd.f32 %v616_v22, %v588_v19 }
 0x105   :  { %v440_v29 = vadd.f32 %v619_v27, %v591_v25 }
 0x107   :  { %v636_v31 = vpop.f32.mrb[8].mxu0 }
 0x108   :  { %v486_v32 = vadd.f32 %v636_v31, %v437_v28  ;;  %v477_v33 = vpop.f32.mrb[9].mxu0 }
 0x109   :  { %v478_v35 = vadd.f32 %v477_v33, %v429_v14  ;;  %v637_v36 = vpop.f32.mrb[10].mxu0 }
 0x10a   :  { %v500_v37 = vmul.f32 %v562_v30, %v486_v32  ;;  %v489_v38 = vadd.f32 %v637_v36, %v440_v29  ;;  %v480_v39 = vpop.f32.mrb[11].mxu0 }
 0x10b   :  { %v498_v40 = vmul.f32 %v562_v30, %v478_v35  ;;  %v481_v41 = vadd.f32 %v480_v39, %v432_v15 }
 0x10c   :  { %v510_v42 = vadd.f32 %v563_v34, %v500_v37  ;;  %v501_v43 = vmul.f32 %v562_v30, %v489_v38 }
 0x10d   :  { %v508_v44 = vadd.f32 %v563_v34, %v498_v40  ;;  %v499_v45 = vmul.f32 %v562_v30, %v481_v41 }
 0x10e   :  { %v514_v46 = vmax.f32 %v510_v42, 0.0  ;;  %v511_v47 = vadd.f32 %v563_v34, %v501_v43 }
 0x10f   :  { %v512_v48 = vmax.f32 %v508_v44, 0.0  ;;  %v509_v49 = vadd.f32 %v563_v34, %v499_v45 }
 0x110   :  { %518 = vst.msk [vmem:[%s895_s4 + $0x10] sm:$0xff] %vm338_vm0, %v514_v46  ;;  %v515_v50 = vmax.f32 %v511_v47, 0.0 }
 0x111   :  { %516 = vst.msk [vmem:[%s895_s4] sm:$0xff] %vm338_vm0, %v512_v48  ;;  %v513_v51 = vmax.f32 %v509_v49, 0.0 }
 0x112   :  { %519 = vst.msk [vmem:[%s895_s4 + $0x18] sm:$0xff] %vm338_vm0, %v515_v50 }
 0x113   :  { %517 = vst.msk [vmem:[%s895_s4 + $0x8] sm:$0xff] %vm338_vm0, %v513_v51 }

// kernel: _lambda_.36
= control target key start
LH: loop header
LB: loop body
LE: loop exit
PB: predicated region body
PF: predicated region fallthrough
CT: control target
= control target key end

     0   :  { %s355_s1 = inlined_call_operand.vmem [shape: bf16[256,128], index: 1, kind: input, shape index: {}]   ;;  %s356_s0 = inlined_call_operand.vmem [shape: f32[8,256], index: 0, kind: input, shape index: {}]   ;;  %s357_s2 = inlined_call_operand.vmem [shape: f32[1,128], index: 2, kind: input, shape index: {}]   ;;  %s358_s3 = inlined_call_operand.vmem [shape: f32[1,128], index: 3, kind: input, shape index: {}]   ;;  %s359_s4 = inlined_call_operand.vmem [shape: f32[8,128], index: 4, kind: output, shape index: {}]  }
   0x1   :  { %v251_v0 = vld [vmem:[%s355_s1 + $0x40] sm:$0xff]   ;;  %v253_v2 = vld [vmem:[%s355_s1 + $0x48] sm:$0xff]   ;;  %v255_v4 = vld [vmem:[%s355_s1 + $0x50] sm:$0xff]  }
   0x2   :  { %v252_v1 = vld [vmem:[%s355_s1] sm:$0xff]   ;;  %229 = vmatprep.subr.bf16.mxu0 %v251_v0  ;;  %v254_v3 = vld [vmem:[%s355_s1 + $0x8] sm:$0xff]   ;;  %v256_v5 = vld [vmem:[%s355_s1 + $0x10] sm:$0xff]  }
   0x3   :  { %230 = vmatpush3.bf16.msra.mxu0 %v252_v1  ;;  %v257_v6 = vld [vmem:[%s355_s1 + $0x58] sm:$0xff]   ;;  %v259_v8 = vld [vmem:[%s355_s1 + $0x60] sm:$0xff]   ;;  %v261_v10 = vld [vmem:[%s355_s1 + $0x68] sm:$0xff]  }
   0x4   :  { %231 = vmatprep.subr.bf16.mxu0 %v253_v2  ;;  %v258_v7 = vld [vmem:[%s355_s1 + $0x18] sm:$0xff]   ;;  %v260_v9 = vld [vmem:[%s355_s1 + $0x20] sm:$0xff]   ;;  %v19_v11 = vld [vmem:[%s356_s0 + $0x8] sm:$0xff] }
   0x5   :  { %v55_v12 = vpack.c.bf16 %v19_v11, %v19_v11  ;;  %v262_v13 = vld [vmem:[%s355_s1 + $0x28] sm:$0xff]   ;;  %v263_v14 = vld [vmem:[%s355_s1 + $0x70] sm:$0xff]   ;;  %v265_v16 = vld [vmem:[%s355_s1 + $0x78] sm:$0xff]  }
   0x6   :  { %v264_v15 = vld [vmem:[%s355_s1 + $0x30] sm:$0xff]   ;;  %v266_v17 = vld [vmem:[%s355_s1 + $0x38] sm:$0xff]   ;;  %v18_v18 = vld [vmem:[%s356_s0] sm:$0xff] }
   0x7   :  { %232 = vmatpush3.bf16.msra.mxu0 %v254_v3  ;;  %184 = vmatprep.mubr.bf16.mxu0 %v55_v12  ;;  %v54_v19 = vpack.c.bf16 %v18_v18, %v18_v18  ;;  %v227_v21 = vld [vmem:[%s357_s2] ss:$0 sm:$0xff] }
   0x8   :  { %233 = vmatprep.subr.bf16.mxu0 %v255_v4  ;;  %v228_v25 = vld [vmem:[%s358_s3] ss:$0 sm:$0xff] }
   0xb   :  { %234 = vmatpush3.bf16.msra.mxu0 %v256_v5 }
   0xc   :  { %235 = vmatprep.subr.bf16.mxu0 %v257_v6 }
   0xf   :  { %236 = vmatpush3.bf16.msra.mxu0 %v258_v7 }
  0x10   :  { %237 = vmatprep.subr.bf16.mxu0 %v259_v8 }
  0x13   :  { %238 = vmatpush3.bf16.msra.mxu0 %v260_v9 }
  0x14   :  { %239 = vmatprep.subr.bf16.mxu0 %v261_v10 }
  0x17   :  { %240 = vmatpush3.bf16.msra.mxu0 %v262_v13 }
  0x18   :  { %241 = vmatprep.subr.bf16.mxu0 %v263_v14 }
  0x1b   :  { %242 = vmatpush3.bf16.msra.mxu0 %v264_v15 }
  0x1c   :  { %243 = vmatprep.subr.bf16.mxu0 %v265_v16 }
  0x1f   :  { %244 = vmatpush3.bf16.msra.mxu0 %v266_v17 }
  0x22   :  { %185 = vmatmul.mubr.bf16.vlgmr.msra.gmra.mrb[0].mxu0 %v54_v19 }
  0xf5   :  { %v245_v20 = vpop.f32.mrb[0].mxu0 }
  0xf6   :  { %v246_v22 = vpop.f32.mrb[1].mxu0 }
  0xf7   :  { %v247_v23 = vadd.f32 %v246_v22, %v245_v20  ;;  %v248_v24 = vpop.f32.mrb[2].mxu0 }
  0xf8   :  { %v249_v26 = vpop.f32.mrb[3].mxu0 }
  0xf9   :  { %v198_v27 = vmul.f32 %v247_v23, %v227_v21 }
  0xfb   :  { %v205_v28 = vadd.f32 %v228_v25, %v198_v27 }
  0xfd   :  { %206 = vst [vmem:[%s359_s4] sm:$0xff] %v205_v28 }

// kernel: _lambda_.39
= control target key start
LH: loop header
LB: loop body
LE: loop exit
PB: predicated region body
PF: predicated region fallthrough
CT: control target
= control target key end

     0   :  { %v206_v0 = vmov 0.0   ;;  %vm207_vm0 = vmmov 0   ;;  %s286_s1 = inlined_call_operand.vmem [shape: bf16[128,128], index: 1, kind: input, shape index: {}]   ;;  %s287_s0 = inlined_call_operand.vmem [shape: f32[10,128], index: 0, kind: input, shape index: {}]   ;;  %s288_s2 = inlined_call_operand.vmem [shape: f32[1,128], index: 2, kind: input, shape index: {}]   ;;  %s289_s3 = inlined_call_operand.vmem [shape: f32[1,128], index: 3, kind: input, shape index: {}]   ;;  %s290_s4 = inlined_call_operand.vmem [shape: f32[10,128], index: 4, kind: input, shape index: {}]   ;;  %s291_s5 = inlined_call_operand.vmem [shape: f32[10,128], index: 5, kind: output, shape index: {}]  }
   0x1   :  { %176 = vmatprep.subr.bf16.mxu0 %v206_v0  ;;  %v198_v1 = vld [vmem:[%s286_s1] sm:$0xff]   ;;  %192 = vmatprep.mubr.msk.bf16.mxu0 %vm207_vm0, %v206_v0  ;;  %v199_v2 = vld [vmem:[%s286_s1 + $0x8] sm:$0xff]   ;;  %v200_v3 = vld [vmem:[%s286_s1 + $0x10] sm:$0xff]  }
   0x2   :  { %177 = vmatpush3.bf16.msra.mxu0 %v198_v1  ;;  %v201_v4 = vld [vmem:[%s286_s1 + $0x18] sm:$0xff]   ;;  %v202_v5 = vld [vmem:[%s286_s1 + $0x20] sm:$0xff]   ;;  %v203_v6 = vld [vmem:[%s286_s1 + $0x28] sm:$0xff]  }
   0x3   :  { %178 = vmatprep.subr.bf16.mxu0 %v206_v0  ;;  %v204_v7 = vld [vmem:[%s286_s1 + $0x30] sm:$0xff]   ;;  %v205_v8 = vld [vmem:[%s286_s1 + $0x38] sm:$0xff]   ;;  %v21_v9 = vld [vmem:[%s287_s0] sm:$0xff] }
   0x4   :  { %v22_v10 = vld [vmem:[%s287_s0 + $0x8] sm:$0xff]  ;;  %v165_v12 = vld [vmem:[%s288_s2] ss:$0 sm:$0xff] }
   0x5   :  { %v41_v11 = vpack.c.bf16 %v22_v10, %v21_v9  ;;  %v166_v13 = vld [vmem:[%s289_s3] ss:$0 sm:$0xff]  ;;  %v148_v22 = vld [vmem:[%s290_s4 + $0x8] sm:$0xff] }
   0x6   :  { %179 = vmatpush3.bf16.msra.mxu0 %v199_v2  ;;  %v147_v17 = vld [vmem:[%s290_s4] sm:$0xff] }
   0x7   :  { %180 = vmatprep.subr.bf16.mxu0 %v206_v0 }
   0xa   :  { %181 = vmatpush3.bf16.msra.mxu0 %v200_v3 }
   0xb   :  { %182 = vmatprep.subr.bf16.mxu0 %v206_v0 }
   0xe   :  { %183 = vmatpush3.bf16.msra.mxu0 %v201_v4 }
   0xf   :  { %184 = vmatprep.subr.bf16.mxu0 %v206_v0 }
  0x12   :  { %185 = vmatpush3.bf16.msra.mxu0 %v202_v5 }
  0x13   :  { %186 = vmatprep.subr.bf16.mxu0 %v206_v0 }
  0x16   :  { %187 = vmatpush3.bf16.msra.mxu0 %v203_v6 }
  0x17   :  { %188 = vmatprep.subr.bf16.mxu0 %v206_v0 }
  0x1a   :  { %189 = vmatpush3.bf16.msra.mxu0 %v204_v7 }
  0x1b   :  { %190 = vmatprep.subr.bf16.mxu0 %v206_v0 }
  0x1e   :  { %191 = vmatpush3.bf16.msra.mxu0 %v205_v8 }
  0x21   :  { %193 = vmatmul.mubr.bf16.vlgmr.msra.gmra.mrb[0].mxu0 %v41_v11 }
  0xf4   :  { %v124_v14 = vpop.f32.mrb[0].mxu0 }
  0xf5   :  { %v137_v15 = vmul.f32 %v165_v12, %v124_v14  ;;  %v194_v16 = vpop.f32.mrb[1].mxu0 }
  0xf6   :  { %v127_v18 = vpop.f32.mrb[2].mxu0 }
  0xf7   :  { %v145_v19 = vadd.f32 %v166_v13, %v137_v15  ;;  %v138_v20 = vmul.f32 %v165_v12, %v127_v18  ;;  %v195_v21 = vpop.f32.mrb[3].mxu0 }
  0xf9   :  { %v149_v23 = vadd.f32 %v147_v17, %v145_v19  ;;  %v146_v24 = vadd.f32 %v166_v13, %v138_v20 }
  0xfb   :  { %151 = vst [vmem:[%s291_s5] sm:$0xff] %v149_v23  ;;  %v150_v25 = vadd.f32 %v148_v22, %v146_v24 }
  0xfd   :  { %152 = vst [vmem:[%s291_s5 + $0x8] sm:$0xff] %v150_v25 }

// kernel: _lambda_.37
= control target key start
LH: loop header
LB: loop body
LE: loop exit
PB: predicated region body
PF: predicated region fallthrough
CT: control target
= control target key end

     0   :  { %v462_v3 = vmov 0.0   ;;  %v463_v30 = vmov 0   ;;  %vm464_vm0 = vmmov 0   ;;  %v315_v53 = vlaneseq  ;;  %s627_s0 = inlined_call_operand.vmem [shape: f32[10,128], index: 0, kind: input, shape index: {}]   ;;  %s628_s3 = inlined_call_operand.vmem [shape: bf16[128,384], index: 3, kind: input, shape index: {}]   ;;  %s629_s1 = inlined_call_operand.vmem [shape: f32[1,128], index: 1, kind: input, shape index: {}]   ;;  %s630_s2 = inlined_call_operand.vmem [shape: f32[1,128], index: 2, kind: input, shape index: {}]   ;;  %s631_s4 = inlined_call_operand.vmem [shape: f32[1,384], index: 4, kind: input, shape index: {}]   ;;  %s632_s5 = inlined_call_operand.vmem [shape: f32[1,384], index: 5, kind: input, shape index: {}]   ;;  %s633_s6 = inlined_call_operand.vmem [shape: f32[10,384], index: 6, kind: output, shape index: {}]  }
   0x1   :  { %v24_v0 = vld [vmem:[%s627_s0] sm:$0xff]  ;;  %v25_v1 = vld [vmem:[%s627_s0 + $0x8] sm:$0xff]  ;;  %403 = vmatprep.subr.bf16.mxu1 %v462_v3  ;;  %v436_v18 = vld [vmem:[%s628_s3 + $0x30] ss:$12 sps:$4 sm:$0xff]   ;;  %262 = vmatprep.mubr.bf16.mxu0 %v463_v30 }
   0x2   :  { %28 = vadd.xlane.f32.xlu0 %v24_v0  ;;  %v426_v2 = vld [vmem:[%s628_s3 + $0x4] ss:$12 sps:$4 sm:$0xff]   ;;  %v428_v4 = vld [vmem:[%s628_s3] ss:$12 sps:$4 sm:$0xff]   ;;  %v429_v5 = vld [vmem:[%s628_s3 + $0x8] ss:$12 sps:$4 sm:$0xff]   ;;  %419 = vmatprep.mubr.msk.bf16.mxu1 %vm464_vm0, %v462_v3 }
   0x3   :  { %230 = vmatprep.subr.bf16.mxu0 %v426_v2  ;;  %v430_v6 = vld [vmem:[%s628_s3 + $0x1c] ss:$12 sps:$4 sm:$0xff]   ;;  %404 = vmatpush3.bf16.msra.mxu1 %v429_v5  ;;  %v432_v15 = vld [vmem:[%s628_s3 + $0x18] ss:$12 sps:$4 sm:$0xff]   ;;  %v433_v16 = vld [vmem:[%s628_s3 + $0x20] ss:$12 sps:$4 sm:$0xff]  }
   0x4   :  { %231 = vmatpush1.bf16.msra.mxu0 %v428_v4  ;;  %405 = vmatprep.subr.bf16.mxu1 %v462_v3  ;;  %v434_v17 = vld [vmem:[%s628_s3 + $0x34] ss:$12 sps:$4 sm:$0xff]   ;;  %v437_v19 = vld [vmem:[%s628_s3 + $0x38] ss:$12 sps:$4 sm:$0xff]   ;;  %v441_v22 = vld [vmem:[%s628_s3 + $0x50] ss:$12 sps:$4 sm:$0xff]  }
   0x5   :  { %232 = vmatprep.subr.bf16.mxu0 %v430_v6  ;;  %v438_v20 = vld [vmem:[%s628_s3 + $0x4c] ss:$12 sps:$4 sm:$0xff]   ;;  %v440_v21 = vld [vmem:[%s628_s3 + $0x48] ss:$12 sps:$4 sm:$0xff]   ;;  %v442_v23 = vld [vmem:[%s628_s3 + $0x64] ss:$12 sps:$4 sm:$0xff]  }
   0x6   :  { %30 = vadd.xlane.f32.xlu0 %v25_v1  ;;  %v444_v24 = vld [vmem:[%s628_s3 + $0x60] ss:$12 sps:$4 sm:$0xff]   ;;  %v445_v25 = vld [vmem:[%s628_s3 + $0x68] ss:$12 sps:$4 sm:$0xff]   ;;  %v448_v27 = vld [vmem:[%s628_s3 + $0x78] ss:$12 sps:$4 sm:$0xff]  }
   0x7   :  { %406 = vmatpush3.bf16.msra.mxu1 %v433_v16  ;;  %v446_v26 = vld [vmem:[%s628_s3 + $0x7c] ss:$12 sps:$4 sm:$0xff]   ;;  %v449_v28 = vld [vmem:[%s628_s3 + $0x80] ss:$12 sps:$4 sm:$0xff]   ;;  %v453_v32 = vld [vmem:[%s628_s3 + $0x98] ss:$12 sps:$4 sm:$0xff]  }
   0x8   :  { %233 = vmatpush1.bf16.msra.mxu0 %v432_v15  ;;  %407 = vmatprep.subr.bf16.mxu1 %v462_v3  ;;  %v450_v29 = vld [vmem:[%s628_s3 + $0x94] ss:$12 sps:$4 sm:$0xff]   ;;  %v452_v31 = vld [vmem:[%s628_s3 + $0x90] ss:$12 sps:$4 sm:$0xff]   ;;  %v454_v33 = vld [vmem:[%s628_s3 + $0xac] ss:$12 sps:$4 sm:$0xff]  }
   0x9   :  { %234 = vmatprep.subr.bf16.mxu0 %v434_v17  ;;  %v456_v34 = vld [vmem:[%s628_s3 + $0xa8] ss:$12 sps:$4 sm:$0xff]   ;;  %v457_v35 = vld [vmem:[%s628_s3 + $0xb0] ss:$12 sps:$4 sm:$0xff]   ;;  %v368_v44 = vld [vmem:[%s629_s1] ss:$0 sm:$0xff] }
   0xa   :  { %v369_v48 = vld [vmem:[%s630_s2] ss:$0 sm:$0xff]  ;;  %v316_v54 = vshrl.u32 %v315_v53, 7 }
   0xb   :  { %408 = vmatpush3.bf16.msra.mxu1 %v437_v19  ;;  %v99_v57 = vld [vmem:[%s631_s4] sm:$0x7] }
   0xc   :  { %235 = vmatpush1.bf16.msra.mxu0 %v436_v18  ;;  %409 = vmatprep.subr.bf16.mxu1 %v462_v3  ;;  %v317_v55 = vsub.s32 0, %v316_v54  ;;  %v325_v56 = vsub.s32 2, %v316_v54  ;;  %v321_v58 = vsub.s32 1, %v316_v54  ;;  %v100_v59 = vld [vmem:[%s632_s5] sm:$0x7] }
   0xd   :  { %236 = vmatprep.subr.bf16.mxu0 %v438_v20 }
   0xe   :  { %v318_v60 = vrot.slane %v99_v57, %v317_v55  ;;  %v326_v61 = vrot.slane %v99_v57, %v325_v56  ;;  %v322_v62 = vrot.slane %v99_v57, %v321_v58  ;;  %v340_v63 = vrot.slane %v100_v59, %v317_v55 }
   0xf   :  { %410 = vmatpush3.bf16.msra.mxu1 %v441_v22 }
  0x10   :  { %237 = vmatpush1.bf16.msra.mxu0 %v440_v21  ;;  %411 = vmatprep.subr.bf16.mxu1 %v462_v3 }
  0x11   :  { %238 = vmatprep.subr.bf16.mxu0 %v442_v23 }
  0x13   :  { %412 = vmatpush3.bf16.msra.mxu1 %v445_v25 }
  0x14   :  { %239 = vmatpush1.bf16.msra.mxu0 %v444_v24  ;;  %413 = vmatprep.subr.bf16.mxu1 %v462_v3 }
  0x15   :  { %240 = vmatprep.subr.bf16.mxu0 %v446_v26 }
  0x17   :  { %414 = vmatpush3.bf16.msra.mxu1 %v449_v28 }
  0x18   :  { %241 = vmatpush1.bf16.msra.mxu0 %v448_v27  ;;  %415 = vmatprep.subr.bf16.mxu1 %v462_v3 }
  0x19   :  { %242 = vmatprep.subr.bf16.mxu0 %v450_v29 }
  0x1b   :  { %416 = vmatpush3.bf16.msra.mxu1 %v453_v32 }
  0x1c   :  { %243 = vmatpush1.bf16.msra.mxu0 %v452_v31  ;;  %417 = vmatprep.subr.bf16.mxu1 %v462_v3  ;;  %v344_v3 = vrot.slane %v100_v59, %v321_v58 }
  0x1d   :  { %244 = vmatprep.subr.bf16.mxu0 %v454_v33 }
  0x1f   :  { %418 = vmatpush3.bf16.msra.mxu1 %v457_v35 }
  0x20   :  { %245 = vmatpush1.bf16.msra.mxu0 %v456_v34 }
  0x8f   :  { %v29_v7 = vpop.xlane.xlu0 %28 }
  0x90   :  { %v33_v8 = vmul.f32 0.0078125, %v29_v7 }
  0x92   :  { %v520_v9 = vsub.f32 %v24_v0, %v33_v8  ;;  %v348_v0 = vrot.slane %v100_v59, %v325_v56 }
  0x93   :  { %v31_v10 = vpop.xlane.xlu0 %30 }
  0x94   :  { %v34_v11 = vmul.f32 0.0078125, %v31_v10  ;;  %v37_v12 = vmul.f32 %v520_v9, %v520_v9 }
  0x96   :  { %v524_v13 = vsub.f32 %v25_v1, %v34_v11  ;;  %39 = vadd.xlane.f32.xlu1 %v37_v12 }
  0x98   :  { %v38_v14 = vmul.f32 %v524_v13, %v524_v13 }
  0x9a   :  { %41 = vadd.xlane.f32.xlu1 %v38_v14 }
 0x123   :  { %v40_v36 = vpop.xlane.xlu1 %39 }
 0x124   :  { %v43_v37 = vmul.f32 0.0078125, %v40_v36 }
 0x126   :  { %v45_v38 = vadd.f32 1e-05, %v43_v37 }
 0x127   :  { %v42_v39 = vpop.xlane.xlu1 %41 }
 0x128   :  { %458 = vrsqrt.f32 %v45_v38  ;;  %v44_v40 = vmul.f32 0.0078125, %v42_v39 }
 0x12a   :  { %v46_v41 = vadd.f32 1e-05, %v44_v40 }
 0x12c   :  { %460 = vrsqrt.f32 %v46_v41 }
 0x132   :  { %v459_v42 = vpop.eup %458 }
 0x133   :  { %v49_v43 = vmul.f32 %v459_v42, %v520_v9 }
 0x135   :  { %v57_v47 = vmul.f32 %v368_v44, %v49_v43 }
 0x136   :  { %v461_v45 = vpop.eup %460 }
 0x137   :  { %v50_v46 = vmul.f32 %v461_v45, %v524_v13  ;;  %v65_v50 = vadd.f32 %v369_v48, %v57_v47 }
 0x139   :  { %v58_v49 = vmul.f32 %v368_v44, %v50_v46 }
 0x13b   :  { %v66_v51 = vadd.f32 %v369_v48, %v58_v49 }
 0x13d   :  { %v101_v52 = vpack.c.bf16 %v66_v51, %v65_v50 }
 0x13f   :  { %263 = vmatmul.mubr.bf16.vlgmr.msra.gmra.mrb[0].mxu0 %v101_v52  ;;  %420 = vmatmul.mubr.bf16.vlgmr.msra.gmra.mrb[0].mxu1 %v101_v52 }
 0x212   :  { %v264_v1 = vpop.f32.mrb[0].mxu0  ;;  %v307_v2 = vpop.f32.mrb[0].mxu1 }
 0x213   :  { %v330_v4 = vmul.f32 %v318_v60, %v264_v1  ;;  %v332_v5 = vmul.f32 %v326_v61, %v307_v2  ;;  %v266_v6 = vpop.f32.mrb[1].mxu0  ;;  %v421_v7 = vpop.f32.mrb[1].mxu1 }
 0x214   :  { %v331_v8 = vmul.f32 %v322_v62, %v266_v6  ;;  %v268_v9 = vpop.f32.mrb[2].mxu0  ;;  %v310_v10 = vpop.f32.mrb[2].mxu1 }
 0x215   :  { %v352_v11 = vadd.f32 %v340_v63, %v330_v4  ;;  %v354_v12 = vadd.f32 %v348_v0, %v332_v5  ;;  %v333_v13 = vmul.f32 %v318_v60, %v268_v9  ;;  %v335_v14 = vmul.f32 %v326_v61, %v310_v10  ;;  %v270_v15 = vpop.f32.mrb[3].mxu0  ;;  %v422_v16 = vpop.f32.mrb[3].mxu1 }
 0x216   :  { %v353_v17 = vadd.f32 %v344_v3, %v331_v8  ;;  %v334_v18 = vmul.f32 %v322_v62, %v270_v15 }
 0x217   :  { %358 = vst [vmem:[%s633_s6] sm:$0xff] %v352_v11  ;;  %360 = vst [vmem:[%s633_s6 + $0x10] sm:$0xff] %v354_v12  ;;  %v355_v19 = vadd.f32 %v340_v63, %v333_v13  ;;  %v357_v20 = vadd.f32 %v348_v0, %v335_v14 }
 0x218   :  { %359 = vst [vmem:[%s633_s6 + $0x8] sm:$0xff] %v353_v17  ;;  %v356_v21 = vadd.f32 %v344_v3, %v334_v18 }
 0x219   :  { %361 = vst [vmem:[%s633_s6 + $0x18] sm:$0xff] %v355_v19  ;;  %363 = vst [vmem:[%s633_s6 + $0x28] sm:$0xff] %v357_v20 }
 0x21a   :  { %362 = vst [vmem:[%s633_s6 + $0x20] sm:$0xff] %v356_v21 }

// kernel: _lambda_.38
= control target key start
LH: loop header
LB: loop body
LE: loop exit
PB: predicated region body
PF: predicated region fallthrough
CT: control target
= control target key end

     0   :  { %vm39_vm0 = vcmask 261120   ;;  %v1078_v0 = vmov 0.0   ;;  %vm1079_vm1 = vmmov 0   ;;  %vm416_vm2 = vcmask 36864   ;;  %s1335_s1 = inlined_call_operand.vmem [shape: bf16[8,5,32], index: 1, kind: input, shape index: {}]   ;;  %s1336_s0 = inlined_call_operand.vmem [shape: bf16[8,5,32], index: 0, kind: input, shape index: {}]   ;;  %s1337_s2 = inlined_call_operand.vmem [shape: bf16[8,5,32], index: 2, kind: input, shape index: {}]   ;;  %s1338_s3 = inlined_call_operand.vmem [shape: f32[8,5,32], index: 3, kind: output, shape index: {}]  }
   0x1   :  { %947 = vmatprep.subr.bf16.mxu0 %v1078_v0  ;;  %953 = vmatprep.subr.bf16.mxu1 %v1078_v0  ;;  %v23_v1 = vld [vmem:[%s1335_s1] sm:$0x7]  ;;  %v24_v2 = vld [vmem:[%s1335_s1 + $0x4] sm:$0x7]  ;;  %v25_v5 = vld [vmem:[%s1335_s1 + $0x8] sm:$0x7] }
   0x2   :  { %v44_v3 = vsel %vm39_vm0, %v23_v1, 0  ;;  %v90_v4 = vsel %vm39_vm0, %v24_v2, 0  ;;  %949 = vmatprep.mubr.msk.bf16.mxu0 %vm1079_vm1, %v1078_v0  ;;  %955 = vmatprep.mubr.msk.bf16.mxu1 %vm1079_vm1, %v1078_v0  ;;  %v26_v6 = vld [vmem:[%s1335_s1 + $0xc] sm:$0x7]  ;;  %v15_v7 = vld [vmem:[%s1336_s0] sm:$0x7] }
   0x3   :  { %948 = vmatpush3.bf16.xpose.msra.mxu0 %v44_v3  ;;  %954 = vmatpush3.bf16.xpose.msra.mxu1 %v90_v4  ;;  %v16_v8 = vld [vmem:[%s1336_s0 + $0x4] sm:$0x7]  ;;  %v136_v9 = vsel %vm39_vm0, %v25_v5, 0  ;;  %v182_v10 = vsel %vm39_vm0, %v26_v6, 0  ;;  %v27_v11 = vld [vmem:[%s1335_s1 + $0x10] sm:$0x7] }
   0x4   :  { %959 = vmatprep.subr.bf16.mxu0 %v1078_v0  ;;  %965 = vmatprep.subr.bf16.mxu1 %v1078_v0  ;;  %v28_v12 = vld [vmem:[%s1335_s1 + $0x14] sm:$0x7]  ;;  %v17_v13 = vld [vmem:[%s1336_s0 + $0x8] sm:$0x7]  ;;  %v18_v14 = vld [vmem:[%s1336_s0 + $0xc] sm:$0x7] }
   0x5   :  { %v228_v15 = vsel %vm39_vm0, %v27_v11, 0  ;;  %v274_v16 = vsel %vm39_vm0, %v28_v12, 0  ;;  %v29_v17 = vld [vmem:[%s1335_s1 + $0x18] sm:$0x7]  ;;  %v30_v18 = vld [vmem:[%s1335_s1 + $0x1c] sm:$0x7] }
   0x6   :  { %v19_v19 = vld [vmem:[%s1336_s0 + $0x10] sm:$0x7]  ;;  %v20_v20 = vld [vmem:[%s1336_s0 + $0x14] sm:$0x7]  ;;  %v320_v21 = vsel %vm39_vm0, %v29_v17, 0  ;;  %v366_v22 = vsel %vm39_vm0, %v30_v18, 0 }
   0x7   :  { %v21_v23 = vld [vmem:[%s1336_s0 + $0x18] sm:$0x7]  ;;  %v22_v24 = vld [vmem:[%s1336_s0 + $0x1c] sm:$0x7]  ;;  %vm517_vm3 = vcmask 1041408   ;;  %vm518_vm4 = vcmask 1042432  }
   0x8   :  { %vm513_vm5 = vcmask 39936   ;;  %vm886_vm6 = vcmask 258048  }
   0xa   :  { %950 = vmatmul.mubr.msk.bf16.vlgmr.msra.gmra.mrb[0].mxu0 %vm39_vm0, %v15_v7  ;;  %956 = vmatmul.mubr.msk.bf16.vlgmr.msra.gmra.mrb[0].mxu1 %vm39_vm0, %v16_v8 }
   0xb   :  { %960 = vmatpush3.bf16.xpose.msra.mxu0 %v136_v9  ;;  %966 = vmatpush3.bf16.xpose.msra.mxu1 %v182_v10 }
   0xc   :  { %961 = vmatprep.mubr.msk.bf16.mxu0 %vm1079_vm1, %v1078_v0  ;;  %967 = vmatprep.mubr.msk.bf16.mxu1 %vm1079_vm1, %v1078_v0 }
   0xd   :  { %971 = vmatprep.subr.bf16.mxu0 %v1078_v0  ;;  %977 = vmatprep.subr.bf16.mxu1 %v1078_v0 }
  0x12   :  { %962 = vmatmul.mubr.msk.bf16.vlgmr.msra.gmra.mrb[4].mxu0 %vm39_vm0, %v17_v13  ;;  %968 = vmatmul.mubr.msk.bf16.vlgmr.msra.gmra.mrb[4].mxu1 %vm39_vm0, %v18_v14 }
  0x13   :  { %972 = vmatpush3.bf16.xpose.msra.mxu0 %v228_v15  ;;  %978 = vmatpush3.bf16.xpose.msra.mxu1 %v274_v16 }
  0x14   :  { %973 = vmatprep.mubr.msk.bf16.mxu0 %vm1079_vm1, %v1078_v0  ;;  %979 = vmatprep.mubr.msk.bf16.mxu1 %vm1079_vm1, %v1078_v0 }
  0x15   :  { %983 = vmatprep.subr.bf16.mxu0 %v1078_v0  ;;  %989 = vmatprep.subr.bf16.mxu1 %v1078_v0 }
  0x1a   :  { %974 = vmatmul.mubr.msk.bf16.vlgmr.msra.gmra.mrb[8].mxu0 %vm39_vm0, %v19_v19  ;;  %980 = vmatmul.mubr.msk.bf16.vlgmr.msra.gmra.mrb[8].mxu1 %vm39_vm0, %v20_v20 }
  0x1b   :  { %984 = vmatpush3.bf16.xpose.msra.mxu0 %v320_v21  ;;  %990 = vmatpush3.bf16.xpose.msra.mxu1 %v366_v22 }
  0x1c   :  { %985 = vmatprep.mubr.msk.bf16.mxu0 %vm1079_vm1, %v1078_v0  ;;  %991 = vmatprep.mubr.msk.bf16.mxu1 %vm1079_vm1, %v1078_v0 }
  0x1d   :  { %995 = vmatprep.subr.bf16.mxu0 %v1078_v0  ;;  %1001 = vmatprep.subr.bf16.mxu1 %v1078_v0 }
  0x22   :  { %986 = vmatmul.mubr.msk.bf16.vlgmr.msra.gmra.mrb[12].mxu0 %vm39_vm0, %v21_v23  ;;  %992 = vmatmul.mubr.msk.bf16.vlgmr.msra.gmra.mrb[12].mxu1 %vm39_vm0, %v22_v24 }
  0x23   :  { %997 = vmatprep.mubr.msk.bf16.mxu0 %vm1079_vm1, %v1078_v0  ;;  %1003 = vmatprep.mubr.msk.bf16.mxu1 %vm1079_vm1, %v1078_v0 }
  0xdd   :  { %v80_v25 = vpop.f32.mrb[0].mxu0  ;;  %v126_v26 = vpop.f32.mrb[0].mxu1 }
  0xde   :  { %v408_v27 = vmul.f32 0.17677669, %v80_v25  ;;  %v951_v28 = vpop.f32.mrb[1].mxu0  ;;  %v409_v29 = vmul.f32 0.17677669, %v126_v26  ;;  %v957_v30 = vpop.f32.mrb[1].mxu1 }
  0xdf   :  { %v83_v31 = vpop.f32.mrb[2].mxu0  ;;  %v129_v32 = vpop.f32.mrb[2].mxu1 }
  0xe0   :  { %v952_v33 = vpop.f32.mrb[3].mxu0  ;;  %v417_v34 = vsel %vm416_vm2, %v408_v27, -inf  ;;  %v958_v35 = vpop.f32.mrb[3].mxu1  ;;  %v420_v36 = vsel %vm416_vm2, %v409_v29, -inf }
  0xe1   :  { %418 = vmax.xlane.f32.xlu0 %v417_v34 }
  0xe5   :  { %421 = vmax.xlane.f32.xlu0 %v420_v36  ;;  %v172_v37 = vpop.f32.mrb[4].mxu0  ;;  %v218_v38 = vpop.f32.mrb[4].mxu1 }
  0xe6   :  { %v410_v39 = vmul.f32 0.17677669, %v172_v37  ;;  %v963_v40 = vpop.f32.mrb[5].mxu0  ;;  %v411_v41 = vmul.f32 0.17677669, %v218_v38  ;;  %v969_v42 = vpop.f32.mrb[5].mxu1 }
  0xe7   :  { %v175_v43 = vpop.f32.mrb[6].mxu0  ;;  %v221_v44 = vpop.f32.mrb[6].mxu1 }
  0xe8   :  { %v964_v45 = vpop.f32.mrb[7].mxu0  ;;  %v423_v46 = vsel %vm416_vm2, %v410_v39, -inf  ;;  %v970_v47 = vpop.f32.mrb[7].mxu1  ;;  %v426_v48 = vsel %vm416_vm2, %v411_v41, -inf }
  0xe9   :  { %424 = vmax.xlane.f32.xlu1 %v423_v46 }
  0xed   :  { %v310_v49 = vpop.f32.mrb[8].mxu1  ;;  %427 = vmax.xlane.f32.xlu1 %v426_v48  ;;  %v264_v50 = vpop.f32.mrb[8].mxu0 }
  0xee   :  { %v413_v51 = vmul.f32 0.17677669, %v310_v49  ;;  %v412_v52 = vmul.f32 0.17677669, %v264_v50  ;;  %v975_v53 = vpop.f32.mrb[9].mxu0  ;;  %v981_v54 = vpop.f32.mrb[9].mxu1 }
  0xef   :  { %v313_v55 = vpop.f32.mrb[10].mxu1  ;;  %v267_v56 = vpop.f32.mrb[10].mxu0  ;;  %v1080_v49 = vmov 65535  }
  0xf0   :  { %v432_v57 = vsel %vm416_vm2, %v413_v51, -inf  ;;  %v429_v58 = vsel %vm416_vm2, %v412_v52, -inf  ;;  %v976_v59 = vpop.f32.mrb[11].mxu0  ;;  %v982_v60 = vpop.f32.mrb[11].mxu1  ;;  %v519_v50 = vsel %vm517_vm3, 4294967295, %v1080_v49 }
  0xf1   :  { %433 = vmax.xlane.f32.xlu1 %v432_v57  ;;  %430 = vmax.xlane.f32.xlu0 %v429_v58  ;;  %v1238_v53 = vsel %vm518_vm4, %v519_v50, 0  ;;  %v32_v55 = vld [vmem:[%s1337_s2 + $0x4] sm:$0x7]  ;;  %v33_v57 = vld [vmem:[%s1337_s2 + $0x8] sm:$0x7] }
  0xf2   :  { %v568_v56 = vand.u32 %v1238_v53, %v32_v55  ;;  %v614_v58 = vand.u32 %v1238_v53, %v33_v57  ;;  %v34_v59 = vld [vmem:[%s1337_s2 + $0xc] sm:$0x7] }
  0xf3   :  { %v660_v60 = vand.u32 %v1238_v53, %v34_v59 }
  0xf4   :  { %1002 = vmatpush3.bf16.msra.mxu1 %v568_v56 }
  0xf5   :  { %v356_v61 = vpop.f32.mrb[12].mxu0  ;;  %v402_v62 = vpop.f32.mrb[12].mxu1  ;;  %1013 = vmatprep.subr.bf16.mxu1 %v1078_v0 }
  0xf6   :  { %v414_v63 = vmul.f32 0.17677669, %v356_v61  ;;  %v415_v1 = vmul.f32 0.17677669, %v402_v62  ;;  %v987_v2 = vpop.f32.mrb[13].mxu0  ;;  %v993_v3 = vpop.f32.mrb[13].mxu1 }
  0xf7   :  { %v405_v4 = vpop.f32.mrb[14].mxu1  ;;  %v359_v5 = vpop.f32.mrb[14].mxu0  ;;  %v35_v61 = vld [vmem:[%s1337_s2 + $0x10] sm:$0x7]  ;;  %v37_v2 = vld [vmem:[%s1337_s2 + $0x18] sm:$0x7] }
  0xf8   :  { %v438_v6 = vsel %vm416_vm2, %v415_v1, -inf  ;;  %v435_v7 = vsel %vm416_vm2, %v414_v63, -inf  ;;  %v988_v8 = vpop.f32.mrb[15].mxu0  ;;  %v994_v9 = vpop.f32.mrb[15].mxu1  ;;  %v706_v62 = vand.u32 %v1238_v53, %v35_v61  ;;  %v798_v3 = vand.u32 %v1238_v53, %v37_v2  ;;  %v38_v4 = vld [vmem:[%s1337_s2 + $0x1c] sm:$0x7] }
  0xf9   :  { %439 = vmax.xlane.f32.xlu1 %v438_v6  ;;  %436 = vmax.xlane.f32.xlu0 %v435_v7  ;;  %v844_v5 = vand.u32 %v1238_v53, %v38_v4 }
 0x16e   :  { %v419_v10 = vpop.xlane.xlu0 %418 }
 0x16f   :  { %v441_v11 = vsub.f32 %v408_v27, %v419_v10 }
 0x171   :  { %v449_v12 = vmul.f32 1.442695, %v441_v11 }
 0x172   :  { %v422_v13 = vpop.xlane.xlu0 %421 }
 0x173   :  { %1046 = vpow2.f32 %v449_v12  ;;  %v442_v14 = vsub.f32 %v409_v29, %v422_v13 }
 0x175   :  { %v451_v15 = vmul.f32 1.442695, %v442_v14 }
 0x176   :  { %v425_v16 = vpop.xlane.xlu1 %424 }
 0x177   :  { %1048 = vpow2.f32 %v451_v15  ;;  %v443_v17 = vsub.f32 %v410_v39, %v425_v16 }
 0x179   :  { %v453_v18 = vmul.f32 1.442695, %v443_v17 }
 0x17a   :  { %v428_v19 = vpop.xlane.xlu1 %427 }
 0x17b   :  { %1050 = vpow2.f32 %v453_v18  ;;  %v444_v20 = vsub.f32 %v411_v41, %v428_v19 }
 0x17d   :  { %v1203_v21 = vpop.eup %1046  ;;  %v455_v22 = vmul.f32 1.442695, %v444_v20 }
 0x17e   :  { %v434_v23 = vpop.xlane.xlu1 %433  ;;  %v431_v24 = vpop.xlane.xlu0 %430  ;;  %v465_v25 = vsel %vm416_vm2, %v1203_v21, 0.0 }
 0x17f   :  { %1052 = vpow2.f32 %v455_v22  ;;  %v446_v26 = vsub.f32 %v413_v51, %v434_v23  ;;  %v445_v27 = vsub.f32 %v412_v52, %v431_v24  ;;  %466 = vadd.xlane.f32.xlu0 %v465_v25  ;;  %v31_v52 = vld [vmem:[%s1337_s2] sm:$0x7] }
 0x180   :  { %v522_v54 = vand.u32 %v1238_v53, %v31_v52 }
 0x181   :  { %v1207_v28 = vpop.eup %1048  ;;  %v459_v29 = vmul.f32 1.442695, %v446_v26  ;;  %v457_v30 = vmul.f32 1.442695, %v445_v27 }
 0x182   :  { %v468_v31 = vsel %vm416_vm2, %v1207_v28, 0.0  ;;  %996 = vmatpush3.bf16.msra.mxu0 %v522_v54 }
 0x183   :  { %1054 = vpow2.f32 %v459_v29  ;;  %469 = vadd.xlane.f32.xlu1 %v468_v31  ;;  %1007 = vmatprep.subr.bf16.mxu0 %v1078_v0 }
 0x184   :  { %1056 = vpow2.f32 %v457_v30 }
 0x185   :  { %v1211_v32 = vpop.eup %1050 }
 0x186   :  { %v440_v33 = vpop.xlane.xlu1 %439  ;;  %v437_v34 = vpop.xlane.xlu0 %436  ;;  %v471_v35 = vsel %vm416_vm2, %v1211_v32, 0.0 }
 0x187   :  { %v448_v36 = vsub.f32 %v415_v1, %v440_v33  ;;  %v447_v37 = vsub.f32 %v414_v63, %v437_v34  ;;  %472 = vadd.xlane.f32.xlu0 %v471_v35  ;;  %v36_v63 = vld [vmem:[%s1337_s2 + $0x14] sm:$0x7] }
 0x188   :  { %v752_v1 = vand.u32 %v1238_v53, %v36_v63 }
 0x189   :  { %v1215_v38 = vpop.eup %1052  ;;  %v463_v39 = vmul.f32 1.442695, %v448_v36  ;;  %v461_v40 = vmul.f32 1.442695, %v447_v37 }
 0x18a   :  { %v474_v41 = vsel %vm416_vm2, %v1215_v38, 0.0 }
 0x18b   :  { %1058 = vpow2.f32 %v463_v39  ;;  %475 = vadd.xlane.f32.xlu1 %v474_v41 }
 0x18c   :  { %1060 = vpow2.f32 %v461_v40 }
 0x18d   :  { %v1219_v42 = vpop.eup %1054 }
 0x18e   :  { %v1221_v43 = vpop.eup %1056  ;;  %v480_v44 = vsel %vm416_vm2, %v1219_v42, 0.0 }
 0x18f   :  { %481 = vadd.xlane.f32.xlu1 %v480_v44  ;;  %v477_v45 = vsel %vm416_vm2, %v1221_v43, 0.0 }
 0x190   :  { %478 = vadd.xlane.f32.xlu0 %v477_v45 }
 0x195   :  { %v1227_v46 = vpop.eup %1058 }
 0x196   :  { %v1229_v47 = vpop.eup %1060  ;;  %v486_v48 = vsel %vm416_vm2, %v1227_v46, 0.0 }
 0x197   :  { %487 = vadd.xlane.f32.xlu1 %v486_v48  ;;  %v483_v51 = vsel %vm416_vm2, %v1229_v47, 0.0 }
 0x198   :  { %484 = vadd.xlane.f32.xlu0 %v483_v51 }
 0x20c   :  { %v467_v6 = vpop.xlane.xlu0 %466 }
 0x20d   :  { %1062 = vrcp.f32 %v467_v6 }
 0x210   :  { %v470_v7 = vpop.xlane.xlu1 %469 }
 0x211   :  { %1064 = vrcp.f32 %v470_v7 }
 0x214   :  { %v473_v8 = vpop.xlane.xlu0 %472 }
 0x215   :  { %1066 = vrcp.f32 %v473_v8 }
 0x217   :  { %v1063_v9 = vpop.eup %1062 }
 0x218   :  { %v497_v10 = vmul.f32 %v1063_v9, %v1203_v21  ;;  %v476_v11 = vpop.xlane.xlu1 %475 }
 0x219   :  { %1068 = vrcp.f32 %v476_v11 }
 0x21a   :  { %v505_v12 = vpack.c.bf16 %v497_v10, %v497_v10 }
 0x21b   :  { %v1065_v13 = vpop.eup %1064 }
 0x21c   :  { %v498_v14 = vmul.f32 %v1065_v13, %v1207_v28  ;;  %v482_v15 = vpop.xlane.xlu1 %481  ;;  %998 = vmatmul.mubr.msk.bf16.vlgmr.msra.gmra.mrb[16].mxu0 %vm513_vm5, %v505_v12 }
 0x21d   :  { %1070 = vrcp.f32 %v482_v15  ;;  %v479_v16 = vpop.xlane.xlu0 %478  ;;  %1008 = vmatpush3.bf16.msra.mxu0 %v614_v58  ;;  %1009 = vmatprep.mubr.msk.bf16.mxu0 %vm1079_vm1, %v1078_v0 }
 0x21e   :  { %1072 = vrcp.f32 %v479_v16  ;;  %v506_v17 = vpack.c.bf16 %v498_v14, %v498_v14  ;;  %1019 = vmatprep.subr.bf16.mxu0 %v1078_v0 }
 0x21f   :  { %v1067_v18 = vpop.eup %1066 }
 0x220   :  { %v499_v19 = vmul.f32 %v1067_v18, %v1211_v32  ;;  %1004 = vmatmul.mubr.msk.bf16.vlgmr.msra.gmra.mrb[16].mxu1 %vm513_vm5, %v506_v17 }
 0x221   :  { %1014 = vmatpush3.bf16.msra.mxu1 %v660_v60  ;;  %1015 = vmatprep.mubr.msk.bf16.mxu1 %vm1079_vm1, %v1078_v0 }
 0x222   :  { %v507_v20 = vpack.c.bf16 %v499_v19, %v499_v19  ;;  %1025 = vmatprep.subr.bf16.mxu1 %v1078_v0 }
 0x223   :  { %v1069_v21 = vpop.eup %1068 }
 0x224   :  { %v500_v22 = vmul.f32 %v1069_v21, %v1215_v38  ;;  %v488_v23 = vpop.xlane.xlu1 %487  ;;  %1010 = vmatmul.mubr.msk.bf16.vlgmr.msra.gmra.mrb[20].mxu0 %vm513_vm5, %v507_v20 }
 0x225   :  { %1074 = vrcp.f32 %v488_v23  ;;  %v485_v24 = vpop.xlane.xlu0 %484  ;;  %1020 = vmatpush3.bf16.msra.mxu0 %v706_v62  ;;  %1021 = vmatprep.mubr.msk.bf16.mxu0 %vm1079_vm1, %v1078_v0 }
 0x226   :  { %1076 = vrcp.f32 %v485_v24  ;;  %v508_v25 = vpack.c.bf16 %v500_v22, %v500_v22  ;;  %1031 = vmatprep.subr.bf16.mxu0 %v1078_v0 }
 0x227   :  { %v1071_v26 = vpop.eup %1070 }
 0x228   :  { %v1073_v27 = vpop.eup %1072  ;;  %1016 = vmatmul.mubr.msk.bf16.vlgmr.msra.gmra.mrb[20].mxu1 %vm513_vm5, %v508_v25  ;;  %v502_v29 = vmul.f32 %v1071_v26, %v1219_v42 }
 0x229   :  { %v501_v28 = vmul.f32 %v1073_v27, %v1221_v43  ;;  %1026 = vmatpush3.bf16.msra.mxu1 %v752_v1  ;;  %1027 = vmatprep.mubr.msk.bf16.mxu1 %vm1079_vm1, %v1078_v0 }
 0x22a   :  { %1037 = vmatprep.subr.bf16.mxu1 %v1078_v0  ;;  %v510_v31 = vpack.c.bf16 %v502_v29, %v502_v29 }
 0x22b   :  { %v509_v30 = vpack.c.bf16 %v501_v28, %v501_v28 }
 0x22d   :  { %1022 = vmatmul.mubr.msk.bf16.vlgmr.msra.gmra.mrb[24].mxu0 %vm513_vm5, %v509_v30 }
 0x22e   :  { %1032 = vmatpush3.bf16.msra.mxu0 %v798_v3  ;;  %1033 = vmatprep.mubr.msk.bf16.mxu0 %vm1079_vm1, %v1078_v0 }
 0x22f   :  { %v1075_v32 = vpop.eup %1074 }
 0x230   :  { %v1077_v33 = vpop.eup %1076  ;;  %1028 = vmatmul.mubr.msk.bf16.vlgmr.msra.gmra.mrb[24].mxu1 %vm513_vm5, %v510_v31  ;;  %v504_v35 = vmul.f32 %v1075_v32, %v1227_v46 }
 0x231   :  { %v503_v34 = vmul.f32 %v1077_v33, %v1229_v47  ;;  %1038 = vmatpush3.bf16.msra.mxu1 %v844_v5  ;;  %1039 = vmatprep.mubr.msk.bf16.mxu1 %vm1079_vm1, %v1078_v0 }
 0x232   :  { %v512_v37 = vpack.c.bf16 %v504_v35, %v504_v35 }
 0x233   :  { %v511_v36 = vpack.c.bf16 %v503_v34, %v503_v34 }
 0x235   :  { %1034 = vmatmul.mubr.msk.bf16.vlgmr.msra.gmra.mrb[28].mxu0 %vm513_vm5, %v511_v36 }
 0x238   :  { %1040 = vmatmul.mubr.msk.bf16.vlgmr.msra.gmra.mrb[28].mxu1 %vm513_vm5, %v512_v37 }
 0x2ef   :  { %v558_v38 = vpop.f32.mrb[16].mxu0 }
 0x2f0   :  { %887 = vst.msk [vmem:[%s1338_s3] sm:$0x1f] %vm886_vm6, %v558_v38  ;;  %v999_v39 = vpop.f32.mrb[17].mxu0 }
 0x2f1   :  { %v561_v40 = vpop.f32.mrb[18].mxu0 }
 0x2f2   :  { %v1000_v41 = vpop.f32.mrb[19].mxu0 }
 0x2f3   :  { %v604_v42 = vpop.f32.mrb[16].mxu1 }
 0x2f4   :  { %888 = vst.msk [vmem:[%s1338_s3 + $0x8] sm:$0x1f] %vm886_vm6, %v604_v42  ;;  %v1005_v0 = vpop.f32.mrb[17].mxu1 }
 0x2f5   :  { %v607_v43 = vpop.f32.mrb[18].mxu1 }
 0x2f6   :  { %v1006_v44 = vpop.f32.mrb[19].mxu1 }
 0x2f7   :  { %v650_v45 = vpop.f32.mrb[20].mxu0 }
 0x2f8   :  { %889 = vst.msk [vmem:[%s1338_s3 + $0x10] sm:$0x1f] %vm886_vm6, %v650_v45  ;;  %v1011_v46 = vpop.f32.mrb[21].mxu0 }
 0x2f9   :  { %v653_v47 = vpop.f32.mrb[22].mxu0 }
 0x2fa   :  { %v1012_v48 = vpop.f32.mrb[23].mxu0 }
 0x2fb   :  { %v696_v49 = vpop.f32.mrb[20].mxu1 }
 0x2fc   :  { %890 = vst.msk [vmem:[%s1338_s3 + $0x18] sm:$0x1f] %vm886_vm6, %v696_v49  ;;  %v1017_v50 = vpop.f32.mrb[21].mxu1 }
 0x2fd   :  { %v699_v51 = vpop.f32.mrb[22].mxu1 }
 0x2fe   :  { %v1018_v52 = vpop.f32.mrb[23].mxu1 }
 0x300   :  { %v742_v53 = vpop.f32.mrb[24].mxu0 }
 0x301   :  { %891 = vst.msk [vmem:[%s1338_s3 + $0x20] sm:$0x1f] %vm886_vm6, %v742_v53  ;;  %v1023_v54 = vpop.f32.mrb[25].mxu0 }
 0x302   :  { %v745_v55 = vpop.f32.mrb[26].mxu0 }
 0x303   :  { %v1024_v56 = vpop.f32.mrb[27].mxu0  ;;  %v788_v57 = vpop.f32.mrb[24].mxu1 }
 0x304   :  { %892 = vst.msk [vmem:[%s1338_s3 + $0x28] sm:$0x1f] %vm886_vm6, %v788_v57  ;;  %v1029_v58 = vpop.f32.mrb[25].mxu1 }
 0x305   :  { %v791_v59 = vpop.f32.mrb[26].mxu1 }
 0x306   :  { %v1030_v60 = vpop.f32.mrb[27].mxu1 }
 0x308   :  { %v834_v61 = vpop.f32.mrb[28].mxu0 }
 0x309   :  { %893 = vst.msk [vmem:[%s1338_s3 + $0x30] sm:$0x1f] %vm886_vm6, %v834_v61  ;;  %v1035_v62 = vpop.f32.mrb[29].mxu0 }
 0x30a   :  { %v837_v63 = vpop.f32.mrb[30].mxu0 }
 0x30b   :  { %v1036_v1 = vpop.f32.mrb[31].mxu0  ;;  %v880_v2 = vpop.f32.mrb[28].mxu1 }
 0x30c   :  { %894 = vst.msk [vmem:[%s1338_s3 + $0x38] sm:$0x1f] %vm886_vm6, %v880_v2  ;;  %v1041_v3 = vpop.f32.mrb[29].mxu1 }
 0x30d   :  { %v883_v4 = vpop.f32.mrb[30].mxu1 }
 0x30e   :  { %v1042_v5 = vpop.f32.mrb[31].mxu1 }

// kernel: _lambda_.47
= control target key start
LH: loop header
LB: loop body
LE: loop exit
PB: predicated region body
PF: predicated region fallthrough
CT: control target
= control target key end

     0   :  { %s107_s0 = inlined_call_operand.vmem [shape: f32[10,128], index: 0, kind: input, shape index: {}]   ;;  %s108_s1 = inlined_call_operand.vmem [shape: f32[1,128], index: 1, kind: input, shape index: {}]   ;;  %s109_s2 = inlined_call_operand.vmem [shape: f32[1,128], index: 2, kind: input, shape index: {}]   ;;  %s110_s3 = inlined_call_operand.vmem [shape: f32[10,128], index: 3, kind: output, shape index: {}]  }
   0x1   :  { %v14_v0 = vld [vmem:[%s107_s0] sm:$0xff]  ;;  %v15_v1 = vld [vmem:[%s107_s0 + $0x8] sm:$0xff] }
   0x2   :  { %16 = vadd.xlane.f32.xlu0 %v14_v0  ;;  %v63_v17 = vld [vmem:[%s108_s1] ss:$0 sm:$0xff] }
   0x3   :  { %v64_v19 = vld [vmem:[%s109_s2] ss:$0 sm:$0xff] }
   0x6   :  { %18 = vadd.xlane.f32.xlu0 %v15_v1 }
  0x8f   :  { %v17_v2 = vpop.xlane.xlu0 %16 }
  0x90   :  { %v21_v3 = vmul.f32 0.0078125, %v17_v2 }
  0x92   :  { %v23_v4 = vsub.f32 %v14_v0, %v21_v3 }
  0x93   :  { %v19_v5 = vpop.xlane.xlu0 %18 }
  0x94   :  { %v22_v6 = vmul.f32 0.0078125, %v19_v5  ;;  %v25_v7 = vmul.f32 %v23_v4, %v23_v4 }
  0x96   :  { %v24_v8 = vsub.f32 %v15_v1, %v22_v6  ;;  %27 = vadd.xlane.f32.xlu1 %v25_v7 }
  0x98   :  { %v26_v9 = vmul.f32 %v24_v8, %v24_v8 }
  0x9a   :  { %29 = vadd.xlane.f32.xlu1 %v26_v9 }
 0x123   :  { %v28_v10 = vpop.xlane.xlu1 %27 }
 0x124   :  { %v31_v11 = vmul.f32 0.0078125, %v28_v10 }
 0x126   :  { %v33_v12 = vadd.f32 1e-05, %v31_v11 }
 0x127   :  { %v30_v13 = vpop.xlane.xlu1 %29 }
 0x128   :  { %65 = vrsqrt.f32 %v33_v12  ;;  %v32_v14 = vmul.f32 0.0078125, %v30_v13 }
 0x12a   :  { %v34_v15 = vadd.f32 1e-05, %v32_v14 }
 0x12c   :  { %67 = vrsqrt.f32 %v34_v15 }
 0x132   :  { %v66_v16 = vpop.eup %65 }
 0x133   :  { %v37_v18 = vmul.f32 %v66_v16, %v23_v4 }
 0x135   :  { %v46_v20 = vmul.f32 %v63_v17, %v37_v18 }
 0x136   :  { %v68_v21 = vpop.eup %67 }
 0x137   :  { %v55_v22 = vadd.f32 %v64_v19, %v46_v20  ;;  %v38_v23 = vmul.f32 %v68_v21, %v24_v8 }
 0x139   :  { %57 = vst [vmem:[%s110_s3] sm:$0xff] %v55_v22  ;;  %v47_v24 = vmul.f32 %v63_v17, %v38_v23 }
 0x13b   :  { %v56_v25 = vadd.f32 %v64_v19, %v47_v24 }
 0x13d   :  { %58 = vst [vmem:[%s110_s3 + $0x8] sm:$0xff] %v56_v25 }

// kernel: _lambda_.40
= control target key start
LH: loop header
LB: loop body
LE: loop exit
PB: predicated region body
PF: predicated region fallthrough
CT: control target
= control target key end

     0   :  { %v419_v21 = vmov 0   ;;  %v210_v44 = vlaneseq  ;;  %s566_s0 = inlined_call_operand.vmem [shape: f32[10,128], index: 0, kind: input, shape index: {}]   ;;  %s567_s3 = inlined_call_operand.vmem [shape: bf16[128,256], index: 3, kind: input, shape index: {}]   ;;  %s568_s1 = inlined_call_operand.vmem [shape: f32[1,128], index: 1, kind: input, shape index: {}]   ;;  %s569_s2 = inlined_call_operand.vmem [shape: f32[1,128], index: 2, kind: input, shape index: {}]   ;;  %s570_s4 = inlined_call_operand.vmem [shape: f32[1,256], index: 4, kind: input, shape index: {}]   ;;  %s571_s5 = inlined_call_operand.vmem [shape: f32[1,256], index: 5, kind: input, shape index: {}]   ;;  %s572_s6 = inlined_call_operand.vmem [shape: f32[10,256], index: 6, kind: output, shape index: {}]  }
   0x1   :  { %v24_v0 = vld [vmem:[%s566_s0] sm:$0xff]  ;;  %v25_v1 = vld [vmem:[%s566_s0 + $0x8] sm:$0xff]  ;;  %v378_v4 = vld [vmem:[%s567_s3 + $0x14] ss:$8 sps:$4 sm:$0xff]   ;;  %198 = vmatprep.mubr.bf16.mxu0 %v419_v21 }
   0x2   :  { %28 = vadd.xlane.f32.xlu0 %v24_v0  ;;  %v375_v2 = vld [vmem:[%s567_s3 + $0x4] ss:$8 sps:$4 sm:$0xff]   ;;  %v377_v3 = vld [vmem:[%s567_s3] ss:$8 sps:$4 sm:$0xff]   ;;  %v380_v13 = vld [vmem:[%s567_s3 + $0x10] ss:$8 sps:$4 sm:$0xff]  }
   0x3   :  { %166 = vmatprep.subr.bf16.mxu0 %v375_v2  ;;  %v381_v14 = vld [vmem:[%s567_s3 + $0x24] ss:$8 sps:$4 sm:$0xff]   ;;  %v383_v15 = vld [vmem:[%s567_s3 + $0x20] ss:$8 sps:$4 sm:$0xff]   ;;  %v384_v16 = vld [vmem:[%s567_s3 + $0x34] ss:$8 sps:$4 sm:$0xff]  }
   0x4   :  { %167 = vmatpush1.bf16.msra.mxu0 %v377_v3  ;;  %v386_v17 = vld [vmem:[%s567_s3 + $0x30] ss:$8 sps:$4 sm:$0xff]   ;;  %v387_v18 = vld [vmem:[%s567_s3 + $0x44] ss:$8 sps:$4 sm:$0xff]   ;;  %v389_v19 = vld [vmem:[%s567_s3 + $0x40] ss:$8 sps:$4 sm:$0xff]  }
   0x5   :  { %168 = vmatprep.subr.bf16.mxu0 %v378_v4  ;;  %v390_v20 = vld [vmem:[%s567_s3 + $0x54] ss:$8 sps:$4 sm:$0xff]   ;;  %v392_v22 = vld [vmem:[%s567_s3 + $0x50] ss:$8 sps:$4 sm:$0xff]   ;;  %v393_v23 = vld [vmem:[%s567_s3 + $0x64] ss:$8 sps:$4 sm:$0xff]  }
   0x6   :  { %30 = vadd.xlane.f32.xlu0 %v25_v1  ;;  %v395_v24 = vld [vmem:[%s567_s3 + $0x60] ss:$8 sps:$4 sm:$0xff]   ;;  %v396_v25 = vld [vmem:[%s567_s3 + $0x74] ss:$8 sps:$4 sm:$0xff]   ;;  %v398_v26 = vld [vmem:[%s567_s3 + $0x70] ss:$8 sps:$4 sm:$0xff]  }
   0x7   :  { %v355_v35 = vld [vmem:[%s568_s1] ss:$0 sm:$0xff]  ;;  %v211_v45 = vshrl.u32 %v210_v44, 7 }
   0x8   :  { %169 = vmatpush1.bf16.msra.mxu0 %v380_v13  ;;  %v356_v39 = vld [vmem:[%s569_s2] ss:$0 sm:$0xff] }
   0x9   :  { %170 = vmatprep.subr.bf16.mxu0 %v381_v14  ;;  %v212_v46 = vsub.s32 0, %v211_v45  ;;  %v83_v47 = vld [vmem:[%s570_s4] sm:$0x3]  ;;  %v216_v48 = vsub.s32 1, %v211_v45 }
   0xa   :  { %v84_v49 = vld [vmem:[%s571_s5] sm:$0x3] }
   0xb   :  { %v213_v50 = vrot.slane %v83_v47, %v212_v46  ;;  %v217_v51 = vrot.slane %v83_v47, %v216_v48  ;;  %v228_v52 = vrot.slane %v84_v49, %v212_v46  ;;  %v232_v54 = vrot.slane %v84_v49, %v216_v48 }
   0xc   :  { %171 = vmatpush1.bf16.msra.mxu0 %v383_v15 }
   0xd   :  { %172 = vmatprep.subr.bf16.mxu0 %v384_v16 }
  0x10   :  { %173 = vmatpush1.bf16.msra.mxu0 %v386_v17 }
  0x11   :  { %174 = vmatprep.subr.bf16.mxu0 %v387_v18 }
  0x14   :  { %175 = vmatpush1.bf16.msra.mxu0 %v389_v19 }
  0x15   :  { %176 = vmatprep.subr.bf16.mxu0 %v390_v20 }
  0x18   :  { %177 = vmatpush1.bf16.msra.mxu0 %v392_v22 }
  0x19   :  { %178 = vmatprep.subr.bf16.mxu0 %v393_v23 }
  0x1c   :  { %179 = vmatpush1.bf16.msra.mxu0 %v395_v24 }
  0x1d   :  { %180 = vmatprep.subr.bf16.mxu0 %v396_v25 }
  0x20   :  { %181 = vmatpush1.bf16.msra.mxu0 %v398_v26 }
  0x8f   :  { %v29_v5 = vpop.xlane.xlu0 %28 }
  0x90   :  { %v33_v6 = vmul.f32 0.0078125, %v29_v5 }
  0x92   :  { %v35_v7 = vsub.f32 %v24_v0, %v33_v6 }
  0x93   :  { %v31_v8 = vpop.xlane.xlu0 %30 }
  0x94   :  { %v34_v9 = vmul.f32 0.0078125, %v31_v8  ;;  %v37_v10 = vmul.f32 %v35_v7, %v35_v7 }
  0x96   :  { %v36_v11 = vsub.f32 %v25_v1, %v34_v9  ;;  %39 = vadd.xlane.f32.xlu1 %v37_v10 }
  0x98   :  { %v38_v12 = vmul.f32 %v36_v11, %v36_v11 }
  0x9a   :  { %41 = vadd.xlane.f32.xlu1 %v38_v12 }
 0x123   :  { %v40_v27 = vpop.xlane.xlu1 %39 }
 0x124   :  { %v43_v28 = vmul.f32 0.0078125, %v40_v27 }
 0x126   :  { %v45_v29 = vadd.f32 1e-05, %v43_v28 }
 0x127   :  { %v42_v30 = vpop.xlane.xlu1 %41 }
 0x128   :  { %399 = vrsqrt.f32 %v45_v29  ;;  %v44_v31 = vmul.f32 0.0078125, %v42_v30 }
 0x12a   :  { %v46_v32 = vadd.f32 1e-05, %v44_v31 }
 0x12c   :  { %401 = vrsqrt.f32 %v46_v32 }
 0x132   :  { %v400_v33 = vpop.eup %399 }
 0x133   :  { %v49_v34 = vmul.f32 %v400_v33, %v35_v7 }
 0x135   :  { %v57_v38 = vmul.f32 %v355_v35, %v49_v34 }
 0x136   :  { %v402_v36 = vpop.eup %401 }
 0x137   :  { %v50_v37 = vmul.f32 %v402_v36, %v36_v11  ;;  %v65_v41 = vadd.f32 %v356_v39, %v57_v38 }
 0x139   :  { %v58_v40 = vmul.f32 %v355_v35, %v50_v37 }
 0x13b   :  { %v66_v42 = vadd.f32 %v356_v39, %v58_v40 }
 0x13d   :  { %v85_v43 = vpack.c.bf16 %v66_v42, %v65_v41 }
 0x13f   :  { %199 = vmatmul.mubr.bf16.vlgmr.msra.gmra.mrb[0].mxu0 %v85_v43 }
 0x212   :  { %v200_v53 = vpop.f32.mrb[0].mxu0 }
 0x213   :  { %v220_v55 = vmul.f32 %v213_v50, %v200_v53  ;;  %v202_v56 = vpop.f32.mrb[1].mxu0 }
 0x214   :  { %v221_v57 = vmul.f32 %v217_v51, %v202_v56  ;;  %v204_v58 = vpop.f32.mrb[2].mxu0 }
 0x215   :  { %v522_v59 = vadd.f32 %v228_v52, %v220_v55  ;;  %v222_v60 = vmul.f32 %v213_v50, %v204_v58  ;;  %v206_v61 = vpop.f32.mrb[3].mxu0 }
 0x216   :  { %v524_v62 = vadd.f32 %v232_v54, %v221_v57  ;;  %v223_v63 = vmul.f32 %v217_v51, %v206_v61 }
 0x217   :  { %v527_v0 = vmul.f32 0.70710677, %v522_v59  ;;  %v529_v1 = vadd.f32 %v228_v52, %v222_v60 }
 0x218   :  { %v532_v2 = vmul.f32 0.70710677, %v524_v62  ;;  %v538_v5 = vadd.f32 %v232_v54, %v223_v63 }
 0x219   :  { %v255_v3 = vand.u32 2147483647, %v527_v0  ;;  %v536_v4 = vmul.f32 0.70710677, %v529_v1  ;;  %vm247_vm0 = vcmp.ge.f32.partialorder %v527_v0, 0.0 }
 0x21a   :  { %v256_v6 = vand.u32 2147483647, %v532_v2  ;;  %v543_v11 = vmul.f32 0.70710677, %v538_v5  ;;  %vm248_vm1 = vcmp.ge.f32.partialorder %v532_v2, 0.0 }
 0x21b   :  { %v259_v7 = vmul.f32 0.3275911, %v255_v3  ;;  %v257_v9 = vand.u32 2147483647, %v536_v4  ;;  %v311_v18 = vsub.f32 0.0, %v255_v3  ;;  %vm249_vm2 = vcmp.ge.f32.partialorder %v536_v4, 0.0 }
 0x21c   :  { %v260_v8 = vmul.f32 0.3275911, %v256_v6  ;;  %v258_v14 = vand.u32 2147483647, %v543_v11  ;;  %v312_v19 = vsub.f32 0.0, %v256_v6  ;;  %vm250_vm3 = vcmp.ge.f32.partialorder %v543_v11, 0.0 }
 0x21d   :  { %v263_v10 = vadd.f32 1.0, %v259_v7  ;;  %v261_v13 = vmul.f32 0.3275911, %v257_v9  ;;  %v315_v21 = vmul.f32 %v311_v18, %v255_v3  ;;  %v313_v22 = vsub.f32 0.0, %v257_v9 }
 0x21e   :  { %v264_v12 = vadd.f32 1.0, %v260_v8  ;;  %v262_v16 = vmul.f32 0.3275911, %v258_v14  ;;  %v316_v25 = vmul.f32 %v312_v19, %v256_v6  ;;  %v314_v27 = vsub.f32 0.0, %v258_v14 }
 0x21f   :  { %403 = vrcp.f32 %v263_v10  ;;  %v265_v15 = vadd.f32 1.0, %v261_v13  ;;  %v319_v30 = vmul.f32 1.442695, %v315_v21  ;;  %v317_v32 = vmul.f32 %v313_v22, %v257_v9 }
 0x220   :  { %405 = vrcp.f32 %v264_v12  ;;  %v266_v17 = vadd.f32 1.0, %v262_v16  ;;  %v321_v34 = vmul.f32 1.442695, %v316_v25  ;;  %v318_v38 = vmul.f32 %v314_v27, %v258_v14 }
 0x221   :  { %407 = vrcp.f32 %v265_v15  ;;  %v323_v43 = vmul.f32 1.442695, %v317_v32  ;;  %v420_v19 = vmov -1.0   ;;  %v242_v11 = vmul.f32 0.5, %v538_v5 }
 0x222   :  { %409 = vrcp.f32 %v266_v17  ;;  %v325_v48 = vmul.f32 1.442695, %v318_v38  ;;  %v251_v21 = vsel %vm247_vm0, 1.0, %v420_v19  ;;  %v253_v32 = vsel %vm249_vm2, 1.0, %v420_v19 }
 0x223   :  { %411 = vpow2.f32 %v319_v30  ;;  %v240_v30 = vmul.f32 0.5, %v524_v62  ;;  %v254_v4 = vsel %vm250_vm3, 1.0, %v420_v19 }
 0x224   :  { %413 = vpow2.f32 %v321_v34 }
 0x225   :  { %415 = vpow2.f32 %v323_v43 }
 0x226   :  { %417 = vpow2.f32 %v325_v48 }
 0x229   :  { %v404_v20 = vpop.eup %403 }
 0x22a   :  { %v406_v23 = vpop.eup %405  ;;  %v275_v24 = vmul.f32 1.0614054, %v404_v20 }
 0x22b   :  { %v276_v26 = vmul.f32 1.0614054, %v406_v23  ;;  %v408_v29 = vpop.eup %407 }
 0x22c   :  { %v279_v28 = vadd.f32 -1.4531521, %v275_v24  ;;  %v277_v35 = vmul.f32 1.0614054, %v408_v29  ;;  %v410_v36 = vpop.eup %409 }
 0x22d   :  { %v280_v31 = vadd.f32 -1.4531521, %v276_v26  ;;  %v278_v41 = vmul.f32 1.0614054, %v410_v36  ;;  %v412_v7 = vpop.eup %411  ;;  %v239_v26 = vmul.f32 0.5, %v522_v59  ;;  %v241_v59 = vmul.f32 0.5, %v529_v1 }
 0x22e   :  { %v283_v33 = vmul.f32 %v404_v20, %v279_v28  ;;  %v281_v40 = vadd.f32 -1.4531521, %v277_v35  ;;  %v414_v9 = vpop.eup %413 }
 0x22f   :  { %v284_v37 = vmul.f32 %v406_v23, %v280_v31  ;;  %v282_v46 = vadd.f32 -1.4531521, %v278_v41  ;;  %v416_v18 = vpop.eup %415 }
 0x230   :  { %v287_v39 = vadd.f32 1.4214138, %v283_v33  ;;  %v285_v45 = vmul.f32 %v408_v29, %v281_v40  ;;  %v418_v25 = vpop.eup %417 }
 0x231   :  { %v288_v42 = vadd.f32 1.4214138, %v284_v37  ;;  %v286_v51 = vmul.f32 %v410_v36, %v282_v46 }
 0x232   :  { %v291_v44 = vmul.f32 %v404_v20, %v287_v39  ;;  %v289_v50 = vadd.f32 1.4214138, %v285_v45 }
 0x233   :  { %v292_v47 = vmul.f32 %v406_v23, %v288_v42  ;;  %v290_v55 = vadd.f32 1.4214138, %v286_v51 }
 0x234   :  { %v295_v49 = vadd.f32 -0.28449672, %v291_v44  ;;  %v293_v54 = vmul.f32 %v408_v29, %v289_v50 }
 0x235   :  { %v296_v52 = vadd.f32 -0.28449672, %v292_v47  ;;  %v294_v60 = vmul.f32 %v410_v36, %v290_v55 }
 0x236   :  { %v299_v53 = vmul.f32 %v404_v20, %v295_v49  ;;  %v297_v58 = vadd.f32 -0.28449672, %v293_v54 }
 0x237   :  { %v300_v56 = vmul.f32 %v406_v23, %v296_v52  ;;  %v298_v6 = vadd.f32 -0.28449672, %v294_v60 }
 0x238   :  { %v303_v57 = vadd.f32 0.2548296, %v299_v53  ;;  %v301_v3 = vmul.f32 %v408_v29, %v297_v58 }
 0x239   :  { %v304_v61 = vadd.f32 0.2548296, %v300_v56  ;;  %v302_v13 = vmul.f32 %v410_v36, %v298_v6 }
 0x23a   :  { %v307_v63 = vmul.f32 %v404_v20, %v303_v57  ;;  %v305_v12 = vadd.f32 0.2548296, %v301_v3  ;;  %v252_v20 = vsel %vm248_vm1, 1.0, %v420_v19 }
 0x23b   :  { %v308_v8 = vmul.f32 %v406_v23, %v304_v61  ;;  %v306_v17 = vadd.f32 0.2548296, %v302_v13 }
 0x23c   :  { %v327_v10 = vmul.f32 %v412_v7, %v307_v63  ;;  %v309_v16 = vmul.f32 %v408_v29, %v305_v12 }
 0x23d   :  { %v328_v14 = vmul.f32 %v414_v9, %v308_v8  ;;  %v310_v23 = vmul.f32 %v410_v36, %v306_v17 }
 0x23e   :  { %v331_v15 = vsub.f32 1.0, %v327_v10  ;;  %v329_v0 = vmul.f32 %v416_v18, %v309_v16 }
 0x23f   :  { %v332_v22 = vsub.f32 1.0, %v328_v14  ;;  %v330_v29 = vmul.f32 %v418_v25, %v310_v23 }
 0x240   :  { %v335_v24 = vmul.f32 %v331_v15, %v251_v21  ;;  %v333_v28 = vsub.f32 1.0, %v329_v0 }
 0x241   :  { %v336_v2 = vmul.f32 %v332_v22, %v252_v20  ;;  %v334_v35 = vsub.f32 1.0, %v330_v29 }
 0x242   :  { %v339_v27 = vadd.f32 1.0, %v335_v24  ;;  %v337_v34 = vmul.f32 %v333_v28, %v253_v32 }
 0x243   :  { %v340_v31 = vadd.f32 1.0, %v336_v2  ;;  %v338_v38 = vmul.f32 %v334_v35, %v254_v4 }
 0x244   :  { %v343_v33 = vmul.f32 %v339_v27, %v239_v26  ;;  %v341_v36 = vadd.f32 1.0, %v337_v34 }
 0x245   :  { %v344_v37 = vmul.f32 %v340_v31, %v240_v30  ;;  %v342_v39 = vadd.f32 1.0, %v338_v38 }
 0x246   :  { %347 = vst [vmem:[%s572_s6] sm:$0xff] %v343_v33  ;;  %v345_v62 = vmul.f32 %v341_v36, %v241_v59 }
 0x247   :  { %348 = vst [vmem:[%s572_s6 + $0x8] sm:$0xff] %v344_v37  ;;  %v346_v40 = vmul.f32 %v342_v39, %v242_v11 }
 0x248   :  { %349 = vst [vmem:[%s572_s6 + $0x10] sm:$0xff] %v345_v62 }
 0x249   :  { %350 = vst [vmem:[%s572_s6 + $0x18] sm:$0xff] %v346_v40 }

// kernel: _lambda_.41
= control target key start
LH: loop header
LB: loop body
LE: loop exit
PB: predicated region body
PF: predicated region fallthrough
CT: control target
= control target key end

     0   :  { %s388_s1 = inlined_call_operand.vmem [shape: bf16[256,128], index: 1, kind: input, shape index: {}]   ;;  %s389_s0 = inlined_call_operand.vmem [shape: f32[10,256], index: 0, kind: input, shape index: {}]   ;;  %s390_s2 = inlined_call_operand.vmem [shape: f32[1,128], index: 2, kind: input, shape index: {}]   ;;  %s391_s3 = inlined_call_operand.vmem [shape: f32[1,128], index: 3, kind: input, shape index: {}]   ;;  %s392_s4 = inlined_call_operand.vmem [shape: f32[10,128], index: 4, kind: input, shape index: {}]   ;;  %s393_s5 = inlined_call_operand.vmem [shape: f32[10,128], index: 5, kind: output, shape index: {}]  }
   0x1   :  { %v264_v0 = vld [vmem:[%s388_s1 + $0x40] sm:$0xff]   ;;  %v266_v2 = vld [vmem:[%s388_s1 + $0x48] sm:$0xff]   ;;  %v268_v4 = vld [vmem:[%s388_s1 + $0x50] sm:$0xff]  }
   0x2   :  { %v265_v1 = vld [vmem:[%s388_s1] sm:$0xff]   ;;  %242 = vmatprep.subr.bf16.mxu0 %v264_v0  ;;  %v267_v3 = vld [vmem:[%s388_s1 + $0x8] sm:$0xff]   ;;  %v269_v5 = vld [vmem:[%s388_s1 + $0x10] sm:$0xff]  }
   0x3   :  { %243 = vmatpush3.bf16.msra.mxu0 %v265_v1  ;;  %v270_v6 = vld [vmem:[%s388_s1 + $0x58] sm:$0xff]   ;;  %v272_v8 = vld [vmem:[%s388_s1 + $0x60] sm:$0xff]   ;;  %v274_v10 = vld [vmem:[%s388_s1 + $0x68] sm:$0xff]  }
   0x4   :  { %244 = vmatprep.subr.bf16.mxu0 %v266_v2  ;;  %v271_v7 = vld [vmem:[%s388_s1 + $0x18] sm:$0xff]   ;;  %v273_v9 = vld [vmem:[%s388_s1 + $0x20] sm:$0xff]   ;;  %v22_v11 = vld [vmem:[%s389_s0 + $0x8] sm:$0xff] }
   0x5   :  { %v24_v12 = vld [vmem:[%s389_s0 + $0x18] sm:$0xff]  ;;  %v275_v14 = vld [vmem:[%s388_s1 + $0x28] sm:$0xff]   ;;  %v276_v15 = vld [vmem:[%s388_s1 + $0x70] sm:$0xff]  }
   0x6   :  { %v60_v13 = vpack.c.bf16 %v24_v12, %v22_v11  ;;  %v277_v16 = vld [vmem:[%s388_s1 + $0x30] sm:$0xff]   ;;  %v278_v17 = vld [vmem:[%s388_s1 + $0x78] sm:$0xff]   ;;  %v21_v19 = vld [vmem:[%s389_s0] sm:$0xff] }
   0x7   :  { %245 = vmatpush3.bf16.msra.mxu0 %v267_v3  ;;  %v279_v18 = vld [vmem:[%s388_s1 + $0x38] sm:$0xff]   ;;  %v23_v20 = vld [vmem:[%s389_s0 + $0x10] sm:$0xff]  ;;  %v240_v23 = vld [vmem:[%s390_s2] ss:$0 sm:$0xff] }
   0x8   :  { %246 = vmatprep.subr.bf16.mxu0 %v268_v4  ;;  %189 = vmatprep.mubr.bf16.mxu0 %v60_v13  ;;  %v59_v21 = vpack.c.bf16 %v23_v20, %v21_v19  ;;  %v241_v27 = vld [vmem:[%s391_s3] ss:$0 sm:$0xff]  ;;  %v215_v34 = vld [vmem:[%s392_s4 + $0x8] sm:$0xff] }
   0x9   :  { %v214_v31 = vld [vmem:[%s392_s4] sm:$0xff] }
   0xb   :  { %247 = vmatpush3.bf16.msra.mxu0 %v269_v5 }
   0xc   :  { %248 = vmatprep.subr.bf16.mxu0 %v270_v6 }
   0xf   :  { %249 = vmatpush3.bf16.msra.mxu0 %v271_v7 }
  0x10   :  { %250 = vmatprep.subr.bf16.mxu0 %v272_v8 }
  0x13   :  { %251 = vmatpush3.bf16.msra.mxu0 %v273_v9 }
  0x14   :  { %252 = vmatprep.subr.bf16.mxu0 %v274_v10 }
  0x17   :  { %253 = vmatpush3.bf16.msra.mxu0 %v275_v14 }
  0x18   :  { %254 = vmatprep.subr.bf16.mxu0 %v276_v15 }
  0x1b   :  { %255 = vmatpush3.bf16.msra.mxu0 %v277_v16 }
  0x1c   :  { %256 = vmatprep.subr.bf16.mxu0 %v278_v17 }
  0x1f   :  { %257 = vmatpush3.bf16.msra.mxu0 %v279_v18 }
  0x22   :  { %190 = vmatmul.mubr.bf16.vlgmr.msra.gmra.mrb[0].mxu0 %v59_v21 }
  0xf5   :  { %v258_v22 = vpop.f32.mrb[0].mxu0 }
  0xf6   :  { %v259_v24 = vpop.f32.mrb[1].mxu0 }
  0xf7   :  { %v260_v25 = vadd.f32 %v259_v24, %v258_v22  ;;  %v261_v26 = vpop.f32.mrb[2].mxu0 }
  0xf8   :  { %v262_v28 = vpop.f32.mrb[3].mxu0 }
  0xf9   :  { %v204_v29 = vmul.f32 %v260_v25, %v240_v23  ;;  %v263_v30 = vadd.f32 %v262_v28, %v261_v26 }
  0xfb   :  { %v212_v32 = vadd.f32 %v241_v27, %v204_v29  ;;  %v205_v33 = vmul.f32 %v263_v30, %v240_v23 }
  0xfd   :  { %v216_v35 = vadd.f32 %v214_v31, %v212_v32  ;;  %v213_v36 = vadd.f32 %v241_v27, %v205_v33 }
  0xff   :  { %218 = vst [vmem:[%s393_s5] sm:$0xff] %v216_v35  ;;  %v217_v37 = vadd.f32 %v215_v34, %v213_v36 }
 0x101   :  { %219 = vst [vmem:[%s393_s5 + $0x8] sm:$0xff] %v217_v37 }

// kernel: _lambda_.53
= control target key start
LH: loop header
LB: loop body
LE: loop exit
PB: predicated region body
PF: predicated region fallthrough
CT: control target
= control target key end

     0   :  { %v333_v16 = vmov 0   ;;  %v194_v32 = vlaneseq  ;;  %s439_s0 = inlined_call_operand.vmem [shape: f32[8,128], index: 0, kind: input, shape index: {}]   ;;  %s440_s3 = inlined_call_operand.vmem [shape: bf16[128,256], index: 3, kind: input, shape index: {}]   ;;  %s441_s1 = inlined_call_operand.vmem [shape: f32[1,128], index: 1, kind: input, shape index: {}]   ;;  %s442_s2 = inlined_call_operand.vmem [shape: f32[1,128], index: 2, kind: input, shape index: {}]   ;;  %s443_s4 = inlined_call_operand.vmem [shape: f32[1,256], index: 4, kind: input, shape index: {}]   ;;  %s444_s5 = inlined_call_operand.vmem [shape: f32[1,256], index: 5, kind: input, shape index: {}]   ;;  %s445_s6 = inlined_call_operand.vmem [shape: f32[8,256], index: 6, kind: output, shape index: {}]  }
   0x1   :  { %v24_v0 = vld [vmem:[%s439_s0] sm:$0xff]  ;;  %v302_v3 = vld [vmem:[%s440_s3 + $0x14] ss:$8 sps:$4 sm:$0xff]   ;;  %v304_v4 = vld [vmem:[%s440_s3 + $0x10] ss:$8 sps:$4 sm:$0xff]   ;;  %184 = vmatprep.mubr.bf16.mxu0 %v333_v16 }
   0x2   :  { %27 = vadd.xlane.f32.xlu0 %v24_v0  ;;  %v299_v1 = vld [vmem:[%s440_s3 + $0x4] ss:$8 sps:$4 sm:$0xff]   ;;  %v301_v2 = vld [vmem:[%s440_s3] ss:$8 sps:$4 sm:$0xff]   ;;  %v308_v11 = vld [vmem:[%s440_s3 + $0x34] ss:$8 sps:$4 sm:$0xff]  }
   0x3   :  { %152 = vmatprep.subr.bf16.mxu0 %v299_v1  ;;  %v305_v5 = vld [vmem:[%s440_s3 + $0x24] ss:$8 sps:$4 sm:$0xff]   ;;  %v307_v10 = vld [vmem:[%s440_s3 + $0x20] ss:$8 sps:$4 sm:$0xff]   ;;  %v310_v12 = vld [vmem:[%s440_s3 + $0x30] ss:$8 sps:$4 sm:$0xff]  }
   0x4   :  { %153 = vmatpush1.bf16.msra.mxu0 %v301_v2  ;;  %v311_v13 = vld [vmem:[%s440_s3 + $0x44] ss:$8 sps:$4 sm:$0xff]   ;;  %v313_v14 = vld [vmem:[%s440_s3 + $0x40] ss:$8 sps:$4 sm:$0xff]   ;;  %v314_v15 = vld [vmem:[%s440_s3 + $0x54] ss:$8 sps:$4 sm:$0xff]  }
   0x5   :  { %154 = vmatprep.subr.bf16.mxu0 %v302_v3  ;;  %v316_v17 = vld [vmem:[%s440_s3 + $0x50] ss:$8 sps:$4 sm:$0xff]   ;;  %v317_v18 = vld [vmem:[%s440_s3 + $0x64] ss:$8 sps:$4 sm:$0xff]   ;;  %v319_v19 = vld [vmem:[%s440_s3 + $0x60] ss:$8 sps:$4 sm:$0xff]  }
   0x6   :  { %v320_v20 = vld [vmem:[%s440_s3 + $0x74] ss:$8 sps:$4 sm:$0xff]   ;;  %v322_v21 = vld [vmem:[%s440_s3 + $0x70] ss:$8 sps:$4 sm:$0xff]   ;;  %v279_v26 = vld [vmem:[%s441_s1] ss:$0 sm:$0xff] }
   0x7   :  { %v280_v28 = vld [vmem:[%s442_s2] ss:$0 sm:$0xff]  ;;  %v195_v33 = vshrl.u32 %v194_v32, 7 }
   0x8   :  { %155 = vmatpush1.bf16.msra.mxu0 %v304_v4  ;;  %v69_v35 = vld [vmem:[%s443_s4] sm:$0x3] }
   0x9   :  { %156 = vmatprep.subr.bf16.mxu0 %v305_v5  ;;  %v196_v34 = vsub.s32 0, %v195_v33  ;;  %v200_v36 = vsub.s32 1, %v195_v33  ;;  %v70_v37 = vld [vmem:[%s444_s5] sm:$0x3] }
   0xb   :  { %v197_v38 = vrot.slane %v69_v35, %v196_v34  ;;  %v201_v39 = vrot.slane %v69_v35, %v200_v36  ;;  %v210_v40 = vrot.slane %v70_v37, %v196_v34  ;;  %v214_v42 = vrot.slane %v70_v37, %v200_v36 }
   0xc   :  { %157 = vmatpush1.bf16.msra.mxu0 %v307_v10 }
   0xd   :  { %158 = vmatprep.subr.bf16.mxu0 %v308_v11 }
  0x10   :  { %159 = vmatpush1.bf16.msra.mxu0 %v310_v12 }
  0x11   :  { %160 = vmatprep.subr.bf16.mxu0 %v311_v13 }
  0x14   :  { %161 = vmatpush1.bf16.msra.mxu0 %v313_v14 }
  0x15   :  { %162 = vmatprep.subr.bf16.mxu0 %v314_v15 }
  0x18   :  { %163 = vmatpush1.bf16.msra.mxu0 %v316_v17 }
  0x19   :  { %164 = vmatprep.subr.bf16.mxu0 %v317_v18 }
  0x1c   :  { %165 = vmatpush1.bf16.msra.mxu0 %v319_v19 }
  0x1d   :  { %166 = vmatprep.subr.bf16.mxu0 %v320_v20 }
  0x20   :  { %167 = vmatpush1.bf16.msra.mxu0 %v322_v21 }
  0x8f   :  { %v28_v6 = vpop.xlane.xlu0 %27 }
  0x90   :  { %v30_v7 = vmul.f32 0.0078125, %v28_v6 }
  0x92   :  { %v31_v8 = vsub.f32 %v24_v0, %v30_v7 }
  0x94   :  { %v32_v9 = vmul.f32 %v31_v8, %v31_v8 }
  0x96   :  { %33 = vadd.xlane.f32.xlu0 %v32_v9 }
 0x123   :  { %v34_v22 = vpop.xlane.xlu0 %33 }
 0x124   :  { %v35_v23 = vmul.f32 0.0078125, %v34_v22 }
 0x126   :  { %v36_v24 = vadd.f32 1e-05, %v35_v23 }
 0x128   :  { %323 = vrsqrt.f32 %v36_v24 }
 0x132   :  { %v324_v25 = vpop.eup %323 }
 0x133   :  { %v38_v27 = vmul.f32 %v324_v25, %v31_v8  ;;  %v334_v25 = vmov -1.0  }
 0x135   :  { %v45_v29 = vmul.f32 %v279_v26, %v38_v27 }
 0x137   :  { %v52_v30 = vadd.f32 %v280_v28, %v45_v29 }
 0x139   :  { %v71_v31 = vpack.c.bf16 %v52_v30, %v52_v30 }
 0x13b   :  { %185 = vmatmul.mubr.bf16.vlgmr.msra.gmra.mrb[0].mxu0 %v71_v31 }
 0x20e   :  { %v186_v41 = vpop.f32.mrb[0].mxu0 }
 0x20f   :  { %v204_v43 = vmul.f32 %v197_v38, %v186_v41  ;;  %v188_v44 = vpop.f32.mrb[1].mxu0 }
 0x210   :  { %v205_v45 = vmul.f32 %v201_v39, %v188_v44  ;;  %v190_v46 = vpop.f32.mrb[2].mxu0 }
 0x211   :  { %v217_v47 = vadd.f32 %v210_v40, %v204_v43  ;;  %v191_v48 = vpop.f32.mrb[3].mxu0 }
 0x212   :  { %v218_v49 = vadd.f32 %v214_v42, %v205_v45 }
 0x213   :  { %v221_v50 = vmul.f32 0.70710677, %v217_v47  ;;  %v219_v31 = vmul.f32 0.5, %v217_v47 }
 0x214   :  { %v222_v51 = vmul.f32 0.70710677, %v218_v49  ;;  %v220_v33 = vmul.f32 0.5, %v218_v49 }
 0x215   :  { %v227_v52 = vand.u32 2147483647, %v221_v50  ;;  %vm223_vm0 = vcmp.ge.f32.partialorder %v221_v50, 0.0 }
 0x216   :  { %v228_v53 = vand.u32 2147483647, %v222_v51  ;;  %vm224_vm1 = vcmp.ge.f32.partialorder %v222_v51, 0.0  ;;  %v225_v26 = vsel %vm223_vm0, 1.0, %v334_v25 }
 0x217   :  { %v229_v54 = vmul.f32 0.3275911, %v227_v52  ;;  %v255_v58 = vsub.f32 0.0, %v227_v52  ;;  %v226_v29 = vsel %vm224_vm1, 1.0, %v334_v25 }
 0x218   :  { %v230_v55 = vmul.f32 0.3275911, %v228_v53  ;;  %v256_v59 = vsub.f32 0.0, %v228_v53 }
 0x219   :  { %v231_v56 = vadd.f32 1.0, %v229_v54  ;;  %v257_v61 = vmul.f32 %v255_v58, %v227_v52 }
 0x21a   :  { %v232_v57 = vadd.f32 1.0, %v230_v55  ;;  %v258_v0 = vmul.f32 %v256_v59, %v228_v53 }
 0x21b   :  { %325 = vrcp.f32 %v231_v56  ;;  %v259_v3 = vmul.f32 1.442695, %v257_v61 }
 0x21c   :  { %327 = vrcp.f32 %v232_v57  ;;  %v261_v6 = vmul.f32 1.442695, %v258_v0 }
 0x21d   :  { %329 = vpow2.f32 %v259_v3 }
 0x21e   :  { %331 = vpow2.f32 %v261_v6 }
 0x225   :  { %v326_v60 = vpop.eup %325 }
 0x226   :  { %v328_v62 = vpop.eup %327  ;;  %v237_v63 = vmul.f32 1.0614054, %v326_v60 }
 0x227   :  { %v238_v1 = vmul.f32 1.0614054, %v328_v62  ;;  %v330_v19 = vpop.eup %329 }
 0x228   :  { %v239_v2 = vadd.f32 -1.4531521, %v237_v63  ;;  %v332_v21 = vpop.eup %331 }
 0x229   :  { %v240_v4 = vadd.f32 -1.4531521, %v238_v1 }
 0x22a   :  { %v241_v5 = vmul.f32 %v326_v60, %v239_v2 }
 0x22b   :  { %v242_v7 = vmul.f32 %v328_v62, %v240_v4 }
 0x22c   :  { %v243_v8 = vadd.f32 1.4214138, %v241_v5 }
 0x22d   :  { %v244_v9 = vadd.f32 1.4214138, %v242_v7 }
 0x22e   :  { %v245_v10 = vmul.f32 %v326_v60, %v243_v8 }
 0x22f   :  { %v246_v11 = vmul.f32 %v328_v62, %v244_v9 }
 0x230   :  { %v247_v12 = vadd.f32 -0.28449672, %v245_v10 }
 0x231   :  { %v248_v13 = vadd.f32 -0.28449672, %v246_v11 }
 0x232   :  { %v249_v14 = vmul.f32 %v326_v60, %v247_v12 }
 0x233   :  { %v250_v15 = vmul.f32 %v328_v62, %v248_v13 }
 0x234   :  { %v251_v16 = vadd.f32 0.2548296, %v249_v14 }
 0x235   :  { %v252_v17 = vadd.f32 0.2548296, %v250_v15 }
 0x236   :  { %v253_v18 = vmul.f32 %v326_v60, %v251_v16 }
 0x237   :  { %v254_v20 = vmul.f32 %v328_v62, %v252_v17 }
 0x238   :  { %v263_v22 = vmul.f32 %v330_v19, %v253_v18 }
 0x239   :  { %v264_v23 = vmul.f32 %v332_v21, %v254_v20 }
 0x23a   :  { %v265_v24 = vsub.f32 1.0, %v263_v22 }
 0x23b   :  { %v266_v27 = vsub.f32 1.0, %v264_v23 }
 0x23c   :  { %v267_v28 = vmul.f32 %v265_v24, %v225_v26 }
 0x23d   :  { %v268_v30 = vmul.f32 %v266_v27, %v226_v29 }
 0x23e   :  { %v269_v32 = vadd.f32 1.0, %v267_v28 }
 0x23f   :  { %v270_v34 = vadd.f32 1.0, %v268_v30 }
 0x240   :  { %v271_v35 = vmul.f32 %v269_v32, %v219_v31 }
 0x241   :  { %v272_v36 = vmul.f32 %v270_v34, %v220_v33 }
 0x242   :  { %273 = vst [vmem:[%s445_s6] sm:$0xff] %v271_v35 }
 0x243   :  { %274 = vst [vmem:[%s445_s6 + $0x8] sm:$0xff] %v272_v36 }

// kernel: _lambda_.49
= control target key start
LH: loop header
LB: loop body
LE: loop exit
PB: predicated region body
PF: predicated region fallthrough
CT: control target
= control target key end

     0   :  { %v406_v0 = vmov 0   ;;  %vm144_vm0 = vcmask 154624   ;;  %vm169_vm1 = vcmask 1040384   ;;  %vm170_vm2 = vcmask 1041408   ;;  %s693_s1 = inlined_call_operand.vmem [shape: bf16[147,64], index: 1, kind: input, shape index: {}]   ;;  %s694_s0 = inlined_call_operand.vmem [shape: f32[128,147], index: 0, kind: input, shape index: {}]   ;;  %s695_s2 = inlined_call_operand.vmem [shape: f32[1,64], index: 2, kind: input, shape index: {}]   ;;  %s696_s3 = inlined_call_operand.vmem [shape: f32[1,64], index: 3, kind: input, shape index: {}]   ;;  %s697_s4 = inlined_call_operand.vmem [shape: f32[128,64], index: 4, kind: output, shape index: {}]  }
   0x1   :  { %176 = vmatprep.subr.bf16.mxu0 %v406_v0  ;;  %374 = vmatprep.subr.bf16.mxu1 %v406_v0  ;;  %v396_v1 = vld [vmem:[%s693_s1] sm:$0xff]   ;;  %v397_v2 = vld [vmem:[%s693_s1 + $0x8] sm:$0xff]   ;;  %v398_v3 = vld [vmem:[%s693_s1 + $0x10] sm:$0xff]   ;;  %v407_v15 = vmov 65535   ;;  %vm333_vm3 = vcmask 523264  }
   0x2   :  { %177 = vmatpush1.bf16.msra.mxu0 %v396_v1  ;;  %384 = vmatpush1.bf16.msra.mxu1 %v396_v1  ;;  %v399_v4 = vld [vmem:[%s693_s1 + $0x18] sm:$0xff]   ;;  %v19_v5 = vld [vmem:[%s694_s0 + $0x8] sm:$0xff]  ;;  %v400_v11 = vld [vmem:[%s693_s1 + $0x20] sm:$0xff]   ;;  %v171_v16 = vsel %vm169_vm1, 4294967295, %v407_v15 }
   0x3   :  { %178 = vmatprep.subr.bf16.mxu0 %v406_v0  ;;  %375 = vmatprep.subr.bf16.mxu1 %v406_v0  ;;  %v21_v6 = vld [vmem:[%s694_s0 + $0x18] sm:$0xff]  ;;  %v35_v7 = vld [vmem:[%s694_s0 + $0x88] sm:$0xff]  ;;  %v402_v13 = vld [vmem:[%s693_s1 + $0x30] sm:$0xff]   ;;  %v172_v19 = vsel %vm170_vm2, %v171_v16, 0 }
   0x4   :  { %v37_v8 = vld [vmem:[%s694_s0 + $0x98] sm:$0xff]  ;;  %v72_v9 = vpack.c.bf16 %v21_v6, %v19_v5  ;;  %v401_v12 = vld [vmem:[%s693_s1 + $0x28] sm:$0xff]   ;;  %v404_v17 = vld [vmem:[%s693_s1 + $0x40] sm:$0xff]  }
   0x5   :  { %v80_v10 = vpack.c.bf16 %v37_v8, %v35_v7  ;;  %v403_v14 = vld [vmem:[%s693_s1 + $0x38] sm:$0xff]   ;;  %v405_v18 = vld [vmem:[%s693_s1 + $0x48] ss:$0 sps:$4 sm:$0x33]   ;;  %v18_v20 = vld [vmem:[%s694_s0] sm:$0xff] }
   0x6   :  { %179 = vmatpush1.bf16.msra.mxu0 %v397_v2  ;;  %385 = vmatpush1.bf16.msra.mxu1 %v397_v2  ;;  %v20_v21 = vld [vmem:[%s694_s0 + $0x10] sm:$0xff]  ;;  %v174_v22 = vand.u32 %v405_v18, %v172_v19  ;;  %v34_v23 = vld [vmem:[%s694_s0 + $0x80] sm:$0xff]  ;;  %v23_v25 = vld [vmem:[%s694_s0 + $0x28] sm:$0xff] }
   0x7   :  { %180 = vmatprep.subr.bf16.mxu0 %v406_v0  ;;  %376 = vmatprep.subr.bf16.mxu1 %v406_v0  ;;  %v36_v24 = vld [vmem:[%s694_s0 + $0x90] sm:$0xff]  ;;  %v25_v26 = vld [vmem:[%s694_s0 + $0x38] sm:$0xff]  ;;  %v39_v27 = vld [vmem:[%s694_s0 + $0xa8] sm:$0xff]  ;;  %v71_v29 = vpack.c.bf16 %v20_v21, %v18_v20 }
   0x8   :  { %364 = vmatprep.mubr.msk.bf16.mxu0 %vm144_vm0, %v72_v9  ;;  %368 = vmatprep.mubr.msk.bf16.mxu1 %vm144_vm0, %v80_v10  ;;  %v41_v28 = vld [vmem:[%s694_s0 + $0xb8] sm:$0xff]  ;;  %v79_v30 = vpack.c.bf16 %v36_v24, %v34_v23  ;;  %v74_v31 = vpack.c.bf16 %v25_v26, %v23_v25  ;;  %v22_v33 = vld [vmem:[%s694_s0 + $0x20] sm:$0xff]  ;;  %v24_v34 = vld [vmem:[%s694_s0 + $0x30] sm:$0xff] }
   0x9   :  { %v82_v32 = vpack.c.bf16 %v41_v28, %v39_v27  ;;  %v38_v35 = vld [vmem:[%s694_s0 + $0xa0] sm:$0xff]  ;;  %v40_v36 = vld [vmem:[%s694_s0 + $0xb0] sm:$0xff]  ;;  %v27_v37 = vld [vmem:[%s694_s0 + $0x48] sm:$0xff]  ;;  %v73_v41 = vpack.c.bf16 %v24_v34, %v22_v33 }
   0xa   :  { %181 = vmatpush1.bf16.msra.mxu0 %v398_v3  ;;  %386 = vmatpush1.bf16.msra.mxu1 %v398_v3  ;;  %v29_v38 = vld [vmem:[%s694_s0 + $0x58] sm:$0xff]  ;;  %v43_v39 = vld [vmem:[%s694_s0 + $0xc8] sm:$0xff]  ;;  %v81_v42 = vpack.c.bf16 %v40_v36, %v38_v35  ;;  %v26_v45 = vld [vmem:[%s694_s0 + $0x40] sm:$0xff] }
   0xb   :  { %182 = vmatprep.subr.bf16.mxu0 %v406_v0  ;;  %377 = vmatprep.subr.bf16.mxu1 %v406_v0  ;;  %v45_v40 = vld [vmem:[%s694_s0 + $0xd8] sm:$0xff]  ;;  %v76_v43 = vpack.c.bf16 %v29_v38, %v27_v37  ;;  %v28_v46 = vld [vmem:[%s694_s0 + $0x50] sm:$0xff]  ;;  %v42_v47 = vld [vmem:[%s694_s0 + $0xc0] sm:$0xff] }
   0xc   :  { %v84_v44 = vpack.c.bf16 %v45_v40, %v43_v39  ;;  %v44_v48 = vld [vmem:[%s694_s0 + $0xd0] sm:$0xff]  ;;  %v31_v49 = vld [vmem:[%s694_s0 + $0x68] sm:$0xff]  ;;  %v33_v50 = vld [vmem:[%s694_s0 + $0x78] sm:$0xff]  ;;  %v75_v53 = vpack.c.bf16 %v28_v46, %v26_v45 }
   0xd   :  { %v47_v51 = vld [vmem:[%s694_s0 + $0xe8] sm:$0xff]  ;;  %v49_v52 = vld [vmem:[%s694_s0 + $0xf8] sm:$0xff]  ;;  %v83_v54 = vpack.c.bf16 %v44_v48, %v42_v47  ;;  %v78_v55 = vpack.c.bf16 %v33_v50, %v31_v49  ;;  %v30_v57 = vld [vmem:[%s694_s0 + $0x60] sm:$0xff] }
   0xe   :  { %183 = vmatpush1.bf16.msra.mxu0 %v399_v4  ;;  %387 = vmatpush1.bf16.msra.mxu1 %v399_v4  ;;  %v86_v56 = vpack.c.bf16 %v49_v52, %v47_v51  ;;  %v32_v58 = vld [vmem:[%s694_s0 + $0x70] sm:$0xff]  ;;  %v46_v59 = vld [vmem:[%s694_s0 + $0xe0] sm:$0xff] }
   0xf   :  { %184 = vmatprep.subr.bf16.mxu0 %v406_v0  ;;  %378 = vmatprep.subr.bf16.mxu1 %v406_v0  ;;  %v48_v60 = vld [vmem:[%s694_s0 + $0xf0] sm:$0xff]  ;;  %v77_v61 = vpack.c.bf16 %v32_v58, %v30_v57  ;;  %v590_v63 = vld [vmem:[%s695_s2] ss:$0 sm:$0xff] }
  0x10   :  { %v85_v62 = vpack.c.bf16 %v48_v60, %v46_v59 }
  0x12   :  { %185 = vmatpush1.bf16.msra.mxu0 %v400_v11  ;;  %388 = vmatpush1.bf16.msra.mxu1 %v400_v11 }
  0x13   :  { %186 = vmatprep.subr.bf16.mxu0 %v406_v0  ;;  %379 = vmatprep.subr.bf16.mxu1 %v406_v0 }
  0x16   :  { %187 = vmatpush1.bf16.msra.mxu0 %v401_v12  ;;  %389 = vmatpush1.bf16.msra.mxu1 %v401_v12 }
  0x17   :  { %188 = vmatprep.subr.bf16.mxu0 %v406_v0  ;;  %380 = vmatprep.subr.bf16.mxu1 %v406_v0 }
  0x1a   :  { %189 = vmatpush1.bf16.msra.mxu0 %v402_v13  ;;  %390 = vmatpush1.bf16.msra.mxu1 %v402_v13 }
  0x1b   :  { %190 = vmatprep.subr.bf16.mxu0 %v406_v0  ;;  %381 = vmatprep.subr.bf16.mxu1 %v406_v0 }
  0x1e   :  { %191 = vmatpush1.bf16.msra.mxu0 %v403_v14  ;;  %391 = vmatpush1.bf16.msra.mxu1 %v403_v14 }
  0x1f   :  { %192 = vmatprep.subr.bf16.mxu0 %v406_v0  ;;  %382 = vmatprep.subr.bf16.mxu1 %v406_v0 }
  0x22   :  { %193 = vmatpush1.bf16.msra.mxu0 %v404_v17  ;;  %392 = vmatpush1.bf16.msra.mxu1 %v404_v17 }
  0x23   :  { %194 = vmatprep.subr.bf16.mxu0 %v406_v0  ;;  %383 = vmatprep.subr.bf16.mxu1 %v406_v0  ;;  %v595_v0 = vld [vmem:[%s696_s3] ss:$0 sm:$0xff] }
  0x26   :  { %195 = vmatpush1.bf16.msra.mxu0 %v174_v22  ;;  %393 = vmatpush1.bf16.msra.mxu1 %v174_v22 }
  0x29   :  { %209 = vmatmul.mubr.bf16.vlgmr.msra.gmra.mrb[0].mxu0 %v71_v29  ;;  %241 = vmatmul.mubr.bf16.vlgmr.msra.gmra.mrb[0].mxu1 %v79_v30 }
  0x2a   :  { %365 = vmatprep.mubr.msk.bf16.mxu0 %vm144_vm0, %v74_v31  ;;  %369 = vmatprep.mubr.msk.bf16.mxu1 %vm144_vm0, %v82_v32 }
  0x31   :  { %217 = vmatmul.mubr.bf16.gmra.mrb[4].mxu0 %v73_v41  ;;  %249 = vmatmul.mubr.bf16.gmra.mrb[4].mxu1 %v81_v42 }
  0x32   :  { %366 = vmatprep.mubr.msk.bf16.mxu0 %vm144_vm0, %v76_v43  ;;  %370 = vmatprep.mubr.msk.bf16.mxu1 %vm144_vm0, %v84_v44 }
  0x39   :  { %225 = vmatmul.mubr.bf16.gmra.mrb[8].mxu0 %v75_v53  ;;  %257 = vmatmul.mubr.bf16.gmra.mrb[8].mxu1 %v83_v54 }
  0x3a   :  { %367 = vmatprep.mubr.msk.bf16.mxu0 %vm144_vm0, %v78_v55  ;;  %371 = vmatprep.mubr.msk.bf16.mxu1 %vm144_vm0, %v86_v56 }
  0x41   :  { %233 = vmatmul.mubr.bf16.gmra.mrb[12].mxu0 %v77_v61  ;;  %265 = vmatmul.mubr.bf16.gmra.mrb[12].mxu1 %v85_v62 }
  0xfc   :  { %v210_v1 = vpop.f32.mrb[0].mxu0  ;;  %v242_v2 = vpop.f32.mrb[0].mxu1 }
  0xfd   :  { %v279_v3 = vmul.f32 %v590_v63, %v210_v1  ;;  %v287_v4 = vmul.f32 %v590_v63, %v242_v2  ;;  %v212_v5 = vpop.f32.mrb[1].mxu0  ;;  %v244_v6 = vpop.f32.mrb[1].mxu1 }
  0xfe   :  { %v213_v7 = vpop.f32.mrb[2].mxu0  ;;  %v245_v8 = vpop.f32.mrb[2].mxu1 }
  0xff   :  { %v301_v9 = vadd.f32 %v595_v0, %v279_v3  ;;  %v309_v10 = vadd.f32 %v595_v0, %v287_v4  ;;  %v280_v11 = vmul.f32 %v590_v63, %v213_v7  ;;  %v288_v12 = vmul.f32 %v590_v63, %v245_v8  ;;  %v215_v13 = vpop.f32.mrb[3].mxu0  ;;  %v247_v14 = vpop.f32.mrb[3].mxu1 }
 0x101   :  { %v317_v15 = vmax.f32 %v301_v9, 0.0  ;;  %v325_v16 = vmax.f32 %v309_v10, 0.0  ;;  %v302_v17 = vadd.f32 %v595_v0, %v280_v11  ;;  %v310_v18 = vadd.f32 %v595_v0, %v288_v12 }
 0x103   :  { %334 = vst.msk [vmem:[%s697_s4] sm:$0xff] %vm333_vm3, %v317_v15  ;;  %342 = vst.msk [vmem:[%s697_s4 + $0x40] sm:$0xff] %vm333_vm3, %v325_v16  ;;  %v318_v19 = vmax.f32 %v302_v17, 0.0  ;;  %v326_v20 = vmax.f32 %v310_v18, 0.0 }
 0x104   :  { %v218_v21 = vpop.f32.mrb[4].mxu0  ;;  %v250_v22 = vpop.f32.mrb[4].mxu1 }
 0x105   :  { %335 = vst.msk [vmem:[%s697_s4 + $0x8] sm:$0xff] %vm333_vm3, %v318_v19  ;;  %343 = vst.msk [vmem:[%s697_s4 + $0x48] sm:$0xff] %vm333_vm3, %v326_v20  ;;  %v281_v23 = vmul.f32 %v590_v63, %v218_v21  ;;  %v289_v24 = vmul.f32 %v590_v63, %v250_v22  ;;  %v220_v25 = vpop.f32.mrb[5].mxu0  ;;  %v252_v26 = vpop.f32.mrb[5].mxu1 }
 0x106   :  { %v221_v27 = vpop.f32.mrb[6].mxu0  ;;  %v253_v28 = vpop.f32.mrb[6].mxu1 }
 0x107   :  { %v303_v29 = vadd.f32 %v595_v0, %v281_v23  ;;  %v311_v30 = vadd.f32 %v595_v0, %v289_v24  ;;  %v282_v31 = vmul.f32 %v590_v63, %v221_v27  ;;  %v290_v32 = vmul.f32 %v590_v63, %v253_v28  ;;  %v223_v33 = vpop.f32.mrb[7].mxu0  ;;  %v255_v34 = vpop.f32.mrb[7].mxu1 }
 0x109   :  { %v319_v35 = vmax.f32 %v303_v29, 0.0  ;;  %v327_v36 = vmax.f32 %v311_v30, 0.0  ;;  %v304_v37 = vadd.f32 %v595_v0, %v282_v31  ;;  %v312_v38 = vadd.f32 %v595_v0, %v290_v32 }
 0x10b   :  { %336 = vst.msk [vmem:[%s697_s4 + $0x10] sm:$0xff] %vm333_vm3, %v319_v35  ;;  %344 = vst.msk [vmem:[%s697_s4 + $0x50] sm:$0xff] %vm333_vm3, %v327_v36  ;;  %v320_v39 = vmax.f32 %v304_v37, 0.0  ;;  %v328_v40 = vmax.f32 %v312_v38, 0.0 }
 0x10c   :  { %v226_v41 = vpop.f32.mrb[8].mxu0  ;;  %v258_v42 = vpop.f32.mrb[8].mxu1 }
 0x10d   :  { %337 = vst.msk [vmem:[%s697_s4 + $0x18] sm:$0xff] %vm333_vm3, %v320_v39  ;;  %345 = vst.msk [vmem:[%s697_s4 + $0x58] sm:$0xff] %vm333_vm3, %v328_v40  ;;  %v283_v43 = vmul.f32 %v590_v63, %v226_v41  ;;  %v291_v44 = vmul.f32 %v590_v63, %v258_v42  ;;  %v228_v45 = vpop.f32.mrb[9].mxu0  ;;  %v260_v46 = vpop.f32.mrb[9].mxu1 }
 0x10e   :  { %v229_v47 = vpop.f32.mrb[10].mxu0  ;;  %v261_v48 = vpop.f32.mrb[10].mxu1 }
 0x10f   :  { %v305_v49 = vadd.f32 %v595_v0, %v283_v43  ;;  %v313_v50 = vadd.f32 %v595_v0, %v291_v44  ;;  %v284_v51 = vmul.f32 %v590_v63, %v229_v47  ;;  %v292_v52 = vmul.f32 %v590_v63, %v261_v48  ;;  %v231_v53 = vpop.f32.mrb[11].mxu0  ;;  %v263_v54 = vpop.f32.mrb[11].mxu1 }
 0x111   :  { %v321_v55 = vmax.f32 %v305_v49, 0.0  ;;  %v329_v56 = vmax.f32 %v313_v50, 0.0  ;;  %v306_v57 = vadd.f32 %v595_v0, %v284_v51  ;;  %v314_v58 = vadd.f32 %v595_v0, %v292_v52 }
 0x113   :  { %338 = vst.msk [vmem:[%s697_s4 + $0x20] sm:$0xff] %vm333_vm3, %v321_v55  ;;  %346 = vst.msk [vmem:[%s697_s4 + $0x60] sm:$0xff] %vm333_vm3, %v329_v56  ;;  %v322_v59 = vmax.f32 %v306_v57, 0.0  ;;  %v330_v60 = vmax.f32 %v314_v58, 0.0 }
 0x114   :  { %v234_v61 = vpop.f32.mrb[12].mxu0  ;;  %v266_v62 = vpop.f32.mrb[12].mxu1 }
 0x115   :  { %339 = vst.msk [vmem:[%s697_s4 + $0x28] sm:$0xff] %vm333_vm3, %v322_v59  ;;  %347 = vst.msk [vmem:[%s697_s4 + $0x68] sm:$0xff] %vm333_vm3, %v330_v60  ;;  %v285_v1 = vmul.f32 %v590_v63, %v234_v61  ;;  %v293_v2 = vmul.f32 %v590_v63, %v266_v62  ;;  %v236_v3 = vpop.f32.mrb[13].mxu0  ;;  %v268_v4 = vpop.f32.mrb[13].mxu1 }
 0x116   :  { %v237_v5 = vpop.f32.mrb[14].mxu0  ;;  %v269_v6 = vpop.f32.mrb[14].mxu1 }
 0x117   :  { %v307_v7 = vadd.f32 %v595_v0, %v285_v1  ;;  %v315_v8 = vadd.f32 %v595_v0, %v293_v2  ;;  %v286_v9 = vmul.f32 %v590_v63, %v237_v5  ;;  %v294_v10 = vmul.f32 %v590_v63, %v269_v6  ;;  %v239_v11 = vpop.f32.mrb[15].mxu0  ;;  %v271_v12 = vpop.f32.mrb[15].mxu1 }
 0x119   :  { %v323_v13 = vmax.f32 %v307_v7, 0.0  ;;  %v331_v14 = vmax.f32 %v315_v8, 0.0  ;;  %v308_v15 = vadd.f32 %v595_v0, %v286_v9  ;;  %v316_v16 = vadd.f32 %v595_v0, %v294_v10 }
 0x11b   :  { %340 = vst.msk [vmem:[%s697_s4 + $0x30] sm:$0xff] %vm333_vm3, %v323_v13  ;;  %348 = vst.msk [vmem:[%s697_s4 + $0x70] sm:$0xff] %vm333_vm3, %v331_v14  ;;  %v324_v17 = vmax.f32 %v308_v15, 0.0  ;;  %v332_v63 = vmax.f32 %v316_v16, 0.0 }
 0x11d   :  { %341 = vst.msk [vmem:[%s697_s4 + $0x38] sm:$0xff] %vm333_vm3, %v324_v17  ;;  %349 = vst.msk [vmem:[%s697_s4 + $0x78] sm:$0xff] %vm333_vm3, %v332_v63 }

// kernel: _lambda_.50
= control target key start
LH: loop header
LB: loop body
LE: loop exit
PB: predicated region body
PF: predicated region fallthrough
CT: control target
= control target key end

     0   :  { %vm428_vm0 = vcmask 523264   ;;  %s1601_s1 = inlined_call_operand.vmem [shape: bf16[576,64], index: 1, kind: input, shape index: {}]   ;;  %s1602_s0 = inlined_call_operand.vmem [shape: f32[128,576], index: 0, kind: input, shape index: {}]   ;;  %s1603_s2 = inlined_call_operand.vmem [shape: f32[1,64], index: 2, kind: input, shape index: {}]   ;;  %s1604_s3 = inlined_call_operand.vmem [shape: f32[1,64], index: 3, kind: input, shape index: {}]   ;;  %s1605_s4 = inlined_call_operand.vmem [shape: f32[128,64], index: 4, kind: output, shape index: {}]  }
   0x1   :  { %v1042_v0 = vld [vmem:[%s1601_s1 + $0x40] sm:$0xff]   ;;  %v1046_v4 = vld [vmem:[%s1601_s1 + $0x48] sm:$0xff]   ;;  %v1050_v8 = vld [vmem:[%s1601_s1 + $0x50] sm:$0xff]  }
   0x2   :  { %v1043_v1 = vld [vmem:[%s1601_s1 + $0xc0] sm:$0xff]   ;;  %870 = vmatprep.subr.bf16.mxu0 %v1042_v0  ;;  %v1047_v5 = vld [vmem:[%s1601_s1 + $0xc8] sm:$0xff]   ;;  %v1051_v9 = vld [vmem:[%s1601_s1 + $0xd0] sm:$0xff]  }
   0x3   :  { %v1044_v2 = vld [vmem:[%s1601_s1] sm:$0xff]   ;;  %934 = vmatprep.subr.bf16.mxu1 %v1043_v1  ;;  %v1048_v6 = vld [vmem:[%s1601_s1 + $0x8] sm:$0xff]   ;;  %v1052_v10 = vld [vmem:[%s1601_s1 + $0x10] sm:$0xff]  }
   0x4   :  { %v1045_v3 = vld [vmem:[%s1601_s1 + $0x80] sm:$0xff]   ;;  %871 = vmatpush3.bf16.msra.mxu0 %v1044_v2  ;;  %v1049_v7 = vld [vmem:[%s1601_s1 + $0x88] sm:$0xff]   ;;  %v1053_v11 = vld [vmem:[%s1601_s1 + $0x90] sm:$0xff]  }
   0x5   :  { %935 = vmatpush3.bf16.msra.mxu1 %v1045_v3  ;;  %872 = vmatprep.subr.bf16.mxu0 %v1046_v4  ;;  %v1054_v12 = vld [vmem:[%s1601_s1 + $0x58] sm:$0xff]   ;;  %v1058_v16 = vld [vmem:[%s1601_s1 + $0x60] sm:$0xff]   ;;  %v1062_v20 = vld [vmem:[%s1601_s1 + $0x68] sm:$0xff]  }
   0x6   :  { %936 = vmatprep.subr.bf16.mxu1 %v1047_v5  ;;  %v1055_v13 = vld [vmem:[%s1601_s1 + $0xd8] sm:$0xff]   ;;  %v1059_v17 = vld [vmem:[%s1601_s1 + $0xe0] sm:$0xff]   ;;  %v1063_v21 = vld [vmem:[%s1601_s1 + $0xe8] sm:$0xff]  }
   0x7   :  { %v1056_v14 = vld [vmem:[%s1601_s1 + $0x18] sm:$0xff]   ;;  %v1060_v18 = vld [vmem:[%s1601_s1 + $0x20] sm:$0xff]   ;;  %v1064_v22 = vld [vmem:[%s1601_s1 + $0x28] sm:$0xff]  }
   0x8   :  { %873 = vmatpush3.bf16.msra.mxu0 %v1048_v6  ;;  %v1057_v15 = vld [vmem:[%s1601_s1 + $0x98] sm:$0xff]   ;;  %v1061_v19 = vld [vmem:[%s1601_s1 + $0xa0] sm:$0xff]   ;;  %v1065_v23 = vld [vmem:[%s1601_s1 + $0xa8] sm:$0xff]  }
   0x9   :  { %937 = vmatpush3.bf16.msra.mxu1 %v1049_v7  ;;  %874 = vmatprep.subr.bf16.mxu0 %v1050_v8  ;;  %v1066_v24 = vld [vmem:[%s1601_s1 + $0x70] sm:$0xff]   ;;  %v1070_v28 = vld [vmem:[%s1601_s1 + $0x78] sm:$0xff]   ;;  %v19_v32 = vld [vmem:[%s1602_s0 + $0x8] sm:$0xff] }
   0xa   :  { %938 = vmatprep.subr.bf16.mxu1 %v1051_v9  ;;  %v1067_v25 = vld [vmem:[%s1601_s1 + $0xf0] sm:$0xff]   ;;  %v1071_v29 = vld [vmem:[%s1601_s1 + $0xf8] sm:$0xff]   ;;  %v26_v36 = vld [vmem:[%s1602_s0 + $0x40] sm:$0xff] }
   0xb   :  { %v1068_v26 = vld [vmem:[%s1601_s1 + $0x30] sm:$0xff]   ;;  %v1072_v30 = vld [vmem:[%s1601_s1 + $0x38] sm:$0xff]   ;;  %v18_v37 = vld [vmem:[%s1602_s0] sm:$0xff] }
   0xc   :  { %875 = vmatpush3.bf16.msra.mxu0 %v1052_v10  ;;  %v1069_v27 = vld [vmem:[%s1601_s1 + $0xb0] sm:$0xff]   ;;  %v1073_v31 = vld [vmem:[%s1601_s1 + $0xb8] sm:$0xff]   ;;  %v23_v38 = vld [vmem:[%s1602_s0 + $0x28] sm:$0xff] }
   0xd   :  { %939 = vmatpush3.bf16.msra.mxu1 %v1053_v11  ;;  %876 = vmatprep.subr.bf16.mxu0 %v1054_v12  ;;  %v24_v33 = vld [vmem:[%s1602_s0 + $0x30] sm:$0xff]  ;;  %v21_v34 = vld [vmem:[%s1602_s0 + $0x18] sm:$0xff]  ;;  %v172_v40 = vpack.c.bf16 %v23_v38, %v18_v37  ;;  %v1074_v44 = vld [vmem:[%s1601_s1 + $0x100] sm:$0xff]  }
   0xe   :  { %940 = vmatprep.subr.bf16.mxu1 %v1055_v13  ;;  %v173_v35 = vpack.c.bf16 %v24_v33, %v19_v32  ;;  %v175_v39 = vpack.c.bf16 %v26_v36, %v21_v34  ;;  %v20_v41 = vld [vmem:[%s1602_s0 + $0x10] sm:$0xff]  ;;  %v25_v42 = vld [vmem:[%s1602_s0 + $0x38] sm:$0xff]  ;;  %v34_v46 = vld [vmem:[%s1602_s0 + $0x80] sm:$0xff] }
   0xf   :  { %v174_v43 = vpack.c.bf16 %v25_v42, %v20_v41  ;;  %v29_v45 = vld [vmem:[%s1602_s0 + $0x58] sm:$0xff]  ;;  %v31_v47 = vld [vmem:[%s1602_s0 + $0x68] sm:$0xff]  ;;  %v36_v48 = vld [vmem:[%s1602_s0 + $0x90] sm:$0xff] }
  0x10   :  { %877 = vmatpush3.bf16.msra.mxu0 %v1056_v14  ;;  %485 = vmatprep.mubr.bf16.mxu0 %v173_v35  ;;  %v178_v49 = vpack.c.bf16 %v34_v46, %v29_v45  ;;  %v180_v50 = vpack.c.bf16 %v36_v48, %v31_v47  ;;  %v28_v51 = vld [vmem:[%s1602_s0 + $0x50] sm:$0xff]  ;;  %v33_v52 = vld [vmem:[%s1602_s0 + $0x78] sm:$0xff]  ;;  %v30_v53 = vld [vmem:[%s1602_s0 + $0x60] sm:$0xff] }
  0x11   :  { %941 = vmatpush3.bf16.msra.mxu1 %v1057_v15  ;;  %878 = vmatprep.subr.bf16.mxu0 %v1058_v16  ;;  %v35_v54 = vld [vmem:[%s1602_s0 + $0x88] sm:$0xff]  ;;  %v44_v56 = vld [vmem:[%s1602_s0 + $0xd0] sm:$0xff]  ;;  %v41_v57 = vld [vmem:[%s1602_s0 + $0xb8] sm:$0xff]  ;;  %v177_v59 = vpack.c.bf16 %v33_v52, %v28_v51 }
  0x12   :  { %942 = vmatprep.subr.bf16.mxu1 %v1059_v17  ;;  %582 = vmatprep.mubr.bf16.mxu1 %v175_v39  ;;  %v39_v55 = vld [vmem:[%s1602_s0 + $0xa8] sm:$0xff]  ;;  %v46_v58 = vld [vmem:[%s1602_s0 + $0xe0] sm:$0xff]  ;;  %v179_v60 = vpack.c.bf16 %v35_v54, %v30_v53  ;;  %v40_v2 = vld [vmem:[%s1602_s0 + $0xb0] sm:$0xff] }
  0x13   :  { %v183_v61 = vpack.c.bf16 %v44_v56, %v39_v55  ;;  %v1075_v62 = vld [vmem:[%s1601_s1 + $0x108] sm:$0xff]   ;;  %v185_v63 = vpack.c.bf16 %v46_v58, %v41_v57  ;;  %v38_v0 = vld [vmem:[%s1602_s0 + $0xa0] sm:$0xff]  ;;  %v45_v3 = vld [vmem:[%s1602_s0 + $0xd8] sm:$0xff] }
  0x14   :  { %879 = vmatpush3.bf16.msra.mxu0 %v1060_v18  ;;  %v43_v1 = vld [vmem:[%s1602_s0 + $0xc8] sm:$0xff]  ;;  %v49_v4 = vld [vmem:[%s1602_s0 + $0xf8] sm:$0xff]  ;;  %v54_v5 = vld [vmem:[%s1602_s0 + $0x120] sm:$0xff]  ;;  %v184_v10 = vpack.c.bf16 %v45_v3, %v40_v2 }
  0x15   :  { %943 = vmatpush3.bf16.msra.mxu1 %v1061_v19  ;;  %880 = vmatprep.subr.bf16.mxu0 %v1062_v20  ;;  %v51_v6 = vld [vmem:[%s1602_s0 + $0x108] sm:$0xff]  ;;  %v56_v7 = vld [vmem:[%s1602_s0 + $0x130] sm:$0xff]  ;;  %v182_v8 = vpack.c.bf16 %v43_v1, %v38_v0  ;;  %v188_v11 = vpack.c.bf16 %v54_v5, %v49_v4  ;;  %v53_v14 = vld [vmem:[%s1602_s0 + $0x118] sm:$0xff] }
  0x16   :  { %944 = vmatprep.subr.bf16.mxu1 %v1063_v21  ;;  %v1076_v9 = vld [vmem:[%s1601_s1 + $0x110] sm:$0xff]   ;;  %v190_v12 = vpack.c.bf16 %v56_v7, %v51_v6  ;;  %v50_v15 = vld [vmem:[%s1602_s0 + $0x100] sm:$0xff]  ;;  %v55_v16 = vld [vmem:[%s1602_s0 + $0x128] sm:$0xff] }
  0x17   :  { %v48_v13 = vld [vmem:[%s1602_s0 + $0xf0] sm:$0xff]  ;;  %v59_v17 = vld [vmem:[%s1602_s0 + $0x148] sm:$0xff]  ;;  %v1077_v19 = vld [vmem:[%s1601_s1 + $0x118] sm:$0xff]  }
  0x18   :  { %881 = vmatpush3.bf16.msra.mxu0 %v1064_v22  ;;  %v64_v18 = vld [vmem:[%s1602_s0 + $0x170] sm:$0xff]  ;;  %v61_v20 = vld [vmem:[%s1602_s0 + $0x158] sm:$0xff]  ;;  %v66_v21 = vld [vmem:[%s1602_s0 + $0x180] sm:$0xff]  ;;  %v187_v22 = vpack.c.bf16 %v53_v14, %v48_v13 }
  0x19   :  { %945 = vmatpush3.bf16.msra.mxu1 %v1065_v23  ;;  %882 = vmatprep.subr.bf16.mxu0 %v1066_v24  ;;  %v189_v23 = vpack.c.bf16 %v55_v16, %v50_v15  ;;  %v193_v24 = vpack.c.bf16 %v64_v18, %v59_v17  ;;  %v71_v32 = vld [vmem:[%s1602_s0 + $0x1a8] sm:$0xff]  ;;  %v76_v33 = vld [vmem:[%s1602_s0 + $0x1d0] sm:$0xff]  ;;  %v73_v39 = vld [vmem:[%s1602_s0 + $0x1b8] sm:$0xff] }
  0x1a   :  { %946 = vmatprep.subr.bf16.mxu1 %v1067_v25  ;;  %v195_v25 = vpack.c.bf16 %v66_v21, %v61_v20  ;;  %v200_v37 = vpack.c.bf16 %v76_v33, %v71_v32  ;;  %v68_v38 = vld [vmem:[%s1602_s0 + $0x190] sm:$0xff]  ;;  %v75_v41 = vld [vmem:[%s1602_s0 + $0x1c8] sm:$0xff]  ;;  %v86_v45 = vld [vmem:[%s1602_s0 + $0x220] sm:$0xff] }
  0x1b   :  { %v79_v42 = vld [vmem:[%s1602_s0 + $0x1e8] sm:$0xff]  ;;  %v197_v46 = vpack.c.bf16 %v73_v39, %v68_v38  ;;  %v80_v52 = vld [vmem:[%s1602_s0 + $0x1f0] sm:$0xff]  ;;  %v85_v53 = vld [vmem:[%s1602_s0 + $0x218] sm:$0xff] }
  0x1c   :  { %883 = vmatpush3.bf16.msra.mxu0 %v1068_v26  ;;  %v58_v26 = vld [vmem:[%s1602_s0 + $0x140] sm:$0xff]  ;;  %v83_v51 = vld [vmem:[%s1602_s0 + $0x208] sm:$0xff]  ;;  %v89_v54 = vld [vmem:[%s1602_s0 + $0x238] sm:$0xff] }
  0x1d   :  { %947 = vmatpush3.bf16.msra.mxu1 %v1069_v27  ;;  %884 = vmatprep.subr.bf16.mxu0 %v1070_v28  ;;  %v63_v27 = vld [vmem:[%s1602_s0 + $0x168] sm:$0xff]  ;;  %v60_v28 = vld [vmem:[%s1602_s0 + $0x150] sm:$0xff]  ;;  %v94_v55 = vld [vmem:[%s1602_s0 + $0x260] sm:$0xff] }
  0x1e   :  { %948 = vmatprep.subr.bf16.mxu1 %v1071_v29  ;;  %v65_v29 = vld [vmem:[%s1602_s0 + $0x178] sm:$0xff]  ;;  %v192_v34 = vpack.c.bf16 %v63_v27, %v58_v26  ;;  %v91_v56 = vld [vmem:[%s1602_s0 + $0x248] sm:$0xff]  ;;  %v96_v57 = vld [vmem:[%s1602_s0 + $0x270] sm:$0xff] }
  0x1f   :  { %v194_v35 = vpack.c.bf16 %v65_v29, %v60_v28  ;;  %v90_v0 = vld [vmem:[%s1602_s0 + $0x240] sm:$0xff]  ;;  %v95_v1 = vld [vmem:[%s1602_s0 + $0x268] sm:$0xff]  ;;  %v77_v13 = vld [vmem:[%s1602_s0 + $0x1d8] sm:$0xff] }
  0x20   :  { %885 = vmatpush3.bf16.msra.mxu0 %v1072_v30  ;;  %v69_v30 = vld [vmem:[%s1602_s0 + $0x198] sm:$0xff]  ;;  %v22_v2 = vld [vmem:[%s1602_s0 + $0x20] sm:$0xff]  ;;  %v27_v3 = vld [vmem:[%s1602_s0 + $0x48] sm:$0xff]  ;;  %v209_v7 = vpack.c.bf16 %v95_v1, %v90_v0 }
  0x21   :  { %949 = vmatpush3.bf16.msra.mxu1 %v1073_v31  ;;  %1010 = vmatprep.subr.bf16.mxu0 %v1074_v44  ;;  %v74_v31 = vld [vmem:[%s1602_s0 + $0x1c0] sm:$0xff]  ;;  %v67_v5 = vld [vmem:[%s1602_s0 + $0x188] sm:$0xff] }
  0x22   :  { %1034 = vmatprep.subr.bf16.mxu1 %v1074_v44  ;;  %v198_v36 = vpack.c.bf16 %v74_v31, %v69_v30  ;;  %v62_v4 = vld [vmem:[%s1602_s0 + $0x160] sm:$0xff]  ;;  %v47_v15 = vld [vmem:[%s1602_s0 + $0xe8] sm:$0xff] }
  0x23   :  { %486 = vmatmul.mubr.bf16.vlgmr.msra.gmra.mrb[0].mxu0 %v172_v40  ;;  %v70_v40 = vld [vmem:[%s1602_s0 + $0x1a0] sm:$0xff]  ;;  %v87_v17 = vld [vmem:[%s1602_s0 + $0x228] sm:$0xff] }
  0x24   :  { %583 = vmatmul.mubr.bf16.vlgmr.msra.gmra.mrb[0].mxu1 %v174_v43  ;;  %1011 = vmatpush3.bf16.msra.mxu0 %v1074_v44  ;;  %v84_v43 = vld [vmem:[%s1602_s0 + $0x210] sm:$0xff]  ;;  %v199_v47 = vpack.c.bf16 %v75_v41, %v70_v40  ;;  %v42_v14 = vld [vmem:[%s1602_s0 + $0xc0] sm:$0xff] }
  0x25   :  { %1038 = vmatpush3.bf16.msra.mxu1 %v1074_v44  ;;  %493 = vmatprep.mubr.bf16.mxu0 %v178_v49  ;;  %v81_v44 = vld [vmem:[%s1602_s0 + $0x1f8] sm:$0xff]  ;;  %v203_v48 = vpack.c.bf16 %v84_v43, %v79_v42  ;;  %v82_v16 = vld [vmem:[%s1602_s0 + $0x200] sm:$0xff]  ;;  %v186_v20 = vpack.c.bf16 %v47_v15, %v42_v14 }
  0x26   :  { %590 = vmatprep.mubr.bf16.mxu1 %v180_v50  ;;  %1012 = vmatprep.subr.bf16.mxu0 %v1075_v62  ;;  %v205_v49 = vpack.c.bf16 %v86_v45, %v81_v44  ;;  %v78_v50 = vld [vmem:[%s1602_s0 + $0x1e0] sm:$0xff]  ;;  %v206_v21 = vpack.c.bf16 %v87_v17, %v82_v16 }
  0x27   :  { %1035 = vmatprep.subr.bf16.mxu1 %v1075_v62  ;;  %v202_v58 = vpack.c.bf16 %v83_v51, %v78_v50 }
  0x28   :  { %1013 = vmatpush3.bf16.msra.mxu0 %v1075_v62 }
  0x29   :  { %1039 = vmatpush3.bf16.msra.mxu1 %v1075_v62  ;;  %1014 = vmatprep.subr.bf16.mxu0 %v1076_v9  ;;  %v88_v62 = vld [vmem:[%s1602_s0 + $0x230] sm:$0xff] }
  0x2a   :  { %1036 = vmatprep.subr.bf16.mxu1 %v1076_v9 }
  0x2b   :  { %494 = vmatmul.mubr.bf16.gmra.mrb[4].mxu0 %v177_v59  ;;  %v204_v59 = vpack.c.bf16 %v85_v53, %v80_v52 }
  0x2c   :  { %591 = vmatmul.mubr.bf16.gmra.mrb[4].mxu1 %v179_v60  ;;  %501 = vmatprep.mubr.bf16.mxu0 %v183_v61  ;;  %v208_v60 = vpack.c.bf16 %v94_v55, %v89_v54  ;;  %v210_v61 = vpack.c.bf16 %v96_v57, %v91_v56 }
  0x2d   :  { %598 = vmatprep.mubr.bf16.mxu1 %v185_v63  ;;  %1015 = vmatpush3.bf16.msra.mxu0 %v1076_v9  ;;  %v93_v63 = vld [vmem:[%s1602_s0 + $0x258] sm:$0xff] }
  0x2e   :  { %1040 = vmatpush3.bf16.msra.mxu1 %v1076_v9  ;;  %1016 = vmatprep.subr.bf16.mxu0 %v1077_v19  ;;  %v207_v6 = vpack.c.bf16 %v93_v63, %v88_v62  ;;  %v196_v9 = vpack.c.bf16 %v67_v5, %v62_v4 }
  0x2f   :  { %1037 = vmatprep.subr.bf16.mxu1 %v1077_v19 }
  0x31   :  { %1017 = vmatpush3.bf16.msra.mxu0 %v1077_v19 }
  0x32   :  { %1041 = vmatpush3.bf16.msra.mxu1 %v1077_v19 }
  0x33   :  { %502 = vmatmul.mubr.bf16.gmra.mrb[8].mxu0 %v182_v8  ;;  %v176_v8 = vpack.c.bf16 %v27_v3, %v22_v2 }
  0x34   :  { %599 = vmatmul.mubr.bf16.gmra.mrb[8].mxu1 %v184_v10  ;;  %509 = vmatprep.mubr.bf16.mxu0 %v188_v11  ;;  %v32_v10 = vld [vmem:[%s1602_s0 + $0x70] sm:$0xff]  ;;  %v37_v11 = vld [vmem:[%s1602_s0 + $0x98] sm:$0xff] }
  0x35   :  { %606 = vmatprep.mubr.bf16.mxu1 %v190_v12  ;;  %v72_v12 = vld [vmem:[%s1602_s0 + $0x1b0] sm:$0xff]  ;;  %v181_v18 = vpack.c.bf16 %v37_v11, %v32_v10 }
  0x36   :  { %v201_v19 = vpack.c.bf16 %v77_v13, %v72_v12 }
  0x3b   :  { %510 = vmatmul.mubr.bf16.gmra.mrb[12].mxu0 %v187_v22  ;;  %v52_v22 = vld [vmem:[%s1602_s0 + $0x110] sm:$0xff] }
  0x3c   :  { %607 = vmatmul.mubr.bf16.gmra.mrb[12].mxu1 %v189_v23  ;;  %517 = vmatprep.mubr.bf16.mxu0 %v193_v24  ;;  %v57_v23 = vld [vmem:[%s1602_s0 + $0x138] sm:$0xff]  ;;  %v92_v24 = vld [vmem:[%s1602_s0 + $0x250] sm:$0xff] }
  0x3d   :  { %614 = vmatprep.mubr.bf16.mxu1 %v195_v25  ;;  %v97_v25 = vld [vmem:[%s1602_s0 + $0x278] sm:$0xff]  ;;  %v191_v26 = vpack.c.bf16 %v57_v23, %v52_v22 }
  0x3e   :  { %v211_v27 = vpack.c.bf16 %v97_v25, %v92_v24 }
  0x43   :  { %518 = vmatmul.mubr.bf16.gmra.mrb[16].mxu0 %v192_v34 }
  0x44   :  { %615 = vmatmul.mubr.bf16.gmra.mrb[16].mxu1 %v194_v35  ;;  %525 = vmatprep.mubr.bf16.mxu0 %v198_v36 }
  0x45   :  { %622 = vmatprep.mubr.bf16.mxu1 %v200_v37 }
  0x4b   :  { %526 = vmatmul.mubr.bf16.gmra.mrb[20].mxu0 %v197_v46 }
  0x4c   :  { %623 = vmatmul.mubr.bf16.gmra.mrb[20].mxu1 %v199_v47  ;;  %533 = vmatprep.mubr.bf16.mxu0 %v203_v48 }
  0x4d   :  { %630 = vmatprep.mubr.bf16.mxu1 %v205_v49 }
  0x53   :  { %534 = vmatmul.mubr.bf16.gmra.mrb[24].mxu0 %v202_v58 }
  0x54   :  { %631 = vmatmul.mubr.bf16.gmra.mrb[24].mxu1 %v204_v59  ;;  %541 = vmatprep.mubr.bf16.mxu0 %v208_v60 }
  0x55   :  { %638 = vmatprep.mubr.bf16.mxu1 %v210_v61 }
  0x5b   :  { %542 = vmatmul.mubr.bf16.gmra.mrb[28].mxu0 %v207_v6 }
  0x5c   :  { %639 = vmatmul.mubr.bf16.gmra.mrb[28].mxu1 %v209_v7  ;;  %1018 = vmatprep.mubr.msk.bf16.mxu0 %vm428_vm0, %v176_v8 }
  0x5d   :  { %1026 = vmatprep.mubr.msk.bf16.mxu1 %vm428_vm0, %v196_v9 }
  0x63   :  { %1019 = vmatmul.mubr.msk.bf16.vlgmr.msra.gmra.mrb[32].mxu0 %vm428_vm0, %v181_v18 }
  0x64   :  { %1027 = vmatmul.mubr.msk.bf16.vlgmr.msra.gmra.mrb[32].mxu1 %vm428_vm0, %v201_v19  ;;  %1022 = vmatprep.mubr.msk.bf16.mxu0 %vm428_vm0, %v186_v20 }
  0x65   :  { %1030 = vmatprep.mubr.msk.bf16.mxu1 %vm428_vm0, %v206_v21 }
  0x6b   :  { %1023 = vmatmul.mubr.msk.bf16.gmra.mrb[36].mxu0 %vm428_vm0, %v191_v26 }
  0x6c   :  { %1031 = vmatmul.mubr.msk.bf16.gmra.mrb[36].mxu1 %vm428_vm0, %v211_v27 }
  0xf6   :  { %v886_v28 = vpop.f32.mrb[0].mxu0 }
  0xf7   :  { %v950_v29 = vpop.f32.mrb[0].mxu1  ;;  %v887_v30 = vpop.f32.mrb[1].mxu0 }
  0xf8   :  { %v888_v31 = vadd.f32 %v887_v30, %v886_v28  ;;  %v951_v32 = vpop.f32.mrb[1].mxu1  ;;  %v889_v33 = vpop.f32.mrb[2].mxu0 }
  0xf9   :  { %v952_v34 = vadd.f32 %v951_v32, %v950_v29  ;;  %v953_v35 = vpop.f32.mrb[2].mxu1  ;;  %v890_v36 = vpop.f32.mrb[3].mxu0 }
  0xfa   :  { %v891_v37 = vadd.f32 %v890_v36, %v889_v33  ;;  %v954_v38 = vpop.f32.mrb[3].mxu1 }
  0xfb   :  { %v955_v39 = vadd.f32 %v954_v38, %v953_v35  ;;  %v1459_v40 = vadd.f32 %v952_v34, %v888_v31 }
  0xfd   :  { %v1461_v41 = vadd.f32 %v955_v39, %v891_v37 }
  0xfe   :  { %v892_v42 = vpop.f32.mrb[4].mxu0 }
  0xff   :  { %v956_v43 = vpop.f32.mrb[4].mxu1  ;;  %v893_v44 = vpop.f32.mrb[5].mxu0 }
 0x100   :  { %v894_v45 = vadd.f32 %v893_v44, %v892_v42  ;;  %v957_v46 = vpop.f32.mrb[5].mxu1  ;;  %v895_v47 = vpop.f32.mrb[6].mxu0 }
 0x101   :  { %v958_v48 = vadd.f32 %v957_v46, %v956_v43  ;;  %v959_v49 = vpop.f32.mrb[6].mxu1  ;;  %v896_v50 = vpop.f32.mrb[7].mxu0 }
 0x102   :  { %v897_v51 = vadd.f32 %v896_v50, %v895_v47  ;;  %v960_v52 = vpop.f32.mrb[7].mxu1 }
 0x103   :  { %v961_v53 = vadd.f32 %v960_v52, %v959_v49  ;;  %v1463_v54 = vadd.f32 %v958_v48, %v894_v45 }
 0x105   :  { %v1465_v55 = vadd.f32 %v961_v53, %v897_v51 }
 0x106   :  { %v898_v56 = vpop.f32.mrb[8].mxu0 }
 0x107   :  { %v962_v57 = vpop.f32.mrb[8].mxu1  ;;  %v899_v58 = vpop.f32.mrb[9].mxu0 }
 0x108   :  { %v900_v59 = vadd.f32 %v899_v58, %v898_v56  ;;  %v963_v60 = vpop.f32.mrb[9].mxu1  ;;  %v901_v61 = vpop.f32.mrb[10].mxu0 }
 0x109   :  { %v964_v62 = vadd.f32 %v963_v60, %v962_v57  ;;  %v965_v63 = vpop.f32.mrb[10].mxu1  ;;  %v902_v0 = vpop.f32.mrb[11].mxu0 }
 0x10a   :  { %v903_v1 = vadd.f32 %v902_v0, %v901_v61  ;;  %v966_v2 = vpop.f32.mrb[11].mxu1 }
 0x10b   :  { %v967_v3 = vadd.f32 %v966_v2, %v965_v63  ;;  %v1467_v4 = vadd.f32 %v964_v62, %v900_v59 }
 0x10d   :  { %v1469_v5 = vadd.f32 %v967_v3, %v903_v1 }
 0x10e   :  { %v904_v6 = vpop.f32.mrb[12].mxu0 }
 0x10f   :  { %v968_v7 = vpop.f32.mrb[12].mxu1  ;;  %v905_v8 = vpop.f32.mrb[13].mxu0 }
 0x110   :  { %v906_v9 = vadd.f32 %v905_v8, %v904_v6  ;;  %v969_v10 = vpop.f32.mrb[13].mxu1  ;;  %v907_v11 = vpop.f32.mrb[14].mxu0 }
 0x111   :  { %v970_v12 = vadd.f32 %v969_v10, %v968_v7  ;;  %v971_v13 = vpop.f32.mrb[14].mxu1  ;;  %v908_v14 = vpop.f32.mrb[15].mxu0 }
 0x112   :  { %v909_v15 = vadd.f32 %v908_v14, %v907_v11  ;;  %v972_v16 = vpop.f32.mrb[15].mxu1 }
 0x113   :  { %v973_v17 = vadd.f32 %v972_v16, %v971_v13  ;;  %v1471_v18 = vadd.f32 %v970_v12, %v906_v9 }
 0x115   :  { %v1473_v19 = vadd.f32 %v973_v17, %v909_v15 }
 0x116   :  { %v910_v20 = vpop.f32.mrb[16].mxu0 }
 0x117   :  { %v974_v21 = vpop.f32.mrb[16].mxu1  ;;  %v911_v22 = vpop.f32.mrb[17].mxu0 }
 0x118   :  { %v912_v23 = vadd.f32 %v911_v22, %v910_v20  ;;  %v975_v24 = vpop.f32.mrb[17].mxu1  ;;  %v913_v25 = vpop.f32.mrb[18].mxu0  ;;  %v1486_v20 = vld [vmem:[%s1603_s2] ss:$0 sm:$0xff] }
 0x119   :  { %v976_v26 = vadd.f32 %v975_v24, %v974_v21  ;;  %v977_v27 = vpop.f32.mrb[18].mxu1  ;;  %v914_v28 = vpop.f32.mrb[19].mxu0 }
 0x11a   :  { %v915_v29 = vadd.f32 %v914_v28, %v913_v25  ;;  %v978_v30 = vpop.f32.mrb[19].mxu1  ;;  %v1492_v25 = vld [vmem:[%s1604_s3] ss:$0 sm:$0xff] }
 0x11b   :  { %v979_v31 = vadd.f32 %v978_v30, %v977_v27  ;;  %v617_v32 = vadd.f32 %v976_v26, %v912_v23 }
 0x11d   :  { %v1475_v33 = vadd.f32 %v979_v31, %v915_v29 }
 0x11e   :  { %v916_v34 = vpop.f32.mrb[20].mxu0 }
 0x11f   :  { %v980_v35 = vpop.f32.mrb[20].mxu1  ;;  %v917_v36 = vpop.f32.mrb[21].mxu0 }
 0x120   :  { %v918_v37 = vadd.f32 %v917_v36, %v916_v34  ;;  %v981_v38 = vpop.f32.mrb[21].mxu1  ;;  %v919_v39 = vpop.f32.mrb[22].mxu0 }
 0x121   :  { %v982_v42 = vadd.f32 %v981_v38, %v980_v35  ;;  %v983_v43 = vpop.f32.mrb[22].mxu1  ;;  %v920_v44 = vpop.f32.mrb[23].mxu0 }
 0x122   :  { %v921_v45 = vadd.f32 %v920_v44, %v919_v39  ;;  %v984_v46 = vpop.f32.mrb[23].mxu1 }
 0x123   :  { %v985_v47 = vadd.f32 %v984_v46, %v983_v43  ;;  %v625_v48 = vadd.f32 %v982_v42, %v918_v37 }
 0x125   :  { %v628_v49 = vadd.f32 %v985_v47, %v921_v45 }
 0x126   :  { %v922_v50 = vpop.f32.mrb[24].mxu0 }
 0x127   :  { %v986_v51 = vpop.f32.mrb[24].mxu1  ;;  %v923_v52 = vpop.f32.mrb[25].mxu0 }
 0x128   :  { %v924_v53 = vadd.f32 %v923_v52, %v922_v50  ;;  %v987_v56 = vpop.f32.mrb[25].mxu1  ;;  %v925_v57 = vpop.f32.mrb[26].mxu0 }
 0x129   :  { %v988_v58 = vadd.f32 %v987_v56, %v986_v51  ;;  %v989_v59 = vpop.f32.mrb[26].mxu1  ;;  %v926_v60 = vpop.f32.mrb[27].mxu0 }
 0x12a   :  { %v927_v61 = vadd.f32 %v926_v60, %v925_v57  ;;  %v990_v62 = vpop.f32.mrb[27].mxu1 }
 0x12b   :  { %v991_v63 = vadd.f32 %v990_v62, %v989_v59  ;;  %v1477_v0 = vadd.f32 %v988_v58, %v924_v53 }
 0x12d   :  { %v1479_v1 = vadd.f32 %v991_v63, %v927_v61 }
 0x12e   :  { %v928_v2 = vpop.f32.mrb[28].mxu0 }
 0x12f   :  { %v992_v3 = vpop.f32.mrb[28].mxu1  ;;  %v929_v6 = vpop.f32.mrb[29].mxu0 }
 0x130   :  { %v930_v7 = vadd.f32 %v929_v6, %v928_v2  ;;  %v993_v8 = vpop.f32.mrb[29].mxu1  ;;  %v931_v9 = vpop.f32.mrb[30].mxu0 }
 0x131   :  { %v994_v10 = vadd.f32 %v993_v8, %v992_v3  ;;  %v995_v11 = vpop.f32.mrb[30].mxu1  ;;  %v932_v12 = vpop.f32.mrb[31].mxu0 }
 0x132   :  { %v933_v13 = vadd.f32 %v932_v12, %v931_v9  ;;  %v996_v14 = vpop.f32.mrb[31].mxu1 }
 0x133   :  { %v997_v15 = vadd.f32 %v996_v14, %v995_v11  ;;  %v641_v16 = vadd.f32 %v994_v10, %v930_v7 }
 0x135   :  { %v1481_v17 = vadd.f32 %v997_v15, %v933_v13 }
 0x136   :  { %v1020_v21 = vpop.f32.mrb[32].mxu0 }
 0x137   :  { %v690_v22 = vadd.f32 %v1020_v21, %v1463_v54  ;;  %v1028_v23 = vpop.f32.mrb[32].mxu1  ;;  %v681_v24 = vpop.f32.mrb[33].mxu0 }
 0x138   :  { %v722_v26 = vadd.f32 %v1028_v23, %v625_v48  ;;  %v682_v27 = vadd.f32 %v681_v24, %v1459_v40  ;;  %v713_v28 = vpop.f32.mrb[33].mxu1  ;;  %v1021_v29 = vpop.f32.mrb[34].mxu0 }
 0x139   :  { %v752_v30 = vmul.f32 %v1486_v20, %v690_v22  ;;  %v714_v31 = vadd.f32 %v713_v28, %v617_v32  ;;  %v693_v34 = vadd.f32 %v1021_v29, %v1465_v55  ;;  %v1029_v35 = vpop.f32.mrb[34].mxu1  ;;  %v684_v36 = vpop.f32.mrb[35].mxu0 }
 0x13a   :  { %v760_v54 = vmul.f32 %v1486_v20, %v722_v26  ;;  %v750_v37 = vmul.f32 %v1486_v20, %v682_v27  ;;  %v725_v38 = vadd.f32 %v1029_v35, %v628_v49  ;;  %v685_v39 = vadd.f32 %v684_v36, %v1461_v41  ;;  %v716_v42 = vpop.f32.mrb[35].mxu1 }
 0x13b   :  { %v774_v43 = vadd.f32 %v1492_v25, %v752_v30  ;;  %v758_v40 = vmul.f32 %v1486_v20, %v714_v31  ;;  %v753_v44 = vmul.f32 %v1486_v20, %v693_v34  ;;  %v717_v32 = vadd.f32 %v716_v42, %v1475_v33 }
 0x13c   :  { %v782_v55 = vadd.f32 %v1492_v25, %v760_v54  ;;  %v772_v45 = vadd.f32 %v1492_v25, %v750_v37  ;;  %v761_v46 = vmul.f32 %v1486_v20, %v725_v38  ;;  %v751_v47 = vmul.f32 %v1486_v20, %v685_v39 }
 0x13d   :  { %v790_v48 = vmax.f32 %v774_v43, 0.0  ;;  %v780_v41 = vadd.f32 %v1492_v25, %v758_v40  ;;  %v775_v49 = vadd.f32 %v1492_v25, %v753_v44  ;;  %v759_v50 = vmul.f32 %v1486_v20, %v717_v32 }
 0x13e   :  { %v798_v51 = vmax.f32 %v782_v55, 0.0  ;;  %v788_v52 = vmax.f32 %v772_v45, 0.0  ;;  %v783_v53 = vadd.f32 %v1492_v25, %v761_v46  ;;  %v773_v33 = vadd.f32 %v1492_v25, %v751_v47  ;;  %v1024_v56 = vpop.f32.mrb[36].mxu0 }
 0x13f   :  { %806 = vst.msk [vmem:[%s1605_s4 + $0x10] sm:$0xff] %vm428_vm0, %v790_v48  ;;  %v796_v57 = vmax.f32 %v780_v41, 0.0  ;;  %v791_v58 = vmax.f32 %v775_v49, 0.0  ;;  %v781_v59 = vadd.f32 %v1492_v25, %v759_v50  ;;  %v706_v60 = vadd.f32 %v1024_v56, %v1471_v18  ;;  %v1032_v61 = vpop.f32.mrb[36].mxu1  ;;  %v697_v62 = vpop.f32.mrb[37].mxu0 }
 0x140   :  { %814 = vst.msk [vmem:[%s1605_s4 + $0x50] sm:$0xff] %vm428_vm0, %v798_v51  ;;  %804 = vst.msk [vmem:[%s1605_s4] sm:$0xff] %vm428_vm0, %v788_v52  ;;  %v799_v63 = vmax.f32 %v783_v53, 0.0  ;;  %v789_v2 = vmax.f32 %v773_v33, 0.0  ;;  %v738_v3 = vadd.f32 %v1032_v61, %v641_v16  ;;  %v698_v6 = vadd.f32 %v697_v62, %v1467_v4  ;;  %v729_v7 = vpop.f32.mrb[37].mxu1  ;;  %v1025_v8 = vpop.f32.mrb[38].mxu0 }
 0x141   :  { %812 = vst.msk [vmem:[%s1605_s4 + $0x40] sm:$0xff] %vm428_vm0, %v796_v57  ;;  %807 = vst.msk [vmem:[%s1605_s4 + $0x18] sm:$0xff] %vm428_vm0, %v791_v58  ;;  %v797_v18 = vmax.f32 %v781_v59, 0.0  ;;  %v756_v9 = vmul.f32 %v1486_v20, %v706_v60  ;;  %v730_v10 = vadd.f32 %v729_v7, %v1477_v0  ;;  %v709_v11 = vadd.f32 %v1025_v8, %v1473_v19  ;;  %v1033_v4 = vpop.f32.mrb[38].mxu1  ;;  %v700_v12 = vpop.f32.mrb[39].mxu0 }
 0x142   :  { %815 = vst.msk [vmem:[%s1605_s4 + $0x58] sm:$0xff] %vm428_vm0, %v799_v63  ;;  %805 = vst.msk [vmem:[%s1605_s4 + $0x8] sm:$0xff] %vm428_vm0, %v789_v2  ;;  %v764_v13 = vmul.f32 %v1486_v20, %v738_v3  ;;  %v754_v14 = vmul.f32 %v1486_v20, %v698_v6  ;;  %v741_v0 = vadd.f32 %v1033_v4, %v1481_v17  ;;  %v732_v15 = vpop.f32.mrb[39].mxu1 }
 0x143   :  { %v701_v19 = vadd.f32 %v700_v12, %v1469_v5  ;;  %813 = vst.msk [vmem:[%s1605_s4 + $0x48] sm:$0xff] %vm428_vm0, %v797_v18  ;;  %v778_v16 = vadd.f32 %v1492_v25, %v756_v9  ;;  %v762_v21 = vmul.f32 %v1486_v20, %v730_v10  ;;  %v757_v22 = vmul.f32 %v1486_v20, %v709_v11 }
 0x144   :  { %v733_v23 = vadd.f32 %v732_v15, %v1479_v1  ;;  %v786_v24 = vadd.f32 %v1492_v25, %v764_v13  ;;  %v776_v17 = vadd.f32 %v1492_v25, %v754_v14  ;;  %v765_v5 = vmul.f32 %v1486_v20, %v741_v0 }
 0x145   :  { %v755_v26 = vmul.f32 %v1486_v20, %v701_v19  ;;  %v794_v27 = vmax.f32 %v778_v16, 0.0  ;;  %v784_v28 = vadd.f32 %v1492_v25, %v762_v21  ;;  %v779_v29 = vadd.f32 %v1492_v25, %v757_v22 }
 0x146   :  { %v763_v30 = vmul.f32 %v1486_v20, %v733_v23  ;;  %v802_v31 = vmax.f32 %v786_v24, 0.0  ;;  %v792_v34 = vmax.f32 %v776_v17, 0.0  ;;  %v787_v35 = vadd.f32 %v1492_v25, %v765_v5 }
 0x147   :  { %v777_v1 = vadd.f32 %v1492_v25, %v755_v26  ;;  %810 = vst.msk [vmem:[%s1605_s4 + $0x30] sm:$0xff] %vm428_vm0, %v794_v27  ;;  %v800_v36 = vmax.f32 %v784_v28, 0.0  ;;  %v795_v54 = vmax.f32 %v779_v29, 0.0 }
 0x148   :  { %v785_v37 = vadd.f32 %v1492_v25, %v763_v30  ;;  %818 = vst.msk [vmem:[%s1605_s4 + $0x70] sm:$0xff] %vm428_vm0, %v802_v31  ;;  %808 = vst.msk [vmem:[%s1605_s4 + $0x20] sm:$0xff] %vm428_vm0, %v792_v34  ;;  %v803_v20 = vmax.f32 %v787_v35, 0.0 }
 0x149   :  { %v793_v38 = vmax.f32 %v777_v1, 0.0  ;;  %816 = vst.msk [vmem:[%s1605_s4 + $0x60] sm:$0xff] %vm428_vm0, %v800_v36  ;;  %811 = vst.msk [vmem:[%s1605_s4 + $0x38] sm:$0xff] %vm428_vm0, %v795_v54 }
 0x14a   :  { %v801_v25 = vmax.f32 %v785_v37, 0.0  ;;  %819 = vst.msk [vmem:[%s1605_s4 + $0x78] sm:$0xff] %vm428_vm0, %v803_v20 }
 0x14b   :  { %809 = vst.msk [vmem:[%s1605_s4 + $0x28] sm:$0xff] %vm428_vm0, %v793_v38 }
 0x14c   :  { %817 = vst.msk [vmem:[%s1605_s4 + $0x68] sm:$0xff] %vm428_vm0, %v801_v25 }

// kernel: _lambda_.52
= control target key start
LH: loop header
LB: loop body
LE: loop exit
PB: predicated region body
PF: predicated region fallthrough
CT: control target
= control target key end

     0   :  { %s430_s1 = inlined_call_operand.vmem [shape: bf16[256,128], index: 1, kind: input, shape index: {}]   ;;  %s431_s0 = inlined_call_operand.vmem [shape: f32[32,256], index: 0, kind: input, shape index: {}]   ;;  %s432_s2 = inlined_call_operand.vmem [shape: f32[1,128], index: 2, kind: input, shape index: {}]   ;;  %s433_s3 = inlined_call_operand.vmem [shape: f32[1,128], index: 3, kind: input, shape index: {}]   ;;  %s434_s4 = inlined_call_operand.vmem [shape: f32[32,128], index: 4, kind: output, shape index: {}]  }
   0x1   :  { %v299_v0 = vld [vmem:[%s430_s1 + $0x40] sm:$0xff]   ;;  %v301_v2 = vld [vmem:[%s430_s1 + $0x48] sm:$0xff]   ;;  %v303_v4 = vld [vmem:[%s430_s1 + $0x50] sm:$0xff]  }
   0x2   :  { %v300_v1 = vld [vmem:[%s430_s1] sm:$0xff]   ;;  %255 = vmatprep.subr.bf16.mxu0 %v299_v0  ;;  %283 = vmatprep.subr.bf16.mxu1 %v299_v0  ;;  %v302_v3 = vld [vmem:[%s430_s1 + $0x8] sm:$0xff]   ;;  %v304_v5 = vld [vmem:[%s430_s1 + $0x10] sm:$0xff]  }
   0x3   :  { %256 = vmatpush3.bf16.msra.mxu0 %v300_v1  ;;  %291 = vmatpush3.bf16.msra.mxu1 %v300_v1  ;;  %v305_v6 = vld [vmem:[%s430_s1 + $0x58] sm:$0xff]   ;;  %v307_v8 = vld [vmem:[%s430_s1 + $0x60] sm:$0xff]   ;;  %v309_v10 = vld [vmem:[%s430_s1 + $0x68] sm:$0xff]  }
   0x4   :  { %257 = vmatprep.subr.bf16.mxu0 %v301_v2  ;;  %284 = vmatprep.subr.bf16.mxu1 %v301_v2  ;;  %v306_v7 = vld [vmem:[%s430_s1 + $0x18] sm:$0xff]   ;;  %v308_v9 = vld [vmem:[%s430_s1 + $0x20] sm:$0xff]   ;;  %v19_v11 = vld [vmem:[%s431_s0 + $0x8] sm:$0xff] }
   0x5   :  { %v21_v12 = vld [vmem:[%s431_s0 + $0x18] sm:$0xff]  ;;  %v23_v13 = vld [vmem:[%s431_s0 + $0x28] sm:$0xff]  ;;  %v311_v18 = vld [vmem:[%s430_s1 + $0x70] sm:$0xff]  }
   0x6   :  { %v61_v14 = vpack.c.bf16 %v21_v12, %v19_v11  ;;  %v25_v15 = vld [vmem:[%s431_s0 + $0x38] sm:$0xff]  ;;  %v310_v17 = vld [vmem:[%s430_s1 + $0x28] sm:$0xff]   ;;  %v312_v19 = vld [vmem:[%s430_s1 + $0x30] sm:$0xff]  }
   0x7   :  { %258 = vmatpush3.bf16.msra.mxu0 %v302_v3  ;;  %292 = vmatpush3.bf16.msra.mxu1 %v302_v3  ;;  %v63_v16 = vpack.c.bf16 %v25_v15, %v23_v13  ;;  %v313_v20 = vld [vmem:[%s430_s1 + $0x78] sm:$0xff]   ;;  %v18_v22 = vld [vmem:[%s431_s0] sm:$0xff]  ;;  %v20_v23 = vld [vmem:[%s431_s0 + $0x10] sm:$0xff] }
   0x8   :  { %259 = vmatprep.subr.bf16.mxu0 %v303_v4  ;;  %285 = vmatprep.subr.bf16.mxu1 %v303_v4  ;;  %v314_v21 = vld [vmem:[%s430_s1 + $0x38] sm:$0xff]   ;;  %v22_v24 = vld [vmem:[%s431_s0 + $0x20] sm:$0xff]  ;;  %v24_v25 = vld [vmem:[%s431_s0 + $0x30] sm:$0xff]  ;;  %v60_v26 = vpack.c.bf16 %v20_v23, %v18_v22 }
   0x9   :  { %192 = vmatprep.mubr.bf16.mxu0 %v61_v14  ;;  %200 = vmatprep.mubr.bf16.mxu1 %v63_v16  ;;  %v62_v27 = vpack.c.bf16 %v24_v25, %v22_v24  ;;  %v253_v30 = vld [vmem:[%s432_s2] ss:$0 sm:$0xff] }
   0xa   :  { %v254_v37 = vld [vmem:[%s433_s3] ss:$0 sm:$0xff] }
   0xb   :  { %260 = vmatpush3.bf16.msra.mxu0 %v304_v5  ;;  %293 = vmatpush3.bf16.msra.mxu1 %v304_v5 }
   0xc   :  { %261 = vmatprep.subr.bf16.mxu0 %v305_v6  ;;  %286 = vmatprep.subr.bf16.mxu1 %v305_v6 }
   0xf   :  { %262 = vmatpush3.bf16.msra.mxu0 %v306_v7  ;;  %294 = vmatpush3.bf16.msra.mxu1 %v306_v7 }
  0x10   :  { %263 = vmatprep.subr.bf16.mxu0 %v307_v8  ;;  %287 = vmatprep.subr.bf16.mxu1 %v307_v8 }
  0x13   :  { %264 = vmatpush3.bf16.msra.mxu0 %v308_v9  ;;  %295 = vmatpush3.bf16.msra.mxu1 %v308_v9 }
  0x14   :  { %265 = vmatprep.subr.bf16.mxu0 %v309_v10  ;;  %288 = vmatprep.subr.bf16.mxu1 %v309_v10 }
  0x17   :  { %266 = vmatpush3.bf16.msra.mxu0 %v310_v17  ;;  %296 = vmatpush3.bf16.msra.mxu1 %v310_v17 }
  0x18   :  { %267 = vmatprep.subr.bf16.mxu0 %v311_v18  ;;  %289 = vmatprep.subr.bf16.mxu1 %v311_v18 }
  0x1b   :  { %268 = vmatpush3.bf16.msra.mxu0 %v312_v19  ;;  %297 = vmatpush3.bf16.msra.mxu1 %v312_v19 }
  0x1c   :  { %269 = vmatprep.subr.bf16.mxu0 %v313_v20  ;;  %290 = vmatprep.subr.bf16.mxu1 %v313_v20 }
  0x1f   :  { %270 = vmatpush3.bf16.msra.mxu0 %v314_v21  ;;  %298 = vmatpush3.bf16.msra.mxu1 %v314_v21 }
  0x22   :  { %193 = vmatmul.mubr.bf16.vlgmr.msra.gmra.mrb[0].mxu0 %v60_v26  ;;  %201 = vmatmul.mubr.bf16.vlgmr.msra.gmra.mrb[0].mxu1 %v62_v27 }
  0xf5   :  { %v271_v28 = vpop.f32.mrb[0].mxu0  ;;  %v277_v29 = vpop.f32.mrb[0].mxu1 }
  0xf6   :  { %v272_v31 = vpop.f32.mrb[1].mxu0  ;;  %v278_v32 = vpop.f32.mrb[1].mxu1 }
  0xf7   :  { %v273_v33 = vadd.f32 %v272_v31, %v271_v28  ;;  %v279_v34 = vadd.f32 %v278_v32, %v277_v29  ;;  %v274_v35 = vpop.f32.mrb[2].mxu0  ;;  %v280_v36 = vpop.f32.mrb[2].mxu1 }
  0xf8   :  { %v275_v38 = vpop.f32.mrb[3].mxu0  ;;  %v281_v39 = vpop.f32.mrb[3].mxu1 }
  0xf9   :  { %v215_v40 = vmul.f32 %v273_v33, %v253_v30  ;;  %v217_v41 = vmul.f32 %v279_v34, %v253_v30  ;;  %v276_v42 = vadd.f32 %v275_v38, %v274_v35  ;;  %v282_v43 = vadd.f32 %v281_v39, %v280_v36 }
  0xfb   :  { %v225_v44 = vadd.f32 %v254_v37, %v215_v40  ;;  %v227_v45 = vadd.f32 %v254_v37, %v217_v41  ;;  %v216_v46 = vmul.f32 %v276_v42, %v253_v30  ;;  %v218_v47 = vmul.f32 %v282_v43, %v253_v30 }
  0xfd   :  { %229 = vst [vmem:[%s434_s4] sm:$0xff] %v225_v44  ;;  %231 = vst [vmem:[%s434_s4 + $0x10] sm:$0xff] %v227_v45  ;;  %v226_v48 = vadd.f32 %v254_v37, %v216_v46  ;;  %v228_v49 = vadd.f32 %v254_v37, %v218_v47 }
  0xff   :  { %230 = vst [vmem:[%s434_s4 + $0x8] sm:$0xff] %v226_v48  ;;  %232 = vst [vmem:[%s434_s4 + $0x18] sm:$0xff] %v228_v49 }

// kernel: _lambda_.55
= control target key start
LH: loop header
LB: loop body
LE: loop exit
PB: predicated region body
PF: predicated region fallthrough
CT: control target
= control target key end

     0   :  { %v582_v6 = vmov 0.0   ;;  %v583_v48 = vmov 0   ;;  %vm584_vm0 = vmmov 0   ;;  %s831_s0 = inlined_call_operand.vmem [shape: f32[34,128], index: 0, kind: input, shape index: {}]   ;;  %s832_s3 = inlined_call_operand.vmem [shape: bf16[128,384], index: 3, kind: input, shape index: {}]   ;;  %s833_s1 = inlined_call_operand.vmem [shape: f32[1,128], index: 1, kind: input, shape index: {}]   ;;  %s834_s2 = inlined_call_operand.vmem [shape: f32[1,128], index: 2, kind: input, shape index: {}]   ;;  %s835_s4 = inlined_call_operand.vmem [shape: f32[1,384], index: 4, kind: input, shape index: {}]   ;;  %s836_s5 = inlined_call_operand.vmem [shape: f32[1,384], index: 5, kind: input, shape index: {}]   ;;  %s837_s6 = inlined_call_operand.vmem [shape: f32[34,384], index: 6, kind: output, shape index: {}]  }
   0x1   :  { %v24_v0 = vld [vmem:[%s831_s0] sm:$0xff]  ;;  %v26_v1 = vld [vmem:[%s831_s0 + $0x10] sm:$0xff]  ;;  %v25_v2 = vld [vmem:[%s831_s0 + $0x8] sm:$0xff]  ;;  %509 = vmatprep.subr.bf16.mxu1 %v582_v6  ;;  %306 = vmatprep.mubr.bf16.mxu0 %v583_v48 }
   0x2   :  { %31 = vadd.xlane.f32.xlu0 %v24_v0  ;;  %35 = vadd.xlane.f32.xlu1 %v26_v1  ;;  %v27_v3 = vld [vmem:[%s831_s0 + $0x18] sm:$0xff]  ;;  %v28_v4 = vld [vmem:[%s831_s0 + $0x20] sm:$0xff]  ;;  %v543_v8 = vld [vmem:[%s832_s3 + $0x8] ss:$12 sps:$4 sm:$0xff]  }
   0x3   :  { %v540_v5 = vld [vmem:[%s832_s3 + $0x4] ss:$12 sps:$4 sm:$0xff]   ;;  %v542_v7 = vld [vmem:[%s832_s3] ss:$12 sps:$4 sm:$0xff]   ;;  %v544_v9 = vld [vmem:[%s832_s3 + $0x1c] ss:$12 sps:$4 sm:$0xff]   ;;  %510 = vmatpush3.bf16.msra.mxu1 %v543_v8  ;;  %525 = vmatprep.mubr.msk.bf16.mxu1 %vm584_vm0, %v582_v6 }
   0x4   :  { %274 = vmatprep.subr.bf16.mxu0 %v540_v5  ;;  %511 = vmatprep.subr.bf16.mxu1 %v582_v6  ;;  %v546_v30 = vld [vmem:[%s832_s3 + $0x18] ss:$12 sps:$4 sm:$0xff]   ;;  %v547_v31 = vld [vmem:[%s832_s3 + $0x20] ss:$12 sps:$4 sm:$0xff]   ;;  %v550_v33 = vld [vmem:[%s832_s3 + $0x30] ss:$12 sps:$4 sm:$0xff]  }
   0x5   :  { %275 = vmatpush1.bf16.msra.mxu0 %v542_v7  ;;  %v548_v32 = vld [vmem:[%s832_s3 + $0x34] ss:$12 sps:$4 sm:$0xff]   ;;  %v551_v34 = vld [vmem:[%s832_s3 + $0x38] ss:$12 sps:$4 sm:$0xff]   ;;  %v555_v37 = vld [vmem:[%s832_s3 + $0x50] ss:$12 sps:$4 sm:$0xff]  }
   0x6   :  { %33 = vadd.xlane.f32.xlu0 %v25_v2  ;;  %37 = vadd.xlane.f32.xlu1 %v27_v3  ;;  %v552_v35 = vld [vmem:[%s832_s3 + $0x4c] ss:$12 sps:$4 sm:$0xff]   ;;  %v554_v36 = vld [vmem:[%s832_s3 + $0x48] ss:$12 sps:$4 sm:$0xff]   ;;  %v556_v38 = vld [vmem:[%s832_s3 + $0x64] ss:$12 sps:$4 sm:$0xff]  }
   0x7   :  { %276 = vmatprep.subr.bf16.mxu0 %v544_v9  ;;  %512 = vmatpush3.bf16.msra.mxu1 %v547_v31  ;;  %v558_v39 = vld [vmem:[%s832_s3 + $0x60] ss:$12 sps:$4 sm:$0xff]   ;;  %v559_v40 = vld [vmem:[%s832_s3 + $0x68] ss:$12 sps:$4 sm:$0xff]   ;;  %v562_v42 = vld [vmem:[%s832_s3 + $0x78] ss:$12 sps:$4 sm:$0xff]  }
   0x8   :  { %513 = vmatprep.subr.bf16.mxu1 %v582_v6  ;;  %v560_v41 = vld [vmem:[%s832_s3 + $0x7c] ss:$12 sps:$4 sm:$0xff]   ;;  %v563_v43 = vld [vmem:[%s832_s3 + $0x80] ss:$12 sps:$4 sm:$0xff]   ;;  %v567_v46 = vld [vmem:[%s832_s3 + $0x98] ss:$12 sps:$4 sm:$0xff]  }
   0x9   :  { %277 = vmatpush1.bf16.msra.mxu0 %v546_v30  ;;  %v564_v44 = vld [vmem:[%s832_s3 + $0x94] ss:$12 sps:$4 sm:$0xff]   ;;  %v566_v45 = vld [vmem:[%s832_s3 + $0x90] ss:$12 sps:$4 sm:$0xff]   ;;  %v568_v47 = vld [vmem:[%s832_s3 + $0xac] ss:$12 sps:$4 sm:$0xff]  }
   0xa   :  { %39 = vadd.xlane.f32.xlu0 %v28_v4  ;;  %278 = vmatprep.subr.bf16.mxu0 %v548_v32  ;;  %v570_v49 = vld [vmem:[%s832_s3 + $0xa8] ss:$12 sps:$4 sm:$0xff]   ;;  %v571_v50 = vld [vmem:[%s832_s3 + $0xb0] ss:$12 sps:$4 sm:$0xff]  }
   0xb   :  { %514 = vmatpush3.bf16.msra.mxu1 %v551_v34  ;;  %v142_v34 = vld [vmem:[%s836_s5] sm:$0x7] }
   0xc   :  { %515 = vmatprep.subr.bf16.mxu1 %v582_v6 }
   0xd   :  { %279 = vmatpush1.bf16.msra.mxu0 %v550_v33 }
   0xe   :  { %280 = vmatprep.subr.bf16.mxu0 %v552_v35 }
   0xf   :  { %516 = vmatpush3.bf16.msra.mxu1 %v555_v37 }
  0x10   :  { %517 = vmatprep.subr.bf16.mxu1 %v582_v6 }
  0x11   :  { %281 = vmatpush1.bf16.msra.mxu0 %v554_v36 }
  0x12   :  { %282 = vmatprep.subr.bf16.mxu0 %v556_v38 }
  0x13   :  { %518 = vmatpush3.bf16.msra.mxu1 %v559_v40 }
  0x14   :  { %519 = vmatprep.subr.bf16.mxu1 %v582_v6 }
  0x15   :  { %283 = vmatpush1.bf16.msra.mxu0 %v558_v39 }
  0x16   :  { %284 = vmatprep.subr.bf16.mxu0 %v560_v41 }
  0x17   :  { %520 = vmatpush3.bf16.msra.mxu1 %v563_v43 }
  0x18   :  { %521 = vmatprep.subr.bf16.mxu1 %v582_v6 }
  0x19   :  { %285 = vmatpush1.bf16.msra.mxu0 %v562_v42 }
  0x1a   :  { %286 = vmatprep.subr.bf16.mxu0 %v564_v44 }
  0x1b   :  { %522 = vmatpush3.bf16.msra.mxu1 %v567_v46 }
  0x1c   :  { %523 = vmatprep.subr.bf16.mxu1 %v582_v6 }
  0x1d   :  { %287 = vmatpush1.bf16.msra.mxu0 %v566_v45 }
  0x1e   :  { %288 = vmatprep.subr.bf16.mxu0 %v568_v47 }
  0x1f   :  { %524 = vmatpush3.bf16.msra.mxu1 %v571_v50 }
  0x21   :  { %289 = vmatpush1.bf16.msra.mxu0 %v570_v49 }
  0x8f   :  { %v32_v10 = vpop.xlane.xlu0 %31  ;;  %v36_v11 = vpop.xlane.xlu1 %35 }
  0x90   :  { %v42_v12 = vmul.f32 0.0078125, %v32_v10  ;;  %v44_v13 = vmul.f32 0.0078125, %v36_v11  ;;  %v473_v10 = vld [vmem:[%s834_s2] ss:$0 sm:$0xff] }
  0x92   :  { %v649_v14 = vsub.f32 %v24_v0, %v42_v12  ;;  %v651_v15 = vsub.f32 %v26_v1, %v44_v13 }
  0x93   :  { %v34_v16 = vpop.xlane.xlu0 %33  ;;  %v38_v17 = vpop.xlane.xlu1 %37 }
  0x94   :  { %v43_v18 = vmul.f32 0.0078125, %v34_v16  ;;  %v52_v19 = vmul.f32 %v649_v14, %v649_v14  ;;  %v45_v20 = vmul.f32 0.0078125, %v38_v17  ;;  %v54_v23 = vmul.f32 %v651_v15, %v651_v15 }
  0x96   :  { %v655_v21 = vsub.f32 %v25_v2, %v43_v18  ;;  %57 = vadd.xlane.f32.xlu1 %v52_v19  ;;  %v657_v22 = vsub.f32 %v27_v3, %v45_v20 }
  0x97   :  { %v40_v24 = vpop.xlane.xlu0 %39 }
  0x98   :  { %v46_v25 = vmul.f32 0.0078125, %v40_v24  ;;  %v53_v26 = vmul.f32 %v655_v21, %v655_v21  ;;  %v55_v28 = vmul.f32 %v657_v22, %v657_v22 }
  0x9a   :  { %v663_v27 = vsub.f32 %v28_v4, %v46_v25  ;;  %61 = vadd.xlane.f32.xlu1 %v54_v23  ;;  %59 = vadd.xlane.f32.xlu0 %v53_v26  ;;  %v472_v4 = vld [vmem:[%s833_s1] ss:$0 sm:$0xff] }
  0x9c   :  { %v56_v29 = vmul.f32 %v663_v27, %v663_v27 }
  0x9e   :  { %63 = vadd.xlane.f32.xlu0 %v55_v28  ;;  %65 = vadd.xlane.f32.xlu1 %v56_v29  ;;  %v392_v29 = vlaneseq }
  0xa0   :  { %v393_v30 = vshrl.u32 %v392_v29, 7 }
  0xa2   :  { %v394_v31 = vsub.s32 0, %v393_v30  ;;  %v402_v32 = vsub.s32 2, %v393_v30  ;;  %v398_v33 = vsub.s32 1, %v393_v30 }
  0xa4   :  { %v760_v37 = vrot.slane %v142_v34, %v394_v31  ;;  %v762_v38 = vrot.slane %v142_v34, %v402_v32  ;;  %v764_v41 = vrot.slane %v142_v34, %v398_v33 }
 0x123   :  { %v58_v51 = vpop.xlane.xlu1 %57 }
 0x124   :  { %v67_v52 = vmul.f32 0.0078125, %v58_v51 }
 0x126   :  { %v72_v53 = vadd.f32 1e-05, %v67_v52 }
 0x127   :  { %v62_v54 = vpop.xlane.xlu1 %61  ;;  %v60_v55 = vpop.xlane.xlu0 %59 }
 0x128   :  { %572 = vrsqrt.f32 %v72_v53  ;;  %v69_v56 = vmul.f32 0.0078125, %v62_v54  ;;  %v68_v57 = vmul.f32 0.0078125, %v60_v55 }
 0x12a   :  { %v73_v58 = vadd.f32 1e-05, %v68_v57  ;;  %v74_v59 = vadd.f32 1e-05, %v69_v56 }
 0x12b   :  { %v66_v60 = vpop.xlane.xlu1 %65  ;;  %v64_v61 = vpop.xlane.xlu0 %63 }
 0x12c   :  { %v70_v62 = vmul.f32 0.0078125, %v64_v61  ;;  %574 = vrsqrt.f32 %v73_v58  ;;  %v71_v63 = vmul.f32 0.0078125, %v66_v60 }
 0x12d   :  { %576 = vrsqrt.f32 %v74_v59 }
 0x12e   :  { %v75_v0 = vadd.f32 1e-05, %v70_v62  ;;  %v76_v1 = vadd.f32 1e-05, %v71_v63 }
 0x130   :  { %578 = vrsqrt.f32 %v75_v0 }
 0x131   :  { %580 = vrsqrt.f32 %v76_v1 }
 0x132   :  { %v573_v2 = vpop.eup %572 }
 0x133   :  { %v82_v3 = vmul.f32 %v573_v2, %v649_v14 }
 0x135   :  { %v93_v8 = vmul.f32 %v472_v4, %v82_v3 }
 0x136   :  { %v575_v5 = vpop.eup %574 }
 0x137   :  { %v83_v7 = vmul.f32 %v575_v5, %v655_v21  ;;  %v577_v9 = vpop.eup %576  ;;  %v104_v13 = vadd.f32 %v473_v10, %v93_v8 }
 0x138   :  { %v84_v14 = vmul.f32 %v577_v9, %v651_v15 }
 0x139   :  { %v94_v11 = vmul.f32 %v472_v4, %v83_v7 }
 0x13a   :  { %v579_v12 = vpop.eup %578  ;;  %v95_v21 = vmul.f32 %v472_v4, %v84_v14 }
 0x13b   :  { %v105_v16 = vadd.f32 %v473_v10, %v94_v11  ;;  %v85_v17 = vmul.f32 %v579_v12, %v657_v22  ;;  %v581_v20 = vpop.eup %580 }
 0x13c   :  { %v86_v24 = vmul.f32 %v581_v20, %v663_v27  ;;  %v106_v25 = vadd.f32 %v473_v10, %v95_v21  ;;  %v141_v27 = vld [vmem:[%s835_s4] sm:$0x7] }
 0x13d   :  { %v143_v18 = vpack.c.bf16 %v105_v16, %v104_v13  ;;  %v96_v19 = vmul.f32 %v472_v4, %v85_v17  ;;  %v395_v35 = vrot.slane %v141_v27, %v394_v31  ;;  %v403_v36 = vrot.slane %v141_v27, %v402_v32 }
 0x13e   :  { %v97_v28 = vmul.f32 %v472_v4, %v86_v24 }
 0x13f   :  { %307 = vmatmul.mubr.bf16.vlgmr.msra.gmra.mrb[0].mxu0 %v143_v18  ;;  %526 = vmatmul.mubr.bf16.vlgmr.msra.gmra.mrb[0].mxu1 %v143_v18  ;;  %v107_v23 = vadd.f32 %v473_v10, %v96_v19 }
 0x140   :  { %316 = vmatprep.mubr.bf16.mxu0 %v583_v48  ;;  %529 = vmatprep.mubr.msk.bf16.mxu1 %vm584_vm0, %v582_v6  ;;  %v108_v15 = vadd.f32 %v473_v10, %v97_v28 }
 0x141   :  { %v144_v26 = vpack.c.bf16 %v107_v23, %v106_v25 }
 0x142   :  { %v145_v22 = vpack.c.bf16 %v108_v15, %v108_v15 }
 0x147   :  { %317 = vmatmul.mubr.bf16.gmra.mrb[4].mxu0 %v144_v26  ;;  %530 = vmatmul.mubr.bf16.gmra.mrb[4].mxu1 %v144_v26 }
 0x148   :  { %326 = vmatprep.mubr.bf16.mxu0 %v583_v48  ;;  %533 = vmatprep.mubr.msk.bf16.mxu1 %vm584_vm0, %v582_v6  ;;  %v758_v6 = vrot.slane %v141_v27, %v398_v33 }
 0x14f   :  { %327 = vmatmul.mubr.bf16.gmra.mrb[8].mxu0 %v145_v22  ;;  %534 = vmatmul.mubr.bf16.gmra.mrb[8].mxu1 %v145_v22 }
 0x212   :  { %v308_v39 = vpop.f32.mrb[0].mxu0  ;;  %v369_v40 = vpop.f32.mrb[0].mxu1 }
 0x213   :  { %v407_v42 = vmul.f32 %v395_v35, %v308_v39  ;;  %v409_v43 = vmul.f32 %v403_v36, %v369_v40  ;;  %v310_v44 = vpop.f32.mrb[1].mxu0  ;;  %v527_v45 = vpop.f32.mrb[1].mxu1 }
 0x214   :  { %v408_v46 = vmul.f32 %v758_v6, %v310_v44  ;;  %v312_v47 = vpop.f32.mrb[2].mxu0  ;;  %v372_v48 = vpop.f32.mrb[2].mxu1 }
 0x215   :  { %v438_v49 = vadd.f32 %v760_v37, %v407_v42  ;;  %v440_v50 = vadd.f32 %v762_v38, %v409_v43  ;;  %v410_v51 = vmul.f32 %v395_v35, %v312_v47  ;;  %v412_v52 = vmul.f32 %v403_v36, %v372_v48  ;;  %v314_v53 = vpop.f32.mrb[3].mxu0  ;;  %v528_v54 = vpop.f32.mrb[3].mxu1 }
 0x216   :  { %v439_v55 = vadd.f32 %v764_v41, %v408_v46  ;;  %v411_v56 = vmul.f32 %v758_v6, %v314_v53 }
 0x217   :  { %453 = vst [vmem:[%s837_s6] sm:$0xff] %v438_v49  ;;  %455 = vst [vmem:[%s837_s6 + $0x10] sm:$0xff] %v440_v50  ;;  %v441_v57 = vadd.f32 %v760_v37, %v410_v51  ;;  %v443_v58 = vadd.f32 %v762_v38, %v412_v52 }
 0x218   :  { %454 = vst [vmem:[%s837_s6 + $0x8] sm:$0xff] %v439_v55  ;;  %v442_v59 = vadd.f32 %v764_v41, %v411_v56 }
 0x219   :  { %456 = vst [vmem:[%s837_s6 + $0x18] sm:$0xff] %v441_v57  ;;  %458 = vst [vmem:[%s837_s6 + $0x28] sm:$0xff] %v443_v58 }
 0x21a   :  { %457 = vst [vmem:[%s837_s6 + $0x20] sm:$0xff] %v442_v59  ;;  %v318_v60 = vpop.f32.mrb[4].mxu0  ;;  %v377_v61 = vpop.f32.mrb[4].mxu1 }
 0x21b   :  { %v413_v62 = vmul.f32 %v395_v35, %v318_v60  ;;  %v415_v63 = vmul.f32 %v403_v36, %v377_v61  ;;  %v320_v0 = vpop.f32.mrb[5].mxu0  ;;  %v531_v1 = vpop.f32.mrb[5].mxu1 }
 0x21c   :  { %v414_v2 = vmul.f32 %v758_v6, %v320_v0  ;;  %v322_v3 = vpop.f32.mrb[6].mxu0  ;;  %v380_v4 = vpop.f32.mrb[6].mxu1 }
 0x21d   :  { %v444_v5 = vadd.f32 %v760_v37, %v413_v62  ;;  %v446_v7 = vadd.f32 %v762_v38, %v415_v63  ;;  %v416_v8 = vmul.f32 %v395_v35, %v322_v3  ;;  %v418_v9 = vmul.f32 %v403_v36, %v380_v4  ;;  %v324_v10 = vpop.f32.mrb[7].mxu0  ;;  %v532_v11 = vpop.f32.mrb[7].mxu1 }
 0x21e   :  { %v445_v12 = vadd.f32 %v764_v41, %v414_v2  ;;  %v417_v13 = vmul.f32 %v758_v6, %v324_v10 }
 0x21f   :  { %459 = vst [vmem:[%s837_s6 + $0x30] sm:$0xff] %v444_v5  ;;  %461 = vst [vmem:[%s837_s6 + $0x40] sm:$0xff] %v446_v7  ;;  %v447_v16 = vadd.f32 %v760_v37, %v416_v8  ;;  %v449_v14 = vadd.f32 %v762_v38, %v418_v9 }
 0x220   :  { %460 = vst [vmem:[%s837_s6 + $0x38] sm:$0xff] %v445_v12  ;;  %v448_v17 = vadd.f32 %v764_v41, %v417_v13 }
 0x221   :  { %462 = vst [vmem:[%s837_s6 + $0x48] sm:$0xff] %v447_v16  ;;  %464 = vst [vmem:[%s837_s6 + $0x58] sm:$0xff] %v449_v14 }
 0x222   :  { %463 = vst [vmem:[%s837_s6 + $0x50] sm:$0xff] %v448_v17  ;;  %v328_v18 = vpop.f32.mrb[8].mxu0  ;;  %v385_v19 = vpop.f32.mrb[8].mxu1 }
 0x223   :  { %v419_v20 = vmul.f32 %v395_v35, %v328_v18  ;;  %v421_v21 = vmul.f32 %v403_v36, %v385_v19  ;;  %v330_v23 = vpop.f32.mrb[9].mxu0  ;;  %v535_v24 = vpop.f32.mrb[9].mxu1 }
 0x224   :  { %v420_v25 = vmul.f32 %v758_v6, %v330_v23  ;;  %v332_v26 = vpop.f32.mrb[10].mxu0  ;;  %v388_v28 = vpop.f32.mrb[10].mxu1 }
 0x225   :  { %v450_v15 = vadd.f32 %v760_v37, %v419_v20  ;;  %v452_v22 = vadd.f32 %v762_v38, %v421_v21  ;;  %v333_v29 = vpop.f32.mrb[11].mxu0  ;;  %v536_v30 = vpop.f32.mrb[11].mxu1 }
 0x226   :  { %v451_v31 = vadd.f32 %v764_v41, %v420_v25 }
 0x227   :  { %465 = vst [vmem:[%s837_s6 + $0x60] sm:$0xff] %v450_v15  ;;  %467 = vst [vmem:[%s837_s6 + $0x70] sm:$0xff] %v452_v22 }
 0x228   :  { %466 = vst [vmem:[%s837_s6 + $0x68] sm:$0xff] %v451_v31 }

// kernel: _lambda_.57
= control target key start
LH: loop header
LB: loop body
LE: loop exit
PB: predicated region body
PF: predicated region fallthrough
CT: control target
= control target key end

     0   :  { %v267_v0 = vmov 0.0   ;;  %vm268_vm0 = vmmov 0   ;;  %s377_s1 = inlined_call_operand.vmem [shape: bf16[128,128], index: 1, kind: input, shape index: {}]   ;;  %s378_s0 = inlined_call_operand.vmem [shape: f32[34,128], index: 0, kind: input, shape index: {}]   ;;  %s379_s2 = inlined_call_operand.vmem [shape: f32[1,128], index: 2, kind: input, shape index: {}]   ;;  %s380_s3 = inlined_call_operand.vmem [shape: f32[1,128], index: 3, kind: input, shape index: {}]   ;;  %s381_s4 = inlined_call_operand.vmem [shape: f32[34,128], index: 4, kind: input, shape index: {}]   ;;  %s382_s5 = inlined_call_operand.vmem [shape: f32[34,128], index: 5, kind: output, shape index: {}]  }
   0x1   :  { %241 = vmatprep.subr.bf16.mxu1 %v267_v0  ;;  %v259_v1 = vld [vmem:[%s377_s1] sm:$0xff]   ;;  %213 = vmatprep.subr.bf16.mxu0 %v267_v0  ;;  %v260_v2 = vld [vmem:[%s377_s1 + $0x8] sm:$0xff]   ;;  %v261_v3 = vld [vmem:[%s377_s1 + $0x10] sm:$0xff]  }
   0x2   :  { %233 = vmatprep.mubr.msk.bf16.mxu1 %vm268_vm0, %v267_v0  ;;  %229 = vmatprep.mubr.msk.bf16.mxu0 %vm268_vm0, %v267_v0  ;;  %v262_v4 = vld [vmem:[%s377_s1 + $0x18] sm:$0xff]   ;;  %v263_v5 = vld [vmem:[%s377_s1 + $0x20] sm:$0xff]   ;;  %v264_v6 = vld [vmem:[%s377_s1 + $0x28] sm:$0xff]  }
   0x3   :  { %249 = vmatpush3.bf16.msra.mxu1 %v259_v1  ;;  %214 = vmatpush3.bf16.msra.mxu0 %v259_v1  ;;  %v265_v7 = vld [vmem:[%s377_s1 + $0x30] sm:$0xff]   ;;  %v266_v8 = vld [vmem:[%s377_s1 + $0x38] sm:$0xff]   ;;  %v21_v11 = vld [vmem:[%s378_s0] sm:$0xff] }
   0x4   :  { %242 = vmatprep.subr.bf16.mxu1 %v267_v0  ;;  %215 = vmatprep.subr.bf16.mxu0 %v267_v0  ;;  %v23_v9 = vld [vmem:[%s378_s0 + $0x10] sm:$0xff]  ;;  %v24_v10 = vld [vmem:[%s378_s0 + $0x18] sm:$0xff]  ;;  %v22_v12 = vld [vmem:[%s378_s0 + $0x8] sm:$0xff] }
   0x5   :  { %v45_v13 = vpack.c.bf16 %v24_v10, %v23_v9  ;;  %v44_v14 = vpack.c.bf16 %v22_v12, %v21_v11  ;;  %v25_v15 = vld [vmem:[%s378_s0 + $0x20] sm:$0xff]  ;;  %v175_v25 = vld [vmem:[%s381_s4 + $0x10] sm:$0xff]  ;;  %v176_v35 = vld [vmem:[%s381_s4 + $0x18] sm:$0xff] }
   0x6   :  { %v46_v16 = vpack.c.bf16 %v25_v15, %v25_v15  ;;  %v200_v17 = vld [vmem:[%s379_s2] ss:$0 sm:$0xff]  ;;  %v174_v36 = vld [vmem:[%s381_s4 + $0x8] sm:$0xff] }
   0x7   :  { %250 = vmatpush3.bf16.msra.mxu1 %v260_v2  ;;  %216 = vmatpush3.bf16.msra.mxu0 %v260_v2  ;;  %v201_v18 = vld [vmem:[%s380_s3] ss:$0 sm:$0xff] }
   0x8   :  { %243 = vmatprep.subr.bf16.mxu1 %v267_v0  ;;  %217 = vmatprep.subr.bf16.mxu0 %v267_v0  ;;  %v173_v27 = vld [vmem:[%s381_s4] sm:$0xff] }
   0x9   :  { %v177_v46 = vld [vmem:[%s381_s4 + $0x20] sm:$0xff] }
   0xb   :  { %251 = vmatpush3.bf16.msra.mxu1 %v261_v3  ;;  %218 = vmatpush3.bf16.msra.mxu0 %v261_v3 }
   0xc   :  { %244 = vmatprep.subr.bf16.mxu1 %v267_v0  ;;  %219 = vmatprep.subr.bf16.mxu0 %v267_v0 }
   0xf   :  { %252 = vmatpush3.bf16.msra.mxu1 %v262_v4  ;;  %220 = vmatpush3.bf16.msra.mxu0 %v262_v4 }
  0x10   :  { %245 = vmatprep.subr.bf16.mxu1 %v267_v0  ;;  %221 = vmatprep.subr.bf16.mxu0 %v267_v0 }
  0x13   :  { %253 = vmatpush3.bf16.msra.mxu1 %v263_v5  ;;  %222 = vmatpush3.bf16.msra.mxu0 %v263_v5 }
  0x14   :  { %246 = vmatprep.subr.bf16.mxu1 %v267_v0  ;;  %223 = vmatprep.subr.bf16.mxu0 %v267_v0 }
  0x17   :  { %254 = vmatpush3.bf16.msra.mxu1 %v264_v6  ;;  %224 = vmatpush3.bf16.msra.mxu0 %v264_v6 }
  0x18   :  { %247 = vmatprep.subr.bf16.mxu1 %v267_v0  ;;  %225 = vmatprep.subr.bf16.mxu0 %v267_v0 }
  0x1b   :  { %255 = vmatpush3.bf16.msra.mxu1 %v265_v7  ;;  %226 = vmatpush3.bf16.msra.mxu0 %v265_v7 }
  0x1c   :  { %248 = vmatprep.subr.bf16.mxu1 %v267_v0  ;;  %227 = vmatprep.subr.bf16.mxu0 %v267_v0 }
  0x1f   :  { %256 = vmatpush3.bf16.msra.mxu1 %v266_v8  ;;  %228 = vmatpush3.bf16.msra.mxu0 %v266_v8 }
  0x22   :  { %234 = vmatmul.mubr.bf16.vlgmr.msra.gmra.mrb[0].mxu1 %v45_v13  ;;  %230 = vmatmul.mubr.bf16.vlgmr.msra.gmra.mrb[0].mxu0 %v44_v14 }
  0x23   :  { %237 = vmatprep.mubr.msk.bf16.mxu1 %vm268_vm0, %v267_v0 }
  0x2a   :  { %238 = vmatmul.mubr.bf16.gmra.mrb[4].mxu1 %v46_v16 }
  0xf5   :  { %v137_v19 = vpop.f32.mrb[0].mxu1  ;;  %v129_v20 = vpop.f32.mrb[0].mxu0 }
  0xf6   :  { %v159_v21 = vmul.f32 %v200_v17, %v137_v19  ;;  %v235_v22 = vpop.f32.mrb[1].mxu1  ;;  %v157_v23 = vmul.f32 %v200_v17, %v129_v20  ;;  %v231_v24 = vpop.f32.mrb[1].mxu0 }
  0xf7   :  { %v140_v26 = vpop.f32.mrb[2].mxu1  ;;  %v132_v28 = vpop.f32.mrb[2].mxu0 }
  0xf8   :  { %v170_v29 = vadd.f32 %v201_v18, %v159_v21  ;;  %v160_v30 = vmul.f32 %v200_v17, %v140_v26  ;;  %v168_v31 = vadd.f32 %v201_v18, %v157_v23  ;;  %v236_v32 = vpop.f32.mrb[3].mxu1  ;;  %v158_v33 = vmul.f32 %v200_v17, %v132_v28  ;;  %v232_v34 = vpop.f32.mrb[3].mxu0 }
  0xfa   :  { %v180_v37 = vadd.f32 %v175_v25, %v170_v29  ;;  %v171_v38 = vadd.f32 %v201_v18, %v160_v30  ;;  %v178_v39 = vadd.f32 %v173_v27, %v168_v31  ;;  %v169_v40 = vadd.f32 %v201_v18, %v158_v33 }
  0xfc   :  { %185 = vst [vmem:[%s382_s5 + $0x10] sm:$0xff] %v180_v37  ;;  %v181_v41 = vadd.f32 %v176_v35, %v171_v38  ;;  %183 = vst [vmem:[%s382_s5] sm:$0xff] %v178_v39  ;;  %v179_v42 = vadd.f32 %v174_v36, %v169_v40 }
  0xfd   :  { %v145_v43 = vpop.f32.mrb[4].mxu1 }
  0xfe   :  { %186 = vst [vmem:[%s382_s5 + $0x18] sm:$0xff] %v181_v41  ;;  %184 = vst [vmem:[%s382_s5 + $0x8] sm:$0xff] %v179_v42  ;;  %v161_v44 = vmul.f32 %v200_v17, %v145_v43  ;;  %v239_v45 = vpop.f32.mrb[5].mxu1 }
  0xff   :  { %v148_v47 = vpop.f32.mrb[6].mxu1 }
 0x100   :  { %v172_v48 = vadd.f32 %v201_v18, %v161_v44  ;;  %v240_v49 = vpop.f32.mrb[7].mxu1 }
 0x102   :  { %v182_v50 = vadd.f32 %v177_v46, %v172_v48 }
 0x104   :  { %187 = vst [vmem:[%s382_s5 + $0x20] sm:$0xff] %v182_v50 }

// kernel: _lambda_.58
= control target key start
LH: loop header
LB: loop body
LE: loop exit
PB: predicated region body
PF: predicated region fallthrough
CT: control target
= control target key end

     0   :  { %v707_v38 = vmov 0   ;;  %s1064_s0 = inlined_call_operand.vmem [shape: f32[34,128], index: 0, kind: input, shape index: {}]   ;;  %s1065_s3 = inlined_call_operand.vmem [shape: bf16[128,256], index: 3, kind: input, shape index: {}]   ;;  %s1066_s1 = inlined_call_operand.vmem [shape: f32[1,128], index: 1, kind: input, shape index: {}]   ;;  %s1067_s2 = inlined_call_operand.vmem [shape: f32[1,128], index: 2, kind: input, shape index: {}]   ;;  %s1068_s4 = inlined_call_operand.vmem [shape: f32[1,256], index: 4, kind: input, shape index: {}]   ;;  %s1069_s5 = inlined_call_operand.vmem [shape: f32[1,256], index: 5, kind: input, shape index: {}]   ;;  %s1070_s6 = inlined_call_operand.vmem [shape: f32[34,256], index: 6, kind: output, shape index: {}]  }
   0x1   :  { %v26_v0 = vld [vmem:[%s1064_s0 + $0x10] sm:$0xff]  ;;  %v24_v1 = vld [vmem:[%s1064_s0] sm:$0xff]  ;;  %v27_v2 = vld [vmem:[%s1064_s0 + $0x18] sm:$0xff]  ;;  %252 = vmatprep.mubr.bf16.mxu1 %v707_v38  ;;  %242 = vmatprep.mubr.bf16.mxu0 %v707_v38 }
   0x2   :  { %35 = vadd.xlane.f32.xlu0 %v26_v0  ;;  %31 = vadd.xlane.f32.xlu1 %v24_v1  ;;  %v25_v3 = vld [vmem:[%s1064_s0 + $0x8] sm:$0xff]  ;;  %v28_v4 = vld [vmem:[%s1064_s0 + $0x20] sm:$0xff]  ;;  %v636_v7 = vld [vmem:[%s1065_s3 + $0x14] ss:$8 sps:$4 sm:$0xff]  }
   0x3   :  { %v633_v5 = vld [vmem:[%s1065_s3 + $0x4] ss:$8 sps:$4 sm:$0xff]   ;;  %v635_v6 = vld [vmem:[%s1065_s3] ss:$8 sps:$4 sm:$0xff]   ;;  %v638_v28 = vld [vmem:[%s1065_s3 + $0x10] ss:$8 sps:$4 sm:$0xff]  }
   0x4   :  { %615 = vmatprep.subr.bf16.mxu1 %v633_v5  ;;  %210 = vmatprep.subr.bf16.mxu0 %v633_v5  ;;  %v639_v29 = vld [vmem:[%s1065_s3 + $0x24] ss:$8 sps:$4 sm:$0xff]   ;;  %v641_v30 = vld [vmem:[%s1065_s3 + $0x20] ss:$8 sps:$4 sm:$0xff]   ;;  %v642_v31 = vld [vmem:[%s1065_s3 + $0x34] ss:$8 sps:$4 sm:$0xff]  }
   0x5   :  { %623 = vmatpush1.bf16.msra.mxu1 %v635_v6  ;;  %211 = vmatpush1.bf16.msra.mxu0 %v635_v6  ;;  %v644_v32 = vld [vmem:[%s1065_s3 + $0x30] ss:$8 sps:$4 sm:$0xff]   ;;  %v645_v33 = vld [vmem:[%s1065_s3 + $0x44] ss:$8 sps:$4 sm:$0xff]   ;;  %v647_v34 = vld [vmem:[%s1065_s3 + $0x40] ss:$8 sps:$4 sm:$0xff]  }
   0x6   :  { %37 = vadd.xlane.f32.xlu0 %v27_v2  ;;  %33 = vadd.xlane.f32.xlu1 %v25_v3  ;;  %v648_v35 = vld [vmem:[%s1065_s3 + $0x54] ss:$8 sps:$4 sm:$0xff]   ;;  %v650_v36 = vld [vmem:[%s1065_s3 + $0x50] ss:$8 sps:$4 sm:$0xff]   ;;  %v651_v37 = vld [vmem:[%s1065_s3 + $0x64] ss:$8 sps:$4 sm:$0xff]  }
   0x7   :  { %616 = vmatprep.subr.bf16.mxu1 %v636_v7  ;;  %212 = vmatprep.subr.bf16.mxu0 %v636_v7  ;;  %v653_v39 = vld [vmem:[%s1065_s3 + $0x60] ss:$8 sps:$4 sm:$0xff]   ;;  %v654_v40 = vld [vmem:[%s1065_s3 + $0x74] ss:$8 sps:$4 sm:$0xff]   ;;  %v656_v41 = vld [vmem:[%s1065_s3 + $0x70] ss:$8 sps:$4 sm:$0xff]  }
   0x8   :  { %v597_v59 = vld [vmem:[%s1066_s1] ss:$0 sm:$0xff] }
   0x9   :  { %624 = vmatpush1.bf16.msra.mxu1 %v638_v28  ;;  %213 = vmatpush1.bf16.msra.mxu0 %v638_v28 }
   0xa   :  { %39 = vadd.xlane.f32.xlu0 %v28_v4  ;;  %617 = vmatprep.subr.bf16.mxu1 %v639_v29 }
   0xb   :  { %214 = vmatprep.subr.bf16.mxu0 %v639_v29 }
   0xd   :  { %625 = vmatpush1.bf16.msra.mxu1 %v641_v30  ;;  %215 = vmatpush1.bf16.msra.mxu0 %v641_v30 }
   0xe   :  { %618 = vmatprep.subr.bf16.mxu1 %v642_v31  ;;  %216 = vmatprep.subr.bf16.mxu0 %v642_v31 }
  0x11   :  { %626 = vmatpush1.bf16.msra.mxu1 %v644_v32  ;;  %217 = vmatpush1.bf16.msra.mxu0 %v644_v32 }
  0x12   :  { %619 = vmatprep.subr.bf16.mxu1 %v645_v33  ;;  %218 = vmatprep.subr.bf16.mxu0 %v645_v33 }
  0x15   :  { %627 = vmatpush1.bf16.msra.mxu1 %v647_v34  ;;  %219 = vmatpush1.bf16.msra.mxu0 %v647_v34 }
  0x16   :  { %620 = vmatprep.subr.bf16.mxu1 %v648_v35  ;;  %220 = vmatprep.subr.bf16.mxu0 %v648_v35 }
  0x19   :  { %628 = vmatpush1.bf16.msra.mxu1 %v650_v36  ;;  %221 = vmatpush1.bf16.msra.mxu0 %v650_v36 }
  0x1a   :  { %621 = vmatprep.subr.bf16.mxu1 %v651_v37  ;;  %222 = vmatprep.subr.bf16.mxu0 %v651_v37 }
  0x1d   :  { %629 = vmatpush1.bf16.msra.mxu1 %v653_v39  ;;  %223 = vmatpush1.bf16.msra.mxu0 %v653_v39 }
  0x1e   :  { %622 = vmatprep.subr.bf16.mxu1 %v654_v40  ;;  %224 = vmatprep.subr.bf16.mxu0 %v654_v40 }
  0x21   :  { %630 = vmatpush1.bf16.msra.mxu1 %v656_v41  ;;  %225 = vmatpush1.bf16.msra.mxu0 %v656_v41 }
  0x8f   :  { %v36_v8 = vpop.xlane.xlu0 %35  ;;  %v32_v9 = vpop.xlane.xlu1 %31 }
  0x90   :  { %v44_v10 = vmul.f32 0.0078125, %v36_v8  ;;  %v42_v11 = vmul.f32 0.0078125, %v32_v9 }
  0x92   :  { %v768_v12 = vsub.f32 %v26_v0, %v44_v10  ;;  %v770_v13 = vsub.f32 %v24_v1, %v42_v11  ;;  %v598_v0 = vld [vmem:[%s1067_s2] ss:$0 sm:$0xff] }
  0x93   :  { %v38_v14 = vpop.xlane.xlu0 %37  ;;  %v34_v15 = vpop.xlane.xlu1 %33 }
  0x94   :  { %v45_v16 = vmul.f32 0.0078125, %v38_v14  ;;  %v54_v17 = vmul.f32 %v768_v12, %v768_v12  ;;  %v43_v18 = vmul.f32 0.0078125, %v34_v15  ;;  %v52_v21 = vmul.f32 %v770_v13, %v770_v13 }
  0x96   :  { %v774_v19 = vsub.f32 %v27_v2, %v45_v16  ;;  %61 = vadd.xlane.f32.xlu1 %v54_v17  ;;  %v776_v20 = vsub.f32 %v25_v3, %v43_v18  ;;  %v272_v18 = vlaneseq }
  0x97   :  { %v40_v22 = vpop.xlane.xlu0 %39 }
  0x98   :  { %v46_v23 = vmul.f32 0.0078125, %v40_v22  ;;  %v55_v24 = vmul.f32 %v774_v19, %v774_v19  ;;  %v53_v26 = vmul.f32 %v776_v20, %v776_v20 }
  0x9a   :  { %v782_v25 = vsub.f32 %v28_v4, %v46_v23  ;;  %63 = vadd.xlane.f32.xlu0 %v55_v24  ;;  %57 = vadd.xlane.f32.xlu1 %v52_v21  ;;  %v126_v23 = vld [vmem:[%s1069_s5] sm:$0x3] }
  0x9c   :  { %v56_v27 = vmul.f32 %v782_v25, %v782_v25 }
  0x9e   :  { %65 = vadd.xlane.f32.xlu1 %v56_v27  ;;  %59 = vadd.xlane.f32.xlu0 %v53_v26 }
 0x123   :  { %v62_v42 = vpop.xlane.xlu1 %61 }
 0x124   :  { %v69_v43 = vmul.f32 0.0078125, %v62_v42 }
 0x126   :  { %v74_v44 = vadd.f32 1e-05, %v69_v43 }
 0x127   :  { %v64_v45 = vpop.xlane.xlu0 %63  ;;  %v58_v46 = vpop.xlane.xlu1 %57 }
 0x128   :  { %657 = vrsqrt.f32 %v74_v44  ;;  %v70_v47 = vmul.f32 0.0078125, %v64_v45  ;;  %v67_v48 = vmul.f32 0.0078125, %v58_v46 }
 0x12a   :  { %v75_v49 = vadd.f32 1e-05, %v70_v47  ;;  %v72_v50 = vadd.f32 1e-05, %v67_v48 }
 0x12b   :  { %v60_v51 = vpop.xlane.xlu0 %59  ;;  %v66_v52 = vpop.xlane.xlu1 %65 }
 0x12c   :  { %659 = vrsqrt.f32 %v75_v49  ;;  %v68_v53 = vmul.f32 0.0078125, %v60_v51  ;;  %v71_v54 = vmul.f32 0.0078125, %v66_v52 }
 0x12d   :  { %661 = vrsqrt.f32 %v72_v50 }
 0x12e   :  { %v73_v55 = vadd.f32 1e-05, %v68_v53  ;;  %v76_v56 = vadd.f32 1e-05, %v71_v54 }
 0x130   :  { %663 = vrsqrt.f32 %v73_v55 }
 0x131   :  { %665 = vrsqrt.f32 %v76_v56 }
 0x132   :  { %v658_v57 = vpop.eup %657 }
 0x133   :  { %v84_v58 = vmul.f32 %v658_v57, %v768_v12 }
 0x135   :  { %v95_v63 = vmul.f32 %v597_v59, %v84_v58 }
 0x136   :  { %v660_v60 = vpop.eup %659 }
 0x137   :  { %v662_v61 = vpop.eup %661  ;;  %v85_v62 = vmul.f32 %v660_v60, %v774_v19  ;;  %v106_v5 = vadd.f32 %v598_v0, %v95_v63  ;;  %v273_v19 = vshrl.u32 %v272_v18, 7 }
 0x138   :  { %v82_v1 = vmul.f32 %v662_v61, %v770_v13 }
 0x139   :  { %v96_v2 = vmul.f32 %v597_v59, %v85_v62  ;;  %v274_v21 = vsub.s32 0, %v273_v19  ;;  %v278_v22 = vsub.s32 1, %v273_v19 }
 0x13a   :  { %v664_v3 = vpop.eup %663  ;;  %v93_v8 = vmul.f32 %v597_v59, %v82_v1 }
 0x13b   :  { %v666_v4 = vpop.eup %665  ;;  %v107_v6 = vadd.f32 %v598_v0, %v96_v2  ;;  %v83_v7 = vmul.f32 %v664_v3, %v776_v20  ;;  %v125_v20 = vld [vmem:[%s1068_s4] sm:$0x3]  ;;  %v848_v26 = vrot.slane %v126_v23, %v274_v21  ;;  %v850_v28 = vrot.slane %v126_v23, %v278_v22 }
 0x13c   :  { %v86_v9 = vmul.f32 %v666_v4, %v782_v25  ;;  %v104_v14 = vadd.f32 %v598_v0, %v93_v8  ;;  %v844_v24 = vrot.slane %v125_v20, %v274_v21  ;;  %v846_v25 = vrot.slane %v125_v20, %v278_v22 }
 0x13d   :  { %v128_v10 = vpack.c.bf16 %v107_v6, %v106_v5  ;;  %v94_v11 = vmul.f32 %v597_v59, %v83_v7 }
 0x13e   :  { %v97_v12 = vmul.f32 %v597_v59, %v86_v9 }
 0x13f   :  { %253 = vmatmul.mubr.bf16.vlgmr.msra.gmra.mrb[0].mxu1 %v128_v10  ;;  %v105_v15 = vadd.f32 %v598_v0, %v94_v11 }
 0x140   :  { %262 = vmatprep.mubr.bf16.mxu1 %v707_v38  ;;  %v108_v17 = vadd.f32 %v598_v0, %v97_v12 }
 0x141   :  { %v127_v16 = vpack.c.bf16 %v105_v15, %v104_v14 }
 0x142   :  { %v129_v13 = vpack.c.bf16 %v108_v17, %v108_v17 }
 0x143   :  { %243 = vmatmul.mubr.bf16.vlgmr.msra.gmra.mrb[0].mxu0 %v127_v16  ;;  %v708_v16 = vmov -1.0  }
 0x147   :  { %263 = vmatmul.mubr.bf16.gmra.mrb[4].mxu1 %v129_v13 }
 0x212   :  { %v254_v27 = vpop.f32.mrb[0].mxu1 }
 0x213   :  { %v286_v29 = vmul.f32 %v844_v24, %v254_v27  ;;  %v256_v30 = vpop.f32.mrb[1].mxu1 }
 0x214   :  { %v287_v31 = vmul.f32 %v846_v25, %v256_v30  ;;  %v258_v32 = vpop.f32.mrb[2].mxu1 }
 0x215   :  { %v307_v33 = vadd.f32 %v848_v26, %v286_v29  ;;  %v288_v34 = vmul.f32 %v844_v24, %v258_v32  ;;  %v260_v35 = vpop.f32.mrb[3].mxu1 }
 0x216   :  { %v308_v36 = vadd.f32 %v850_v28, %v287_v31  ;;  %v289_v37 = vmul.f32 %v846_v25, %v260_v35  ;;  %v244_v38 = vpop.f32.mrb[0].mxu0 }
 0x217   :  { %v327_v39 = vmul.f32 0.70710677, %v307_v33  ;;  %v309_v40 = vadd.f32 %v848_v26, %v288_v34  ;;  %v246_v41 = vpop.f32.mrb[1].mxu0  ;;  %v282_v48 = vmul.f32 %v844_v24, %v244_v38  ;;  %v872_v3 = vmul.f32 0.5, %v307_v33 }
 0x218   :  { %v328_v42 = vmul.f32 0.70710677, %v308_v36  ;;  %v248_v43 = vpop.f32.mrb[2].mxu0  ;;  %v310_v46 = vadd.f32 %v850_v28, %v289_v37  ;;  %v283_v0 = vmul.f32 %v846_v25, %v246_v41  ;;  %v874_v6 = vmul.f32 0.5, %v308_v36 }
 0x219   :  { %v357_v44 = vand.u32 2147483647, %v327_v39  ;;  %v329_v45 = vmul.f32 0.70710677, %v309_v40  ;;  %v250_v49 = vpop.f32.mrb[3].mxu0  ;;  %v868_v61 = vadd.f32 %v848_v26, %v282_v48  ;;  %vm337_vm0 = vcmp.ge.f32.partialorder %v327_v39, 0.0 }
 0x21a   :  { %v358_v47 = vand.u32 2147483647, %v328_v42  ;;  %v861_v51 = vpop.f32.mrb[4].mxu1  ;;  %v863_v56 = vmul.f32 0.70710677, %v310_v46  ;;  %v880_v11 = vadd.f32 %v850_v28, %v283_v0  ;;  %vm338_vm1 = vcmp.ge.f32.partialorder %v328_v42, 0.0 }
 0x21b   :  { %v367_v50 = vmul.f32 0.3275911, %v357_v44  ;;  %v359_v53 = vand.u32 2147483647, %v329_v45  ;;  %v497_v55 = vsub.f32 0.0, %v357_v44  ;;  %v865_v57 = vpop.f32.mrb[5].mxu1  ;;  %v284_v15 = vmul.f32 %v844_v24, %v248_v43 }
 0x21c   :  { %v368_v52 = vmul.f32 0.3275911, %v358_v47  ;;  %v498_v59 = vsub.f32 0.0, %v358_v47  ;;  %v268_v62 = vpop.f32.mrb[6].mxu1  ;;  %v360_v63 = vand.u32 2147483647, %v863_v56  ;;  %v285_v37 = vmul.f32 %v846_v25, %v250_v49 }
 0x21d   :  { %v377_v54 = vadd.f32 1.0, %v367_v50  ;;  %v369_v60 = vmul.f32 0.3275911, %v359_v53  ;;  %v269_v1 = vpop.f32.mrb[7].mxu1  ;;  %v507_v4 = vmul.f32 %v497_v55, %v357_v44  ;;  %v877_v8 = vmul.f32 0.70710677, %v868_v61 }
 0x21e   :  { %v378_v58 = vadd.f32 1.0, %v368_v52  ;;  %v370_v5 = vmul.f32 0.3275911, %v360_v63  ;;  %v508_v7 = vmul.f32 %v498_v59, %v358_v47  ;;  %v499_v9 = vsub.f32 0.0, %v359_v53 }
 0x21f   :  { %667 = vrcp.f32 %v377_v54  ;;  %v379_v2 = vadd.f32 1.0, %v369_v60  ;;  %v500_v12 = vsub.f32 0.0, %v360_v63  ;;  %v353_v14 = vand.u32 2147483647, %v877_v8 }
 0x220   :  { %669 = vrcp.f32 %v378_v58  ;;  %v380_v10 = vadd.f32 1.0, %v370_v5  ;;  %v885_v17 = vsel %vm337_vm0, 1.0, %v708_v16  ;;  %v521_v13 = vmul.f32 1.442695, %v507_v4 }
 0x221   :  { %671 = vrcp.f32 %v379_v2  ;;  %v887_v18 = vmul.f32 0.5, %v309_v40  ;;  %vm339_vm2 = vcmp.ge.f32.partialorder %v329_v45, 0.0  ;;  %v363_v19 = vmul.f32 0.3275911, %v353_v14 }
 0x222   :  { %673 = vrcp.f32 %v380_v10  ;;  %v890_v21 = vmul.f32 0.70710677, %v880_v11  ;;  %v893_v20 = vadd.f32 %v848_v26, %v284_v15  ;;  %v896_v22 = vsel %vm338_vm1, 1.0, %v708_v16 }
 0x223   :  { %v523_v23 = vmul.f32 1.442695, %v508_v7  ;;  %v509_v27 = vmul.f32 %v499_v9, %v359_v53  ;;  %v898_v29 = vmul.f32 0.5, %v310_v46  ;;  %v510_v30 = vmul.f32 %v500_v12, %v360_v63 }
 0x224   :  { %v373_v31 = vadd.f32 1.0, %v363_v19  ;;  %v493_v32 = vsub.f32 0.0, %v353_v14  ;;  %v354_v33 = vand.u32 2147483647, %v890_v21  ;;  %675 = vpow2.f32 %v521_v13 }
 0x225   :  { %v904_v35 = vsel %vm339_vm2, 1.0, %v708_v16  ;;  %v907_v36 = vmul.f32 0.70710677, %v893_v20  ;;  %vm340_vm3 = vcmp.ge.f32.partialorder %v863_v56, 0.0  ;;  %v525_v42 = vmul.f32 1.442695, %v509_v27 }
 0x226   :  { %677 = vrcp.f32 %v373_v31  ;;  %v364_v40 = vmul.f32 0.3275911, %v354_v33  ;;  %v527_v45 = vmul.f32 1.442695, %v510_v30  ;;  %v503_v46 = vmul.f32 %v493_v32, %v353_v14 }
 0x227   :  { %679 = vpow2.f32 %v523_v23  ;;  %v355_v43 = vand.u32 2147483647, %v907_v36  ;;  %v494_v50 = vsub.f32 0.0, %v354_v33  ;;  %v919_v53 = vadd.f32 %v850_v28, %v285_v37 }
 0x228   :  { %v374_v47 = vadd.f32 1.0, %v364_v40  ;;  %v926_v58 = vsel %vm340_vm3, 1.0, %v708_v16  ;;  %v513_v5 = vmul.f32 1.442695, %v503_v46  ;;  %v290_v23 = vmul.f32 %v844_v24, %v861_v51 }
 0x229   :  { %v901_v34 = vpop.eup %667  ;;  %v365_v52 = vmul.f32 0.3275911, %v355_v43  ;;  %v495_v63 = vsub.f32 0.0, %v355_v43  ;;  %v504_v7 = vmul.f32 %v494_v50, %v354_v33  ;;  %v933_v56 = vmul.f32 0.70710677, %v919_v53 }
 0x22a   :  { %v910_v38 = vpop.eup %669  ;;  %v407_v39 = vmul.f32 1.0614054, %v901_v34  ;;  %681 = vrcp.f32 %v374_v47  ;;  %v291_v33 = vmul.f32 %v846_v25, %v865_v57  ;;  %vm333_vm4 = vcmp.ge.f32.partialorder %v877_v8, 0.0 }
 0x22b   :  { %v408_v41 = vmul.f32 1.0614054, %v910_v38  ;;  %v916_v48 = vpop.eup %671  ;;  %683 = vpow2.f32 %v525_v42  ;;  %v375_v62 = vadd.f32 1.0, %v365_v52  ;;  %v505_v13 = vmul.f32 %v495_v63, %v355_v43 }
 0x22c   :  { %v417_v44 = vadd.f32 -1.4531521, %v407_v39  ;;  %v409_v55 = vmul.f32 1.0614054, %v916_v48  ;;  %v928_v59 = vpop.eup %673  ;;  %685 = vpow2.f32 %v527_v45  ;;  %v939_v19 = vand.u32 2147483647, %v933_v56 }
 0x22d   :  { %v418_v49 = vadd.f32 -1.4531521, %v408_v41  ;;  %v410_v2 = vmul.f32 1.0614054, %v928_v59  ;;  %687 = vrcp.f32 %v375_v62  ;;  %v515_v43 = vmul.f32 1.442695, %v504_v7 }
 0x22e   :  { %v427_v54 = vmul.f32 %v901_v34, %v417_v44  ;;  %v419_v1 = vadd.f32 -1.4531521, %v409_v55  ;;  %v676_v14 = vpop.eup %675  ;;  %689 = vpow2.f32 %v513_v5  ;;  %v366_v41 = vmul.f32 0.3275911, %v939_v19 }
 0x22f   :  { %v428_v60 = vmul.f32 %v910_v38, %v418_v49  ;;  %v420_v12 = vadd.f32 -1.4531521, %v410_v2  ;;  %v517_v46 = vmul.f32 1.442695, %v505_v13  ;;  %v957_v52 = vadd.f32 %v848_v26, %v290_v23 }
 0x230   :  { %v437_v0 = vadd.f32 1.4214138, %v427_v54  ;;  %v429_v10 = vmul.f32 %v916_v48, %v419_v1  ;;  %v943_v27 = vpop.eup %677  ;;  %v376_v47 = vadd.f32 1.0, %v366_v41  ;;  %vm334_vm5 = vcmp.ge.f32.partialorder %v890_v21, 0.0 }
 0x231   :  { %v438_v4 = vadd.f32 1.4214138, %v428_v60  ;;  %v430_v32 = vmul.f32 %v928_v59, %v420_v12  ;;  %v680_v37 = vpop.eup %679  ;;  %v403_v40 = vmul.f32 1.0614054, %v943_v27  ;;  %v313_v8 = vmul.f32 0.5, %v868_v61 }
 0x232   :  { %v447_v9 = vmul.f32 %v901_v34, %v437_v0  ;;  %v439_v31 = vadd.f32 1.4214138, %v429_v10  ;;  %691 = vrcp.f32 %v376_v47  ;;  %vm335_vm6 = vcmp.ge.f32.partialorder %v907_v36, 0.0 }
 0x233   :  { %v448_v15 = vmul.f32 %v910_v38, %v438_v4  ;;  %v440_v51 = vadd.f32 1.4214138, %v430_v32  ;;  %v413_v45 = vadd.f32 -1.4531521, %v403_v40  ;;  %693 = vpow2.f32 %v515_v43 }
 0x234   :  { %v457_v30 = vadd.f32 -0.28449672, %v447_v9  ;;  %v449_v24 = vmul.f32 %v916_v48, %v439_v31  ;;  %v953_v49 = vpop.eup %681  ;;  %695 = vpow2.f32 %v517_v46  ;;  %v314_v61 = vmul.f32 0.5, %v880_v11 }
 0x235   :  { %v458_v39 = vadd.f32 -0.28449672, %v448_v15  ;;  %v450_v50 = vmul.f32 %v928_v59, %v440_v51  ;;  %v684_v54 = vpop.eup %683  ;;  %v423_v60 = vmul.f32 %v943_v27, %v413_v45  ;;  %v404_v62 = vmul.f32 1.0614054, %v953_v49 }
 0x236   :  { %v467_v42 = vmul.f32 %v901_v34, %v457_v30  ;;  %v459_v57 = vadd.f32 -0.28449672, %v449_v24  ;;  %v686_v63 = vpop.eup %685  ;;  %v968_v15 = vmul.f32 0.70710677, %v957_v52  ;;  %vm336_vm7 = vcmp.ge.f32.partialorder %v933_v56, 0.0 }
 0x237   :  { %v468_v44 = vmul.f32 %v910_v38, %v458_v39  ;;  %v460_v2 = vadd.f32 -0.28449672, %v450_v50  ;;  %v433_v5 = vadd.f32 1.4214138, %v423_v60  ;;  %v414_v7 = vadd.f32 -1.4531521, %v404_v62  ;;  %v964_v26 = vpop.eup %687 }
 0x238   :  { %v477_v25 = vadd.f32 0.2548296, %v467_v42  ;;  %v469_v1 = vmul.f32 %v916_v48, %v459_v57  ;;  %v405_v30 = vmul.f32 1.0614054, %v964_v26  ;;  %v975_v39 = vadd.f32 %v850_v28, %v291_v33 }
 0x239   :  { %v478_v55 = vadd.f32 0.2548296, %v468_v44  ;;  %v470_v12 = vmul.f32 %v928_v59, %v460_v2  ;;  %v424_v23 = vmul.f32 %v953_v49, %v414_v7  ;;  %v985_v33 = vand.u32 2147483647, %v968_v15 }
 0x23a   :  { %v487_v0 = vmul.f32 %v901_v34, %v477_v25  ;;  %v479_v10 = vadd.f32 0.2548296, %v469_v1  ;;  %v443_v34 = vmul.f32 %v943_v27, %v433_v5  ;;  %v415_v44 = vadd.f32 -1.4531521, %v405_v30 }
 0x23b   :  { %v488_v4 = vmul.f32 %v910_v38, %v478_v55  ;;  %v480_v32 = vadd.f32 0.2548296, %v470_v12  ;;  %v434_v42 = vadd.f32 1.4214138, %v424_v23  ;;  %vm341_vm8 = vcmp.ge.f32.partialorder %v968_v15, 0.0 }
 0x23c   :  { %v537_v9 = vmul.f32 %v676_v14, %v487_v0  ;;  %v489_v31 = vmul.f32 %v916_v48, %v479_v10  ;;  %v690_v14 = vpop.eup %689  ;;  %v453_v41 = vadd.f32 -0.28449672, %v443_v34  ;;  %v425_v57 = vmul.f32 %v964_v26, %v415_v44 }
 0x23d   :  { %v538_v13 = vmul.f32 %v680_v37, %v488_v4  ;;  %v496_v37 = vsub.f32 0.0, %v939_v19  ;;  %v490_v43 = vmul.f32 %v928_v59, %v480_v32  ;;  %v444_v28 = vmul.f32 %v953_v49, %v434_v42  ;;  %v988_v50 = vpop.eup %691 }
 0x23e   :  { %v547_v38 = vsub.f32 1.0, %v537_v9  ;;  %v539_v51 = vmul.f32 %v684_v54, %v489_v31  ;;  %v463_v45 = vmul.f32 %v943_v27, %v453_v41  ;;  %v435_v1 = vadd.f32 1.4214138, %v425_v57 }
 0x23f   :  { %v548_v40 = vsub.f32 1.0, %v538_v13  ;;  %v540_v25 = vmul.f32 %v686_v63, %v490_v43  ;;  %v454_v59 = vadd.f32 -0.28449672, %v444_v28  ;;  %v506_v55 = vmul.f32 %v496_v37, %v939_v19 }
 0x240   :  { %v557_v24 = vmul.f32 %v547_v38, %v885_v17  ;;  %v549_v47 = vsub.f32 1.0, %v539_v51  ;;  %v473_v54 = vadd.f32 0.2548296, %v463_v45  ;;  %v406_v7 = vmul.f32 1.0614054, %v988_v50 }
 0x241   :  { %v558_v48 = vmul.f32 %v548_v40, %v896_v22  ;;  %v694_v22 = vpop.eup %693  ;;  %v550_v0 = vsub.f32 1.0, %v540_v25  ;;  %v464_v5 = vmul.f32 %v953_v49, %v454_v59  ;;  %v371_v9 = vmul.f32 0.3275911, %v985_v33 }
 0x242   :  { %v567_v46 = vadd.f32 1.0, %v557_v24  ;;  %v559_v62 = vmul.f32 %v549_v47, %v904_v35  ;;  %v696_v2 = vpop.eup %695  ;;  %v483_v63 = vmul.f32 %v943_v27, %v473_v54  ;;  %v445_v35 = vmul.f32 %v964_v26, %v435_v1 }
 0x243   :  { %v568_v17 = vadd.f32 1.0, %v558_v48  ;;  %v474_v27 = vadd.f32 0.2548296, %v464_v5  ;;  %v416_v10 = vadd.f32 -1.4531521, %v406_v7  ;;  %v381_v30 = vadd.f32 1.0, %v371_v9 }
 0x244   :  { %v577_v60 = vmul.f32 %v567_v46, %v872_v3  ;;  %v569_v19 = vadd.f32 1.0, %v559_v62  ;;  %v560_v3 = vmul.f32 %v550_v0, %v926_v58  ;;  %v519_v12 = vmul.f32 1.442695, %v506_v55 }
 0x245   :  { %v578_v4 = vmul.f32 %v568_v17, %v874_v6  ;;  %v533_v6 = vmul.f32 %v690_v14, %v483_v63  ;;  %v455_v23 = vadd.f32 -0.28449672, %v445_v35  ;;  %v484_v58 = vmul.f32 %v953_v49, %v474_v27 }
 0x246   :  { %587 = vst [vmem:[%s1070_s6 + $0x20] sm:$0xff] %v577_v60  ;;  %v579_v13 = vmul.f32 %v569_v19, %v887_v18  ;;  %v570_v34 = vadd.f32 1.0, %v560_v3  ;;  %v426_v31 = vmul.f32 %v988_v50, %v416_v10  ;;  %v343_v14 = vsel %vm333_vm4, 1.0, %v708_v16 }
 0x247   :  { %588 = vst [vmem:[%s1070_s6 + $0x28] sm:$0xff] %v578_v4  ;;  %v543_v38 = vsub.f32 1.0, %v533_v6  ;;  %v465_v18 = vmul.f32 %v964_v26, %v455_v23  ;;  %697 = vrcp.f32 %v381_v30  ;;  %v534_v41 = vmul.f32 %v694_v22, %v484_v58 }
 0x248   :  { %589 = vst [vmem:[%s1070_s6 + $0x30] sm:$0xff] %v579_v13  ;;  %v580_v32 = vmul.f32 %v570_v34, %v898_v29  ;;  %v436_v49 = vadd.f32 1.4214138, %v426_v31  ;;  %699 = vpow2.f32 %v519_v12  ;;  %v1022_v29 = vmul.f32 0.70710677, %v975_v39 }
 0x249   :  { %v553_v40 = vmul.f32 %v543_v38, %v343_v14  ;;  %v475_v42 = vadd.f32 0.2548296, %v465_v18  ;;  %v544_v24 = vsub.f32 1.0, %v534_v41  ;;  %v344_v43 = vsel %vm334_vm5, 1.0, %v708_v16 }
 0x24a   :  { %590 = vst [vmem:[%s1070_s6 + $0x38] sm:$0xff] %v580_v32  ;;  %v446_v51 = vmul.f32 %v988_v50, %v436_v49  ;;  %v362_v44 = vand.u32 2147483647, %v1022_v29  ;;  %v501_v47 = vsub.f32 0.0, %v985_v33  ;;  %v345_v55 = vsel %vm335_vm6, 1.0, %v708_v16 }
 0x24b   :  { %v563_v37 = vadd.f32 1.0, %v553_v40  ;;  %v485_v21 = vmul.f32 %v964_v26, %v475_v42  ;;  %v554_v45 = vmul.f32 %v544_v24, %v344_v43  ;;  %v346_v35 = vsel %vm336_vm7, 1.0, %v708_v16 }
 0x24c   :  { %v456_v28 = vadd.f32 -0.28449672, %v446_v51  ;;  %v372_v25 = vmul.f32 0.3275911, %v362_v44  ;;  %v511_v62 = vmul.f32 %v501_v47, %v985_v33  ;;  %v321_v51 = vmul.f32 0.5, %v957_v52 }
 0x24d   :  { %v573_v48 = vmul.f32 %v563_v37, %v313_v8  ;;  %v535_v46 = vmul.f32 %v696_v2, %v485_v21  ;;  %v564_v57 = vadd.f32 1.0, %v554_v45  ;;  %v315_v2 = vmul.f32 0.5, %v893_v20 }
 0x24e   :  { %v466_v26 = vmul.f32 %v988_v50, %v456_v28  ;;  %v382_v54 = vadd.f32 1.0, %v372_v25  ;;  %v529_v19 = vmul.f32 1.442695, %v511_v62  ;;  %v316_v20 = vmul.f32 0.5, %v919_v53 }
 0x24f   :  { %583 = vst [vmem:[%s1070_s6] sm:$0xff] %v573_v48  ;;  %v545_v17 = vsub.f32 1.0, %v535_v46  ;;  %v574_v59 = vmul.f32 %v564_v57, %v314_v61  ;;  %v351_v8 = vsel %vm341_vm8, 1.0, %v708_v16  ;;  %vm342_vm9 = vcmp.ge.f32.partialorder %v1022_v29, 0.0 }
 0x250   :  { %v476_v22 = vadd.f32 0.2548296, %v466_v26  ;;  %701 = vrcp.f32 %v382_v54  ;;  %v352_v46 = vsel %vm342_vm9, 1.0, %v708_v16  ;;  %v322_v25 = vmul.f32 0.5, %v975_v39 }
 0x251   :  { %v698_v36 = vpop.eup %697  ;;  %v555_v60 = vmul.f32 %v545_v17, %v345_v55  ;;  %584 = vst [vmem:[%s1070_s6 + $0x8] sm:$0xff] %v574_v59  ;;  %703 = vpow2.f32 %v529_v19 }
 0x252   :  { %v486_v11 = vmul.f32 %v988_v50, %v476_v22  ;;  %v411_v0 = vmul.f32 1.0614054, %v698_v36  ;;  %v700_v1 = vpop.eup %699  ;;  %v502_v50 = vsub.f32 0.0, %v362_v44 }
 0x253   :  { %v565_v4 = vadd.f32 1.0, %v555_v60 }
 0x254   :  { %v536_v63 = vmul.f32 %v700_v1, %v486_v11  ;;  %v421_v5 = vadd.f32 -1.4531521, %v411_v0  ;;  %v512_v12 = vmul.f32 %v502_v50, %v362_v44 }
 0x255   :  { %v575_v7 = vmul.f32 %v565_v4, %v315_v2 }
 0x256   :  { %v546_v3 = vsub.f32 1.0, %v536_v63  ;;  %v431_v33 = vmul.f32 %v698_v36, %v421_v5  ;;  %v531_v58 = vmul.f32 1.442695, %v512_v12 }
 0x257   :  { %585 = vst [vmem:[%s1070_s6 + $0x10] sm:$0xff] %v575_v7 }
 0x258   :  { %v556_v9 = vmul.f32 %v546_v3, %v346_v35  ;;  %v441_v6 = vadd.f32 1.4214138, %v431_v33  ;;  %705 = vpow2.f32 %v531_v58 }
 0x25a   :  { %v566_v27 = vadd.f32 1.0, %v556_v9  ;;  %v451_v56 = vmul.f32 %v698_v36, %v441_v6  ;;  %v702_v10 = vpop.eup %701 }
 0x25b   :  { %v412_v23 = vmul.f32 1.0614054, %v702_v10  ;;  %v704_v40 = vpop.eup %703 }
 0x25c   :  { %v576_v13 = vmul.f32 %v566_v27, %v316_v20  ;;  %v461_v34 = vadd.f32 -0.28449672, %v451_v56 }
 0x25d   :  { %v422_v38 = vadd.f32 -1.4531521, %v412_v23 }
 0x25e   :  { %586 = vst [vmem:[%s1070_s6 + $0x18] sm:$0xff] %v576_v13  ;;  %v471_v30 = vmul.f32 %v698_v36, %v461_v34 }
 0x25f   :  { %v432_v32 = vmul.f32 %v702_v10, %v422_v38 }
 0x260   :  { %v481_v31 = vadd.f32 0.2548296, %v471_v30 }
 0x261   :  { %v442_v18 = vadd.f32 1.4214138, %v432_v32 }
 0x262   :  { %v491_v14 = vmul.f32 %v698_v36, %v481_v31  ;;  %v706_v45 = vpop.eup %705 }
 0x263   :  { %v452_v41 = vmul.f32 %v702_v10, %v442_v18 }
 0x264   :  { %v541_v53 = vmul.f32 %v704_v40, %v491_v14 }
 0x265   :  { %v462_v42 = vadd.f32 -0.28449672, %v452_v41 }
 0x266   :  { %v551_v49 = vsub.f32 1.0, %v541_v53 }
 0x267   :  { %v472_v24 = vmul.f32 %v702_v10, %v462_v42 }
 0x268   :  { %v561_v37 = vmul.f32 %v551_v49, %v351_v8 }
 0x269   :  { %v482_v21 = vadd.f32 0.2548296, %v472_v24 }
 0x26a   :  { %v571_v43 = vadd.f32 1.0, %v561_v37 }
 0x26b   :  { %v492_v48 = vmul.f32 %v702_v10, %v482_v21 }
 0x26c   :  { %v581_v44 = vmul.f32 %v571_v43, %v321_v51 }
 0x26d   :  { %v542_v15 = vmul.f32 %v706_v45, %v492_v48 }
 0x26e   :  { %591 = vst [vmem:[%s1070_s6 + $0x40] sm:$0xff] %v581_v44 }
 0x26f   :  { %v552_v28 = vsub.f32 1.0, %v542_v15 }
 0x271   :  { %v562_v47 = vmul.f32 %v552_v28, %v352_v46 }
 0x273   :  { %v572_v61 = vadd.f32 1.0, %v562_v47 }
 0x275   :  { %v582_v52 = vmul.f32 %v572_v61, %v322_v25 }
 0x277   :  { %592 = vst [vmem:[%s1070_s6 + $0x48] sm:$0xff] %v582_v52 }

// kernel: _lambda_.56
= control target key start
LH: loop header
LB: loop body
LE: loop exit
PB: predicated region body
PF: predicated region fallthrough
CT: control target
= control target key end

     0   :  { %vm103_vm0 = vcmask 261120   ;;  %vm727_vm1 = vcmask 131072   ;;  %vm720_vm2 = vcmask 138240   ;;  %vm1017_vm3 = vcmask 1040384   ;;  %s2602_s1 = inlined_call_operand.vmem [shape: bf16[8,17,32], index: 1, kind: input, shape index: {}]   ;;  %s2603_s0 = inlined_call_operand.vmem [shape: bf16[8,17,32], index: 0, kind: input, shape index: {}]   ;;  %s2604_s2 = inlined_call_operand.vmem [shape: bf16[8,17,32], index: 2, kind: input, shape index: {}]   ;;  %s2605_s3 = inlined_call_operand.vmem [shape: f32[8,17,32], index: 3, kind: output, shape index: {}]  }
   0x1   :  { %v1851_v0 = vld [vmem:[%s2602_s1] sm:$0xff]   ;;  %v1852_v1 = vld [vmem:[%s2602_s1 + $0xc] sm:$0xff]   ;;  %v1853_v3 = vld [vmem:[%s2602_s1 + $0x8] ss:$0 sps:$4 sm:$0x11]   ;;  %vm1535_vm4 = vcmask 253952  }
   0x2   :  { %1834 = vmatprep.subr.msk.bf16.mxu0 %vm103_vm0, %v1851_v0  ;;  %v111_v2 = vsel %vm103_vm0, %v1851_v0, 0  ;;  %1836 = vmatprep.subr.msk.bf16.mxu1 %vm103_vm0, %v1852_v1  ;;  %v187_v4 = vsel %vm103_vm0, %v1852_v1, 0  ;;  %v1854_v5 = vld [vmem:[%s2602_s1 + $0x14] ss:$0 sps:$4 sm:$0x11]   ;;  %v1855_v6 = vld [vmem:[%s2603_s0] sm:$0xff]  }
   0x3   :  { %1707 = vmatpush3.bf16.xpose.msra.mxu0 %v111_v2  ;;  %1715 = vmatpush3.bf16.xpose.msra.mxu1 %v187_v4  ;;  %v1856_v7 = vld [vmem:[%s2603_s0 + $0xc] sm:$0xff]   ;;  %v114_v8 = vsel %vm103_vm0, %v1853_v3, 0  ;;  %v1859_v9 = vld [vmem:[%s2602_s1 + $0x18] sm:$0xff]   ;;  %v190_v10 = vsel %vm103_vm0, %v1854_v5, 0  ;;  %v1860_v11 = vld [vmem:[%s2602_s1 + $0x24] sm:$0xff]  }
   0x4   :  { %1835 = vmatprep.subr.msk.bf16.mxu0 %vm103_vm0, %v1853_v3  ;;  %1837 = vmatprep.subr.msk.bf16.mxu1 %vm103_vm0, %v1854_v5  ;;  %v1857_v12 = vld [vmem:[%s2603_s0 + $0x8] ss:$0 sps:$4 sm:$0x11]   ;;  %v1858_v13 = vld [vmem:[%s2603_s0 + $0x14] ss:$0 sps:$4 sm:$0x11]  }
   0x5   :  { %1710 = vmatprep.mubr.msk.bf16.mxu0 %vm103_vm0, %v1855_v6  ;;  %1718 = vmatprep.mubr.msk.bf16.mxu1 %vm103_vm0, %v1856_v7  ;;  %v263_v14 = vsel %vm103_vm0, %v1859_v9, 0  ;;  %v339_v15 = vsel %vm103_vm0, %v1860_v11, 0  ;;  %v1861_v16 = vld [vmem:[%s2602_s1 + $0x20] ss:$0 sps:$4 sm:$0x11]   ;;  %v1863_v18 = vld [vmem:[%s2603_s0 + $0x18] sm:$0xff]  }
   0x6   :  { %v1862_v17 = vld [vmem:[%s2602_s1 + $0x2c] ss:$0 sps:$4 sm:$0x11]   ;;  %v1864_v19 = vld [vmem:[%s2603_s0 + $0x24] sm:$0xff]   ;;  %v266_v20 = vsel %vm103_vm0, %v1861_v16, 0  ;;  %v1867_v21 = vld [vmem:[%s2602_s1 + $0x30] sm:$0xff]  }
   0x7   :  { %v342_v22 = vsel %vm103_vm0, %v1862_v17, 0  ;;  %v1868_v23 = vld [vmem:[%s2602_s1 + $0x3c] sm:$0xff]   ;;  %v1866_v25 = vld [vmem:[%s2603_s0 + $0x2c] ss:$0 sps:$4 sm:$0x11]   ;;  %v415_v26 = vsel %vm103_vm0, %v1867_v21, 0 }
   0x8   :  { %v1865_v24 = vld [vmem:[%s2603_s0 + $0x20] ss:$0 sps:$4 sm:$0x11]   ;;  %v1869_v27 = vld [vmem:[%s2602_s1 + $0x38] ss:$0 sps:$4 sm:$0x11]  }
   0x9   :  { %v491_v28 = vsel %vm103_vm0, %v1868_v23, 0  ;;  %v1870_v29 = vld [vmem:[%s2602_s1 + $0x44] ss:$0 sps:$4 sm:$0x11]   ;;  %v1871_v30 = vld [vmem:[%s2603_s0 + $0x30] sm:$0xff]   ;;  %v1872_v31 = vld [vmem:[%s2603_s0 + $0x3c] sm:$0xff]  }
   0xa   :  { %v418_v32 = vsel %vm103_vm0, %v1869_v27, 0  ;;  %v1875_v33 = vld [vmem:[%s2602_s1 + $0x48] sm:$0xff]   ;;  %v494_v34 = vsel %vm103_vm0, %v1870_v29, 0  ;;  %v1876_v35 = vld [vmem:[%s2602_s1 + $0x54] sm:$0xff]  }
   0xb   :  { %1709 = vmatpush3.bf16.xpose.msra.mxu0 %v114_v8  ;;  %1717 = vmatpush3.bf16.xpose.msra.mxu1 %v190_v10  ;;  %v1873_v36 = vld [vmem:[%s2603_s0 + $0x38] ss:$0 sps:$4 sm:$0x11]   ;;  %v1874_v37 = vld [vmem:[%s2603_s0 + $0x44] ss:$0 sps:$4 sm:$0x11]  }
   0xc   :  { %1838 = vmatprep.subr.msk.bf16.mxu0 %vm103_vm0, %v1859_v9  ;;  %1840 = vmatprep.subr.msk.bf16.mxu1 %vm103_vm0, %v1860_v11  ;;  %v567_v38 = vsel %vm103_vm0, %v1875_v33, 0  ;;  %v1877_v39 = vld [vmem:[%s2602_s1 + $0x50] ss:$0 sps:$4 sm:$0x11]   ;;  %v643_v40 = vsel %vm103_vm0, %v1876_v35, 0  ;;  %v1879_v42 = vld [vmem:[%s2603_s0 + $0x48] sm:$0xff]  }
   0xd   :  { %v1878_v41 = vld [vmem:[%s2602_s1 + $0x5c] ss:$0 sps:$4 sm:$0x11]   ;;  %v1881_v43 = vld [vmem:[%s2603_s0 + $0x54] sm:$0xff]   ;;  %v570_v44 = vsel %vm103_vm0, %v1877_v39, 0 }
   0xe   :  { %v646_v45 = vsel %vm103_vm0, %v1878_v41, 0  ;;  %v1880_v46 = vld [vmem:[%s2603_s0 + $0x50] ss:$0 sps:$4 sm:$0x11]  }
   0xf   :  { %v1882_v47 = vld [vmem:[%s2603_s0 + $0x5c] ss:$0 sps:$4 sm:$0x11]  }
  0x12   :  { %1711 = vmatmul.mubr.msk.bf16.vlgmr.msra.gmra.mrb[0].mxu0 %vm103_vm0, %v1857_v12  ;;  %1719 = vmatmul.mubr.msk.bf16.vlgmr.msra.gmra.mrb[0].mxu1 %vm103_vm0, %v1858_v13 }
  0x13   :  { %1723 = vmatpush3.bf16.xpose.msra.mxu0 %v263_v14  ;;  %1731 = vmatpush3.bf16.xpose.msra.mxu1 %v339_v15 }
  0x14   :  { %1839 = vmatprep.subr.msk.bf16.mxu0 %vm103_vm0, %v1861_v16  ;;  %1841 = vmatprep.subr.msk.bf16.mxu1 %vm103_vm0, %v1862_v17 }
  0x15   :  { %1726 = vmatprep.mubr.msk.bf16.mxu0 %vm103_vm0, %v1863_v18  ;;  %1734 = vmatprep.mubr.msk.bf16.mxu1 %vm103_vm0, %v1864_v19 }
  0x1b   :  { %1725 = vmatpush3.bf16.xpose.msra.mxu0 %v266_v20  ;;  %1733 = vmatpush3.bf16.xpose.msra.mxu1 %v342_v22 }
  0x1c   :  { %1842 = vmatprep.subr.msk.bf16.mxu0 %vm103_vm0, %v1867_v21  ;;  %1844 = vmatprep.subr.msk.bf16.mxu1 %vm103_vm0, %v1868_v23 }
  0x22   :  { %1727 = vmatmul.mubr.msk.bf16.vlgmr.msra.gmra.mrb[4].mxu0 %vm103_vm0, %v1865_v24  ;;  %1735 = vmatmul.mubr.msk.bf16.vlgmr.msra.gmra.mrb[4].mxu1 %vm103_vm0, %v1866_v25 }
  0x23   :  { %1739 = vmatpush3.bf16.xpose.msra.mxu0 %v415_v26  ;;  %1747 = vmatpush3.bf16.xpose.msra.mxu1 %v491_v28 }
  0x24   :  { %1843 = vmatprep.subr.msk.bf16.mxu0 %vm103_vm0, %v1869_v27  ;;  %1845 = vmatprep.subr.msk.bf16.mxu1 %vm103_vm0, %v1870_v29 }
  0x25   :  { %1742 = vmatprep.mubr.msk.bf16.mxu0 %vm103_vm0, %v1871_v30  ;;  %1750 = vmatprep.mubr.msk.bf16.mxu1 %vm103_vm0, %v1872_v31 }
  0x2b   :  { %1741 = vmatpush3.bf16.xpose.msra.mxu0 %v418_v32  ;;  %1749 = vmatpush3.bf16.xpose.msra.mxu1 %v494_v34 }
  0x2c   :  { %1846 = vmatprep.subr.msk.bf16.mxu0 %vm103_vm0, %v1875_v33  ;;  %1848 = vmatprep.subr.msk.bf16.mxu1 %vm103_vm0, %v1876_v35 }
  0x32   :  { %1743 = vmatmul.mubr.msk.bf16.vlgmr.msra.gmra.mrb[8].mxu0 %vm103_vm0, %v1873_v36  ;;  %1751 = vmatmul.mubr.msk.bf16.vlgmr.msra.gmra.mrb[8].mxu1 %vm103_vm0, %v1874_v37 }
  0x33   :  { %1755 = vmatpush3.bf16.xpose.msra.mxu0 %v567_v38  ;;  %1763 = vmatpush3.bf16.xpose.msra.mxu1 %v643_v40 }
  0x34   :  { %1847 = vmatprep.subr.msk.bf16.mxu0 %vm103_vm0, %v1877_v39  ;;  %1849 = vmatprep.subr.msk.bf16.mxu1 %vm103_vm0, %v1878_v41 }
  0x35   :  { %1758 = vmatprep.mubr.msk.bf16.mxu0 %vm103_vm0, %v1879_v42  ;;  %1766 = vmatprep.mubr.msk.bf16.mxu1 %vm103_vm0, %v1881_v43 }
  0x3b   :  { %1757 = vmatpush3.bf16.xpose.msra.mxu0 %v570_v44  ;;  %1765 = vmatpush3.bf16.xpose.msra.mxu1 %v646_v45 }
  0x42   :  { %1759 = vmatmul.mubr.msk.bf16.vlgmr.msra.gmra.mrb[12].mxu0 %vm103_vm0, %v1880_v46  ;;  %1767 = vmatmul.mubr.msk.bf16.vlgmr.msra.gmra.mrb[12].mxu1 %vm103_vm0, %v1882_v47 }
  0xe5   :  { %v1712_v48 = vpop.f32.mrb[0].mxu0  ;;  %v1720_v50 = vpop.f32.mrb[0].mxu1 }
  0xe6   :  { %v2160_v49 = vmul.f32 0.17677669, %v1712_v48  ;;  %v150_v51 = vpop.f32.mrb[1].mxu0  ;;  %v2162_v52 = vmul.f32 0.17677669, %v1720_v50  ;;  %v226_v55 = vpop.f32.mrb[1].mxu1 }
  0xe7   :  { %v2164_v53 = vmul.f32 0.17677669, %v150_v51  ;;  %v1713_v54 = vpop.f32.mrb[2].mxu0  ;;  %v2166_v57 = vmul.f32 0.17677669, %v226_v55  ;;  %v1721_v58 = vpop.f32.mrb[2].mxu1 }
  0xe8   :  { %v153_v56 = vpop.f32.mrb[3].mxu0  ;;  %v728_v59 = vsel %vm727_vm1, %v2160_v49, -inf  ;;  %v737_v60 = vsel %vm727_vm1, %v2162_v52, -inf  ;;  %v229_v61 = vpop.f32.mrb[3].mxu1 }
  0xe9   :  { %729 = vmax.xlane.f32.xlu0 %v728_v59  ;;  %738 = vmax.xlane.f32.xlu1 %v737_v60  ;;  %v731_v62 = vsel %vm720_vm2, %v2166_v57, -inf  ;;  %v2174_v63 = vmul.f32 0.17677669, %v153_v56  ;;  %v721_v0 = vsel %vm720_vm2, %v2164_v53, -inf  ;;  %v2178_v1 = vmul.f32 0.17677669, %v229_v61 }
  0xeb   :  { %v724_v2 = vsel %vm720_vm2, %v2174_v63, -inf  ;;  %v734_v3 = vsel %vm720_vm2, %v2178_v1, -inf }
  0xed   :  { %722 = vmax.xlane.f32.xlu0 %v721_v0  ;;  %732 = vmax.xlane.f32.xlu1 %v731_v62 }
  0xf1   :  { %725 = vmax.xlane.f32.xlu0 %v724_v2  ;;  %735 = vmax.xlane.f32.xlu1 %v734_v3 }
  0xf5   :  { %v1728_v4 = vpop.f32.mrb[4].mxu0  ;;  %v1736_v6 = vpop.f32.mrb[4].mxu1 }
  0xf6   :  { %v2184_v5 = vmul.f32 0.17677669, %v1728_v4  ;;  %v302_v7 = vpop.f32.mrb[5].mxu0  ;;  %v2186_v8 = vmul.f32 0.17677669, %v1736_v6  ;;  %v378_v10 = vpop.f32.mrb[5].mxu1 }
  0xf7   :  { %v1729_v9 = vpop.f32.mrb[6].mxu0  ;;  %v2188_v11 = vmul.f32 0.17677669, %v302_v7  ;;  %v1737_v13 = vpop.f32.mrb[6].mxu1  ;;  %v2198_v19 = vmul.f32 0.17677669, %v378_v10 }
  0xf8   :  { %v305_v12 = vpop.f32.mrb[7].mxu0  ;;  %v746_v14 = vsel %vm727_vm1, %v2184_v5, -inf  ;;  %v755_v16 = vsel %vm727_vm1, %v2186_v8, -inf  ;;  %v381_v17 = vpop.f32.mrb[7].mxu1 }
  0xf9   :  { %v2192_v15 = vmul.f32 0.17677669, %v305_v12  ;;  %747 = vmax.xlane.f32.xlu0 %v746_v14  ;;  %756 = vmax.xlane.f32.xlu1 %v755_v16  ;;  %v740_v20 = vsel %vm720_vm2, %v2188_v11, -inf  ;;  %v2202_v21 = vmul.f32 0.17677669, %v381_v17  ;;  %v749_v22 = vsel %vm720_vm2, %v2198_v19, -inf }
  0xfb   :  { %v743_v18 = vsel %vm720_vm2, %v2192_v15, -inf  ;;  %v752_v23 = vsel %vm720_vm2, %v2202_v21, -inf }
  0xfd   :  { %741 = vmax.xlane.f32.xlu0 %v740_v20  ;;  %744 = vmax.xlane.f32.xlu1 %v743_v18 }
 0x101   :  { %750 = vmax.xlane.f32.xlu0 %v749_v22  ;;  %753 = vmax.xlane.f32.xlu1 %v752_v23 }
 0x105   :  { %v1744_v24 = vpop.f32.mrb[8].mxu0  ;;  %v1752_v26 = vpop.f32.mrb[8].mxu1 }
 0x106   :  { %v2208_v25 = vmul.f32 0.17677669, %v1744_v24  ;;  %v454_v27 = vpop.f32.mrb[9].mxu0  ;;  %v2210_v28 = vmul.f32 0.17677669, %v1752_v26  ;;  %v530_v30 = vpop.f32.mrb[9].mxu1 }
 0x107   :  { %v1745_v29 = vpop.f32.mrb[10].mxu0  ;;  %v2212_v31 = vmul.f32 0.17677669, %v454_v27  ;;  %v1753_v33 = vpop.f32.mrb[10].mxu1  ;;  %v2222_v39 = vmul.f32 0.17677669, %v530_v30 }
 0x108   :  { %v457_v32 = vpop.f32.mrb[11].mxu0  ;;  %v764_v34 = vsel %vm727_vm1, %v2208_v25, -inf  ;;  %v773_v36 = vsel %vm727_vm1, %v2210_v28, -inf  ;;  %v533_v37 = vpop.f32.mrb[11].mxu1 }
 0x109   :  { %v2216_v35 = vmul.f32 0.17677669, %v457_v32  ;;  %765 = vmax.xlane.f32.xlu0 %v764_v34  ;;  %774 = vmax.xlane.f32.xlu1 %v773_v36  ;;  %v758_v40 = vsel %vm720_vm2, %v2212_v31, -inf  ;;  %v2226_v41 = vmul.f32 0.17677669, %v533_v37  ;;  %v767_v42 = vsel %vm720_vm2, %v2222_v39, -inf }
 0x10b   :  { %v761_v38 = vsel %vm720_vm2, %v2216_v35, -inf  ;;  %v770_v43 = vsel %vm720_vm2, %v2226_v41, -inf }
 0x10d   :  { %759 = vmax.xlane.f32.xlu0 %v758_v40  ;;  %762 = vmax.xlane.f32.xlu1 %v761_v38 }
 0x111   :  { %768 = vmax.xlane.f32.xlu0 %v767_v42  ;;  %771 = vmax.xlane.f32.xlu1 %v770_v43 }
 0x115   :  { %v1760_v44 = vpop.f32.mrb[12].mxu0  ;;  %v1768_v46 = vpop.f32.mrb[12].mxu1 }
 0x116   :  { %v606_v45 = vpop.f32.mrb[13].mxu0  ;;  %v682_v50 = vpop.f32.mrb[13].mxu1  ;;  %v2246_v0 = vmul.f32 0.17677669, %v1760_v44  ;;  %v2248_v2 = vmul.f32 0.17677669, %v1768_v46 }
 0x117   :  { %v2232_v47 = vmul.f32 0.17677669, %v606_v45  ;;  %v1761_v48 = vpop.f32.mrb[14].mxu0  ;;  %v2234_v51 = vmul.f32 0.17677669, %v682_v50  ;;  %v1769_v55 = vpop.f32.mrb[14].mxu1 }
 0x118   :  { %v609_v54 = vpop.f32.mrb[15].mxu0  ;;  %v685_v58 = vpop.f32.mrb[15].mxu1  ;;  %v782_v4 = vsel %vm727_vm1, %v2246_v0, -inf  ;;  %v791_v6 = vsel %vm727_vm1, %v2248_v2, -inf }
 0x119   :  { %v2236_v56 = vmul.f32 0.17677669, %v609_v54  ;;  %v776_v59 = vsel %vm720_vm2, %v2232_v47, -inf  ;;  %v2240_v60 = vmul.f32 0.17677669, %v685_v58  ;;  %v785_v62 = vsel %vm720_vm2, %v2234_v51, -inf }
 0x11a   :  { %777 = vmax.xlane.f32.xlu0 %v776_v59 }
 0x11b   :  { %v779_v61 = vsel %vm720_vm2, %v2236_v56, -inf  ;;  %v788_v3 = vsel %vm720_vm2, %v2240_v60, -inf }
 0x11c   :  { %780 = vmax.xlane.f32.xlu1 %v779_v61 }
 0x11e   :  { %786 = vmax.xlane.f32.xlu0 %v785_v62 }
 0x120   :  { %789 = vmax.xlane.f32.xlu1 %v788_v3 }
 0x122   :  { %783 = vmax.xlane.f32.xlu0 %v782_v4 }
 0x124   :  { %792 = vmax.xlane.f32.xlu1 %v791_v6 }
 0x176   :  { %v730_v7 = vpop.xlane.xlu0 %729  ;;  %v739_v9 = vpop.xlane.xlu1 %738 }
 0x177   :  { %v796_v10 = vsub.f32 %v2160_v49, %v730_v7  ;;  %v799_v12 = vsub.f32 %v2162_v52, %v739_v9 }
 0x179   :  { %v822_v13 = vmul.f32 1.442695, %v796_v10  ;;  %v828_v14 = vmul.f32 1.442695, %v799_v12 }
 0x17a   :  { %v723_v16 = vpop.xlane.xlu0 %722  ;;  %v733_v17 = vpop.xlane.xlu1 %732 }
 0x17b   :  { %1899 = vpow2.f32 %v822_v13  ;;  %v794_v18 = vsub.f32 %v2164_v53, %v723_v16  ;;  %v797_v20 = vsub.f32 %v2166_v57, %v733_v17 }
 0x17c   :  { %1901 = vpow2.f32 %v828_v14 }
 0x17d   :  { %v818_v22 = vmul.f32 1.442695, %v794_v18  ;;  %v824_v23 = vmul.f32 1.442695, %v797_v20 }
 0x17e   :  { %v726_v24 = vpop.xlane.xlu0 %725  ;;  %v736_v26 = vpop.xlane.xlu1 %735 }
 0x17f   :  { %1903 = vpow2.f32 %v818_v22  ;;  %v795_v27 = vsub.f32 %v2174_v63, %v726_v24  ;;  %v798_v49 = vsub.f32 %v2178_v1, %v736_v26 }
 0x180   :  { %1905 = vpow2.f32 %v824_v23 }
 0x181   :  { %v820_v52 = vmul.f32 1.442695, %v795_v27  ;;  %v826_v29 = vmul.f32 1.442695, %v798_v49 }
 0x183   :  { %1907 = vpow2.f32 %v820_v52 }
 0x184   :  { %1909 = vpow2.f32 %v826_v29 }
 0x185   :  { %v2262_v30 = vpop.eup %1899 }
 0x186   :  { %v2264_v53 = vpop.eup %1901  ;;  %v748_v32 = vpop.xlane.xlu0 %747  ;;  %v872_v57 = vsel %vm727_vm1, %v2262_v30, 0.0 }
 0x187   :  { %v757_v33 = vpop.xlane.xlu1 %756  ;;  %v802_v34 = vsub.f32 %v2184_v5, %v748_v32  ;;  %873 = vadd.xlane.f32.xlu0 %v872_v57  ;;  %v881_v63 = vsel %vm727_vm1, %v2264_v53, 0.0 }
 0x188   :  { %v805_v1 = vsub.f32 %v2186_v8, %v757_v33  ;;  %882 = vadd.xlane.f32.xlu1 %v881_v63  ;;  %v1883_v63 = vld [vmem:[%s2604_s2] sm:$0xff]  }
 0x189   :  { %v2272_v36 = vpop.eup %1903  ;;  %v834_v37 = vmul.f32 1.442695, %v802_v34  ;;  %1770 = vmatprep.subr.bf16.mxu0 %v1883_v63 }
 0x18a   :  { %v840_v38 = vmul.f32 1.442695, %v805_v1  ;;  %v742_v40 = vpop.xlane.xlu0 %741  ;;  %v866_v42 = vsel %vm720_vm2, %v2272_v36, 0.0  ;;  %v2276_v43 = vpop.eup %1905  ;;  %1771 = vmatpush3.bf16.msra.mxu0 %v1883_v63 }
 0x18b   :  { %1911 = vpow2.f32 %v834_v37  ;;  %v800_v5 = vsub.f32 %v2188_v11, %v742_v40  ;;  %v745_v44 = vpop.xlane.xlu1 %744  ;;  %867 = vadd.xlane.f32.xlu0 %v866_v42  ;;  %v875_v54 = vsel %vm720_vm2, %v2276_v43, 0.0  ;;  %v1995_v42 = vmov 0  }
 0x18c   :  { %1913 = vpow2.f32 %v840_v38  ;;  %v801_v45 = vsub.f32 %v2192_v15, %v745_v44 }
 0x18d   :  { %v2280_v8 = vpop.eup %1907  ;;  %v830_v46 = vmul.f32 1.442695, %v800_v5  ;;  %v2336_v5 = vsel %vm1017_vm3, 65535, %v1995_v42 }
 0x18e   :  { %v832_v48 = vmul.f32 1.442695, %v801_v45  ;;  %v751_v50 = vpop.xlane.xlu0 %750  ;;  %v869_v55 = vsel %vm720_vm2, %v2280_v8, 0.0  ;;  %v2286_v58 = vpop.eup %1909 }
 0x18f   :  { %1915 = vpow2.f32 %v830_v46  ;;  %v803_v11 = vsub.f32 %v2198_v19, %v751_v50  ;;  %v754_v59 = vpop.xlane.xlu1 %753  ;;  %876 = vadd.xlane.f32.xlu0 %v875_v54  ;;  %870 = vadd.xlane.f32.xlu1 %v869_v55  ;;  %v878_v3 = vsel %vm720_vm2, %v2286_v58, 0.0  ;;  %v1885_v46 = vld [vmem:[%s2604_s2 + $0xc] sm:$0xff]  }
 0x190   :  { %1917 = vpow2.f32 %v832_v48  ;;  %v804_v15 = vsub.f32 %v2202_v21, %v754_v59  ;;  %1778 = vmatprep.subr.bf16.mxu1 %v1885_v46 }
 0x191   :  { %v836_v61 = vmul.f32 1.442695, %v803_v11  ;;  %1779 = vmatpush3.bf16.msra.mxu1 %v1885_v46  ;;  %v1897_v46 = vld [vmem:[%s2604_s2 + $0x50] ss:$0 sps:$4 sm:$0x11]  }
 0x192   :  { %v838_v62 = vmul.f32 1.442695, %v804_v15 }
 0x193   :  { %1919 = vpow2.f32 %v836_v61  ;;  %879 = vadd.xlane.f32.xlu1 %v878_v3 }
 0x194   :  { %1921 = vpow2.f32 %v838_v62 }
 0x195   :  { %v2292_v4 = vpop.eup %1911 }
 0x196   :  { %v2294_v6 = vpop.eup %1913  ;;  %v766_v7 = vpop.xlane.xlu0 %765  ;;  %v890_v19 = vsel %vm727_vm1, %v2292_v4, 0.0 }
 0x197   :  { %v775_v9 = vpop.xlane.xlu1 %774  ;;  %v808_v10 = vsub.f32 %v2208_v25, %v766_v7  ;;  %891 = vadd.xlane.f32.xlu0 %v890_v19  ;;  %v899_v21 = vsel %vm727_vm1, %v2294_v6, 0.0 }
 0x198   :  { %v811_v12 = vsub.f32 %v2210_v28, %v775_v9  ;;  %900 = vadd.xlane.f32.xlu1 %v899_v21 }
 0x199   :  { %v2302_v13 = vpop.eup %1915  ;;  %v846_v14 = vmul.f32 1.442695, %v808_v10 }
 0x19a   :  { %v2304_v16 = vpop.eup %1917  ;;  %v852_v17 = vmul.f32 1.442695, %v811_v12  ;;  %v760_v18 = vpop.xlane.xlu0 %759  ;;  %v884_v20 = vsel %vm720_vm2, %v2302_v13, 0.0 }
 0x19b   :  { %1923 = vpow2.f32 %v846_v14  ;;  %v806_v25 = vsub.f32 %v2212_v31, %v760_v18  ;;  %v763_v22 = vpop.xlane.xlu1 %762  ;;  %885 = vadd.xlane.f32.xlu0 %v884_v20  ;;  %v887_v23 = vsel %vm720_vm2, %v2304_v16, 0.0  ;;  %v2370_v20 = vld [vmem:[%s2604_s2 + $0x18] sm:$0xff]  }
 0x19c   :  { %1925 = vpow2.f32 %v852_v17  ;;  %v807_v28 = vsub.f32 %v2216_v35, %v763_v22  ;;  %888 = vadd.xlane.f32.xlu1 %v887_v23  ;;  %v1888_v23 = vld [vmem:[%s2604_s2 + $0x20] ss:$0 sps:$4 sm:$0x11]  }
 0x19d   :  { %v2312_v24 = vpop.eup %1919  ;;  %v842_v26 = vmul.f32 1.442695, %v806_v25 }
 0x19e   :  { %v2314_v27 = vpop.eup %1921  ;;  %v844_v49 = vmul.f32 1.442695, %v807_v28  ;;  %v769_v52 = vpop.xlane.xlu0 %768  ;;  %v893_v29 = vsel %vm720_vm2, %v2312_v24, 0.0  ;;  %v2378_v28 = vand.u32 %v1888_v23, %v2336_v5 }
 0x19f   :  { %1927 = vpow2.f32 %v842_v26  ;;  %v809_v31 = vsub.f32 %v2222_v39, %v769_v52  ;;  %v772_v32 = vpop.xlane.xlu1 %771  ;;  %894 = vadd.xlane.f32.xlu0 %v893_v29  ;;  %v896_v57 = vsel %vm720_vm2, %v2314_v27, 0.0  ;;  %v2383_v26 = vld [vmem:[%s2604_s2 + $0x24] sm:$0xff]  }
 0x1a0   :  { %1929 = vpow2.f32 %v844_v49  ;;  %v810_v35 = vsub.f32 %v2226_v41, %v772_v32  ;;  %897 = vadd.xlane.f32.xlu1 %v896_v57  ;;  %v1884_v41 = vld [vmem:[%s2604_s2 + $0x8] ss:$0 sps:$4 sm:$0x11]  }
 0x1a1   :  { %v848_v33 = vmul.f32 1.442695, %v809_v31  ;;  %v1021_v45 = vand.u32 %v1884_v41, %v2336_v5 }
 0x1a2   :  { %v850_v34 = vmul.f32 1.442695, %v810_v35 }
 0x1a3   :  { %1931 = vpow2.f32 %v848_v33  ;;  %1772 = vmatprep.subr.bf16.mxu0 %v1021_v45 }
 0x1a4   :  { %1933 = vpow2.f32 %v850_v34  ;;  %1773 = vmatpush3.bf16.msra.mxu0 %v1021_v45 }
 0x1a5   :  { %v2325_v1 = vpop.eup %1923  ;;  %1786 = vmatprep.subr.bf16.mxu0 %v2370_v20 }
 0x1a6   :  { %v2327_v39 = vpop.eup %1925  ;;  %v908_v37 = vsel %vm727_vm1, %v2325_v1, 0.0 }
 0x1a7   :  { %909 = vadd.xlane.f32.xlu0 %v908_v37  ;;  %v778_v38 = vpop.xlane.xlu0 %777  ;;  %v917_v40 = vsel %vm727_vm1, %v2327_v39, 0.0 }
 0x1a8   :  { %v812_v44 = vsub.f32 %v2232_v47, %v778_v38  ;;  %918 = vadd.xlane.f32.xlu1 %v917_v40  ;;  %v1886_v47 = vld [vmem:[%s2604_s2 + $0x14] ss:$0 sps:$4 sm:$0x11]   ;;  %v1892_v40 = vld [vmem:[%s2604_s2 + $0x38] ss:$0 sps:$4 sm:$0x11]  }
 0x1a9   :  { %v2343_v48 = vpop.eup %1927  ;;  %v781_v50 = vpop.xlane.xlu1 %780  ;;  %v2420_v42 = vand.u32 %v1892_v40, %v2336_v5 }
 0x1aa   :  { %v2345_v54 = vpop.eup %1929  ;;  %v854_v55 = vmul.f32 1.442695, %v812_v44  ;;  %v813_v11 = vsub.f32 %v2236_v56, %v781_v50  ;;  %v902_v59 = vsel %vm720_vm2, %v2343_v48, 0.0  ;;  %v1087_v56 = vand.u32 %v1886_v47, %v2336_v5  ;;  %v1894_v44 = vld [vmem:[%s2604_s2 + $0x44] ss:$0 sps:$4 sm:$0x11]  }
 0x1ab   :  { %903 = vadd.xlane.f32.xlu0 %v902_v59  ;;  %v787_v15 = vpop.xlane.xlu0 %786  ;;  %v905_v61 = vsel %vm720_vm2, %v2345_v54, 0.0  ;;  %v2426_v45 = vand.u32 %v1894_v44, %v2336_v5  ;;  %v2432_v50 = vand.u32 %v1897_v46, %v2336_v5 }
 0x1ac   :  { %1935 = vpow2.f32 %v854_v55  ;;  %v856_v62 = vmul.f32 1.442695, %v813_v11  ;;  %v815_v3 = vsub.f32 %v2234_v51, %v787_v15  ;;  %906 = vadd.xlane.f32.xlu1 %v905_v61  ;;  %1780 = vmatprep.subr.bf16.mxu1 %v1087_v56  ;;  %v1898_v55 = vld [vmem:[%s2604_s2 + $0x5c] ss:$0 sps:$4 sm:$0x11]  }
 0x1ad   :  { %v2357_v7 = vpop.eup %1931  ;;  %v790_v19 = vpop.xlane.xlu1 %789  ;;  %1781 = vmatpush3.bf16.msra.mxu1 %v1087_v56  ;;  %v2438_v11 = vand.u32 %v1898_v55, %v2336_v5 }
 0x1ae   :  { %v2359_v9 = vpop.eup %1933  ;;  %1937 = vpow2.f32 %v856_v62  ;;  %v860_v10 = vmul.f32 1.442695, %v815_v3  ;;  %v816_v21 = vsub.f32 %v2240_v60, %v790_v19  ;;  %v911_v12 = vsel %vm720_vm2, %v2357_v7, 0.0  ;;  %1794 = vmatprep.subr.bf16.mxu1 %v2383_v26 }
 0x1af   :  { %912 = vadd.xlane.f32.xlu0 %v911_v12  ;;  %v784_v14 = vpop.xlane.xlu0 %783  ;;  %v914_v51 = vsel %vm720_vm2, %v2359_v9, 0.0 }
 0x1b0   :  { %1939 = vpow2.f32 %v860_v10  ;;  %v862_v17 = vmul.f32 1.442695, %v816_v21  ;;  %v814_v18 = vsub.f32 %v2246_v0, %v784_v14  ;;  %915 = vadd.xlane.f32.xlu1 %v914_v51 }
 0x1b1   :  { %v793_v60 = vpop.xlane.xlu1 %792 }
 0x1b2   :  { %1941 = vpow2.f32 %v862_v17  ;;  %v858_v25 = vmul.f32 1.442695, %v814_v18  ;;  %v817_v22 = vsub.f32 %v2248_v2, %v793_v60  ;;  %v1890_v2 = vld [vmem:[%s2604_s2 + $0x2c] ss:$0 sps:$4 sm:$0x11]  }
 0x1b3   :  { %v2396_v31 = vand.u32 %v1890_v2, %v2336_v5 }
 0x1b4   :  { %1943 = vpow2.f32 %v858_v25  ;;  %v864_v0 = vmul.f32 1.442695, %v817_v22 }
 0x1b6   :  { %v2385_v49 = vpop.eup %1935  ;;  %1945 = vpow2.f32 %v864_v0 }
 0x1b7   :  { %v920_v52 = vsel %vm720_vm2, %v2385_v49, 0.0 }
 0x1b8   :  { %v2393_v29 = vpop.eup %1937  ;;  %921 = vadd.xlane.f32.xlu0 %v920_v52 }
 0x1b9   :  { %v923_v32 = vsel %vm720_vm2, %v2393_v29, 0.0 }
 0x1ba   :  { %v2400_v57 = vpop.eup %1939  ;;  %924 = vadd.xlane.f32.xlu1 %v923_v32 }
 0x1bb   :  { %v929_v35 = vsel %vm720_vm2, %v2400_v57, 0.0 }
 0x1bc   :  { %v2404_v33 = vpop.eup %1941  ;;  %930 = vadd.xlane.f32.xlu0 %v929_v35 }
 0x1bd   :  { %v932_v34 = vsel %vm720_vm2, %v2404_v33, 0.0 }
 0x1be   :  { %v2408_v63 = vpop.eup %1943  ;;  %933 = vadd.xlane.f32.xlu1 %v932_v34 }
 0x1bf   :  { %v926_v37 = vsel %vm727_vm1, %v2408_v63, 0.0 }
 0x1c0   :  { %v2412_v41 = vpop.eup %1945  ;;  %927 = vadd.xlane.f32.xlu0 %v926_v37 }
 0x1c1   :  { %v935_v38 = vsel %vm727_vm1, %v2412_v41, 0.0 }
 0x1c2   :  { %936 = vadd.xlane.f32.xlu1 %v935_v38 }
 0x214   :  { %v874_v59 = vpop.xlane.xlu0 %873 }
 0x215   :  { %v883_v47 = vpop.xlane.xlu1 %882  ;;  %1947 = vrcp.f32 %v874_v59 }
 0x218   :  { %v868_v15 = vpop.xlane.xlu0 %867 }
 0x219   :  { %1949 = vrcp.f32 %v868_v15 }
 0x21a   :  { %1951 = vrcp.f32 %v883_v47 }
 0x21c   :  { %v877_v61 = vpop.xlane.xlu0 %876  ;;  %v871_v62 = vpop.xlane.xlu1 %870 }
 0x21d   :  { %1953 = vrcp.f32 %v871_v62 }
 0x21e   :  { %1955 = vrcp.f32 %v877_v61 }
 0x21f   :  { %v1948_v19 = vpop.eup %1947 }
 0x220   :  { %v880_v3 = vpop.xlane.xlu1 %879  ;;  %v964_v14 = vmul.f32 %v1948_v19, %v2262_v30 }
 0x221   :  { %1957 = vrcp.f32 %v880_v3 }
 0x222   :  { %v987_v52 = vpack.c.bf16 %v964_v14, %v964_v14 }
 0x223   :  { %v1950_v21 = vpop.eup %1949 }
 0x224   :  { %v892_v56 = vpop.xlane.xlu0 %891  ;;  %v1952_v12 = vpop.eup %1951  ;;  %v962_v60 = vmul.f32 %v1950_v21, %v2272_v36 }
 0x225   :  { %v901_v10 = vpop.xlane.xlu1 %900  ;;  %1959 = vrcp.f32 %v892_v56  ;;  %v967_v23 = vmul.f32 %v1952_v12, %v2264_v53  ;;  %v1891_v53 = vld [vmem:[%s2604_s2 + $0x30] sm:$0xff]  }
 0x227   :  { %v1954_v5 = vpop.eup %1953 }
 0x228   :  { %v886_v51 = vpop.xlane.xlu0 %885  ;;  %v1956_v17 = vpop.eup %1955  ;;  %v963_v25 = vmul.f32 %v1954_v5, %v2280_v8  ;;  %v989_v8 = vpack.c.bf16 %v967_v23, %v967_v23 }
 0x229   :  { %1961 = vrcp.f32 %v886_v51  ;;  %v889_v18 = vpop.xlane.xlu1 %888  ;;  %v965_v32 = vmul.f32 %v1956_v17, %v2276_v43 }
 0x22a   :  { %1963 = vrcp.f32 %v889_v18  ;;  %v986_v0 = vpack.c.bf16 %v963_v25, %v962_v60 }
 0x22b   :  { %v1958_v22 = vpop.eup %1957  ;;  %1965 = vrcp.f32 %v901_v10 }
 0x22c   :  { %v895_v2 = vpop.xlane.xlu0 %894  ;;  %v966_v30 = vmul.f32 %v1958_v22, %v2286_v58  ;;  %1774 = vmatprep.mubr.msk.bf16.mxu0 %vm720_vm2, %v986_v0 }
 0x22d   :  { %1967 = vrcp.f32 %v895_v2  ;;  %v898_v35 = vpop.xlane.xlu1 %897  ;;  %1775 = vmatmul.mubr.msk.bf16.vlgmr.msra.gmra.mrb[16].mxu0 %vm720_vm2, %v987_v52 }
 0x22e   :  { %1969 = vrcp.f32 %v898_v35  ;;  %v988_v36 = vpack.c.bf16 %v966_v30, %v965_v32  ;;  %1787 = vmatpush3.bf16.msra.mxu0 %v2370_v20  ;;  %v1893_v20 = vld [vmem:[%s2604_s2 + $0x3c] sm:$0xff]  }
 0x22f   :  { %1788 = vmatprep.subr.bf16.mxu0 %v2378_v28  ;;  %v1960_v43 = vpop.eup %1959 }
 0x230   :  { %1782 = vmatprep.mubr.msk.bf16.mxu1 %vm720_vm2, %v988_v36  ;;  %v970_v37 = vmul.f32 %v1960_v43, %v2292_v4 }
 0x231   :  { %1783 = vmatmul.mubr.msk.bf16.vlgmr.msra.gmra.mrb[16].mxu1 %vm720_vm2, %v989_v8 }
 0x232   :  { %1795 = vmatpush3.bf16.msra.mxu1 %v2383_v26  ;;  %1789 = vmatpush3.bf16.msra.mxu0 %v2378_v28  ;;  %v991_v61 = vpack.c.bf16 %v970_v37, %v970_v37 }
 0x233   :  { %v1962_v58 = vpop.eup %1961  ;;  %1796 = vmatprep.subr.bf16.mxu1 %v2396_v31  ;;  %1802 = vmatprep.subr.bf16.mxu0 %v1891_v53 }
 0x234   :  { %v1964_v34 = vpop.eup %1963  ;;  %v910_v38 = vpop.xlane.xlu0 %909  ;;  %v968_v40 = vmul.f32 %v1962_v58, %v2302_v13 }
 0x235   :  { %v1966_v44 = vpop.eup %1965  ;;  %v919_v46 = vpop.xlane.xlu1 %918  ;;  %v969_v26 = vmul.f32 %v1964_v34, %v2304_v16  ;;  %1971 = vrcp.f32 %v910_v38 }
 0x236   :  { %1797 = vmatpush3.bf16.msra.mxu1 %v2396_v31  ;;  %v973_v47 = vmul.f32 %v1966_v44, %v2294_v6  ;;  %v1895_v6 = vld [vmem:[%s2604_s2 + $0x48] sm:$0xff]  }
 0x237   :  { %v1968_v28 = vpop.eup %1967  ;;  %v990_v55 = vpack.c.bf16 %v969_v26, %v968_v40  ;;  %1810 = vmatprep.subr.bf16.mxu1 %v1893_v20 }
 0x238   :  { %v1970_v59 = vpop.eup %1969  ;;  %v904_v15 = vpop.xlane.xlu0 %903  ;;  %v971_v4 = vmul.f32 %v1968_v28, %v2312_v24  ;;  %v993_v3 = vpack.c.bf16 %v973_v47, %v973_v47 }
 0x239   :  { %1973 = vrcp.f32 %v904_v15  ;;  %1790 = vmatprep.mubr.msk.bf16.mxu0 %vm720_vm2, %v990_v55  ;;  %v907_v13 = vpop.xlane.xlu1 %906  ;;  %v972_v62 = vmul.f32 %v1970_v59, %v2314_v27  ;;  %v1896_v27 = vld [vmem:[%s2604_s2 + $0x54] sm:$0xff]  }
 0x23a   :  { %1975 = vrcp.f32 %v907_v13  ;;  %1791 = vmatmul.mubr.msk.bf16.vlgmr.msra.gmra.mrb[20].mxu0 %vm720_vm2, %v991_v61 }
 0x23b   :  { %1977 = vrcp.f32 %v919_v46  ;;  %v992_v16 = vpack.c.bf16 %v972_v62, %v971_v4  ;;  %1803 = vmatpush3.bf16.msra.mxu0 %v1891_v53 }
 0x23c   :  { %v913_v31 = vpop.xlane.xlu0 %912  ;;  %1804 = vmatprep.subr.bf16.mxu0 %v2420_v42 }
 0x23d   :  { %1979 = vrcp.f32 %v913_v31  ;;  %1798 = vmatprep.mubr.msk.bf16.mxu1 %vm720_vm2, %v992_v16  ;;  %v916_v24 = vpop.xlane.xlu1 %915 }
 0x23e   :  { %1981 = vrcp.f32 %v916_v24  ;;  %1799 = vmatmul.mubr.msk.bf16.vlgmr.msra.gmra.mrb[20].mxu1 %vm720_vm2, %v993_v3 }
 0x23f   :  { %1805 = vmatpush3.bf16.msra.mxu0 %v2420_v42  ;;  %1811 = vmatpush3.bf16.msra.mxu1 %v1893_v20  ;;  %v1972_v56 = vpop.eup %1971 }
 0x240   :  { %1812 = vmatprep.subr.bf16.mxu1 %v2426_v45  ;;  %1818 = vmatprep.subr.bf16.mxu0 %v1895_v6  ;;  %v976_v21 = vmul.f32 %v1972_v56, %v2325_v1 }
 0x242   :  { %v995_v22 = vpack.c.bf16 %v976_v21, %v976_v21 }
 0x243   :  { %v1974_v19 = vpop.eup %1973  ;;  %1813 = vmatpush3.bf16.msra.mxu1 %v2426_v45 }
 0x244   :  { %v1976_v10 = vpop.eup %1975  ;;  %v974_v12 = vmul.f32 %v1974_v19, %v2343_v48  ;;  %1826 = vmatprep.subr.bf16.mxu1 %v1896_v27 }
 0x245   :  { %v1978_v5 = vpop.eup %1977  ;;  %v922_v42 = vpop.xlane.xlu0 %921  ;;  %v975_v14 = vmul.f32 %v1976_v10, %v2345_v54 }
 0x246   :  { %1983 = vrcp.f32 %v922_v42  ;;  %v979_v25 = vmul.f32 %v1978_v5, %v2327_v39 }
 0x247   :  { %v1980_v51 = vpop.eup %1979  ;;  %v925_v17 = vpop.xlane.xlu1 %924  ;;  %v994_v18 = vpack.c.bf16 %v975_v14, %v974_v12 }
 0x248   :  { %v1982_v60 = vpop.eup %1981  ;;  %1985 = vrcp.f32 %v925_v17  ;;  %v977_v45 = vmul.f32 %v1980_v51, %v2357_v7  ;;  %v997_v0 = vpack.c.bf16 %v979_v25, %v979_v25 }
 0x249   :  { %1806 = vmatprep.mubr.msk.bf16.mxu0 %vm720_vm2, %v994_v18  ;;  %v931_v1 = vpop.xlane.xlu0 %930  ;;  %v978_v48 = vmul.f32 %v1982_v60, %v2359_v9 }
 0x24a   :  { %1987 = vrcp.f32 %v931_v1  ;;  %1807 = vmatmul.mubr.msk.bf16.vlgmr.msra.gmra.mrb[24].mxu0 %vm720_vm2, %v995_v22 }
 0x24b   :  { %v934_v54 = vpop.xlane.xlu1 %933  ;;  %v996_v23 = vpack.c.bf16 %v978_v48, %v977_v45  ;;  %1819 = vmatpush3.bf16.msra.mxu0 %v1895_v6 }
 0x24c   :  { %1989 = vrcp.f32 %v934_v54  ;;  %1820 = vmatprep.subr.bf16.mxu0 %v2432_v50 }
 0x24d   :  { %1814 = vmatprep.mubr.msk.bf16.mxu1 %vm720_vm2, %v996_v23  ;;  %v928_v39 = vpop.xlane.xlu0 %927 }
 0x24e   :  { %1991 = vrcp.f32 %v928_v39  ;;  %1815 = vmatmul.mubr.msk.bf16.vlgmr.msra.gmra.mrb[24].mxu1 %vm720_vm2, %v997_v0 }
 0x24f   :  { %v937_v7 = vpop.xlane.xlu1 %936  ;;  %1827 = vmatpush3.bf16.msra.mxu1 %v1896_v27  ;;  %1821 = vmatpush3.bf16.msra.mxu0 %v2432_v50 }
 0x250   :  { %v1984_v9 = vpop.eup %1983  ;;  %1993 = vrcp.f32 %v937_v7  ;;  %1828 = vmatprep.subr.bf16.mxu1 %v2438_v11 }
 0x251   :  { %v980_v52 = vmul.f32 %v1984_v9, %v2385_v49 }
 0x252   :  { %v1986_v2 = vpop.eup %1985 }
 0x253   :  { %v981_v32 = vmul.f32 %v1986_v2, %v2393_v29  ;;  %1829 = vmatpush3.bf16.msra.mxu1 %v2438_v11 }
 0x254   :  { %v1988_v30 = vpop.eup %1987 }
 0x255   :  { %v998_v35 = vpack.c.bf16 %v981_v32, %v980_v52  ;;  %v983_v8 = vmul.f32 %v1988_v30, %v2400_v57 }
 0x256   :  { %v1990_v36 = vpop.eup %1989 }
 0x257   :  { %1822 = vmatprep.mubr.msk.bf16.mxu0 %vm720_vm2, %v998_v35  ;;  %v984_v50 = vmul.f32 %v1990_v36, %v2404_v33 }
 0x258   :  { %v1992_v53 = vpop.eup %1991 }
 0x259   :  { %v982_v43 = vmul.f32 %v1992_v53, %v2408_v63  ;;  %v1000_v58 = vpack.c.bf16 %v984_v50, %v983_v8 }
 0x25a   :  { %v1994_v20 = vpop.eup %1993 }
 0x25b   :  { %v999_v34 = vpack.c.bf16 %v982_v43, %v982_v43  ;;  %v985_v49 = vmul.f32 %v1994_v20, %v2412_v41  ;;  %1830 = vmatprep.mubr.msk.bf16.mxu1 %vm720_vm2, %v1000_v58 }
 0x25d   :  { %v1001_v29 = vpack.c.bf16 %v985_v49, %v985_v49  ;;  %1823 = vmatmul.mubr.msk.bf16.vlgmr.msra.gmra.mrb[28].mxu0 %vm720_vm2, %v999_v34 }
 0x25f   :  { %1831 = vmatmul.mubr.msk.bf16.vlgmr.msra.gmra.mrb[28].mxu1 %vm720_vm2, %v1001_v29 }
 0x300   :  { %v1776_v11 = vpop.f32.mrb[16].mxu0 }
 0x301   :  { %1536 = vst.msk [vmem:[%s2605_s3 + $0x10] sm:$0x1] %vm1535_vm4, %v1776_v11  ;;  %v1057_v57 = vpop.f32.mrb[17].mxu0 }
 0x302   :  { %1533 = vst.msk [vmem:[%s2605_s3] sm:$0xff] %vm103_vm0, %v1057_v57  ;;  %v1777_v33 = vpop.f32.mrb[18].mxu0 }
 0x303   :  { %v1060_v63 = vpop.f32.mrb[19].mxu0 }
 0x304   :  { %v1784_v41 = vpop.f32.mrb[16].mxu1  ;;  %1534 = vst.msk [vmem:[%s2605_s3 + $0x8] sm:$0xff] %vm103_vm0, %v1060_v63 }
 0x305   :  { %1539 = vst.msk [vmem:[%s2605_s3 + $0x28] sm:$0x1] %vm1535_vm4, %v1784_v41  ;;  %v1123_v37 = vpop.f32.mrb[17].mxu1 }
 0x306   :  { %1537 = vst.msk [vmem:[%s2605_s3 + $0x18] sm:$0xff] %vm103_vm0, %v1123_v37  ;;  %v1785_v38 = vpop.f32.mrb[18].mxu1 }
 0x307   :  { %v1126_v40 = vpop.f32.mrb[19].mxu1 }
 0x308   :  { %1538 = vst.msk [vmem:[%s2605_s3 + $0x20] sm:$0xff] %vm103_vm0, %v1126_v40 }
 0x30d   :  { %v1792_v44 = vpop.f32.mrb[20].mxu0 }
 0x30e   :  { %1542 = vst.msk [vmem:[%s2605_s3 + $0x40] sm:$0x1] %vm1535_vm4, %v1792_v44  ;;  %v1189_v46 = vpop.f32.mrb[21].mxu0 }
 0x30f   :  { %1540 = vst.msk [vmem:[%s2605_s3 + $0x30] sm:$0xff] %vm103_vm0, %v1189_v46  ;;  %v1793_v26 = vpop.f32.mrb[22].mxu0 }
 0x310   :  { %v1192_v28 = vpop.f32.mrb[23].mxu0 }
 0x311   :  { %1541 = vst.msk [vmem:[%s2605_s3 + $0x38] sm:$0xff] %vm103_vm0, %v1192_v28  ;;  %v1800_v55 = vpop.f32.mrb[20].mxu1 }
 0x312   :  { %1545 = vst.msk [vmem:[%s2605_s3 + $0x58] sm:$0x1] %vm1535_vm4, %v1800_v55  ;;  %v1255_v59 = vpop.f32.mrb[21].mxu1 }
 0x313   :  { %1543 = vst.msk [vmem:[%s2605_s3 + $0x48] sm:$0xff] %vm103_vm0, %v1255_v59  ;;  %v1801_v47 = vpop.f32.mrb[22].mxu1 }
 0x314   :  { %v1258_v15 = vpop.f32.mrb[23].mxu1 }
 0x315   :  { %1544 = vst.msk [vmem:[%s2605_s3 + $0x50] sm:$0xff] %vm103_vm0, %v1258_v15 }
 0x31d   :  { %v1808_v61 = vpop.f32.mrb[24].mxu0 }
 0x31e   :  { %1548 = vst.msk [vmem:[%s2605_s3 + $0x70] sm:$0x1] %vm1535_vm4, %v1808_v61  ;;  %v1321_v4 = vpop.f32.mrb[25].mxu0 }
 0x31f   :  { %1546 = vst.msk [vmem:[%s2605_s3 + $0x60] sm:$0xff] %vm103_vm0, %v1321_v4  ;;  %v1809_v13 = vpop.f32.mrb[26].mxu0 }
 0x320   :  { %v1324_v62 = vpop.f32.mrb[27].mxu0 }
 0x321   :  { %1547 = vst.msk [vmem:[%s2605_s3 + $0x68] sm:$0xff] %vm103_vm0, %v1324_v62  ;;  %v1816_v16 = vpop.f32.mrb[24].mxu1 }
 0x322   :  { %1551 = vst.msk [vmem:[%s2605_s3 + $0x88] sm:$0x1] %vm1535_vm4, %v1816_v16  ;;  %v1387_v31 = vpop.f32.mrb[25].mxu1 }
 0x323   :  { %1549 = vst.msk [vmem:[%s2605_s3 + $0x78] sm:$0xff] %vm103_vm0, %v1387_v31  ;;  %v1817_v3 = vpop.f32.mrb[26].mxu1 }
 0x324   :  { %v1390_v6 = vpop.f32.mrb[27].mxu1 }
 0x325   :  { %1550 = vst.msk [vmem:[%s2605_s3 + $0x80] sm:$0xff] %vm103_vm0, %v1390_v6 }
 0x330   :  { %v1824_v24 = vpop.f32.mrb[28].mxu0 }
 0x331   :  { %1554 = vst.msk [vmem:[%s2605_s3 + $0xa0] sm:$0x1] %vm1535_vm4, %v1824_v24  ;;  %v1453_v27 = vpop.f32.mrb[29].mxu0 }
 0x332   :  { %1552 = vst.msk [vmem:[%s2605_s3 + $0x90] sm:$0xff] %vm103_vm0, %v1453_v27  ;;  %v1825_v56 = vpop.f32.mrb[30].mxu0  ;;  %v1832_v19 = vpop.f32.mrb[28].mxu1 }
 0x333   :  { %1557 = vst.msk [vmem:[%s2605_s3 + $0xb8] sm:$0x1] %vm1535_vm4, %v1832_v19  ;;  %v1456_v10 = vpop.f32.mrb[31].mxu0  ;;  %v1519_v21 = vpop.f32.mrb[29].mxu1 }
 0x334   :  { %1553 = vst.msk [vmem:[%s2605_s3 + $0x98] sm:$0xff] %vm103_vm0, %v1456_v10  ;;  %1555 = vst.msk [vmem:[%s2605_s3 + $0xa8] sm:$0xff] %vm103_vm0, %v1519_v21  ;;  %v1833_v12 = vpop.f32.mrb[30].mxu1 }
 0x335   :  { %v1522_v5 = vpop.f32.mrb[31].mxu1 }
 0x336   :  { %1556 = vst.msk [vmem:[%s2605_s3 + $0xb0] sm:$0xff] %vm103_vm0, %v1522_v5 }

// kernel: _lambda_.65
= control target key start
LH: loop header
LB: loop body
LE: loop exit
PB: predicated region body
PF: predicated region fallthrough
CT: control target
= control target key end

     0   :  { %s363_s0 = inlined_call_operand.vmem [shape: f32[2,128], index: 0, kind: input, shape index: {}]   ;;  %s364_s1 = inlined_call_operand.vmem [shape: f32[1,128], index: 1, kind: input, shape index: {}]   ;;  %s365_s2 = inlined_call_operand.vmem [shape: f32[1,128], index: 2, kind: input, shape index: {}]   ;;  %s366_s3 = inlined_call_operand.vmem [shape: bf16[128,128], index: 3, kind: input, shape index: {}]   ;;  %s367_s4 = inlined_call_operand.vmem [shape: f32[1,128], index: 4, kind: input, shape index: {}]   ;;  %s368_s5 = inlined_call_operand.vmem [shape: f32[1,128], index: 5, kind: input, shape index: {}]   ;;  %s369_s6 = inlined_call_operand.hbm [shape: f32[2,128], index: 6, kind: output, shape index: {}]  }
   0x1   :  { %v25_v0 = vld [vmem:[%s363_s0] sm:$0xff] }
   0x2   :  { %11 = vsyncpa [#allocation3], 0  ;;  %28 = vadd.xlane.f32.xlu0 %v25_v0  ;;  %v238_v1 = vld [vmem:[%s366_s3] sm:$0xff]   ;;  %v272_v2 = vmov 0.0   ;;  %v239_v3 = vld [vmem:[%s366_s3 + $0x8] sm:$0xff]   ;;  %vm273_vm0 = vmmov 0  }
   0x3   :  { %213 = vmatprep.subr.bf16.mxu0 %v272_v2  ;;  %v240_v8 = vld [vmem:[%s366_s3 + $0x10] sm:$0xff]   ;;  %v241_v9 = vld [vmem:[%s366_s3 + $0x18] sm:$0xff]   ;;  %v242_v10 = vld [vmem:[%s366_s3 + $0x20] sm:$0xff]   ;;  %229 = vmatprep.mubr.msk.bf16.mxu0 %vm273_vm0, %v272_v2 }
   0x4   :  { %214 = vmatpush3.bf16.msra.mxu0 %v238_v1  ;;  %v243_v11 = vld [vmem:[%s366_s3 + $0x28] sm:$0xff]   ;;  %v244_v12 = vld [vmem:[%s366_s3 + $0x30] sm:$0xff]   ;;  %v245_v13 = vld [vmem:[%s366_s3 + $0x38] sm:$0xff]  }
   0x5   :  { %215 = vmatprep.subr.bf16.mxu0 %v272_v2  ;;  %v192_v18 = vld [vmem:[%s364_s1] ss:$0 sm:$0xff] }
   0x6   :  { %v193_v20 = vld [vmem:[%s365_s2] ss:$0 sm:$0xff] }
   0x7   :  { %v202_v24 = vld [vmem:[%s367_s4] ss:$0 sm:$0xff] }
   0x8   :  { %216 = vmatpush3.bf16.msra.mxu0 %v239_v3  ;;  %v203_v25 = vld [vmem:[%s368_s5] ss:$0 sm:$0xff] }
   0x9   :  { %217 = vmatprep.subr.bf16.mxu0 %v272_v2 }
   0xc   :  { %218 = vmatpush3.bf16.msra.mxu0 %v240_v8 }
   0xd   :  { %219 = vmatprep.subr.bf16.mxu0 %v272_v2 }
  0x10   :  { %220 = vmatpush3.bf16.msra.mxu0 %v241_v9 }
  0x11   :  { %221 = vmatprep.subr.bf16.mxu0 %v272_v2 }
  0x14   :  { %222 = vmatpush3.bf16.msra.mxu0 %v242_v10 }
  0x15   :  { %223 = vmatprep.subr.bf16.mxu0 %v272_v2 }
  0x18   :  { %224 = vmatpush3.bf16.msra.mxu0 %v243_v11 }
  0x19   :  { %225 = vmatprep.subr.bf16.mxu0 %v272_v2 }
  0x1c   :  { %226 = vmatpush3.bf16.msra.mxu0 %v244_v12 }
  0x1d   :  { %227 = vmatprep.subr.bf16.mxu0 %v272_v2 }
  0x20   :  { %228 = vmatpush3.bf16.msra.mxu0 %v245_v13 }
  0x8f   :  { %v29_v4 = vpop.xlane.xlu0 %28 }
  0x90   :  { %v31_v5 = vmul.f32 0.0078125, %v29_v4 }
  0x92   :  { %v32_v6 = vsub.f32 %v25_v0, %v31_v5 }
  0x94   :  { %v33_v7 = vmul.f32 %v32_v6, %v32_v6 }
  0x96   :  { %34 = vadd.xlane.f32.xlu0 %v33_v7 }
 0x123   :  { %v35_v14 = vpop.xlane.xlu0 %34 }
 0x124   :  { %v36_v15 = vmul.f32 0.0078125, %v35_v14 }
 0x126   :  { %v37_v16 = vadd.f32 1e-05, %v36_v15 }
 0x128   :  { %246 = vrsqrt.f32 %v37_v16 }
 0x132   :  { %v247_v17 = vpop.eup %246 }
 0x133   :  { %v39_v19 = vmul.f32 %v247_v17, %v32_v6 }
 0x135   :  { %v46_v21 = vmul.f32 %v192_v18, %v39_v19 }
 0x137   :  { %v53_v22 = vadd.f32 %v193_v20, %v46_v21 }
 0x139   :  { %v72_v23 = vpack.c.bf16 %v53_v22, %v53_v22 }
 0x13b   :  { %230 = vmatmul.mubr.bf16.vlgmr.msra.gmra.mrb[0].mxu0 %v72_v23 }
 0x20e   :  { %v155_v26 = vpop.f32.mrb[0].mxu0 }
 0x20f   :  { %v167_v27 = vmul.f32 %v202_v24, %v155_v26  ;;  %v231_v28 = vpop.f32.mrb[1].mxu0 }
 0x210   :  { %v158_v29 = vpop.f32.mrb[2].mxu0 }
 0x211   :  { %v174_v30 = vadd.f32 %v203_v25, %v167_v27  ;;  %v232_v31 = vpop.f32.mrb[3].mxu0 }
 0x213   :  { %175 = vst [vmem:[#allocation2] sm:$0xff] %v174_v30 }
 0x214   :  { %180 = vsyncadd [#allocation3], 96  ;;  %s274_s1 = smov [#allocation2]  }
 0x215   :  { %s181_s2 = sshll.u32 %s274_s1, 4  ;;  %s182_s2 = int_to_ptr.vmem [resolvable:$true] %s181_s2 }
 0x216   :  { %s248_s21 = scalar_lea.vmem %s182_s2, 32  ;;  %s252_s22 = scalar_lea.vmem %s182_s2, 128 }
 0x217   :  { %p249_p0 = scmp.ne.s32.totalorder %s182_s2, %s248_s21  ;;  %p253_p1 = scmp.lt.s32.totalorder %s182_s2, %s182_s2 }
 0x218   :  { %p254_p2 = scmp.lt.s32.totalorder %s252_s22, %s248_s21 }
 0x21a   :  { %p255_p3 = por %p254_p2, %p253_p1 }
 0x21c   :  { %p256_p4 = pnand %p255_p3, %p249_p0 }
 0x21e   :  { %259 = shalt.err (!%p256_p4)
}
 0x21f   :  { %s260_s23 = scalar_lea.hbm %s369_s6, 32 }
 0x220   :  { %p261_p5 = scmp.ne.s32.totalorder %s369_s6, %s260_s23  ;;  %p264_p6 = scmp.lt.u32.totalorder %s260_s23, %s369_s6 }
 0x222   :  { %p266_p7 = pnand %p264_p6, %p261_p5 }
 0x224   :  { %269 = shalt.err (!%p266_p7)
}
 0x225   :  { %s275_s27 = smov 32   ;;  %s276_s28 = smov 2  }
 0x226   :  { %187 = dma.vmem_to_hbm [thread:$0]  %s182_s2, 32, %s369_s6, [#allocation3], %s275_s27, %s275_s27, %s276_s28  }
 0x227   :  { %270 = dma.done.wait [#allocation3], 128  }
 0x228   :  { %271 = vsyncadd [#allocation3], 4294967168 }
 0x229   :  { %191 = vsyncpa [#allocation3], 1 }

// kernel: _lambda_.48
= control target key start
LH: loop header
LB: loop body
LE: loop exit
PB: predicated region body
PF: predicated region fallthrough
CT: control target
= control target key end

     0   :  { %9 = vsyncpa [#allocation3], 0  ;;  %v234_v1 = vmov 0.0   ;;  %vm235_vm0 = vmmov 0   ;;  %s309_s0 = inlined_call_operand.vmem [shape: f32[2,128], index: 0, kind: input, shape index: {}]   ;;  %s310_s1 = inlined_call_operand.vmem [shape: bf16[128,128], index: 1, kind: input, shape index: {}]   ;;  %s311_s2 = inlined_call_operand.vmem [shape: f32[1,128], index: 2, kind: input, shape index: {}]   ;;  %s312_s3 = inlined_call_operand.vmem [shape: f32[1,128], index: 3, kind: input, shape index: {}]   ;;  %s313_s4 = inlined_call_operand.hbm [shape: f32[2,128], index: 4, kind: output, shape index: {}]  }
   0x1   :  { %v202_v0 = vld [vmem:[%s310_s1] sm:$0xff]   ;;  %177 = vmatprep.subr.bf16.mxu0 %v234_v1  ;;  %v203_v2 = vld [vmem:[%s310_s1 + $0x8] sm:$0xff]   ;;  %193 = vmatprep.mubr.msk.bf16.mxu0 %vm235_vm0, %v234_v1  ;;  %v204_v3 = vld [vmem:[%s310_s1 + $0x10] sm:$0xff]  }
   0x2   :  { %178 = vmatpush3.bf16.msra.mxu0 %v202_v0  ;;  %v205_v4 = vld [vmem:[%s310_s1 + $0x18] sm:$0xff]   ;;  %v206_v5 = vld [vmem:[%s310_s1 + $0x20] sm:$0xff]   ;;  %v207_v6 = vld [vmem:[%s310_s1 + $0x28] sm:$0xff]  }
   0x3   :  { %179 = vmatprep.subr.bf16.mxu0 %v234_v1  ;;  %v208_v7 = vld [vmem:[%s310_s1 + $0x30] sm:$0xff]   ;;  %v209_v8 = vld [vmem:[%s310_s1 + $0x38] sm:$0xff]   ;;  %v19_v9 = vld [vmem:[%s309_s0] sm:$0xff] }
   0x4   :  { %v38_v10 = vpack.c.bf16 %v19_v9, %v19_v9  ;;  %v166_v11 = vld [vmem:[%s311_s2] ss:$0 sm:$0xff] }
   0x5   :  { %v167_v12 = vld [vmem:[%s312_s3] ss:$0 sm:$0xff] }
   0x6   :  { %180 = vmatpush3.bf16.msra.mxu0 %v203_v2 }
   0x7   :  { %181 = vmatprep.subr.bf16.mxu0 %v234_v1 }
   0xa   :  { %182 = vmatpush3.bf16.msra.mxu0 %v204_v3 }
   0xb   :  { %183 = vmatprep.subr.bf16.mxu0 %v234_v1 }
   0xe   :  { %184 = vmatpush3.bf16.msra.mxu0 %v205_v4 }
   0xf   :  { %185 = vmatprep.subr.bf16.mxu0 %v234_v1 }
  0x12   :  { %186 = vmatpush3.bf16.msra.mxu0 %v206_v5 }
  0x13   :  { %187 = vmatprep.subr.bf16.mxu0 %v234_v1 }
  0x16   :  { %188 = vmatpush3.bf16.msra.mxu0 %v207_v6 }
  0x17   :  { %189 = vmatprep.subr.bf16.mxu0 %v234_v1 }
  0x1a   :  { %190 = vmatpush3.bf16.msra.mxu0 %v208_v7 }
  0x1b   :  { %191 = vmatprep.subr.bf16.mxu0 %v234_v1 }
  0x1e   :  { %192 = vmatpush3.bf16.msra.mxu0 %v209_v8 }
  0x21   :  { %194 = vmatmul.mubr.bf16.vlgmr.msra.gmra.mrb[0].mxu0 %v38_v10 }
  0xf4   :  { %v121_v13 = vpop.f32.mrb[0].mxu0 }
  0xf5   :  { %v133_v14 = vmul.f32 %v166_v11, %v121_v13  ;;  %v195_v15 = vpop.f32.mrb[1].mxu0 }
  0xf6   :  { %v124_v16 = vpop.f32.mrb[2].mxu0 }
  0xf7   :  { %v140_v17 = vadd.f32 %v167_v12, %v133_v14  ;;  %v196_v18 = vpop.f32.mrb[3].mxu0 }
  0xf9   :  { %141 = vst [vmem:[#allocation2] sm:$0xff] %v140_v17 }
  0xfa   :  { %146 = vsyncadd [#allocation3], 96  ;;  %s236_s0 = smov [#allocation2]  }
  0xfb   :  { %s147_s1 = sshll.u32 %s236_s0, 4  ;;  %s148_s1 = int_to_ptr.vmem [resolvable:$true] %s147_s1 }
  0xfc   :  { %s210_s11 = scalar_lea.vmem %s148_s1, 32  ;;  %s214_s12 = scalar_lea.vmem %s148_s1, 128 }
  0xfd   :  { %p211_p0 = scmp.ne.s32.totalorder %s148_s1, %s210_s11  ;;  %p215_p1 = scmp.lt.s32.totalorder %s148_s1, %s148_s1 }
  0xfe   :  { %p216_p2 = scmp.lt.s32.totalorder %s214_s12, %s210_s11 }
 0x100   :  { %p217_p3 = por %p216_p2, %p215_p1 }
 0x102   :  { %p218_p4 = pnand %p217_p3, %p211_p0 }
 0x104   :  { %221 = shalt.err (!%p218_p4)
}
 0x105   :  { %s222_s13 = scalar_lea.hbm %s313_s4, 32 }
 0x106   :  { %p223_p5 = scmp.ne.s32.totalorder %s313_s4, %s222_s13  ;;  %p226_p6 = scmp.lt.u32.totalorder %s222_s13, %s313_s4 }
 0x108   :  { %p228_p7 = pnand %p226_p6, %p223_p5 }
 0x10a   :  { %231 = shalt.err (!%p228_p7)
}
 0x10b   :  { %s237_s18 = smov 32   ;;  %s238_s19 = smov 2  }
 0x10c   :  { %153 = dma.vmem_to_hbm [thread:$0]  %s148_s1, 32, %s313_s4, [#allocation3], %s237_s18, %s237_s18, %s238_s19  }
 0x10d   :  { %232 = dma.done.wait [#allocation3], 128  }
 0x10e   :  { %233 = vsyncadd [#allocation3], 4294967168 }
 0x10f   :  { %157 = vsyncpa [#allocation3], 1 }

// kernel: _lambda_.59
= control target key start
LH: loop header
LB: loop body
LE: loop exit
PB: predicated region body
PF: predicated region fallthrough
CT: control target
= control target key end

     0   :  { %s492_s1 = inlined_call_operand.vmem [shape: bf16[256,128], index: 1, kind: input, shape index: {}]   ;;  %s493_s0 = inlined_call_operand.vmem [shape: f32[34,256], index: 0, kind: input, shape index: {}]   ;;  %s494_s2 = inlined_call_operand.vmem [shape: f32[1,128], index: 2, kind: input, shape index: {}]   ;;  %s495_s3 = inlined_call_operand.vmem [shape: f32[1,128], index: 3, kind: input, shape index: {}]   ;;  %s496_s4 = inlined_call_operand.vmem [shape: f32[34,128], index: 4, kind: input, shape index: {}]   ;;  %s497_s5 = inlined_call_operand.vmem [shape: f32[34,128], index: 5, kind: output, shape index: {}]  }
   0x1   :  { %v332_v0 = vld [vmem:[%s492_s1 + $0x40] sm:$0xff]   ;;  %v334_v2 = vld [vmem:[%s492_s1 + $0x48] sm:$0xff]   ;;  %v336_v4 = vld [vmem:[%s492_s1 + $0x50] sm:$0xff]  }
   0x2   :  { %v333_v1 = vld [vmem:[%s492_s1] sm:$0xff]   ;;  %316 = vmatprep.subr.bf16.mxu1 %v332_v0  ;;  %282 = vmatprep.subr.bf16.mxu0 %v332_v0  ;;  %v335_v3 = vld [vmem:[%s492_s1 + $0x8] sm:$0xff]   ;;  %v337_v5 = vld [vmem:[%s492_s1 + $0x10] sm:$0xff]  }
   0x3   :  { %324 = vmatpush3.bf16.msra.mxu1 %v333_v1  ;;  %283 = vmatpush3.bf16.msra.mxu0 %v333_v1  ;;  %v338_v6 = vld [vmem:[%s492_s1 + $0x58] sm:$0xff]   ;;  %v340_v8 = vld [vmem:[%s492_s1 + $0x60] sm:$0xff]   ;;  %v342_v10 = vld [vmem:[%s492_s1 + $0x68] sm:$0xff]  }
   0x4   :  { %317 = vmatprep.subr.bf16.mxu1 %v334_v2  ;;  %284 = vmatprep.subr.bf16.mxu0 %v334_v2  ;;  %v339_v7 = vld [vmem:[%s492_s1 + $0x18] sm:$0xff]   ;;  %v341_v9 = vld [vmem:[%s492_s1 + $0x20] sm:$0xff]   ;;  %v26_v11 = vld [vmem:[%s493_s0 + $0x28] sm:$0xff] }
   0x5   :  { %v28_v12 = vld [vmem:[%s493_s0 + $0x38] sm:$0xff]  ;;  %v22_v14 = vld [vmem:[%s493_s0 + $0x8] sm:$0xff]  ;;  %v344_v18 = vld [vmem:[%s492_s1 + $0x70] sm:$0xff]  }
   0x6   :  { %v68_v13 = vpack.c.bf16 %v28_v12, %v26_v11  ;;  %v24_v15 = vld [vmem:[%s493_s0 + $0x18] sm:$0xff]  ;;  %v343_v17 = vld [vmem:[%s492_s1 + $0x28] sm:$0xff]   ;;  %v345_v19 = vld [vmem:[%s492_s1 + $0x30] sm:$0xff]  }
   0x7   :  { %325 = vmatpush3.bf16.msra.mxu1 %v335_v3  ;;  %285 = vmatpush3.bf16.msra.mxu0 %v335_v3  ;;  %v66_v16 = vpack.c.bf16 %v24_v15, %v22_v14  ;;  %v346_v20 = vld [vmem:[%s492_s1 + $0x78] sm:$0xff]   ;;  %v25_v22 = vld [vmem:[%s493_s0 + $0x20] sm:$0xff]  ;;  %v27_v23 = vld [vmem:[%s493_s0 + $0x30] sm:$0xff] }
   0x8   :  { %318 = vmatprep.subr.bf16.mxu1 %v336_v4  ;;  %286 = vmatprep.subr.bf16.mxu0 %v336_v4  ;;  %v347_v21 = vld [vmem:[%s492_s1 + $0x38] sm:$0xff]   ;;  %v21_v24 = vld [vmem:[%s493_s0] sm:$0xff]  ;;  %v23_v25 = vld [vmem:[%s493_s0 + $0x10] sm:$0xff]  ;;  %v67_v27 = vpack.c.bf16 %v27_v23, %v25_v22 }
   0x9   :  { %207 = vmatprep.mubr.bf16.mxu1 %v68_v13  ;;  %199 = vmatprep.mubr.bf16.mxu0 %v66_v16  ;;  %v30_v26 = vld [vmem:[%s493_s0 + $0x48] sm:$0xff]  ;;  %v65_v28 = vpack.c.bf16 %v23_v25, %v21_v24  ;;  %v29_v30 = vld [vmem:[%s493_s0 + $0x40] sm:$0xff]  ;;  %v247_v48 = vld [vmem:[%s496_s4 + $0x10] sm:$0xff] }
   0xa   :  { %v70_v29 = vpack.c.bf16 %v30_v26, %v30_v26  ;;  %v69_v31 = vpack.c.bf16 %v29_v30, %v29_v30  ;;  %v280_v34 = vld [vmem:[%s494_s2] ss:$0 sm:$0xff]  ;;  %v248_v54 = vld [vmem:[%s496_s4 + $0x18] sm:$0xff]  ;;  %v246_v55 = vld [vmem:[%s496_s4 + $0x8] sm:$0xff] }
   0xb   :  { %326 = vmatpush3.bf16.msra.mxu1 %v337_v5  ;;  %287 = vmatpush3.bf16.msra.mxu0 %v337_v5  ;;  %v281_v41 = vld [vmem:[%s495_s3] ss:$0 sm:$0xff] }
   0xc   :  { %319 = vmatprep.subr.bf16.mxu1 %v338_v6  ;;  %288 = vmatprep.subr.bf16.mxu0 %v338_v6  ;;  %v245_v49 = vld [vmem:[%s496_s4] sm:$0xff] }
   0xd   :  { %v249_v4 = vld [vmem:[%s496_s4 + $0x20] sm:$0xff] }
   0xf   :  { %327 = vmatpush3.bf16.msra.mxu1 %v339_v7  ;;  %289 = vmatpush3.bf16.msra.mxu0 %v339_v7 }
  0x10   :  { %320 = vmatprep.subr.bf16.mxu1 %v340_v8  ;;  %290 = vmatprep.subr.bf16.mxu0 %v340_v8 }
  0x13   :  { %328 = vmatpush3.bf16.msra.mxu1 %v341_v9  ;;  %291 = vmatpush3.bf16.msra.mxu0 %v341_v9 }
  0x14   :  { %321 = vmatprep.subr.bf16.mxu1 %v342_v10  ;;  %292 = vmatprep.subr.bf16.mxu0 %v342_v10 }
  0x17   :  { %329 = vmatpush3.bf16.msra.mxu1 %v343_v17  ;;  %293 = vmatpush3.bf16.msra.mxu0 %v343_v17 }
  0x18   :  { %322 = vmatprep.subr.bf16.mxu1 %v344_v18  ;;  %294 = vmatprep.subr.bf16.mxu0 %v344_v18 }
  0x1b   :  { %330 = vmatpush3.bf16.msra.mxu1 %v345_v19  ;;  %295 = vmatpush3.bf16.msra.mxu0 %v345_v19 }
  0x1c   :  { %323 = vmatprep.subr.bf16.mxu1 %v346_v20  ;;  %296 = vmatprep.subr.bf16.mxu0 %v346_v20 }
  0x1f   :  { %331 = vmatpush3.bf16.msra.mxu1 %v347_v21  ;;  %297 = vmatpush3.bf16.msra.mxu0 %v347_v21 }
  0x22   :  { %208 = vmatmul.mubr.bf16.vlgmr.msra.gmra.mrb[0].mxu1 %v67_v27  ;;  %200 = vmatmul.mubr.bf16.vlgmr.msra.gmra.mrb[0].mxu0 %v65_v28 }
  0x23   :  { %215 = vmatprep.mubr.bf16.mxu1 %v70_v29 }
  0x2a   :  { %216 = vmatmul.mubr.bf16.gmra.mrb[4].mxu1 %v69_v31 }
  0xf5   :  { %v304_v32 = vpop.f32.mrb[0].mxu1  ;;  %v298_v33 = vpop.f32.mrb[0].mxu0 }
  0xf6   :  { %v305_v35 = vpop.f32.mrb[1].mxu1  ;;  %v299_v36 = vpop.f32.mrb[1].mxu0 }
  0xf7   :  { %v306_v37 = vadd.f32 %v305_v35, %v304_v32  ;;  %v307_v38 = vpop.f32.mrb[2].mxu1  ;;  %v300_v39 = vadd.f32 %v299_v36, %v298_v33  ;;  %v301_v40 = vpop.f32.mrb[2].mxu0 }
  0xf8   :  { %v308_v42 = vpop.f32.mrb[3].mxu1  ;;  %v302_v43 = vpop.f32.mrb[3].mxu0 }
  0xf9   :  { %v231_v44 = vmul.f32 %v306_v37, %v280_v34  ;;  %v309_v45 = vadd.f32 %v308_v42, %v307_v38  ;;  %v229_v46 = vmul.f32 %v300_v39, %v280_v34  ;;  %v303_v47 = vadd.f32 %v302_v43, %v301_v40 }
  0xfb   :  { %v242_v50 = vadd.f32 %v281_v41, %v231_v44  ;;  %v232_v51 = vmul.f32 %v309_v45, %v280_v34  ;;  %v240_v52 = vadd.f32 %v281_v41, %v229_v46  ;;  %v230_v53 = vmul.f32 %v303_v47, %v280_v34 }
  0xfd   :  { %v252_v56 = vadd.f32 %v247_v48, %v242_v50  ;;  %v243_v57 = vadd.f32 %v281_v41, %v232_v51  ;;  %v250_v58 = vadd.f32 %v245_v49, %v240_v52  ;;  %v241_v59 = vadd.f32 %v281_v41, %v230_v53  ;;  %v310_v60 = vpop.f32.mrb[4].mxu1 }
  0xfe   :  { %v311_v61 = vpop.f32.mrb[5].mxu1 }
  0xff   :  { %257 = vst [vmem:[%s497_s5 + $0x10] sm:$0xff] %v252_v56  ;;  %v253_v62 = vadd.f32 %v248_v54, %v243_v57  ;;  %255 = vst [vmem:[%s497_s5] sm:$0xff] %v250_v58  ;;  %v251_v63 = vadd.f32 %v246_v55, %v241_v59  ;;  %v312_v0 = vadd.f32 %v311_v61, %v310_v60  ;;  %v313_v1 = vpop.f32.mrb[6].mxu1 }
 0x100   :  { %v314_v2 = vpop.f32.mrb[7].mxu1 }
 0x101   :  { %258 = vst [vmem:[%s497_s5 + $0x18] sm:$0xff] %v253_v62  ;;  %256 = vst [vmem:[%s497_s5 + $0x8] sm:$0xff] %v251_v63  ;;  %v233_v3 = vmul.f32 %v312_v0, %v280_v34 }
 0x103   :  { %v244_v5 = vadd.f32 %v281_v41, %v233_v3 }
 0x105   :  { %v254_v6 = vadd.f32 %v249_v4, %v244_v5 }
 0x107   :  { %259 = vst [vmem:[%s497_s5 + $0x20] sm:$0xff] %v254_v6 }

</bundles_post_ra>
